<compile_context>
chip_gen: v7x
topology: tpu7x:2x2x1
jax: 0.10.0
libtpu: 0.0.40
codegen_flags: <defaults>
</compile_context>

<pallas_src>
import functools

import jax
import jax.numpy as jnp
from jax.experimental import pallas as pl
from jax.experimental.pallas import tpu as pltpu


# ----------------------------------------------------------------------------
# Fused UVBlock kernel
# ----------------------------------------------------------------------------

def _uv_block_kernel(x_ref, w_ref, b_ref, out_ref, slab_ref, *,
                     H, W, num_feat, c_pad, kins):
    HW = H * W
    base = 2 * W                       # first image row inside the slab
    slope = jnp.float32(0.2)

    # (Re)initialize the slab for this batch element: zero the two halo row-blocks
    # and drop x (already channel-padded to c_pad with zeros) into the image region.
    # Halos must be re-zeroed every grid step: under megacore "parallel" each core has
    # its own scratch, so a pl.when(program_id == 0) guard would be unsafe.
    halo = jnp.zeros((2 * W, c_pad), slab_ref.dtype)
    slab_ref[0:base, :] = halo
    slab_ref[base + HW:base + HW + 2 * W, :] = halo
    slab_ref[base:base + HW, :] = x_ref[0]

    # Column masks for the horizontal taps: the flattened slab has no W halo, so a
    # +-1 flat shift wraps into the neighbouring image row and must be zeroed.
    col = jax.lax.broadcasted_iota(jnp.int32, (HW, 1), 0) % W
    ok_left = col > 0                  # tap dx = -1 invalid at w == 0
    ok_right = col < (W - 1)           # tap dx = +1 invalid at w == W - 1

    def conv(k):
        """3x3 conv over the current slab contents -> (HW, c_pad) f32 (bias added)."""
        kin = kins[k]                  # static per-conv padded input-channel count
        acc = None
        for ky in range(3):
            s = (ky + 1) * W           # flat offset of tap row ky at dx = 0
            left = jnp.where(ok_left, slab_ref[s - 1:s - 1 + HW, :kin], 0.0)
            center = slab_ref[s:s + HW, :kin]
            right = jnp.where(ok_right, slab_ref[s + 1:s + 1 + HW, :kin], 0.0)
            win = jnp.concatenate([left, center, right], axis=-1)      # (HW, 3*kin)
            p = jnp.dot(win.astype(jnp.bfloat16), w_ref[k, ky, :3 * kin, :],
                        preferred_element_type=jnp.float32)
            acc = p if acc is None else acc + p
        return acc + b_ref[k]

    # conv1..conv4: LeakyReLU(0.2), then append to the dense feature stack.  Packed
    # weights/biases are zero outside the destination lanes, so the activation is
    # exactly zero there and the add leaves existing channels bit-identical.
    for k in range(4):
        act = conv(k)
        act = jnp.where(act >= 0.0, act, act * slope)
        slab_ref[base:base + HW, :] = slab_ref[base:base + HW, :] + act

    # conv5: out = conv5(cat(x, x1..x4)) * 0.2 + x   (no activation).  Lanes
    # [0, num_feat) of the slab interior still hold x exactly in f32 (residual).
    y = conv(4) * slope + slab_ref[base:base + HW, :]
    out_ref[0] = y[:, :num_feat]


# ----------------------------------------------------------------------------
# Parameter packing + wrapper
# ----------------------------------------------------------------------------

def _pack_params(params, num_feat, num_grow_ch, c_pad, kins):
    """Embed the 5 conv weights/biases into lane-dense, lane-placed tensors.

    Weights -> (5, 3, 3*c_pad, c_pad) bf16.  For conv k only the first 3*kins[k]
    rows are used: rows are [kx0 | kx1 | kx2] input-channel blocks of stride kins[k],
    columns place the real output channels at their destination lanes inside the
    slab.  Biases -> (5, 1, c_pad) f32 with the same lane placement.
    """
    n_conv = len(params)
    w_pack = jnp.zeros((n_conv, 3, 3 * c_pad, c_pad), jnp.float32)
    b_pack = jnp.zeros((n_conv, 1, c_pad), jnp.float32)
    for k, (w, b) in enumerate(params):
        cin, cout = w.shape[2], w.shape[3]
        kin = kins[k]
        off = 0 if k == n_conv - 1 else num_feat + k * num_grow_ch
        for ky in range(3):
            for kx in range(3):
                w_pack = w_pack.at[k, ky,
                                   kx * kin:kx * kin + cin,
                                   off:off + cout].set(w[ky, kx])
        b_pack = b_pack.at[k, 0, off:off + cout].set(b)
    return w_pack.astype(jnp.bfloat16), b_pack


@jax.jit
def uv_block(x, params):
    """x: (N, H, W, num_feat) f32; params: [(w_hwio, b), ...] x5.  Returns NHWC f32."""
    N, H, W, num_feat = x.shape
    num_grow_ch = params[0][0].shape[-1]
    c_total = num_feat + 4 * num_grow_ch
    c_pad = ((c_total + 127) // 128) * 128
    HW = H * W

    # Per-conv padded input-channel counts (conv k sees the first kins[k] slab lanes).
    kins = tuple(
        min(c_pad, ((num_feat + k * num_grow_ch + 127) // 128) * 128)
        for k in range(4)
    ) + (c_pad,)

    # Flatten spatial and pad channels once so all in-kernel stores are full-lane.
    x_flat = jnp.pad(x.reshape(N, HW, num_feat),
                     ((0, 0), (0, 0), (0, c_pad - num_feat)))
    w_pack, b_pack = _pack_params(params, num_feat, num_grow_ch, c_pad, kins)

    kernel = functools.partial(_uv_block_kernel, H=H, W=W,
                               num_feat=num_feat, c_pad=c_pad, kins=kins)
    out_flat = pl.pallas_call(
        kernel,
        out_shape=jax.ShapeDtypeStruct((N, HW, num_feat), jnp.float32),
        grid=(N,),
        in_specs=[
            pl.BlockSpec((1, HW, c_pad), lambda n: (n, 0, 0)),
            pl.BlockSpec((5, 3, 3 * c_pad, c_pad), lambda n: (0, 0, 0, 0)),
            pl.BlockSpec((5, 1, c_pad), lambda n: (0, 0, 0)),
        ],
        out_specs=pl.BlockSpec((1, HW, num_feat), lambda n: (n, 0, 0)),
        scratch_shapes=[pltpu.VMEM(((H + 4) * W, c_pad), jnp.float32)],
        compiler_params=pltpu.CompilerParams(
            dimension_semantics=("parallel",),
            vmem_limit_bytes=32 * 1024 * 1024,
        ),
    )(x_flat, w_pack, b_pack)
    return out_flat.reshape(N, H, W, num_feat)


# ----------------------------------------------------------------------------
# Pure-JAX reference (correctness check only)
# ----------------------------------------------------------------------------

def _conv_ref(x, w, b):
    y = jax.lax.conv_general_dilated(
        x, w, window_strides=(1, 1), padding="SAME",
        dimension_numbers=("NHWC", "HWIO", "NHWC"),
        preferred_element_type=jnp.float32,
        precision=jax.lax.Precision.HIGHEST)
    return y + b.reshape(1, 1, 1, -1)


def uv_block_ref(x, params):
    slope = 0.2
    lrelu = lambda v: jnp.where(v >= 0, v, v * slope)
    (w1, b1), (w2, b2), (w3, b3), (w4, b4), (w5, b5) = params
    x1 = lrelu(_conv_ref(x, w1, b1))
    x2 = lrelu(_conv_ref(jnp.concatenate([x, x1], axis=-1), w2, b2))
    x3 = lrelu(_conv_ref(jnp.concatenate([x, x1, x2], axis=-1), w3, b3))
    x4 = lrelu(_conv_ref(jnp.concatenate([x, x1, x2, x3], axis=-1), w4, b4))
    x5 = _conv_ref(jnp.concatenate([x, x1, x2, x3, x4], axis=-1), w5, b5)
    return x5 * 0.2 + x


# ----------------------------------------------------------------------------
# Deterministic parameter init: kaiming_normal_ (fan_in, gain sqrt(2)) * 0.1, bias 0
# — matches default_init_weights([...], 0.1) in the PyTorch module.
# ----------------------------------------------------------------------------

def init_params(key, num_feat, num_grow_ch):
    cins = [num_feat,
            num_feat + num_grow_ch,
            num_feat + 2 * num_grow_ch,
            num_feat + 3 * num_grow_ch,
            num_feat + 4 * num_grow_ch]
    couts = [num_grow_ch] * 4 + [num_feat]
    params = []
    for cin, cout in zip(cins, couts):
        key, wk = jax.random.split(key)
        fan_in = cin * 3 * 3
        std = (2.0 / fan_in) ** 0.5
        w = jax.random.normal(wk, (3, 3, cin, cout), jnp.float32) * std * 0.1
        b = jnp.zeros((cout,), jnp.float32)
        params.append((w, b))
    return params


if __name__ == "__main__":
    num_feat, num_grow_ch = 8, 4
    N, H, W = 2, 16, 16

    key = jax.random.PRNGKey(0)
    key, xk = jax.random.split(key)
    x = jax.random.normal(xk, (N, H, W, num_feat), jnp.float32)  # NHWC
    params = init_params(key, num_feat, num_grow_ch)

    out = jax.block_until_ready(uv_block(x, params))
    ref = uv_block_ref(x, params)

    assert out.shape == (N, H, W, num_feat)
    max_err = float(jnp.max(jnp.abs(out - ref)))
    # Kernel uses bf16 MXU operands with f32 accumulation; reference is f32 HIGHEST.
    assert jnp.allclose(out, ref, atol=5e-3, rtol=5e-3), max_err

    print("KERNEL_OK")
</pallas_src>

<mosaic_0001>
module attributes {stable_mosaic.version = 11 : i64} {
  func.func @_uv_block_kernel(%arg0: i32, %arg1: memref<1x256x128xf32, #tpu.memory_space<vmem>>, %arg2: memref<5x3x384x128xbf16, #tpu.memory_space<vmem>>, %arg3: memref<5x1x128xf32, #tpu.memory_space<vmem>>, %arg4: memref<1x256x8xf32, #tpu.memory_space<vmem>>, %arg5: memref<320x128xf32, #tpu.memory_space<vmem>>) attributes {dimension_semantics = [#tpu.dimension_semantics<parallel>], iteration_bounds = array<i64: 2>, scalar_prefetch = 0 : i64, scratch_operands = 1 : i64, tpu.core_type = #tpu.core_type<tc>, window_params = [{transform_indices = @transform_0, window_bounds = array<i64: 1, 256, 128>}, {pipeline_mode = #tpu.pipeline_mode<synchronous>, transform_indices = @transform_1, window_bounds = array<i64: 5, 3, 384, 128>}, {pipeline_mode = #tpu.pipeline_mode<synchronous>, transform_indices = @transform_2, window_bounds = array<i64: 5, 1, 128>}, {transform_indices = @transform_3, window_bounds = array<i64: 1, 256, 8>}]} {
    %cst = arith.constant 0.000000e+00 : f32
    %0 = vector.broadcast %cst : f32 to vector<32x128xf32>
    %c0 = arith.constant 0 : index
    %c0_0 = arith.constant 0 : index
    %1 = vector.load %arg5[%c0, %c0_0] : memref<320x128xf32, #tpu.memory_space<vmem>>, vector<32x128xf32>
    tpu.vector_store %arg5[%c0, %c0_0], %0 {strides = array<i32>} : memref<320x128xf32, #tpu.memory_space<vmem>>, vector<32x128xf32>,
    %c288 = arith.constant 288 : index
    %c0_1 = arith.constant 0 : index
    %2 = vector.load %arg5[%c288, %c0_1] : memref<320x128xf32, #tpu.memory_space<vmem>>, vector<32x128xf32>
    tpu.vector_store %arg5[%c288, %c0_1], %0 {strides = array<i32>} : memref<320x128xf32, #tpu.memory_space<vmem>>, vector<32x128xf32>,
    %c0_2 = arith.constant 0 : index
    %c0_3 = arith.constant 0 : index
    %c0_4 = arith.constant 0 : index
    %3 = vector.load %arg1[%c0_2, %c0_3, %c0_4] : memref<1x256x128xf32, #tpu.memory_space<vmem>>, vector<1x256x128xf32>
    %4 = vector.shape_cast %3 : vector<1x256x128xf32> to vector<256x128xf32>
    %c32 = arith.constant 32 : index
    %c0_5 = arith.constant 0 : index
    %5 = vector.load %arg5[%c32, %c0_5] : memref<320x128xf32, #tpu.memory_space<vmem>>, vector<256x128xf32>
    tpu.vector_store %arg5[%c32, %c0_5], %4 {strides = array<i32>} : memref<320x128xf32, #tpu.memory_space<vmem>>, vector<256x128xf32>,
    %6 = tpu.iota {dimensions = array<i32: 0>} : vector<256x1xi32>
    %c16_i32 = arith.constant 16 : i32
    %c0_i32 = arith.constant 0 : i32
    %7 = arith.cmpi eq, %c16_i32, %c0_i32 : i32
    %c1_i32 = arith.constant 1 : i32
    %8 = arith.select %7, %c1_i32, %c16_i32 : i32
    %9 = vector.broadcast %8 : i32 to vector<256x1xi32>
    %10 = arith.remsi %6, %9 : vector<256x1xi32>
    %c0_i32_6 = arith.constant 0 : i32
    %11 = vector.broadcast %c0_i32_6 : i32 to vector<256x1xi32>
    %12 = arith.cmpi ne, %10, %11 : vector<256x1xi32>
    %c0_i32_7 = arith.constant 0 : i32
    %13 = vector.broadcast %c0_i32_7 : i32 to vector<256x1xi32>
    %14 = arith.cmpi slt, %10, %13 : vector<256x1xi32>
    %c0_i32_8 = arith.constant 0 : i32
    %15 = arith.cmpi slt, %8, %c0_i32_8 : i32
    %16 = vector.broadcast %15 : i1 to vector<256x1xi1>
    %17 = vector.broadcast %16 : vector<256x1xi1> to vector<256x1xi1>
    %18 = arith.xori %14, %17 : vector<256x1xi1>
    %19 = arith.andi %18, %12 : vector<256x1xi1>
    %20 = vector.broadcast %8 : i32 to vector<256x1xi32>
    %21 = arith.addi %10, %20 : vector<256x1xi32>
    %22 = arith.select %19, %21, %10 : vector<256x1xi1>, vector<256x1xi32>
    %c0_i32_9 = arith.constant 0 : i32
    %23 = vector.broadcast %c0_i32_9 : i32 to vector<256x1xi32>
    %24 = arith.cmpi sgt, %22, %23 : vector<256x1xi32>
    %c15_i32 = arith.constant 15 : i32
    %25 = vector.broadcast %c15_i32 : i32 to vector<256x1xi32>
    %26 = arith.cmpi slt, %22, %25 : vector<256x1xi32>
    %c15 = arith.constant 15 : index
    %c0_10 = arith.constant 0 : index
    %27 = vector.load %arg5[%c15, %c0_10] : memref<320x128xf32, #tpu.memory_space<vmem>>, vector<256x128xf32>
    %cst_11 = arith.constant 0.000000e+00 : f32
    %28 = vector.shape_cast %24 : vector<256x1xi1> to vector<256x1xi1>
    %29 = vector.broadcast %28 : vector<256x1xi1> to vector<256x128xi1>
    %30 = vector.broadcast %cst_11 : f32 to vector<256x128xf32>
    %31 = arith.select %29, %27, %30 : vector<256x128xi1>, vector<256x128xf32>
    %c16 = arith.constant 16 : index
    %c0_12 = arith.constant 0 : index
    %32 = vector.load %arg5[%c16, %c0_12] : memref<320x128xf32, #tpu.memory_space<vmem>>, vector<256x128xf32>
    %c17 = arith.constant 17 : index
    %c0_13 = arith.constant 0 : index
    %33 = vector.load %arg5[%c17, %c0_13] : memref<320x128xf32, #tpu.memory_space<vmem>>, vector<256x128xf32>
    %cst_14 = arith.constant 0.000000e+00 : f32
    %34 = vector.shape_cast %26 : vector<256x1xi1> to vector<256x1xi1>
    %35 = vector.broadcast %34 : vector<256x1xi1> to vector<256x128xi1>
    %36 = vector.broadcast %cst_14 : f32 to vector<256x128xf32>
    %37 = arith.select %35, %33, %36 : vector<256x128xi1>, vector<256x128xf32>
    %38 = tpu.concatenate %31, %32, %37 in 1 : vector<256x128xf32>, vector<256x128xf32>, vector<256x128xf32> -> vector<256x384xf32>
    %39 = arith.truncf %38 : vector<256x384xf32> to vector<256x384xbf16>
    %c0_15 = arith.constant 0 : index
    %c0_16 = arith.constant 0 : index
    %c0_17 = arith.constant 0 : index
    %c0_18 = arith.constant 0 : index
    %40 = vector.load %arg2[%c0_15, %c0_16, %c0_17, %c0_18] : memref<5x3x384x128xbf16, #tpu.memory_space<vmem>>, vector<1x1x384x128xbf16>
    %41 = vector.shape_cast %40 : vector<1x1x384x128xbf16> to vector<384x128xbf16>
    %cst_19 = arith.constant dense<0.000000e+00> : vector<256x128xf32>
    %42 = tpu.matmul %39, %41, %cst_19 {dimension_numbers = #tpu.dot_dimension_numbers<[1], [0], [0], [1], [0, 0, 1, 1], [], []>} : vector<256x384xbf16>, vector<384x128xbf16>, vector<256x128xf32> -> vector<256x128xf32>
    %c31 = arith.constant 31 : index
    %c0_20 = arith.constant 0 : index
    %43 = vector.load %arg5[%c31, %c0_20] : memref<320x128xf32, #tpu.memory_space<vmem>>, vector<256x128xf32>
    %cst_21 = arith.constant 0.000000e+00 : f32
    %44 = vector.shape_cast %24 : vector<256x1xi1> to vector<256x1xi1>
    %45 = vector.broadcast %44 : vector<256x1xi1> to vector<256x128xi1>
    %46 = vector.broadcast %cst_21 : f32 to vector<256x128xf32>
    %47 = arith.select %45, %43, %46 : vector<256x128xi1>, vector<256x128xf32>
    %c32_22 = arith.constant 32 : index
    %c0_23 = arith.constant 0 : index
    %48 = vector.load %arg5[%c32_22, %c0_23] : memref<320x128xf32, #tpu.memory_space<vmem>>, vector<256x128xf32>
    %c33 = arith.constant 33 : index
    %c0_24 = arith.constant 0 : index
    %49 = vector.load %arg5[%c33, %c0_24] : memref<320x128xf32, #tpu.memory_space<vmem>>, vector<256x128xf32>
    %cst_25 = arith.constant 0.000000e+00 : f32
    %50 = vector.shape_cast %26 : vector<256x1xi1> to vector<256x1xi1>
    %51 = vector.broadcast %50 : vector<256x1xi1> to vector<256x128xi1>
    %52 = vector.broadcast %cst_25 : f32 to vector<256x128xf32>
    %53 = arith.select %51, %49, %52 : vector<256x128xi1>, vector<256x128xf32>
    %54 = tpu.concatenate %47, %48, %53 in 1 : vector<256x128xf32>, vector<256x128xf32>, vector<256x128xf32> -> vector<256x384xf32>
    %55 = arith.truncf %54 : vector<256x384xf32> to vector<256x384xbf16>
    %c0_26 = arith.constant 0 : index
    %c1 = arith.constant 1 : index
    %c0_27 = arith.constant 0 : index
    %c0_28 = arith.constant 0 : index
    %56 = vector.load %arg2[%c0_26, %c1, %c0_27, %c0_28] : memref<5x3x384x128xbf16, #tpu.memory_space<vmem>>, vector<1x1x384x128xbf16>
    %57 = vector.shape_cast %56 : vector<1x1x384x128xbf16> to vector<384x128xbf16>
    %cst_29 = arith.constant dense<0.000000e+00> : vector<256x128xf32>
    %58 = tpu.matmul %55, %57, %cst_29 {dimension_numbers = #tpu.dot_dimension_numbers<[1], [0], [0], [1], [0, 0, 1, 1], [], []>} : vector<256x384xbf16>, vector<384x128xbf16>, vector<256x128xf32> -> vector<256x128xf32>
    %59 = arith.addf %42, %58 : vector<256x128xf32>
    %c47 = arith.constant 47 : index
    %c0_30 = arith.constant 0 : index
    %60 = vector.load %arg5[%c47, %c0_30] : memref<320x128xf32, #tpu.memory_space<vmem>>, vector<256x128xf32>
    %cst_31 = arith.constant 0.000000e+00 : f32
    %61 = vector.shape_cast %24 : vector<256x1xi1> to vector<256x1xi1>
    %62 = vector.broadcast %61 : vector<256x1xi1> to vector<256x128xi1>
    %63 = vector.broadcast %cst_31 : f32 to vector<256x128xf32>
    %64 = arith.select %62, %60, %63 : vector<256x128xi1>, vector<256x128xf32>
    %c48 = arith.constant 48 : index
    %c0_32 = arith.constant 0 : index
    %65 = vector.load %arg5[%c48, %c0_32] : memref<320x128xf32, #tpu.memory_space<vmem>>, vector<256x128xf32>
    %c49 = arith.constant 49 : index
    %c0_33 = arith.constant 0 : index
    %66 = vector.load %arg5[%c49, %c0_33] : memref<320x128xf32, #tpu.memory_space<vmem>>, vector<256x128xf32>
    %cst_34 = arith.constant 0.000000e+00 : f32
    %67 = vector.shape_cast %26 : vector<256x1xi1> to vector<256x1xi1>
    %68 = vector.broadcast %67 : vector<256x1xi1> to vector<256x128xi1>
    %69 = vector.broadcast %cst_34 : f32 to vector<256x128xf32>
    %70 = arith.select %68, %66, %69 : vector<256x128xi1>, vector<256x128xf32>
    %71 = tpu.concatenate %64, %65, %70 in 1 : vector<256x128xf32>, vector<256x128xf32>, vector<256x128xf32> -> vector<256x384xf32>
    %72 = arith.truncf %71 : vector<256x384xf32> to vector<256x384xbf16>
    %c0_35 = arith.constant 0 : index
    %c2 = arith.constant 2 : index
    %c0_36 = arith.constant 0 : index
    %c0_37 = arith.constant 0 : index
    %73 = vector.load %arg2[%c0_35, %c2, %c0_36, %c0_37] : memref<5x3x384x128xbf16, #tpu.memory_space<vmem>>, vector<1x1x384x128xbf16>
    %74 = vector.shape_cast %73 : vector<1x1x384x128xbf16> to vector<384x128xbf16>
    %cst_38 = arith.constant dense<0.000000e+00> : vector<256x128xf32>
    %75 = tpu.matmul %72, %74, %cst_38 {dimension_numbers = #tpu.dot_dimension_numbers<[1], [0], [0], [1], [0, 0, 1, 1], [], []>} : vector<256x384xbf16>, vector<384x128xbf16>, vector<256x128xf32> -> vector<256x128xf32>
    %76 = arith.addf %59, %75 : vector<256x128xf32>
    %c0_39 = arith.constant 0 : index
    %c0_40 = arith.constant 0 : index
    %c0_41 = arith.constant 0 : index
    %77 = vector.load %arg3[%c0_39, %c0_40, %c0_41] : memref<5x1x128xf32, #tpu.memory_space<vmem>>, vector<1x1x128xf32>
    %78 = vector.shape_cast %77 : vector<1x1x128xf32> to vector<1x128xf32>
    %79 = vector.broadcast %78 : vector<1x128xf32> to vector<256x128xf32>
    %80 = arith.addf %76, %79 : vector<256x128xf32>
    %cst_42 = arith.constant 0.000000e+00 : f32
    %81 = vector.broadcast %cst_42 : f32 to vector<256x128xf32>
    %82 = arith.cmpf oge, %80, %81 : vector<256x128xf32>
    %cst_43 = arith.constant 2.000000e-01 : f32
    %83 = vector.broadcast %cst_43 : f32 to vector<256x128xf32>
    %84 = arith.mulf %80, %83 : vector<256x128xf32>
    %85 = arith.select %82, %80, %84 : vector<256x128xi1>, vector<256x128xf32>
    %c32_44 = arith.constant 32 : index
    %c0_45 = arith.constant 0 : index
    %86 = vector.load %arg5[%c32_44, %c0_45] : memref<320x128xf32, #tpu.memory_space<vmem>>, vector<256x128xf32>
    %87 = arith.addf %86, %85 : vector<256x128xf32>
    %c32_46 = arith.constant 32 : index
    %c0_47 = arith.constant 0 : index
    %88 = vector.load %arg5[%c32_46, %c0_47] : memref<320x128xf32, #tpu.memory_space<vmem>>, vector<256x128xf32>
    tpu.vector_store %arg5[%c32_46, %c0_47], %87 {strides = array<i32>} : memref<320x128xf32, #tpu.memory_space<vmem>>, vector<256x128xf32>,
    %c15_48 = arith.constant 15 : index
    %c0_49 = arith.constant 0 : index
    %89 = vector.load %arg5[%c15_48, %c0_49] : memref<320x128xf32, #tpu.memory_space<vmem>>, vector<256x128xf32>
    %cst_50 = arith.constant 0.000000e+00 : f32
    %90 = vector.shape_cast %24 : vector<256x1xi1> to vector<256x1xi1>
    %91 = vector.broadcast %90 : vector<256x1xi1> to vector<256x128xi1>
    %92 = vector.broadcast %cst_50 : f32 to vector<256x128xf32>
    %93 = arith.select %91, %89, %92 : vector<256x128xi1>, vector<256x128xf32>
    %c16_51 = arith.constant 16 : index
    %c0_52 = arith.constant 0 : index
    %94 = vector.load %arg5[%c16_51, %c0_52] : memref<320x128xf32, #tpu.memory_space<vmem>>, vector<256x128xf32>
    %c17_53 = arith.constant 17 : index
    %c0_54 = arith.constant 0 : index
    %95 = vector.load %arg5[%c17_53, %c0_54] : memref<320x128xf32, #tpu.memory_space<vmem>>, vector<256x128xf32>
    %cst_55 = arith.constant 0.000000e+00 : f32
    %96 = vector.shape_cast %26 : vector<256x1xi1> to vector<256x1xi1>
    %97 = vector.broadcast %96 : vector<256x1xi1> to vector<256x128xi1>
    %98 = vector.broadcast %cst_55 : f32 to vector<256x128xf32>
    %99 = arith.select %97, %95, %98 : vector<256x128xi1>, vector<256x128xf32>
    %100 = tpu.concatenate %93, %94, %99 in 1 : vector<256x128xf32>, vector<256x128xf32>, vector<256x128xf32> -> vector<256x384xf32>
    %101 = arith.truncf %100 : vector<256x384xf32> to vector<256x384xbf16>
    %c1_56 = arith.constant 1 : index
    %c0_57 = arith.constant 0 : index
    %c0_58 = arith.constant 0 : index
    %c0_59 = arith.constant 0 : index
    %102 = vector.load %arg2[%c1_56, %c0_57, %c0_58, %c0_59] : memref<5x3x384x128xbf16, #tpu.memory_space<vmem>>, vector<1x1x384x128xbf16>
    %103 = vector.shape_cast %102 : vector<1x1x384x128xbf16> to vector<384x128xbf16>
    %cst_60 = arith.constant dense<0.000000e+00> : vector<256x128xf32>
    %104 = tpu.matmul %101, %103, %cst_60 {dimension_numbers = #tpu.dot_dimension_numbers<[1], [0], [0], [1], [0, 0, 1, 1], [], []>} : vector<256x384xbf16>, vector<384x128xbf16>, vector<256x128xf32> -> vector<256x128xf32>
    %c31_61 = arith.constant 31 : index
    %c0_62 = arith.constant 0 : index
    %105 = vector.load %arg5[%c31_61, %c0_62] : memref<320x128xf32, #tpu.memory_space<vmem>>, vector<256x128xf32>
    %cst_63 = arith.constant 0.000000e+00 : f32
    %106 = vector.shape_cast %24 : vector<256x1xi1> to vector<256x1xi1>
    %107 = vector.broadcast %106 : vector<256x1xi1> to vector<256x128xi1>
    %108 = vector.broadcast %cst_63 : f32 to vector<256x128xf32>
    %109 = arith.select %107, %105, %108 : vector<256x128xi1>, vector<256x128xf32>
    %c32_64 = arith.constant 32 : index
    %c0_65 = arith.constant 0 : index
    %110 = vector.load %arg5[%c32_64, %c0_65] : memref<320x128xf32, #tpu.memory_space<vmem>>, vector<256x128xf32>
    %c33_66 = arith.constant 33 : index
    %c0_67 = arith.constant 0 : index
    %111 = vector.load %arg5[%c33_66, %c0_67] : memref<320x128xf32, #tpu.memory_space<vmem>>, vector<256x128xf32>
    %cst_68 = arith.constant 0.000000e+00 : f32
    %112 = vector.shape_cast %26 : vector<256x1xi1> to vector<256x1xi1>
    %113 = vector.broadcast %112 : vector<256x1xi1> to vector<256x128xi1>
    %114 = vector.broadcast %cst_68 : f32 to vector<256x128xf32>
    %115 = arith.select %113, %111, %114 : vector<256x128xi1>, vector<256x128xf32>
    %116 = tpu.concatenate %109, %110, %115 in 1 : vector<256x128xf32>, vector<256x128xf32>, vector<256x128xf32> -> vector<256x384xf32>
    %117 = arith.truncf %116 : vector<256x384xf32> to vector<256x384xbf16>
    %c1_69 = arith.constant 1 : index
    %c1_70 = arith.constant 1 : index
    %c0_71 = arith.constant 0 : index
    %c0_72 = arith.constant 0 : index
    %118 = vector.load %arg2[%c1_69, %c1_70, %c0_71, %c0_72] : memref<5x3x384x128xbf16, #tpu.memory_space<vmem>>, vector<1x1x384x128xbf16>
    %119 = vector.shape_cast %118 : vector<1x1x384x128xbf16> to vector<384x128xbf16>
    %cst_73 = arith.constant dense<0.000000e+00> : vector<256x128xf32>
    %120 = tpu.matmul %117, %119, %cst_73 {dimension_numbers = #tpu.dot_dimension_numbers<[1], [0], [0], [1], [0, 0, 1, 1], [], []>} : vector<256x384xbf16>, vector<384x128xbf16>, vector<256x128xf32> -> vector<256x128xf32>
    %121 = arith.addf %104, %120 : vector<256x128xf32>
    %c47_74 = arith.constant 47 : index
    %c0_75 = arith.constant 0 : index
    %122 = vector.load %arg5[%c47_74, %c0_75] : memref<320x128xf32, #tpu.memory_space<vmem>>, vector<256x128xf32>
    %cst_76 = arith.constant 0.000000e+00 : f32
    %123 = vector.shape_cast %24 : vector<256x1xi1> to vector<256x1xi1>
    %124 = vector.broadcast %123 : vector<256x1xi1> to vector<256x128xi1>
    %125 = vector.broadcast %cst_76 : f32 to vector<256x128xf32>
    %126 = arith.select %124, %122, %125 : vector<256x128xi1>, vector<256x128xf32>
    %c48_77 = arith.constant 48 : index
    %c0_78 = arith.constant 0 : index
    %127 = vector.load %arg5[%c48_77, %c0_78] : memref<320x128xf32, #tpu.memory_space<vmem>>, vector<256x128xf32>
    %c49_79 = arith.constant 49 : index
    %c0_80 = arith.constant 0 : index
    %128 = vector.load %arg5[%c49_79, %c0_80] : memref<320x128xf32, #tpu.memory_space<vmem>>, vector<256x128xf32>
    %cst_81 = arith.constant 0.000000e+00 : f32
    %129 = vector.shape_cast %26 : vector<256x1xi1> to vector<256x1xi1>
    %130 = vector.broadcast %129 : vector<256x1xi1> to vector<256x128xi1>
    %131 = vector.broadcast %cst_81 : f32 to vector<256x128xf32>
    %132 = arith.select %130, %128, %131 : vector<256x128xi1>, vector<256x128xf32>
    %133 = tpu.concatenate %126, %127, %132 in 1 : vector<256x128xf32>, vector<256x128xf32>, vector<256x128xf32> -> vector<256x384xf32>
    %134 = arith.truncf %133 : vector<256x384xf32> to vector<256x384xbf16>
    %c1_82 = arith.constant 1 : index
    %c2_83 = arith.constant 2 : index
    %c0_84 = arith.constant 0 : index
    %c0_85 = arith.constant 0 : index
    %135 = vector.load %arg2[%c1_82, %c2_83, %c0_84, %c0_85] : memref<5x3x384x128xbf16, #tpu.memory_space<vmem>>, vector<1x1x384x128xbf16>
    %136 = vector.shape_cast %135 : vector<1x1x384x128xbf16> to vector<384x128xbf16>
    %cst_86 = arith.constant dense<0.000000e+00> : vector<256x128xf32>
    %137 = tpu.matmul %134, %136, %cst_86 {dimension_numbers = #tpu.dot_dimension_numbers<[1], [0], [0], [1], [0, 0, 1, 1], [], []>} : vector<256x384xbf16>, vector<384x128xbf16>, vector<256x128xf32> -> vector<256x128xf32>
    %138 = arith.addf %121, %137 : vector<256x128xf32>
    %c1_87 = arith.constant 1 : index
    %c0_88 = arith.constant 0 : index
    %c0_89 = arith.constant 0 : index
    %139 = vector.load %arg3[%c1_87, %c0_88, %c0_89] : memref<5x1x128xf32, #tpu.memory_space<vmem>>, vector<1x1x128xf32>
    %140 = vector.shape_cast %139 : vector<1x1x128xf32> to vector<1x128xf32>
    %141 = vector.broadcast %140 : vector<1x128xf32> to vector<256x128xf32>
    %142 = arith.addf %138, %141 : vector<256x128xf32>
    %cst_90 = arith.constant 0.000000e+00 : f32
    %143 = vector.broadcast %cst_90 : f32 to vector<256x128xf32>
    %144 = arith.cmpf oge, %142, %143 : vector<256x128xf32>
    %cst_91 = arith.constant 2.000000e-01 : f32
    %145 = vector.broadcast %cst_91 : f32 to vector<256x128xf32>
    %146 = arith.mulf %142, %145 : vector<256x128xf32>
    %147 = arith.select %144, %142, %146 : vector<256x128xi1>, vector<256x128xf32>
    %c32_92 = arith.constant 32 : index
    %c0_93 = arith.constant 0 : index
    %148 = vector.load %arg5[%c32_92, %c0_93] : memref<320x128xf32, #tpu.memory_space<vmem>>, vector<256x128xf32>
    %149 = arith.addf %148, %147 : vector<256x128xf32>
    %c32_94 = arith.constant 32 : index
    %c0_95 = arith.constant 0 : index
    %150 = vector.load %arg5[%c32_94, %c0_95] : memref<320x128xf32, #tpu.memory_space<vmem>>, vector<256x128xf32>
    tpu.vector_store %arg5[%c32_94, %c0_95], %149 {strides = array<i32>} : memref<320x128xf32, #tpu.memory_space<vmem>>, vector<256x128xf32>,
    %c15_96 = arith.constant 15 : index
    %c0_97 = arith.constant 0 : index
    %151 = vector.load %arg5[%c15_96, %c0_97] : memref<320x128xf32, #tpu.memory_space<vmem>>, vector<256x128xf32>
    %cst_98 = arith.constant 0.000000e+00 : f32
    %152 = vector.shape_cast %24 : vector<256x1xi1> to vector<256x1xi1>
    %153 = vector.broadcast %152 : vector<256x1xi1> to vector<256x128xi1>
    %154 = vector.broadcast %cst_98 : f32 to vector<256x128xf32>
    %155 = arith.select %153, %151, %154 : vector<256x128xi1>, vector<256x128xf32>
    %c16_99 = arith.constant 16 : index
    %c0_100 = arith.constant 0 : index
    %156 = vector.load %arg5[%c16_99, %c0_100] : memref<320x128xf32, #tpu.memory_space<vmem>>, vector<256x128xf32>
    %c17_101 = arith.constant 17 : index
    %c0_102 = arith.constant 0 : index
    %157 = vector.load %arg5[%c17_101, %c0_102] : memref<320x128xf32, #tpu.memory_space<vmem>>, vector<256x128xf32>
    %cst_103 = arith.constant 0.000000e+00 : f32
    %158 = vector.shape_cast %26 : vector<256x1xi1> to vector<256x1xi1>
    %159 = vector.broadcast %158 : vector<256x1xi1> to vector<256x128xi1>
    %160 = vector.broadcast %cst_103 : f32 to vector<256x128xf32>
    %161 = arith.select %159, %157, %160 : vector<256x128xi1>, vector<256x128xf32>
    %162 = tpu.concatenate %155, %156, %161 in 1 : vector<256x128xf32>, vector<256x128xf32>, vector<256x128xf32> -> vector<256x384xf32>
    %163 = arith.truncf %162 : vector<256x384xf32> to vector<256x384xbf16>
    %c2_104 = arith.constant 2 : index
    %c0_105 = arith.constant 0 : index
    %c0_106 = arith.constant 0 : index
    %c0_107 = arith.constant 0 : index
    %164 = vector.load %arg2[%c2_104, %c0_105, %c0_106, %c0_107] : memref<5x3x384x128xbf16, #tpu.memory_space<vmem>>, vector<1x1x384x128xbf16>
    %165 = vector.shape_cast %164 : vector<1x1x384x128xbf16> to vector<384x128xbf16>
    %cst_108 = arith.constant dense<0.000000e+00> : vector<256x128xf32>
    %166 = tpu.matmul %163, %165, %cst_108 {dimension_numbers = #tpu.dot_dimension_numbers<[1], [0], [0], [1], [0, 0, 1, 1], [], []>} : vector<256x384xbf16>, vector<384x128xbf16>, vector<256x128xf32> -> vector<256x128xf32>
    %c31_109 = arith.constant 31 : index
    %c0_110 = arith.constant 0 : index
    %167 = vector.load %arg5[%c31_109, %c0_110] : memref<320x128xf32, #tpu.memory_space<vmem>>, vector<256x128xf32>
    %cst_111 = arith.constant 0.000000e+00 : f32
    %168 = vector.shape_cast %24 : vector<256x1xi1> to vector<256x1xi1>
    %169 = vector.broadcast %168 : vector<256x1xi1> to vector<256x128xi1>
    %170 = vector.broadcast %cst_111 : f32 to vector<256x128xf32>
    %171 = arith.select %169, %167, %170 : vector<256x128xi1>, vector<256x128xf32>
    %c32_112 = arith.constant 32 : index
    %c0_113 = arith.constant 0 : index
    %172 = vector.load %arg5[%c32_112, %c0_113] : memref<320x128xf32, #tpu.memory_space<vmem>>, vector<256x128xf32>
    %c33_114 = arith.constant 33 : index
    %c0_115 = arith.constant 0 : index
    %173 = vector.load %arg5[%c33_114, %c0_115] : memref<320x128xf32, #tpu.memory_space<vmem>>, vector<256x128xf32>
    %cst_116 = arith.constant 0.000000e+00 : f32
    %174 = vector.shape_cast %26 : vector<256x1xi1> to vector<256x1xi1>
    %175 = vector.broadcast %174 : vector<256x1xi1> to vector<256x128xi1>
    %176 = vector.broadcast %cst_116 : f32 to vector<256x128xf32>
    %177 = arith.select %175, %173, %176 : vector<256x128xi1>, vector<256x128xf32>
    %178 = tpu.concatenate %171, %172, %177 in 1 : vector<256x128xf32>, vector<256x128xf32>, vector<256x128xf32> -> vector<256x384xf32>
    %179 = arith.truncf %178 : vector<256x384xf32> to vector<256x384xbf16>
    %c2_117 = arith.constant 2 : index
    %c1_118 = arith.constant 1 : index
    %c0_119 = arith.constant 0 : index
    %c0_120 = arith.constant 0 : index
    %180 = vector.load %arg2[%c2_117, %c1_118, %c0_119, %c0_120] : memref<5x3x384x128xbf16, #tpu.memory_space<vmem>>, vector<1x1x384x128xbf16>
    %181 = vector.shape_cast %180 : vector<1x1x384x128xbf16> to vector<384x128xbf16>
    %cst_121 = arith.constant dense<0.000000e+00> : vector<256x128xf32>
    %182 = tpu.matmul %179, %181, %cst_121 {dimension_numbers = #tpu.dot_dimension_numbers<[1], [0], [0], [1], [0, 0, 1, 1], [], []>} : vector<256x384xbf16>, vector<384x128xbf16>, vector<256x128xf32> -> vector<256x128xf32>
    %183 = arith.addf %166, %182 : vector<256x128xf32>
    %c47_122 = arith.constant 47 : index
    %c0_123 = arith.constant 0 : index
    %184 = vector.load %arg5[%c47_122, %c0_123] : memref<320x128xf32, #tpu.memory_space<vmem>>, vector<256x128xf32>
    %cst_124 = arith.constant 0.000000e+00 : f32
    %185 = vector.shape_cast %24 : vector<256x1xi1> to vector<256x1xi1>
    %186 = vector.broadcast %185 : vector<256x1xi1> to vector<256x128xi1>
    %187 = vector.broadcast %cst_124 : f32 to vector<256x128xf32>
    %188 = arith.select %186, %184, %187 : vector<256x128xi1>, vector<256x128xf32>
    %c48_125 = arith.constant 48 : index
    %c0_126 = arith.constant 0 : index
    %189 = vector.load %arg5[%c48_125, %c0_126] : memref<320x128xf32, #tpu.memory_space<vmem>>, vector<256x128xf32>
    %c49_127 = arith.constant 49 : index
    %c0_128 = arith.constant 0 : index
    %190 = vector.load %arg5[%c49_127, %c0_128] : memref<320x128xf32, #tpu.memory_space<vmem>>, vector<256x128xf32>
    %cst_129 = arith.constant 0.000000e+00 : f32
    %191 = vector.shape_cast %26 : vector<256x1xi1> to vector<256x1xi1>
    %192 = vector.broadcast %191 : vector<256x1xi1> to vector<256x128xi1>
    %193 = vector.broadcast %cst_129 : f32 to vector<256x128xf32>
    %194 = arith.select %192, %190, %193 : vector<256x128xi1>, vector<256x128xf32>
    %195 = tpu.concatenate %188, %189, %194 in 1 : vector<256x128xf32>, vector<256x128xf32>, vector<256x128xf32> -> vector<256x384xf32>
    %196 = arith.truncf %195 : vector<256x384xf32> to vector<256x384xbf16>
    %c2_130 = arith.constant 2 : index
    %c2_131 = arith.constant 2 : index
    %c0_132 = arith.constant 0 : index
    %c0_133 = arith.constant 0 : index
    %197 = vector.load %arg2[%c2_130, %c2_131, %c0_132, %c0_133] : memref<5x3x384x128xbf16, #tpu.memory_space<vmem>>, vector<1x1x384x128xbf16>
    %198 = vector.shape_cast %197 : vector<1x1x384x128xbf16> to vector<384x128xbf16>
    %cst_134 = arith.constant dense<0.000000e+00> : vector<256x128xf32>
    %199 = tpu.matmul %196, %198, %cst_134 {dimension_numbers = #tpu.dot_dimension_numbers<[1], [0], [0], [1], [0, 0, 1, 1], [], []>} : vector<256x384xbf16>, vector<384x128xbf16>, vector<256x128xf32> -> vector<256x128xf32>
    %200 = arith.addf %183, %199 : vector<256x128xf32>
    %c2_135 = arith.constant 2 : index
    %c0_136 = arith.constant 0 : index
    %c0_137 = arith.constant 0 : index
    %201 = vector.load %arg3[%c2_135, %c0_136, %c0_137] : memref<5x1x128xf32, #tpu.memory_space<vmem>>, vector<1x1x128xf32>
    %202 = vector.shape_cast %201 : vector<1x1x128xf32> to vector<1x128xf32>
    %203 = vector.broadcast %202 : vector<1x128xf32> to vector<256x128xf32>
    %204 = arith.addf %200, %203 : vector<256x128xf32>
    %cst_138 = arith.constant 0.000000e+00 : f32
    %205 = vector.broadcast %cst_138 : f32 to vector<256x128xf32>
    %206 = arith.cmpf oge, %204, %205 : vector<256x128xf32>
    %cst_139 = arith.constant 2.000000e-01 : f32
    %207 = vector.broadcast %cst_139 : f32 to vector<256x128xf32>
    %208 = arith.mulf %204, %207 : vector<256x128xf32>
    %209 = arith.select %206, %204, %208 : vector<256x128xi1>, vector<256x128xf32>
    %c32_140 = arith.constant 32 : index
    %c0_141 = arith.constant 0 : index
    %210 = vector.load %arg5[%c32_140, %c0_141] : memref<320x128xf32, #tpu.memory_space<vmem>>, vector<256x128xf32>
    %211 = arith.addf %210, %209 : vector<256x128xf32>
    %c32_142 = arith.constant 32 : index
    %c0_143 = arith.constant 0 : index
    %212 = vector.load %arg5[%c32_142, %c0_143] : memref<320x128xf32, #tpu.memory_space<vmem>>, vector<256x128xf32>
    tpu.vector_store %arg5[%c32_142, %c0_143], %211 {strides = array<i32>} : memref<320x128xf32, #tpu.memory_space<vmem>>, vector<256x128xf32>,
    %c15_144 = arith.constant 15 : index
    %c0_145 = arith.constant 0 : index
    %213 = vector.load %arg5[%c15_144, %c0_145] : memref<320x128xf32, #tpu.memory_space<vmem>>, vector<256x128xf32>
    %cst_146 = arith.constant 0.000000e+00 : f32
    %214 = vector.shape_cast %24 : vector<256x1xi1> to vector<256x1xi1>
    %215 = vector.broadcast %214 : vector<256x1xi1> to vector<256x128xi1>
    %216 = vector.broadcast %cst_146 : f32 to vector<256x128xf32>
    %217 = arith.select %215, %213, %216 : vector<256x128xi1>, vector<256x128xf32>
    %c16_147 = arith.constant 16 : index
    %c0_148 = arith.constant 0 : index
    %218 = vector.load %arg5[%c16_147, %c0_148] : memref<320x128xf32, #tpu.memory_space<vmem>>, vector<256x128xf32>
    %c17_149 = arith.constant 17 : index
    %c0_150 = arith.constant 0 : index
    %219 = vector.load %arg5[%c17_149, %c0_150] : memref<320x128xf32, #tpu.memory_space<vmem>>, vector<256x128xf32>
    %cst_151 = arith.constant 0.000000e+00 : f32
    %220 = vector.shape_cast %26 : vector<256x1xi1> to vector<256x1xi1>
    %221 = vector.broadcast %220 : vector<256x1xi1> to vector<256x128xi1>
    %222 = vector.broadcast %cst_151 : f32 to vector<256x128xf32>
    %223 = arith.select %221, %219, %222 : vector<256x128xi1>, vector<256x128xf32>
    %224 = tpu.concatenate %217, %218, %223 in 1 : vector<256x128xf32>, vector<256x128xf32>, vector<256x128xf32> -> vector<256x384xf32>
    %225 = arith.truncf %224 : vector<256x384xf32> to vector<256x384xbf16>
    %c3 = arith.constant 3 : index
    %c0_152 = arith.constant 0 : index
    %c0_153 = arith.constant 0 : index
    %c0_154 = arith.constant 0 : index
    %226 = vector.load %arg2[%c3, %c0_152, %c0_153, %c0_154] : memref<5x3x384x128xbf16, #tpu.memory_space<vmem>>, vector<1x1x384x128xbf16>
    %227 = vector.shape_cast %226 : vector<1x1x384x128xbf16> to vector<384x128xbf16>
    %cst_155 = arith.constant dense<0.000000e+00> : vector<256x128xf32>
    %228 = tpu.matmul %225, %227, %cst_155 {dimension_numbers = #tpu.dot_dimension_numbers<[1], [0], [0], [1], [0, 0, 1, 1], [], []>} : vector<256x384xbf16>, vector<384x128xbf16>, vector<256x128xf32> -> vector<256x128xf32>
    %c31_156 = arith.constant 31 : index
    %c0_157 = arith.constant 0 : index
    %229 = vector.load %arg5[%c31_156, %c0_157] : memref<320x128xf32, #tpu.memory_space<vmem>>, vector<256x128xf32>
    %cst_158 = arith.constant 0.000000e+00 : f32
    %230 = vector.shape_cast %24 : vector<256x1xi1> to vector<256x1xi1>
    %231 = vector.broadcast %230 : vector<256x1xi1> to vector<256x128xi1>
    %232 = vector.broadcast %cst_158 : f32 to vector<256x128xf32>
    %233 = arith.select %231, %229, %232 : vector<256x128xi1>, vector<256x128xf32>
    %c32_159 = arith.constant 32 : index
    %c0_160 = arith.constant 0 : index
    %234 = vector.load %arg5[%c32_159, %c0_160] : memref<320x128xf32, #tpu.memory_space<vmem>>, vector<256x128xf32>
    %c33_161 = arith.constant 33 : index
    %c0_162 = arith.constant 0 : index
    %235 = vector.load %arg5[%c33_161, %c0_162] : memref<320x128xf32, #tpu.memory_space<vmem>>, vector<256x128xf32>
    %cst_163 = arith.constant 0.000000e+00 : f32
    %236 = vector.shape_cast %26 : vector<256x1xi1> to vector<256x1xi1>
    %237 = vector.broadcast %236 : vector<256x1xi1> to vector<256x128xi1>
    %238 = vector.broadcast %cst_163 : f32 to vector<256x128xf32>
    %239 = arith.select %237, %235, %238 : vector<256x128xi1>, vector<256x128xf32>
    %240 = tpu.concatenate %233, %234, %239 in 1 : vector<256x128xf32>, vector<256x128xf32>, vector<256x128xf32> -> vector<256x384xf32>
    %241 = arith.truncf %240 : vector<256x384xf32> to vector<256x384xbf16>
    %c3_164 = arith.constant 3 : index
    %c1_165 = arith.constant 1 : index
    %c0_166 = arith.constant 0 : index
    %c0_167 = arith.constant 0 : index
    %242 = vector.load %arg2[%c3_164, %c1_165, %c0_166, %c0_167] : memref<5x3x384x128xbf16, #tpu.memory_space<vmem>>, vector<1x1x384x128xbf16>
    %243 = vector.shape_cast %242 : vector<1x1x384x128xbf16> to vector<384x128xbf16>
    %cst_168 = arith.constant dense<0.000000e+00> : vector<256x128xf32>
    %244 = tpu.matmul %241, %243, %cst_168 {dimension_numbers = #tpu.dot_dimension_numbers<[1], [0], [0], [1], [0, 0, 1, 1], [], []>} : vector<256x384xbf16>, vector<384x128xbf16>, vector<256x128xf32> -> vector<256x128xf32>
    %245 = arith.addf %228, %244 : vector<256x128xf32>
    %c47_169 = arith.constant 47 : index
    %c0_170 = arith.constant 0 : index
    %246 = vector.load %arg5[%c47_169, %c0_170] : memref<320x128xf32, #tpu.memory_space<vmem>>, vector<256x128xf32>
    %cst_171 = arith.constant 0.000000e+00 : f32
    %247 = vector.shape_cast %24 : vector<256x1xi1> to vector<256x1xi1>
    %248 = vector.broadcast %247 : vector<256x1xi1> to vector<256x128xi1>
    %249 = vector.broadcast %cst_171 : f32 to vector<256x128xf32>
    %250 = arith.select %248, %246, %249 : vector<256x128xi1>, vector<256x128xf32>
    %c48_172 = arith.constant 48 : index
    %c0_173 = arith.constant 0 : index
    %251 = vector.load %arg5[%c48_172, %c0_173] : memref<320x128xf32, #tpu.memory_space<vmem>>, vector<256x128xf32>
    %c49_174 = arith.constant 49 : index
    %c0_175 = arith.constant 0 : index
    %252 = vector.load %arg5[%c49_174, %c0_175] : memref<320x128xf32, #tpu.memory_space<vmem>>, vector<256x128xf32>
    %cst_176 = arith.constant 0.000000e+00 : f32
    %253 = vector.shape_cast %26 : vector<256x1xi1> to vector<256x1xi1>
    %254 = vector.broadcast %253 : vector<256x1xi1> to vector<256x128xi1>
    %255 = vector.broadcast %cst_176 : f32 to vector<256x128xf32>
    %256 = arith.select %254, %252, %255 : vector<256x128xi1>, vector<256x128xf32>
    %257 = tpu.concatenate %250, %251, %256 in 1 : vector<256x128xf32>, vector<256x128xf32>, vector<256x128xf32> -> vector<256x384xf32>
    %258 = arith.truncf %257 : vector<256x384xf32> to vector<256x384xbf16>
    %c3_177 = arith.constant 3 : index
    %c2_178 = arith.constant 2 : index
    %c0_179 = arith.constant 0 : index
    %c0_180 = arith.constant 0 : index
    %259 = vector.load %arg2[%c3_177, %c2_178, %c0_179, %c0_180] : memref<5x3x384x128xbf16, #tpu.memory_space<vmem>>, vector<1x1x384x128xbf16>
    %260 = vector.shape_cast %259 : vector<1x1x384x128xbf16> to vector<384x128xbf16>
    %cst_181 = arith.constant dense<0.000000e+00> : vector<256x128xf32>
    %261 = tpu.matmul %258, %260, %cst_181 {dimension_numbers = #tpu.dot_dimension_numbers<[1], [0], [0], [1], [0, 0, 1, 1], [], []>} : vector<256x384xbf16>, vector<384x128xbf16>, vector<256x128xf32> -> vector<256x128xf32>
    %262 = arith.addf %245, %261 : vector<256x128xf32>
    %c3_182 = arith.constant 3 : index
    %c0_183 = arith.constant 0 : index
    %c0_184 = arith.constant 0 : index
    %263 = vector.load %arg3[%c3_182, %c0_183, %c0_184] : memref<5x1x128xf32, #tpu.memory_space<vmem>>, vector<1x1x128xf32>
    %264 = vector.shape_cast %263 : vector<1x1x128xf32> to vector<1x128xf32>
    %265 = vector.broadcast %264 : vector<1x128xf32> to vector<256x128xf32>
    %266 = arith.addf %262, %265 : vector<256x128xf32>
    %cst_185 = arith.constant 0.000000e+00 : f32
    %267 = vector.broadcast %cst_185 : f32 to vector<256x128xf32>
    %268 = arith.cmpf oge, %266, %267 : vector<256x128xf32>
    %cst_186 = arith.constant 2.000000e-01 : f32
    %269 = vector.broadcast %cst_186 : f32 to vector<256x128xf32>
    %270 = arith.mulf %266, %269 : vector<256x128xf32>
    %271 = arith.select %268, %266, %270 : vector<256x128xi1>, vector<256x128xf32>
    %c32_187 = arith.constant 32 : index
    %c0_188 = arith.constant 0 : index
    %272 = vector.load %arg5[%c32_187, %c0_188] : memref<320x128xf32, #tpu.memory_space<vmem>>, vector<256x128xf32>
    %273 = arith.addf %272, %271 : vector<256x128xf32>
    %c32_189 = arith.constant 32 : index
    %c0_190 = arith.constant 0 : index
    %274 = vector.load %arg5[%c32_189, %c0_190] : memref<320x128xf32, #tpu.memory_space<vmem>>, vector<256x128xf32>
    tpu.vector_store %arg5[%c32_189, %c0_190], %273 {strides = array<i32>} : memref<320x128xf32, #tpu.memory_space<vmem>>, vector<256x128xf32>,
    %c15_191 = arith.constant 15 : index
    %c0_192 = arith.constant 0 : index
    %275 = vector.load %arg5[%c15_191, %c0_192] : memref<320x128xf32, #tpu.memory_space<vmem>>, vector<256x128xf32>
    %cst_193 = arith.constant 0.000000e+00 : f32
    %276 = vector.shape_cast %24 : vector<256x1xi1> to vector<256x1xi1>
    %277 = vector.broadcast %276 : vector<256x1xi1> to vector<256x128xi1>
    %278 = vector.broadcast %cst_193 : f32 to vector<256x128xf32>
    %279 = arith.select %277, %275, %278 : vector<256x128xi1>, vector<256x128xf32>
    %c16_194 = arith.constant 16 : index
    %c0_195 = arith.constant 0 : index
    %280 = vector.load %arg5[%c16_194, %c0_195] : memref<320x128xf32, #tpu.memory_space<vmem>>, vector<256x128xf32>
    %c17_196 = arith.constant 17 : index
    %c0_197 = arith.constant 0 : index
    %281 = vector.load %arg5[%c17_196, %c0_197] : memref<320x128xf32, #tpu.memory_space<vmem>>, vector<256x128xf32>
    %cst_198 = arith.constant 0.000000e+00 : f32
    %282 = vector.shape_cast %26 : vector<256x1xi1> to vector<256x1xi1>
    %283 = vector.broadcast %282 : vector<256x1xi1> to vector<256x128xi1>
    %284 = vector.broadcast %cst_198 : f32 to vector<256x128xf32>
    %285 = arith.select %283, %281, %284 : vector<256x128xi1>, vector<256x128xf32>
    %286 = tpu.concatenate %279, %280, %285 in 1 : vector<256x128xf32>, vector<256x128xf32>, vector<256x128xf32> -> vector<256x384xf32>
    %287 = arith.truncf %286 : vector<256x384xf32> to vector<256x384xbf16>
    %c4 = arith.constant 4 : index
    %c0_199 = arith.constant 0 : index
    %c0_200 = arith.constant 0 : index
    %c0_201 = arith.constant 0 : index
    %288 = vector.load %arg2[%c4, %c0_199, %c0_200, %c0_201] : memref<5x3x384x128xbf16, #tpu.memory_space<vmem>>, vector<1x1x384x128xbf16>
    %289 = vector.shape_cast %288 : vector<1x1x384x128xbf16> to vector<384x128xbf16>
    %cst_202 = arith.constant dense<0.000000e+00> : vector<256x128xf32>
    %290 = tpu.matmul %287, %289, %cst_202 {dimension_numbers = #tpu.dot_dimension_numbers<[1], [0], [0], [1], [0, 0, 1, 1], [], []>} : vector<256x384xbf16>, vector<384x128xbf16>, vector<256x128xf32> -> vector<256x128xf32>
    %c31_203 = arith.constant 31 : index
    %c0_204 = arith.constant 0 : index
    %291 = vector.load %arg5[%c31_203, %c0_204] : memref<320x128xf32, #tpu.memory_space<vmem>>, vector<256x128xf32>
    %cst_205 = arith.constant 0.000000e+00 : f32
    %292 = vector.shape_cast %24 : vector<256x1xi1> to vector<256x1xi1>
    %293 = vector.broadcast %292 : vector<256x1xi1> to vector<256x128xi1>
    %294 = vector.broadcast %cst_205 : f32 to vector<256x128xf32>
    %295 = arith.select %293, %291, %294 : vector<256x128xi1>, vector<256x128xf32>
    %c32_206 = arith.constant 32 : index
    %c0_207 = arith.constant 0 : index
    %296 = vector.load %arg5[%c32_206, %c0_207] : memref<320x128xf32, #tpu.memory_space<vmem>>, vector<256x128xf32>
    %c33_208 = arith.constant 33 : index
    %c0_209 = arith.constant 0 : index
    %297 = vector.load %arg5[%c33_208, %c0_209] : memref<320x128xf32, #tpu.memory_space<vmem>>, vector<256x128xf32>
    %cst_210 = arith.constant 0.000000e+00 : f32
    %298 = vector.shape_cast %26 : vector<256x1xi1> to vector<256x1xi1>
    %299 = vector.broadcast %298 : vector<256x1xi1> to vector<256x128xi1>
    %300 = vector.broadcast %cst_210 : f32 to vector<256x128xf32>
    %301 = arith.select %299, %297, %300 : vector<256x128xi1>, vector<256x128xf32>
    %302 = tpu.concatenate %295, %296, %301 in 1 : vector<256x128xf32>, vector<256x128xf32>, vector<256x128xf32> -> vector<256x384xf32>
    %303 = arith.truncf %302 : vector<256x384xf32> to vector<256x384xbf16>
    %c4_211 = arith.constant 4 : index
    %c1_212 = arith.constant 1 : index
    %c0_213 = arith.constant 0 : index
    %c0_214 = arith.constant 0 : index
    %304 = vector.load %arg2[%c4_211, %c1_212, %c0_213, %c0_214] : memref<5x3x384x128xbf16, #tpu.memory_space<vmem>>, vector<1x1x384x128xbf16>
    %305 = vector.shape_cast %304 : vector<1x1x384x128xbf16> to vector<384x128xbf16>
    %cst_215 = arith.constant dense<0.000000e+00> : vector<256x128xf32>
    %306 = tpu.matmul %303, %305, %cst_215 {dimension_numbers = #tpu.dot_dimension_numbers<[1], [0], [0], [1], [0, 0, 1, 1], [], []>} : vector<256x384xbf16>, vector<384x128xbf16>, vector<256x128xf32> -> vector<256x128xf32>
    %307 = arith.addf %290, %306 : vector<256x128xf32>
    %c47_216 = arith.constant 47 : index
    %c0_217 = arith.constant 0 : index
    %308 = vector.load %arg5[%c47_216, %c0_217] : memref<320x128xf32, #tpu.memory_space<vmem>>, vector<256x128xf32>
    %cst_218 = arith.constant 0.000000e+00 : f32
    %309 = vector.shape_cast %24 : vector<256x1xi1> to vector<256x1xi1>
    %310 = vector.broadcast %309 : vector<256x1xi1> to vector<256x128xi1>
    %311 = vector.broadcast %cst_218 : f32 to vector<256x128xf32>
    %312 = arith.select %310, %308, %311 : vector<256x128xi1>, vector<256x128xf32>
    %c48_219 = arith.constant 48 : index
    %c0_220 = arith.constant 0 : index
    %313 = vector.load %arg5[%c48_219, %c0_220] : memref<320x128xf32, #tpu.memory_space<vmem>>, vector<256x128xf32>
    %c49_221 = arith.constant 49 : index
    %c0_222 = arith.constant 0 : index
    %314 = vector.load %arg5[%c49_221, %c0_222] : memref<320x128xf32, #tpu.memory_space<vmem>>, vector<256x128xf32>
    %cst_223 = arith.constant 0.000000e+00 : f32
    %315 = vector.shape_cast %26 : vector<256x1xi1> to vector<256x1xi1>
    %316 = vector.broadcast %315 : vector<256x1xi1> to vector<256x128xi1>
    %317 = vector.broadcast %cst_223 : f32 to vector<256x128xf32>
    %318 = arith.select %316, %314, %317 : vector<256x128xi1>, vector<256x128xf32>
    %319 = tpu.concatenate %312, %313, %318 in 1 : vector<256x128xf32>, vector<256x128xf32>, vector<256x128xf32> -> vector<256x384xf32>
    %320 = arith.truncf %319 : vector<256x384xf32> to vector<256x384xbf16>
    %c4_224 = arith.constant 4 : index
    %c2_225 = arith.constant 2 : index
    %c0_226 = arith.constant 0 : index
    %c0_227 = arith.constant 0 : index
    %321 = vector.load %arg2[%c4_224, %c2_225, %c0_226, %c0_227] : memref<5x3x384x128xbf16, #tpu.memory_space<vmem>>, vector<1x1x384x128xbf16>
    %322 = vector.shape_cast %321 : vector<1x1x384x128xbf16> to vector<384x128xbf16>
    %cst_228 = arith.constant dense<0.000000e+00> : vector<256x128xf32>
    %323 = tpu.matmul %320, %322, %cst_228 {dimension_numbers = #tpu.dot_dimension_numbers<[1], [0], [0], [1], [0, 0, 1, 1], [], []>} : vector<256x384xbf16>, vector<384x128xbf16>, vector<256x128xf32> -> vector<256x128xf32>
    %324 = arith.addf %307, %323 : vector<256x128xf32>
    %c4_229 = arith.constant 4 : index
    %c0_230 = arith.constant 0 : index
    %c0_231 = arith.constant 0 : index
    %325 = vector.load %arg3[%c4_229, %c0_230, %c0_231] : memref<5x1x128xf32, #tpu.memory_space<vmem>>, vector<1x1x128xf32>
    %326 = vector.shape_cast %325 : vector<1x1x128xf32> to vector<1x128xf32>
    %327 = vector.broadcast %326 : vector<1x128xf32> to vector<256x128xf32>
    %328 = arith.addf %324, %327 : vector<256x128xf32>
    %cst_232 = arith.constant 2.000000e-01 : f32
    %329 = vector.broadcast %cst_232 : f32 to vector<256x128xf32>
    %330 = arith.mulf %328, %329 : vector<256x128xf32>
    %c32_233 = arith.constant 32 : index
    %c0_234 = arith.constant 0 : index
    %331 = vector.load %arg5[%c32_233, %c0_234] : memref<320x128xf32, #tpu.memory_space<vmem>>, vector<256x128xf32>
    %332 = arith.addf %330, %331 : vector<256x128xf32>
    %333 = vector.extract_strided_slice %332 {offsets = [0, 0], sizes = [256, 8], strides = [1, 1]} : vector<256x128xf32> to vector<256x8xf32>
    %c0_235 = arith.constant 0 : index
    %c0_236 = arith.constant 0 : index
    %c0_237 = arith.constant 0 : index
    %334 = vector.load %arg4[%c0_235, %c0_236, %c0_237] : memref<1x256x8xf32, #tpu.memory_space<vmem>>, vector<1x256x8xf32>
    %335 = vector.shape_cast %334 : vector<1x256x8xf32> to vector<256x8xf32>
    %336 = vector.shape_cast %333 : vector<256x8xf32> to vector<1x256x8xf32>
    tpu.vector_store %arg4[%c0_235, %c0_236, %c0_237], %336 {strides = array<i32>} : memref<1x256x8xf32, #tpu.memory_space<vmem>>, vector<1x256x8xf32>,
    return
  }
  func.func @transform_0(%arg0: i32) -> (i32, i32, i32) {
    %c0_i32 = arith.constant 0 : i32
    %c0_i32_0 = arith.constant 0 : i32
    %c0_i32_1 = arith.constant 0 : i32
    return %arg0, %c0_i32, %c0_i32_0 : i32, i32, i32
  }
  func.func @transform_1(%arg0: i32) -> (i32, i32, i32, i32) {
    %c0_i32 = arith.constant 0 : i32
    %c0_i32_0 = arith.constant 0 : i32
    %c0_i32_1 = arith.constant 0 : i32
    %c0_i32_2 = arith.constant 0 : i32
    %c0_i32_3 = arith.constant 0 : i32
    return %c0_i32, %c0_i32_0, %c0_i32_1, %c0_i32_2 : i32, i32, i32, i32
  }
  func.func @transform_2(%arg0: i32) -> (i32, i32, i32) {
    %c0_i32 = arith.constant 0 : i32
    %c0_i32_0 = arith.constant 0 : i32
    %c0_i32_1 = arith.constant 0 : i32
    %c0_i32_2 = arith.constant 0 : i32
    return %c0_i32, %c0_i32_0, %c0_i32_1 : i32, i32, i32
  }
  func.func @transform_3(%arg0: i32) -> (i32, i32, i32) {
    %c0_i32 = arith.constant 0 : i32
    %c0_i32_0 = arith.constant 0 : i32
    %c0_i32_1 = arith.constant 0 : i32
    return %arg0, %c0_i32, %c0_i32_0 : i32, i32, i32
  }
}

</mosaic_0001>

<bundles_post_ra>
// kernel: uv_block.1
= control target key start
LH: loop header
LB: loop body
LE: loop exit
PB: predicated region body
PF: predicated region fallthrough
CT: control target
= control target key end

     0   :  { %s18958_s12 = smov 0   ;;  %s23925_s0 = inlined_call_operand.vmem [shape: f32[2,256,128], index: 0, kind: input, shape index: {}]   ;;  %s23926_s1 = inlined_call_operand.vmem [shape: bf16[5,3,384,128], index: 1, kind: input, shape index: {}]   ;;  %s23927_s2 = inlined_call_operand.vmem [shape: f32[5,1,128], index: 2, kind: input, shape index: {}]   ;;  %s23928_s3 = inlined_call_operand.vmem [shape: f32[2,256,8], index: 3, kind: output, shape index: {}]  }
   0x1 LB: > { %s12323_s13 = sadd.s32 4294967295, %s18934_s12   ;;  %p12327_p0 = scmp.ge.s32.totalorder %s18934_s12, 1  ;;  %s18934_s12 = sphi %s18958_s12, %s13_s12  }
   0x2   : > { %p137_p1 = scmp.lt.s32.totalorder %s18934_s12, 3 }
   0x4   : > { %p138_p2 = pnand %p12327_p0, %p137_p1 }
   0x6   : > { %141 = sbr.rel (%p138_p2) target bundleno = 3030 (0xbd6), region = 32 }
   0xd   : > { %v18403_v0 = vld [vmem:[%s23926_s1 + $0x100] sm:$0xff]   ;;  %v18405_v2 = vld [vmem:[%s23926_s1 + $0x108] sm:$0xff]   ;;  %p161_p3 = scmp.lt.s32.totalorder %s12323_s13, 1  ;;  %v18407_v4 = vld [vmem:[%s23926_s1 + $0x110] sm:$0xff]   ;;  %v244_v9 = vlaneseq  ;;  %vm23960_vm1 = vmmov 1   ;;  %v24259_v41 = vmov 0 }
   0xe   : > { %v18404_v1 = vld [vmem:[%s23926_s1 + $0xc0] sm:$0xff]   ;;  %17577 = vmatprep.subr.bf16.mxu1 %v18403_v0  ;;  %14817 = vmatprep.subr.bf16.mxu0 %v18403_v0  ;;  %v18406_v3 = vld [vmem:[%s23926_s1 + $0xc8] sm:$0xff]   ;;  %v18408_v5 = vld [vmem:[%s23926_s1 + $0xd0] sm:$0xff]   ;;  %v18937_v56 = vmov 0.0   ;;  %v24264_v60 = vmov 0 }
   0xf   : > { %17585 = vmatpush3.bf16.msra.mxu1 %v18404_v1  ;;  %14818 = vmatpush3.bf16.msra.mxu0 %v18404_v1  ;;  %s24872_s13 = smov (!%p161_p3, %s12323_s13), 1  ;;  %v18409_v6 = vld [vmem:[%s23926_s1 + $0x118] sm:$0xff]   ;;  %v18411_v8 = vld [vmem:[%s23926_s1 + $0x120] sm:$0xff]   ;;  %v18413_v11 = vld [vmem:[%s23926_s1 + $0x128] sm:$0xff]   ;;  %v19012_v15 = vshrl.u32 %v244_v9, 7  ;;  %172 = vst [vmem:[#allocation2] sm:$0xff] %v18937_v56 }
  0x10   : > { %17578 = vmatprep.subr.bf16.mxu1 %v18405_v2  ;;  %14819 = vmatprep.subr.bf16.mxu0 %v18405_v2  ;;  %s14815_s28 = sshll.u32 %s24872_s13, 8  ;;  %v18410_v7 = vld [vmem:[%s23926_s1 + $0xd8] sm:$0xff]   ;;  %v18412_v10 = vld [vmem:[%s23926_s1 + $0xe0] sm:$0xff]   ;;  %v18414_v19 = vld [vmem:[%s23926_s1 + $0xe8] sm:$0xff]   ;;  %175 = vst [vmem:[#allocation2 + $0x18] sm:$0xff] %v18937_v56 }
  0x11   : > { %s19001_s8 = scalar_lea.vmem %s23925_s0, %s14815_s28  ;;  %v18415_v20 = vld [vmem:[%s23926_s1 + $0x130] sm:$0xff]   ;;  %v253_v21 = vadd.s32 64, %v19012_v15  ;;  %v18417_v29 = vld [vmem:[%s23926_s1 + $0x138] sm:$0xff]   ;;  %v18419_v37 = vld [vmem:[%s23926_s1 + $0x140] sm:$0xff]   ;;  %v255_v38 = vadd.s32 80, %v19012_v15  ;;  %v257_v53 = vadd.s32 96, %v19012_v15  ;;  %s23799_s30 = scalar_lea.vmem %s23928_s3, %s14815_s28 }
  0x12   : > { %v188_v12 = vld [vmem:[%s19001_s8 + $0x40] sm:$0xff]  ;;  %v189_v13 = vld [vmem:[%s19001_s8 + $0x48] sm:$0xff]  ;;  %v187_v14 = vld [vmem:[%s19001_s8 + $0x38] sm:$0xff]  ;;  %173 = vst [vmem:[#allocation2 + $0x8] sm:$0xff] %v18937_v56  ;;  %v247_v52 = vadd.s32 16, %v19012_v15 }
  0x13   : > { %17586 = vmatpush3.bf16.msra.mxu1 %v18406_v3  ;;  %14820 = vmatpush3.bf16.msra.mxu0 %v18406_v3  ;;  %220 = vst [vmem:[#allocation2 + $0x60] sm:$0xff] %v188_v12  ;;  %221 = vst [vmem:[#allocation2 + $0x68] sm:$0xff] %v189_v13  ;;  %v19014_v16 = vpack.c.bf16 %v189_v13, %v188_v12  ;;  %v190_v17 = vld [vmem:[%s19001_s8 + $0x50] sm:$0xff]  ;;  %v191_v18 = vld [vmem:[%s19001_s8 + $0x58] sm:$0xff]  ;;  %v337_v30 = vand.u32 15, %v253_v21  ;;  %v351_v44 = vand.u32 15, %v255_v38 }
  0x14   : > { %17579 = vmatprep.subr.bf16.mxu1 %v18407_v4  ;;  %14821 = vmatprep.subr.bf16.mxu0 %v18407_v4  ;;  %219 = vst [vmem:[#allocation2 + $0x58] sm:$0xff] %v187_v14  ;;  %222 = vst [vmem:[#allocation2 + $0x70] sm:$0xff] %v190_v17  ;;  %v19027_v22 = vld [vmem:[%s19001_s8 + $0x60] sm:$0xff]  ;;  %v19030_v23 = vld [vmem:[%s19001_s8 + $0x68] sm:$0xff]  ;;  %v19086_v42 = vpack.c.bf16 %v191_v18, %v190_v17  ;;  %v365_v62 = vand.u32 15, %v257_v53  ;;  %v24267_v13 = vmov 0 }
  0x15   : > { %1469 = vmatprep.mubr.bf16.mxu1 %v19014_v16  ;;  %223 = vst [vmem:[#allocation2 + $0x78] sm:$0xff] %v191_v18  ;;  %224 = vst [vmem:[#allocation2 + $0x80] sm:$0xff] %v19027_v22  ;;  %v19035_v24 = vld [vmem:[%s19001_s8 + $0x70] sm:$0xff]  ;;  %v19038_v25 = vld [vmem:[%s19001_s8 + $0x78] sm:$0xff]  ;;  %vm669_vm0 = vcmp.gt.s32.totalorder %v337_v30, 0  ;;  %vm19114_vm3 = vcmp.gt.s32.totalorder %v351_v44, 0  ;;  %v19144_v61 = vpack.c.bf16 %v19030_v23, %v19027_v22 }
  0x16   : > { %225 = vst [vmem:[#allocation2 + $0x88] sm:$0xff] %v19030_v23  ;;  %226 = vst [vmem:[#allocation2 + $0x90] sm:$0xff] %v19035_v24  ;;  %v18416_v26 = vld [vmem:[%s23926_s1 + $0xf0] sm:$0xff]   ;;  %v19046_v27 = vld [vmem:[%s19001_s8 + $0x80] sm:$0xff]  ;;  %vm673_vm5 = vcmp.gt.s32.totalorder %v365_v62, 0  ;;  %v19190_v14 = vpack.c.bf16 %v19038_v25, %v19035_v24  ;;  %v261_v23 = vadd.s32 128, %v19012_v15 }
  0x17   : > { %17587 = vmatpush3.bf16.msra.mxu1 %v18408_v5  ;;  %14822 = vmatpush3.bf16.msra.mxu0 %v18408_v5  ;;  %227 = vst [vmem:[#allocation2 + $0x98] sm:$0xff] %v19038_v25  ;;  %v19049_v28 = vld [vmem:[%s19001_s8 + $0x88] sm:$0xff]  ;;  %228 = vst [vmem:[#allocation2 + $0xa0] sm:$0xff] %v19046_v27  ;;  %v18418_v31 = vld [vmem:[%s23926_s1 + $0xf8] sm:$0xff]   ;;  %v24273_v44 = vmov 0 }
  0x18   : > { %17580 = vmatprep.subr.bf16.mxu1 %v18409_v6  ;;  %14823 = vmatprep.subr.bf16.mxu0 %v18409_v6  ;;  %229 = vst [vmem:[#allocation2 + $0xa8] sm:$0xff] %v19049_v28  ;;  %v19060_v33 = vld [vmem:[%s19001_s8 + $0x90] sm:$0xff]  ;;  %v19063_v35 = vld [vmem:[%s19001_s8 + $0x98] sm:$0xff]  ;;  %v19067_v36 = vld [vmem:[%s19001_s8 + $0xa0] sm:$0xff]  ;;  %v393_v30 = vand.u32 15, %v261_v23 }
  0x19   : > { %230 = vst [vmem:[#allocation2 + $0xb0] sm:$0xff] %v19060_v33  ;;  %231 = vst [vmem:[#allocation2 + $0xb8] sm:$0xff] %v19063_v35  ;;  %v19075_v39 = vld [vmem:[%s19001_s8 + $0xa8] sm:$0xff]  ;;  %v19089_v43 = vld [vmem:[%s19001_s8 + $0xb0] sm:$0xff] }
  0x1a   : > { %v736_v34 = vld [vmem:[#allocation2 + $0x67] sm:$0xff]  ;;  %232 = vst [vmem:[#allocation2 + $0xc0] sm:$0xff] %v19067_v36  ;;  %233 = vst [vmem:[#allocation2 + $0xc8] sm:$0xff] %v19075_v39  ;;  %v19095_v46 = vld [vmem:[%s19001_s8 + $0xb8] sm:$0xff]  ;;  %vm677_vm9 = vcmp.gt.s32.totalorder %v393_v30, 0 }
  0x1b   : > { %17588 = vmatpush3.bf16.msra.mxu1 %v18410_v7  ;;  %14824 = vmatpush3.bf16.msra.mxu0 %v18410_v7  ;;  %v735_v32 = vld [vmem:[#allocation2 + $0x5f] sm:$0xff]  ;;  %vm19082_vm2 = vmpackc.low %vm23960_vm1, %vm669_vm0  ;;  %v18420_v45 = vld [vmem:[%s23926_s1 + $0x148] sm:$0xff]   ;;  %234 = vst [vmem:[#allocation2 + $0xd0] sm:$0xff] %v19089_v43 }
  0x1c   : > { %17581 = vmatprep.subr.bf16.mxu1 %v18411_v8  ;;  %14825 = vmatprep.subr.bf16.mxu0 %v18411_v8  ;;  %v19079_v40 = vpack.c.bf16 %v736_v34, %v735_v32  ;;  %v24260_v41 = vsel %vm19082_vm2, 4294967295, %v24259_v41  ;;  %235 = vst [vmem:[#allocation2 + $0xd8] sm:$0xff] %v19095_v46  ;;  %v19100_v47 = vld [vmem:[%s19001_s8 + $0xc0] sm:$0xff]  ;;  %v19106_v48 = vld [vmem:[%s19001_s8 + $0xc8] sm:$0xff]  ;;  %v738_v50 = vld [vmem:[#allocation2 + $0x77] sm:$0xff]  ;;  %v259_v8 = vadd.s32 112, %v19012_v15 }
  0x1d   : > { %24261 = vst [vmem:[#allocation3_spill] sm:$0xff] %v24260_v41  ;;  %236 = vst [vmem:[#allocation2 + $0xe0] sm:$0xff] %v19100_v47  ;;  %v737_v49 = vld [vmem:[#allocation2 + $0x6f] sm:$0xff]  ;;  %v19123_v55 = vld [vmem:[%s19001_s8 + $0xd8] sm:$0xff] }
  0x1e   : > { %237 = vst [vmem:[#allocation2 + $0xe8] sm:$0xff] %v19106_v48  ;;  %v19112_v51 = vld [vmem:[%s19001_s8 + $0xd0] sm:$0xff]  ;;  %174 = vst [vmem:[#allocation2 + $0x10] sm:$0xff] %v18937_v56  ;;  %v19127_v57 = vpack.c.bf16 %v738_v50, %v737_v49  ;;  %v19130_v58 = vld [vmem:[%s19001_s8 + $0xe0] sm:$0xff]  ;;  %v379_v17 = vand.u32 15, %v259_v8  ;;  %v24281_v8 = vmov 0 }
  0x1f   : > { %17589 = vmatpush3.bf16.msra.mxu1 %v18412_v10  ;;  %14826 = vmatpush3.bf16.msra.mxu0 %v18412_v10  ;;  %v18421_v54 = vld [vmem:[%s23926_s1 + $0x150] sm:$0xff]   ;;  %238 = vst [vmem:[#allocation2 + $0xf0] sm:$0xff] %v19112_v51  ;;  %176 = vst [vmem:[#allocation2 + $0x120] sm:$0xff] %v18937_v56  ;;  %v19133_v59 = vld [vmem:[%s19001_s8 + $0xe8] sm:$0xff] }
  0x20   : > { %17582 = vmatprep.subr.bf16.mxu1 %v18413_v11  ;;  %14827 = vmatprep.subr.bf16.mxu0 %v18413_v11  ;;  %177 = vst [vmem:[#allocation2 + $0x128] sm:$0xff] %v18937_v56  ;;  %178 = vst [vmem:[#allocation2 + $0x130] sm:$0xff] %v18937_v56  ;;  %v18422_v63 = vld [vmem:[%s23926_s1 + $0x158] sm:$0xff]   ;;  %v19152_v0 = vld [vmem:[%s19001_s8 + $0xf0] sm:$0xff]  ;;  %vm675_vm7 = vcmp.gt.s32.totalorder %v379_v17, 0  ;;  %v265_v56 = vadd.s32 160, %v19012_v15 }
  0x21   : > { %239 = vst [vmem:[#allocation2 + $0xf8] sm:$0xff] %v19123_v55  ;;  %vm19138_vm4 = vmpackc.low %vm23960_vm1, %vm19114_vm3  ;;  %v19155_v1 = vld [vmem:[%s19001_s8 + $0xf8] sm:$0xff]  ;;  %v180_v2 = vld [vmem:[%s19001_s8] sm:$0xff] }
  0x22   : > { %v24265_v60 = vsel %vm19138_vm4, 4294967295, %v24264_v60  ;;  %240 = vst [vmem:[#allocation2 + $0x100] sm:$0xff] %v19130_v58  ;;  %241 = vst [vmem:[#allocation2 + $0x108] sm:$0xff] %v19133_v59  ;;  %v181_v3 = vld [vmem:[%s19001_s8 + $0x8] sm:$0xff]  ;;  %v739_v4 = vld [vmem:[#allocation2 + $0x7f] sm:$0xff] }
  0x23   : > { %17590 = vmatpush3.bf16.msra.mxu1 %v18414_v19  ;;  %14828 = vmatpush3.bf16.msra.mxu0 %v18414_v19  ;;  %24266 = vst [vmem:[#allocation4_spill] sm:$0xff] %v24265_v60  ;;  %242 = vst [vmem:[#allocation2 + $0x110] sm:$0xff] %v19152_v0  ;;  %v740_v5 = vld [vmem:[#allocation2 + $0x87] sm:$0xff]  ;;  %v19166_v6 = vld [vmem:[%s19001_s8 + $0x10] sm:$0xff]  ;;  %v19168_v7 = vpack.c.bf16 %v181_v3, %v180_v2 }
  0x24   : > { %17583 = vmatprep.subr.bf16.mxu1 %v18415_v20  ;;  %14829 = vmatprep.subr.bf16.mxu0 %v18415_v20  ;;  %243 = vst [vmem:[#allocation2 + $0x118] sm:$0xff] %v19155_v1  ;;  %212 = vst [vmem:[#allocation2 + $0x20] sm:$0xff] %v180_v2  ;;  %v18423_v9 = vld [vmem:[%s23926_s1 + $0x160] sm:$0xff]   ;;  %v183_v10 = vld [vmem:[%s19001_s8 + $0x18] sm:$0xff]  ;;  %v19181_v12 = vpack.c.bf16 %v740_v5, %v739_v4  ;;  %v295_v4 = vand.u32 15, %v247_v52 }
  0x25   : > { %213 = vst [vmem:[#allocation2 + $0x28] sm:$0xff] %v181_v3  ;;  %214 = vst [vmem:[#allocation2 + $0x30] sm:$0xff] %v19166_v6  ;;  %v19177_v11 = vld [vmem:[%s19001_s8 + $0x20] sm:$0xff]  ;;  %1437 = vmatprep.mubr.bf16.mxu0 %v19168_v7  ;;  %v18424_v18 = vld [vmem:[%s23926_s1 + $0x168] sm:$0xff]  }
  0x26   : > { %215 = vst [vmem:[#allocation2 + $0x38] sm:$0xff] %v183_v10  ;;  %216 = vst [vmem:[#allocation2 + $0x40] sm:$0xff] %v19177_v11  ;;  %v19196_v19 = vld [vmem:[%s19001_s8 + $0x28] sm:$0xff]  ;;  %v19199_v20 = vld [vmem:[%s19001_s8 + $0x30] sm:$0xff]  ;;  %vm663_vm15 = vcmp.gt.s32.totalorder %v295_v4, 0 }
  0x27   : > { %17591 = vmatpush3.bf16.msra.mxu1 %v18416_v26  ;;  %14830 = vmatpush3.bf16.msra.mxu0 %v18416_v26  ;;  %vm19184_vm6 = vmpackc.low %vm23960_vm1, %vm673_vm5  ;;  %217 = vst [vmem:[#allocation2 + $0x48] sm:$0xff] %v19196_v19  ;;  %v741_v21 = vld [vmem:[#allocation2 + $0x8f] sm:$0xff]  ;;  %v742_v22 = vld [vmem:[#allocation2 + $0x97] sm:$0xff]  ;;  %v24270_v26 = vmov 0  ;;  %v19301_v30 = vpack.c.bf16 %v19196_v19, %v19177_v11  ;;  %v19320_v11 = vpack.c.bf16 %v19095_v46, %v19089_v43  ;;  %v269_v46 = vadd.s32 192, %v19012_v15 }
  0x28   : > { %17584 = vmatprep.subr.bf16.mxu1 %v18417_v29  ;;  %14831 = vmatprep.subr.bf16.mxu0 %v18417_v29  ;;  %v24268_v13 = vsel %vm19184_vm6, 4294967295, %v24267_v13  ;;  %218 = vst [vmem:[#allocation2 + $0x50] sm:$0xff] %v19199_v20  ;;  %v18425_v24 = vld [vmem:[%s23926_s1 + $0x170] sm:$0xff]   ;;  %v19211_v25 = vpack.c.bf16 %v742_v22, %v741_v21  ;;  %vm19214_vm8 = vmpackc.low %vm23960_vm1, %vm675_vm7  ;;  %v19220_v29 = vpack.c.bf16 %v19049_v28, %v19046_v27  ;;  %v743_v32 = vld [vmem:[#allocation2 + $0x9f] sm:$0xff]  ;;  %v263_v27 = vadd.s32 144, %v19012_v15 }
  0x29   : > { %24269 = vst [vmem:[#allocation5_spill] sm:$0xff] %v24268_v13  ;;  %v24271_v26 = vsel %vm19214_vm8, 4294967295, %v24270_v26  ;;  %v744_v34 = vld [vmem:[#allocation2 + $0xa7] sm:$0xff]  ;;  %vm19237_vm10 = vmpackc.low %vm23960_vm1, %vm677_vm9  ;;  %v745_v50 = vld [vmem:[#allocation2 + $0xaf] sm:$0xff]  ;;  %v449_v4 = vand.u32 15, %v269_v46  ;;  %v19394_v46 = vpack.c.bf16 %v19123_v55, %v19112_v51 }
  0x2a   : > { %24272 = vst [vmem:[#allocation6_spill] sm:$0xff] %v24271_v26  ;;  %v18427_v28 = vld [vmem:[%s23926_s1 + $0x40] sm:$0xff]   ;;  %v19234_v38 = vpack.c.bf16 %v744_v34, %v743_v32  ;;  %v24274_v44 = vsel %vm19237_vm10, 4294967295, %v24273_v44  ;;  %v407_v49 = vand.u32 15, %v263_v27  ;;  %v746_v53 = vld [vmem:[#allocation2 + $0xb7] sm:$0xff]  ;;  %v18440_v17 = vld [vmem:[%s23926_s1 + $0x188] sm:$0xff]  }
  0x2b   : > { %17592 = vmatpush3.bf16.msra.mxu1 %v18418_v31  ;;  %14832 = vmatpush3.bf16.msra.mxu0 %v18418_v31  ;;  %v18426_v31 = vld [vmem:[%s23926_s1 + $0x178] sm:$0xff]   ;;  %24275 = vst [vmem:[#allocation7_spill] sm:$0xff] %v24274_v44  ;;  %v18437_v2 = vld [vmem:[%s23926_s1 + $0x1c0] sm:$0xff]   ;;  %v19267_v5 = vpack.c.bf16 %v746_v53, %v745_v50  ;;  %vm19295_vm3 = vmpackc.low %vm23960_vm1, %vm663_vm15  ;;  %v251_v53 = vadd.s32 48, %v19012_v15  ;;  %vm685_vm15 = vcmp.gt.s32.totalorder %v449_v4, 0  ;;  %v246_v4 = vadd.s32 8, %v19012_v15 }
  0x2c   : > { %16857 = vmatprep.subr.bf16.mxu1 %v18419_v37  ;;  %v728_v62 = vld [vmem:[#allocation2 + $0x27] sm:$0xff]  ;;  %vm679_vm13 = vcmp.gt.s32.totalorder %v407_v49, 0  ;;  %15089 = vmatprep.subr.bf16.mxu0 %v18437_v2  ;;  %v747_v21 = vld [vmem:[#allocation2 + $0xbf] sm:$0xff]  ;;  %v729_v22 = vld [vmem:[#allocation2 + $0x2f] sm:$0xff]  ;;  %v24289_v49 = vmov 0  ;;  %24292 = vst [vmem:[#allocation16_spill] sm:$0xff] %v19320_v11 }
  0x2d   : > { %v18438_v3 = vld [vmem:[%s23926_s1 + $0x180] sm:$0xff]   ;;  %24280 = vst [vmem:[#allocation10_spill] sm:$0xff] %v19267_v5  ;;  %vm19276_vm14 = vmpackc.low %vm23960_vm1, %vm679_vm13  ;;  %v730_v23 = vld [vmem:[#allocation2 + $0x37] sm:$0xff]  ;;  %v24296_v2 = vmov 0 }
  0x2e   : > { %12418 = vmatmul.mubr.msk.bf16.vlgmr.msra.gmra.mrb[0].mxu1 %vm19082_vm2, %v19079_v40  ;;  %v24282_v8 = vsel %vm19276_vm14, 4294967295, %v24281_v8  ;;  %v19303_v32 = vpack.c.bf16 %v730_v23, %v729_v22  ;;  %v18443_v34 = vld [vmem:[%s23926_s1 + $0x1d0] sm:$0xff]   ;;  %v18445_v19 = vld [vmem:[%s23926_s1 + $0x1d8] sm:$0xff]   ;;  %v271_v22 = vadd.s32 208, %v19012_v15  ;;  %24308 = vst [vmem:[#allocation24_spill] sm:$0xff] %v19394_v46 }
  0x2f   : > { %16858 = vmatpush3.bf16.msra.mxu1 %v18419_v37  ;;  %1477 = vmatprep.mubr.bf16.mxu1 %v19086_v42  ;;  %v281_v37 = vand.u32 15, %v19012_v15  ;;  %24283 = vst [vmem:[#allocation11_spill] sm:$0xff] %v24282_v8  ;;  %v18446_v50 = vld [vmem:[%s23926_s1 + $0x198] sm:$0xff]   ;;  %v749_v43 = vld [vmem:[#allocation2 + $0xcf] sm:$0xff] }
  0x30   : > { %16859 = vmatprep.subr.bf16.mxu1 %v18420_v45  ;;  %v750_v52 = vld [vmem:[#allocation2 + $0xd7] sm:$0xff] }
  0x31   : > { %vm661_vm11 = vcmp.gt.s32.totalorder %v281_v37, 0  ;;  %v862_v23 = vld [vmem:[#allocation2 + $0x58] sm:$0xff] }
  0x32   : > { %vm19252_vm12 = vmpackc.low %vm23960_vm1, %vm661_vm11  ;;  %v18457_v51 = vld [vmem:[%s23926_s1 + $0x1f8] sm:$0xff]  }
  0x33   : > { %16860 = vmatpush3.bf16.msra.mxu1 %v18420_v45  ;;  %v19243_v45 = vpack.c.bf16 %v19063_v35, %v19060_v33  ;;  %v24277_v33 = vmov 0  ;;  %v19257_v35 = vpack.c.bf16 %v183_v10, %v19166_v6  ;;  %v18439_v6 = vld [vmem:[%s23926_s1 + $0x1c8] sm:$0xff]   ;;  %v421_v10 = vand.u32 15, %v265_v56  ;;  %v731_v56 = vld [vmem:[#allocation2 + $0x3f] sm:$0xff] }
  0x34   : > { %16861 = vmatprep.subr.bf16.mxu1 %v18421_v54  ;;  %v24278_v33 = vsel %vm19252_vm12, 4294967295, %v24277_v33 }
  0x35   : > { %24276 = vst [vmem:[#allocation8_spill] sm:$0xff] %v19243_v45  ;;  %24279 = vst [vmem:[#allocation9_spill] sm:$0xff] %v24278_v33  ;;  %vm681_vm0 = vcmp.gt.s32.totalorder %v421_v10, 0  ;;  %v18449_v10 = vld [vmem:[%s23926_s1 + $0x1e0] sm:$0xff]  }
  0x36   : > { %12421 = vmatmul.mubr.msk.bf16.gmra.mrb[4].mxu1 %vm19138_vm4, %v19127_v57  ;;  %vm19314_vm5 = vmpackc.low %vm23960_vm1, %vm681_vm0 }
  0x37   : > { %1485 = vmatprep.mubr.bf16.mxu1 %v19144_v61  ;;  %16862 = vmatpush3.bf16.msra.mxu1 %v18421_v54  ;;  %v727_v54 = vld [vmem:[#allocation2 + $0x1f] sm:$0xff]  ;;  %v24290_v49 = vsel %vm19314_vm5, 4294967295, %v24289_v49 }
  0x38   : > { %16863 = vmatprep.subr.bf16.mxu1 %v18422_v63  ;;  %24291 = vst [vmem:[#allocation15_spill] sm:$0xff] %v24290_v49 }
  0x3b   : > { %16864 = vmatpush3.bf16.msra.mxu1 %v18422_v63  ;;  %v19259_v63 = vpack.c.bf16 %v728_v62, %v727_v54  ;;  %v24293_v54 = vmov 0  ;;  %v732_v62 = vld [vmem:[#allocation2 + $0x47] sm:$0xff] }
  0x3c   : > { %16865 = vmatprep.subr.bf16.mxu1 %v18423_v9 }
  0x3d   : > { %12406 = vmatmul.mubr.msk.bf16.vlgmr.msra.gmra.mrb[0].mxu0 %vm19252_vm12, %v19259_v63 }
  0x3e   : > { %12424 = vmatmul.mubr.msk.bf16.gmra.mrb[8].mxu1 %vm19184_vm6, %v19181_v12  ;;  %15090 = vmatpush3.bf16.msra.mxu0 %v18438_v3  ;;  %v19348_v3 = vpack.c.bf16 %v750_v52, %v749_v43  ;;  %v24305_v43 = vmov 0  ;;  %v463_v52 = vand.u32 15, %v271_v22  ;;  %v288_v22 = vand.u32 15, %v246_v4 }
  0x3f   : > { %1493 = vmatprep.mubr.bf16.mxu1 %v19190_v14  ;;  %16866 = vmatpush3.bf16.msra.mxu1 %v18423_v9  ;;  %v19282_v9 = vpack.c.bf16 %v19075_v39, %v19067_v36  ;;  %v249_v36 = vadd.s32 32, %v19012_v15  ;;  %v748_v39 = vld [vmem:[#allocation2 + $0xc7] sm:$0xff]  ;;  %v1210_v4 = vpack.c.bf16 %v19155_v1, %v19152_v0  ;;  %v1109_v1 = vld [vmem:[#allocation2 + $0x10f] sm:$0xff] }
  0x40   : > { %16867 = vmatprep.subr.bf16.mxu1 %v18424_v18  ;;  %1445 = vmatprep.mubr.bf16.mxu0 %v19257_v35  ;;  %v19308_v27 = vpack.c.bf16 %v748_v39, %v747_v21  ;;  %24299 = vst [vmem:[#allocation19_spill] sm:$0xff] %v19348_v3  ;;  %v323_v21 = vand.u32 15, %v251_v53  ;;  %v752_v39 = vld [vmem:[#allocation2 + $0xe7] sm:$0xff]  ;;  %v18455_v53 = vld [vmem:[%s23926_s1 + $0x1f0] sm:$0xff]  }
  0x41   : > { %24284 = vst [vmem:[#allocation12_spill] sm:$0xff] %v19282_v9  ;;  %15091 = vmatprep.subr.bf16.mxu0 %v18439_v6  ;;  %v309_v37 = vand.u32 15, %v249_v36  ;;  %v19350_v6 = vpack.c.bf16 %v732_v62, %v731_v56  ;;  %v18451_v36 = vld [vmem:[%s23926_s1 + $0x1e8] sm:$0xff]   ;;  %v275_v56 = vadd.s32 240, %v19012_v15  ;;  %v18456_v62 = vld [vmem:[%s23926_s1 + $0x1b0] sm:$0xff]  }
  0x42   : > { %15092 = vmatpush3.bf16.msra.mxu0 %v18440_v17  ;;  %24288 = vst [vmem:[#allocation14_spill] sm:$0xff] %v19308_v27  ;;  %v19357_v17 = vpack.c.bf16 %v19106_v48, %v19100_v47  ;;  %v18452_v47 = vld [vmem:[%s23926_s1 + $0x1a8] sm:$0xff]   ;;  %v751_v48 = vld [vmem:[#allocation2 + $0xdf] sm:$0xff]  ;;  %vm667_vm0 = vcmp.gt.s32.totalorder %v323_v21, 0  ;;  %v754_v21 = vld [vmem:[#allocation2 + $0xf7] sm:$0xff] }
  0x43   : > { %16868 = vmatpush3.bf16.msra.mxu1 %v18424_v18  ;;  %v267_v18 = vadd.s32 176, %v19012_v15  ;;  %15093 = vmatprep.subr.bf16.mxu0 %v18443_v34  ;;  %vm665_vm9 = vcmp.gt.s32.totalorder %v309_v37, 0  ;;  %v19382_v34 = vpack.c.bf16 %v862_v23, %v19199_v20  ;;  %v273_v37 = vadd.s32 224, %v19012_v15 }
  0x44   : > { %16869 = vmatprep.subr.bf16.mxu1 %v18425_v24  ;;  %vm19344_vm13 = vmpackc.low %vm23960_vm1, %vm665_vm9  ;;  %24300 = vst [vmem:[#allocation20_spill] sm:$0xff] %v19357_v17  ;;  %v24310_v23 = vmov 0 }
  0x45   : > { %12409 = vmatmul.mubr.msk.bf16.gmra.mrb[4].mxu0 %vm19295_vm3, %v19303_v32  ;;  %v24297_v2 = vsel %vm19344_vm13, 4294967295, %v24296_v2  ;;  %vm19388_vm9 = vmpackc.low %vm23960_vm1, %vm667_vm0  ;;  %v477_v55 = vand.u32 15, %v273_v37  ;;  %v19432_v37 = vpack.c.bf16 %v19133_v59, %v19130_v58  ;;  %v755_v58 = vld [vmem:[#allocation2 + $0xff] sm:$0xff]  ;;  %v756_v59 = vld [vmem:[#allocation2 + $0x107] sm:$0xff] }
  0x46   : > { %12427 = vmatmul.mubr.msk.bf16.gmra.mrb[12].mxu1 %vm19214_vm8, %v19211_v25  ;;  %1453 = vmatprep.mubr.bf16.mxu0 %v19301_v30  ;;  %24298 = vst [vmem:[#allocation18_spill] sm:$0xff] %v24297_v2  ;;  %v24306_v43 = vsel %vm19388_vm9, 4294967295, %v24305_v43 }
  0x47   : > { %1501 = vmatprep.mubr.bf16.mxu1 %v19220_v29  ;;  %16870 = vmatpush3.bf16.msra.mxu1 %v18425_v24  ;;  %v24285_v24 = vmov 0  ;;  %24307 = vst [vmem:[#allocation23_spill] sm:$0xff] %v24306_v43  ;;  %vm689_vm0 = vcmp.gt.s32.totalorder %v477_v55, 0  ;;  %24313 = vst [vmem:[#allocation27_spill] sm:$0xff] %v19432_v37  ;;  %v24321_v55 = vmov 0 }
  0x48   : > { %16871 = vmatprep.subr.bf16.mxu1 %v18426_v31  ;;  %v24286_v24 = vsel %vm19295_vm3, 4294967295, %v24285_v24 }
  0x49   : > { %24287 = vst [vmem:[#allocation13_spill] sm:$0xff] %v24286_v24 }
  0x4b   : > { %16872 = vmatpush3.bf16.msra.mxu1 %v18426_v31  ;;  %v435_v31 = vand.u32 15, %v267_v18  ;;  %v18450_v18 = vld [vmem:[%s23926_s1 + $0x1a0] sm:$0xff]  }
  0x4c   : > { %14953 = vmatprep.subr.bf16.mxu1 %v18427_v28  ;;  %v18444_v28 = vld [vmem:[%s23926_s1 + $0x190] sm:$0xff]  }
  0x4d   : > { %15094 = vmatpush3.bf16.msra.mxu0 %v18444_v28  ;;  %vm683_vm7 = vcmp.gt.s32.totalorder %v435_v31, 0  ;;  %v24301_v31 = vmov 0  ;;  %v19384_v28 = vpack.c.bf16 %v752_v39, %v751_v48  ;;  %v250_v48 = vadd.s32 40, %v19012_v15 }
  0x4e   : > { %12430 = vmatmul.mubr.msk.bf16.gmra.mrb[16].mxu1 %vm19237_vm10, %v19234_v38  ;;  %15095 = vmatprep.subr.bf16.mxu0 %v18445_v19  ;;  %vm19339_vm11 = vmpackc.low %vm23960_vm1, %vm683_vm7  ;;  %v733_v19 = vld [vmem:[#allocation2 + $0x4f] sm:$0xff] }
  0x4f   : > { %1509 = vmatprep.mubr.bf16.mxu1 %v19243_v45  ;;  %v24294_v54 = vsel %vm19339_vm11, 4294967295, %v24293_v54  ;;  %12412 = vmatmul.mubr.msk.bf16.gmra.mrb[8].mxu0 %vm19344_vm13, %v19350_v6  ;;  %vm19377_vm7 = vmpackc.low %vm23960_vm1, %vm685_vm15  ;;  %24304 = vst [vmem:[#allocation22_spill] sm:$0xff] %v19384_v28  ;;  %vm687_vm15 = vcmp.gt.s32.totalorder %v463_v52, 0  ;;  %v316_v52 = vand.u32 15, %v250_v48  ;;  %v258_v48 = vadd.s32 104, %v19012_v15 }
  0x50   : > { %24295 = vst [vmem:[#allocation17_spill] sm:$0xff] %v24294_v54  ;;  %v24302_v31 = vsel %vm19377_vm7, 4294967295, %v24301_v31  ;;  %1461 = vmatprep.mubr.bf16.mxu0 %v19382_v34 }
  0x51   : > { %15096 = vmatpush3.bf16.msra.mxu0 %v18446_v50  ;;  %24303 = vst [vmem:[#allocation21_spill] sm:$0xff] %v24302_v31  ;;  %v734_v50 = vld [vmem:[#allocation2 + $0x57] sm:$0xff] }
  0x52   : > { %15097 = vmatprep.subr.bf16.mxu0 %v18449_v10  ;;  %v19397_v20 = vpack.c.bf16 %v734_v50, %v733_v19  ;;  %v18458_v10 = vld [vmem:[%s23926_s1 + $0x1b8] sm:$0xff]   ;;  %v24314_v19 = vmov 0 }
  0x55   : > { %15098 = vmatpush3.bf16.msra.mxu0 %v18450_v18  ;;  %v753_v18 = vld [vmem:[#allocation2 + $0xef] sm:$0xff] }
  0x56   : > { %12433 = vmatmul.mubr.msk.bf16.gmra.mrb[20].mxu1 %vm19276_vm14, %v19267_v5  ;;  %15099 = vmatprep.subr.bf16.mxu0 %v18451_v36  ;;  %v491_v36 = vand.u32 15, %v275_v56  ;;  %v19423_v39 = vpack.c.bf16 %v754_v21, %v753_v18  ;;  %v254_v56 = vadd.s32 72, %v19012_v15  ;;  %vm19467_vm14 = vcmp.lt.s32.totalorder %v316_v52, 15  ;;  %v888_v52 = vld [vmem:[#allocation2 + $0x29] sm:$0xff] }
  0x57   : > { %1517 = vmatprep.mubr.bf16.mxu1 %v19282_v9  ;;  %12415 = vmatmul.mubr.msk.bf16.gmra.mrb[12].mxu0 %vm19388_vm9, %v19397_v20  ;;  %v2265_v18 = vld [vmem:[#allocation2 + $0x70] sm:$0xff] }
  0x58   : > { %2626 = vmatprep.mubr.bf16.mxu0 %v19257_v35  ;;  %24309 = vst [vmem:[#allocation25_spill] sm:$0xff] %v19423_v39  ;;  %v344_v0 = vand.u32 15, %v254_v56 }
  0x59   : > { %15100 = vmatpush3.bf16.msra.mxu0 %v18452_v47  ;;  %v248_v47 = vadd.s32 24, %v19012_v15 }
  0x5a   : > { %15101 = vmatprep.subr.bf16.mxu0 %v18455_v53  ;;  %v252_v53 = vadd.s32 56, %v19012_v15 }
  0x5b   : > { %v302_v50 = vand.u32 15, %v248_v47  ;;  %v256_v47 = vadd.s32 88, %v19012_v15 }
  0x5c   : > { %v330_v21 = vand.u32 15, %v252_v53  ;;  %v260_v53 = vadd.s32 120, %v19012_v15 }
  0x5d   : > { %15102 = vmatpush3.bf16.msra.mxu0 %v18456_v62  ;;  %v19449_v62 = vpack.c.bf16 %v756_v59, %v755_v58  ;;  %v2264_v58 = vld [vmem:[#allocation2 + $0x68] sm:$0xff] }
  0x5e   : > { %12436 = vmatmul.mubr.msk.bf16.gmra.mrb[24].mxu1 %vm19314_vm5, %v19308_v27  ;;  %15103 = vmatprep.subr.bf16.mxu0 %v18457_v51  ;;  %vm691_vm5 = vcmp.gt.s32.totalorder %v491_v36, 0  ;;  %v24318_v51 = vmov 0  ;;  %v1110_v36 = vld [vmem:[#allocation2 + $0x117] sm:$0xff]  ;;  %v18430_v59 = vld [vmem:[%s23926_s1 + $0x8] sm:$0xff]  }
  0x5f   : > { %1525 = vmatprep.mubr.bf16.mxu1 %v19320_v11  ;;  %24317 = vst [vmem:[#allocation29_spill] sm:$0xff] %v19449_v62  ;;  %v12450_v56 = vpack.c.bf16 %v1110_v36, %v1109_v1  ;;  %v262_v1 = vadd.s32 136, %v19012_v15  ;;  %v2199_v36 = vld [vmem:[#allocation2 + $0x5f] sm:$0xff]  ;;  %v2268_v27 = vld [vmem:[#allocation2 + $0x88] sm:$0xff] }
  0x61   : > { %15104 = vmatpush3.bf16.msra.mxu0 %v18458_v10  ;;  %v889_v10 = vld [vmem:[#allocation2 + $0x31] sm:$0xff] }
  0x64   : > { %12694 = vmatmul.mubr.msk.bf16.vlgmr.msra.gmra.mrb[16].mxu0 %vm19252_vm12, %v19303_v32  ;;  %vm19463_vm12 = vcmp.lt.s32.totalorder %v302_v50, 15  ;;  %v887_v50 = vld [vmem:[#allocation2 + $0x21] sm:$0xff] }
  0x65   : > { %2634 = vmatprep.mubr.bf16.mxu0 %v19301_v30 }
  0x66   : > { %12439 = vmatmul.mubr.msk.bf16.gmra.mrb[28].mxu1 %vm19339_vm11, %v19348_v3  ;;  %vm19435_vm11 = vmpackc.low %vm23960_vm1, %vm689_vm0  ;;  %v18429_v3 = vld [vmem:[%s23926_s1 + $0x48] sm:$0xff]  }
  0x67   : > { %1533 = vmatprep.mubr.bf16.mxu1 %v19357_v17  ;;  %v24315_v19 = vsel %vm19435_vm11, 4294967295, %v24314_v19  ;;  %vm19454_vm0 = vmpackc.low %vm23960_vm1, %vm691_vm5  ;;  %vm19481_vm5 = vcmp.lt.s32.totalorder %v330_v21, 15  ;;  %v2269_v21 = vld [vmem:[#allocation2 + $0x90] sm:$0xff] }
  0x68   : > { %24316 = vst [vmem:[#allocation28_spill] sm:$0xff] %v24315_v19  ;;  %v24319_v51 = vsel %vm19454_vm0, 4294967295, %v24318_v51 }
  0x69   : > { %24320 = vst [vmem:[#allocation30_spill] sm:$0xff] %v24319_v51 }
  0x6c   : > { %12697 = vmatmul.mubr.msk.bf16.gmra.mrb[20].mxu0 %vm19295_vm3, %v19350_v6  ;;  %vm19501_vm3 = vcmp.lt.s32.totalorder %v344_v0, 15  ;;  %v891_v0 = vld [vmem:[#allocation2 + $0x41] sm:$0xff] }
  0x6d   : > { %2642 = vmatprep.mubr.bf16.mxu0 %v19382_v34 }
  0x6e   : > { %12442 = vmatmul.mubr.msk.bf16.gmra.mrb[32].mxu1 %vm19377_vm7, %v19384_v28  ;;  %vm19426_vm7 = vmpackc.low %vm23960_vm1, %vm687_vm15  ;;  %vm694_vm15 = vcmp.lt.s32.totalorder %v288_v22, 15  ;;  %v2263_v22 = vld [vmem:[#allocation2 + $0x60] sm:$0xff]  ;;  %v892_v28 = vld [vmem:[#allocation2 + $0x49] sm:$0xff] }
  0x6f   : > { %1541 = vmatprep.mubr.bf16.mxu1 %v19394_v46  ;;  %v24311_v23 = vsel %vm19426_vm7, 4294967295, %v24310_v23  ;;  %v2266_v46 = vld [vmem:[#allocation2 + $0x78] sm:$0xff] }
  0x70   : > { %24312 = vst [vmem:[#allocation26_spill] sm:$0xff] %v24311_v23  ;;  %v2366_v11 = vpack.c.bf16 %v2266_v46, %v2265_v18  ;;  %v264_v46 = vadd.s32 152, %v19012_v15  ;;  %v894_v18 = vld [vmem:[#allocation2 + $0x59] sm:$0xff] }
  0x74   : > { %12700 = vmatmul.mubr.msk.bf16.gmra.mrb[24].mxu0 %vm19344_vm13, %v19397_v20 }
  0x76   : > { %12445 = vmatmul.mubr.msk.bf16.gmra.mrb[36].mxu1 %vm19426_vm7, %v19423_v39  ;;  %vm19459_vm7 = vmpackc.low %vm694_vm15, %vm23960_vm1  ;;  %v19485_v39 = vpack.c.bf16 %v888_v52, %v887_v50  ;;  %v890_v50 = vld [vmem:[#allocation2 + $0x39] sm:$0xff]  ;;  %v358_v52 = vand.u32 15, %v256_v47 }
  0x77   : > { %1549 = vmatprep.mubr.bf16.mxu1 %v19432_v37  ;;  %v24322_v55 = vsel %vm19459_vm7, 4294967295, %v24321_v55  ;;  %v2363_v37 = vpack.c.bf16 %v2264_v58, %v2263_v22  ;;  %vm19490_vm15 = vmpackc.low %vm19463_vm12, %vm23960_vm1  ;;  %v2200_v22 = vld [vmem:[#allocation2 + $0x67] sm:$0xff]  ;;  %v372_v58 = vand.u32 15, %v258_v48  ;;  %v19517_v17 = vpack.c.bf16 %v890_v50, %v889_v10  ;;  %v893_v50 = vld [vmem:[#allocation2 + $0x51] sm:$0xff] }
  0x78   : > { %24323 = vst [vmem:[#allocation31_spill] sm:$0xff] %v24322_v55  ;;  %24330 = vst [vmem:[#allocation32_spill] sm:$0xff] %v19485_v39  ;;  %v18428_v47 = vld [vmem:[%s23926_s1] sm:$0xff]   ;;  %v12702_v48 = vpack.c.bf16 %v2200_v22, %v2199_v36  ;;  %v24344_v36 = vmov 0  ;;  %v386_v22 = vand.u32 15, %v260_v53  ;;  %v400_v10 = vand.u32 15, %v262_v1 }
  0x79   : > { %2650 = vmatprep.mubr.bf16.mxu0 %v2363_v37  ;;  %24339 = vst [vmem:[#allocation35_spill] sm:$0xff] %v19517_v17  ;;  %vm19527_vm12 = vmpackc.low %vm19481_vm5, %vm23960_vm1  ;;  %v24341_v37 = vmov 0  ;;  %vm19542_vm5 = vcmp.lt.s32.totalorder %v358_v52, 15  ;;  %v2202_v53 = vld [vmem:[#allocation2 + $0x77] sm:$0xff]  ;;  %v2267_v1 = vld [vmem:[#allocation2 + $0x80] sm:$0xff]  ;;  %v19573_v9 = vpack.c.bf16 %v894_v18, %v893_v50 }
  0x7a   : > { %v24342_v37 = vsel %vm19527_vm12, 4294967295, %v24341_v37  ;;  %v896_v55 = vld [vmem:[#allocation2 + $0x69] sm:$0xff]  ;;  %v897_v50 = vld [vmem:[#allocation2 + $0x71] sm:$0xff]  ;;  %v898_v18 = vld [vmem:[#allocation2 + $0x79] sm:$0xff] }
  0x7b   : > { %24343 = vst [vmem:[#allocation37_spill] sm:$0xff] %v24342_v37  ;;  %v18431_v52 = vld [vmem:[%s23926_s1 + $0x50] sm:$0xff]   ;;  %24355 = vst [vmem:[#allocation39_spill] sm:$0xff] %v19573_v9  ;;  %v19617_v37 = vpack.c.bf16 %v898_v18, %v897_v50  ;;  %v902_v50 = vld [vmem:[#allocation2 + $0x99] sm:$0xff] }
  0x7c   : > { %12703 = vmatmul.mubr.msk.bf16.gmra.mrb[28].mxu0 %vm19388_vm9, %v12702_v48  ;;  %v18441_v48 = vld [vmem:[%s23926_s1 + $0x68] sm:$0xff]  }
  0x7d   : > { %2658 = vmatprep.mubr.bf16.mxu0 %v2366_v11  ;;  %24366 = vst [vmem:[#allocation43_spill] sm:$0xff] %v19617_v37 }
  0x7e   : > { %12448 = vmatmul.mubr.msk.bf16.gmra.mrb[40].mxu1 %vm19435_vm11, %v19449_v62  ;;  %v24331_v62 = vmov 0  ;;  %vm19497_vm11 = vmpackc.low %vm19467_vm14, %vm23960_vm1 }
  0x7f   : > { %1557 = vmatprep.mubr.bf16.mxu1 %v1210_v4  ;;  %v24332_v62 = vsel %vm19490_vm15, 4294967295, %v24331_v62  ;;  %v24334_v4 = vmov 0  ;;  %vm19534_vm14 = vmpackc.low %vm19501_vm3, %vm23960_vm1  ;;  %vm19562_vm3 = vcmp.lt.s32.totalorder %v386_v22, 15  ;;  %vm19569_vm1 = vcmp.lt.s32.totalorder %v400_v10, 15 }
  0x80   : > { %24333 = vst [vmem:[#allocation33_spill] sm:$0xff] %v24332_v62  ;;  %v24335_v4 = vsel %vm19497_vm11, 4294967295, %v24334_v4  ;;  %v24345_v36 = vsel %vm19534_vm14, 4294967295, %v24344_v36  ;;  %v24361_v10 = vmov 0  ;;  %v18442_v62 = vld [vmem:[%s23926_s1 + $0x28] sm:$0xff]  }
  0x81   : > { %24336 = vst [vmem:[#allocation34_spill] sm:$0xff] %v24335_v4  ;;  %24346 = vst [vmem:[#allocation38_spill] sm:$0xff] %v24345_v36  ;;  %v18435_v4 = vld [vmem:[%s23926_s1 + $0x60] sm:$0xff]  }
  0x82   : > { %v24451_v2 = vld [vmem:[#allocation37_spill] sm:$0xff] }
  0x86   : > { %12451 = vmatmul.mubr.msk.bf16.gmra.mrb[44].mxu1 %vm19454_vm0, %v12450_v56  ;;  %v19522_v56 = vpack.c.bf16 %v892_v28, %v891_v0  ;;  %v2201_v28 = vld [vmem:[#allocation2 + $0x6f] sm:$0xff] }
  0x87   : > { %16873 = vmatprep.mubr.msk.bf16.mxu1 %vm19459_vm7, %v19485_v39  ;;  %vm19546_vm7 = vcmp.lt.s32.totalorder %v372_v58, 15  ;;  %v895_v39 = vld [vmem:[#allocation2 + $0x61] sm:$0xff]  ;;  %v266_v58 = vadd.s32 168, %v19012_v15  ;;  %v12705_v11 = vpack.c.bf16 %v2202_v53, %v2201_v28  ;;  %v414_v28 = vand.u32 15, %v264_v46 }
  0x88   : > { %24340 = vst [vmem:[#allocation36_spill] sm:$0xff] %v19522_v56  ;;  %v19578_v22 = vpack.c.bf16 %v896_v55, %v895_v39  ;;  %v2203_v39 = vld [vmem:[#allocation2 + $0x7f] sm:$0xff]  ;;  %v2204_v55 = vld [vmem:[#allocation2 + $0x87] sm:$0xff]  ;;  %v270_v53 = vadd.s32 200, %v19012_v15 }
  0x89   : > { %v428_v0 = vand.u32 15, %v266_v58  ;;  %12706 = vmatmul.mubr.msk.bf16.gmra.mrb[32].mxu0 %vm19082_vm2, %v12705_v11  ;;  %v899_v46 = vld [vmem:[#allocation2 + $0x81] sm:$0xff] }
  0x8a   : > { %24356 = vst [vmem:[#allocation40_spill] sm:$0xff] %v19578_v22  ;;  %v18436_v11 = vld [vmem:[%s23926_s1 + $0x20] sm:$0xff]   ;;  %v456_v18 = vand.u32 15, %v270_v53  ;;  %v2272_v53 = vld [vmem:[#allocation2 + $0xa8] sm:$0xff] }
  0x8b   : > { %v2208_v58 = vld [vmem:[#allocation2 + $0xa7] sm:$0xff] }
  0x8e   : > { %16874 = vmatmul.mubr.msk.bf16.vlgmr.msra.gmra.mrb[48].mxu1 %vm19490_vm15, %v19517_v17  ;;  %v18432_v17 = vld [vmem:[%s23926_s1 + $0x10] sm:$0xff]  }
  0x8f   : > { %14954 = vmatpush3.bf16.msra.mxu1 %v18428_v47  ;;  %16877 = vmatprep.mubr.msk.bf16.mxu1 %vm19497_vm11, %v19522_v56  ;;  %v18433_v47 = vld [vmem:[%s23926_s1 + $0x58] sm:$0xff]   ;;  %vm24357_vm11 = vmmov 1   ;;  %v24358_v56 = vmov 0  ;;  %v24450_v43 = vld [vmem:[#allocation36_spill] sm:$0xff] }
  0x90   : > { %14955 = vmatprep.subr.bf16.mxu1 %v18429_v3  ;;  %v2369_v3 = vpack.c.bf16 %v2268_v27, %v2267_v1  ;;  %vm19583_vm15 = vmpackc.low %vm19542_vm5, %vm24357_vm11  ;;  %v268_v27 = vadd.s32 184, %v19012_v15  ;;  %v2270_v1 = vld [vmem:[#allocation2 + $0x98] sm:$0xff] }
  0x91   : > { %v24359_v56 = vsel %vm19583_vm15, 4294967295, %v24358_v56  ;;  %vm19590_vm0 = vmpackc.low %vm19546_vm7, %vm24357_vm11  ;;  %vm19610_vm7 = vcmp.lt.s32.totalorder %v414_v28, 15  ;;  %v2372_v5 = vpack.c.bf16 %v2270_v1, %v2269_v21  ;;  %v904_v21 = vld [vmem:[#allocation2 + $0xa9] sm:$0xff] }
  0x92   : > { %24360 = vst [vmem:[#allocation41_spill] sm:$0xff] %v24359_v56  ;;  %v24362_v10 = vsel %vm19590_vm0, 4294967295, %v24361_v10  ;;  %2666 = vmatprep.mubr.bf16.mxu0 %v2369_v3  ;;  %vm19624_vm5 = vmpackc.low %vm19562_vm3, %vm24357_vm11  ;;  %v442_v28 = vand.u32 15, %v268_v27  ;;  %v903_v27 = vld [vmem:[#allocation2 + $0xa1] sm:$0xff]  ;;  %v18447_v1 = vld [vmem:[%s23926_s1 + $0x70] sm:$0xff]  }
  0x93   : > { %14956 = vmatpush3.bf16.msra.mxu1 %v18430_v59  ;;  %24363 = vst [vmem:[#allocation42_spill] sm:$0xff] %v24362_v10  ;;  %v18434_v59 = vld [vmem:[%s23926_s1 + $0x18] sm:$0xff]   ;;  %v19670_v10 = vpack.c.bf16 %v904_v21, %v903_v27  ;;  %vm19675_vm3 = vmpackc.low %vm19610_vm7, %vm24357_vm11  ;;  %v908_v21 = vld [vmem:[#allocation2 + $0xc9] sm:$0xff] }
  0x94   : > { %14957 = vmatprep.subr.bf16.mxu1 %v18431_v52  ;;  %v900_v52 = vld [vmem:[#allocation2 + $0x89] sm:$0xff]  ;;  %v18454_v3 = vld [vmem:[%s23926_s1 + $0x38] sm:$0xff]  }
  0x95   : > { %v19619_v45 = vpack.c.bf16 %v900_v52, %v899_v46  ;;  %v274_v46 = vadd.s32 232, %v19012_v15  ;;  %v18448_v52 = vld [vmem:[%s23926_s1 + $0x30] sm:$0xff]   ;;  %v2274_v27 = vld [vmem:[#allocation2 + $0xb8] sm:$0xff] }
  0x96   : > { %16878 = vmatmul.mubr.msk.bf16.gmra.mrb[52].mxu1 %vm19527_vm12, %v19573_v9  ;;  %v12708_v9 = vpack.c.bf16 %v2204_v55, %v2203_v39  ;;  %vm19635_vm12 = vcmp.lt.s32.totalorder %v428_v0, 15  ;;  %v2205_v39 = vld [vmem:[#allocation2 + $0x8f] sm:$0xff]  ;;  %v2271_v0 = vld [vmem:[#allocation2 + $0xa0] sm:$0xff] }
  0x97   : > { %16881 = vmatprep.mubr.msk.bf16.mxu1 %vm19534_vm14, %v19578_v22  ;;  %14958 = vmatpush3.bf16.msra.mxu1 %v18432_v17  ;;  %v24367_v17 = vmov 0  ;;  %vm19631_vm14 = vmpackc.low %vm19569_vm1, %vm24357_vm11  ;;  %v901_v55 = vld [vmem:[#allocation2 + $0x91] sm:$0xff]  ;;  %vm19658_vm1 = vcmp.lt.s32.totalorder %v442_v28, 15  ;;  %v2375_v22 = vpack.c.bf16 %v2272_v53, %v2271_v0  ;;  %v24381_v28 = vmov 0 }
  0x98   : > { %14959 = vmatprep.subr.bf16.mxu1 %v18433_v47  ;;  %v24368_v17 = vsel %vm19624_vm5, 4294967295, %v24367_v17  ;;  %v24370_v47 = vmov 0  ;;  %12709 = vmatmul.mubr.msk.bf16.gmra.mrb[36].mxu0 %vm19138_vm4, %v12708_v9  ;;  %v19665_v56 = vpack.c.bf16 %v902_v50, %v901_v55  ;;  %v2207_v55 = vld [vmem:[#allocation2 + $0x9f] sm:$0xff]  ;;  %v905_v50 = vld [vmem:[#allocation2 + $0xb1] sm:$0xff]  ;;  %v484_v0 = vand.u32 15, %v274_v46 }
  0x99   : > { %24369 = vst [vmem:[#allocation44_spill] sm:$0xff] %v24368_v17  ;;  %v24371_v47 = vsel %vm19631_vm14, 4294967295, %v24370_v47  ;;  %2674 = vmatprep.mubr.bf16.mxu0 %v2372_v5  ;;  %v18453_v5 = vld [vmem:[%s23926_s1 + $0x78] sm:$0xff]  }
  0x9a   : > { %24372 = vst [vmem:[#allocation45_spill] sm:$0xff] %v24371_v47  ;;  %24377 = vst [vmem:[#allocation46_spill] sm:$0xff] %v19665_v56 }
  0x9b   : > { %14960 = vmatpush3.bf16.msra.mxu1 %v18434_v59  ;;  %v272_v59 = vadd.s32 216, %v19012_v15 }
  0x9c   : > { %14961 = vmatprep.subr.bf16.mxu1 %v18435_v4  ;;  %v2206_v4 = vld [vmem:[#allocation2 + $0x97] sm:$0xff] }
  0x9e   : > { %16882 = vmatmul.mubr.msk.bf16.gmra.mrb[56].mxu1 %vm19583_vm15, %v19617_v37  ;;  %v12711_v37 = vpack.c.bf16 %v2206_v4, %v2205_v39  ;;  %vm19686_vm15 = vcmp.lt.s32.totalorder %v456_v18, 15  ;;  %v470_v39 = vand.u32 15, %v272_v59  ;;  %v906_v4 = vld [vmem:[#allocation2 + $0xb9] sm:$0xff]  ;;  %v2273_v18 = vld [vmem:[#allocation2 + $0xb0] sm:$0xff]  ;;  %v907_v59 = vld [vmem:[#allocation2 + $0xc1] sm:$0xff] }
  0x9f   : > { %16885 = vmatprep.mubr.msk.bf16.mxu1 %vm19590_vm0, %v19619_v45  ;;  %14962 = vmatpush3.bf16.msra.mxu1 %v18436_v11  ;;  %v24378_v11 = vmov 0  ;;  %vm19682_vm0 = vmpackc.low %vm19635_vm12, %vm24357_vm11  ;;  %v2378_v46 = vpack.c.bf16 %v2274_v27, %v2273_v18  ;;  %v19709_v53 = vpack.c.bf16 %v908_v21, %v907_v59  ;;  %v2276_v18 = vld [vmem:[#allocation2 + $0xc8] sm:$0xff]  ;;  %v24397_v21 = vmov 0 }
  0xa0   : > { %14963 = vmatprep.subr.bf16.mxu1 %v18441_v48  ;;  %v24379_v11 = vsel %vm19675_vm3, 4294967295, %v24378_v11  ;;  %v24382_v28 = vsel %vm19682_vm0, 4294967295, %v24381_v28  ;;  %12712 = vmatmul.mubr.msk.bf16.gmra.mrb[40].mxu0 %vm19184_vm6, %v12711_v37  ;;  %v19707_v37 = vpack.c.bf16 %v906_v4, %v905_v50  ;;  %vm19714_vm12 = vmpackc.low %vm19658_vm1, %vm24357_vm11  ;;  %v2210_v50 = vld [vmem:[#allocation2 + $0xb7] sm:$0xff]  ;;  %v2275_v4 = vld [vmem:[#allocation2 + $0xc0] sm:$0xff] }
  0xa1   : > { %24380 = vst [vmem:[#allocation47_spill] sm:$0xff] %v24379_v11  ;;  %24383 = vst [vmem:[#allocation48_spill] sm:$0xff] %v24382_v28  ;;  %2682 = vmatprep.mubr.bf16.mxu0 %v2375_v22  ;;  %v24390_v22 = vmov 0  ;;  %v911_v48 = vld [vmem:[#allocation2 + $0xe1] sm:$0xff]  ;;  %v2381_v27 = vpack.c.bf16 %v2276_v18, %v2275_v4  ;;  %v916_v4 = vld [vmem:[#allocation2 + $0x109] sm:$0xff] }
  0xa2   : > { %24386 = vst [vmem:[#allocation49_spill] sm:$0xff] %v19709_v53  ;;  %vm19721_vm7 = vmpackc.low %vm19686_vm15, %vm24357_vm11  ;;  %vm722_vm15 = vcmp.lt.s32.totalorder %v484_v0, 15  ;;  %v24400_v0 = vmov 0 }
  0xa3   : > { %14964 = vmatpush3.bf16.msra.mxu1 %v18442_v62  ;;  %v276_v62 = vadd.s32 248, %v19012_v15  ;;  %v12714_v15 = vpack.c.bf16 %v2208_v58, %v2207_v55  ;;  %v24391_v22 = vsel %vm19721_vm7, 4294967295, %v24390_v22  ;;  %v910_v55 = vld [vmem:[#allocation2 + $0xd9] sm:$0xff]  ;;  %v915_v58 = vld [vmem:[#allocation2 + $0x101] sm:$0xff] }
  0xa4   : > { %14965 = vmatprep.subr.bf16.mxu1 %v18447_v1  ;;  %v19702_v1 = vld [vmem:[%s23926_s1 + $0x80] sm:$0xff]   ;;  %24392 = vst [vmem:[#allocation51_spill] sm:$0xff] %v24391_v22  ;;  %v19764_v18 = vpack.c.bf16 %v916_v4, %v915_v58 }
  0xa5   : > { %v498_v9 = vand.u32 15, %v276_v62  ;;  %v2279_v22 = vld [vmem:[#allocation2 + $0xe0] sm:$0xff] }
  0xa6   : > { %16886 = vmatmul.mubr.msk.bf16.gmra.mrb[60].mxu1 %vm19624_vm5, %v19665_v56  ;;  %v24387_v56 = vmov 0  ;;  %v2215_v58 = vld [vmem:[#allocation2 + $0xdf] sm:$0xff]  ;;  %v2216_v4 = vld [vmem:[#allocation2 + $0xe7] sm:$0xff] }
  0xa7   : > { %16889 = vmatprep.mubr.msk.bf16.mxu1 %vm19631_vm14, %v19670_v10  ;;  %14966 = vmatpush3.bf16.msra.mxu1 %v18448_v52  ;;  %v24388_v56 = vsel %vm19714_vm12, 4294967295, %v24387_v56  ;;  %v2209_v52 = vld [vmem:[#allocation2 + $0xaf] sm:$0xff]  ;;  %vm19726_vm14 = vcmp.lt.s32.totalorder %v470_v39, 15 }
  0xa8   : > { %14967 = vmatprep.subr.bf16.mxu1 %v18453_v5  ;;  %24389 = vst [vmem:[#allocation50_spill] sm:$0xff] %v24388_v56  ;;  %v909_v5 = vld [vmem:[#allocation2 + $0xd1] sm:$0xff]  ;;  %12715 = vmatmul.mubr.msk.bf16.gmra.mrb[44].mxu0 %vm19214_vm8, %v12714_v15  ;;  %v12717_v39 = vpack.c.bf16 %v2210_v50, %v2209_v52  ;;  %vm19745_vm1 = vmpackc.low %vm19726_vm14, %vm24357_vm11  ;;  %v2211_v15 = vld [vmem:[#allocation2 + $0xbf] sm:$0xff] }
  0xa9   : > { %2690 = vmatprep.mubr.bf16.mxu0 %v2378_v46  ;;  %v19738_v62 = vpack.c.bf16 %v910_v55, %v909_v5  ;;  %v24398_v21 = vsel %vm19745_vm1, 4294967295, %v24397_v21  ;;  %v2212_v46 = vld [vmem:[#allocation2 + $0xc7] sm:$0xff]  ;;  %v913_v52 = vld [vmem:[#allocation2 + $0xf1] sm:$0xff]  ;;  %v914_v5 = vld [vmem:[#allocation2 + $0xf9] sm:$0xff] }
  0xaa   : > { %24399 = vst [vmem:[#allocation54_spill] sm:$0xff] %v24398_v21  ;;  %v2277_v55 = vld [vmem:[#allocation2 + $0xd0] sm:$0xff]  ;;  %v2278_v50 = vld [vmem:[#allocation2 + $0xd8] sm:$0xff] }
  0xab   : > { %14968 = vmatpush3.bf16.msra.mxu1 %v18454_v3  ;;  %v912_v3 = vld [vmem:[#allocation2 + $0xe9] sm:$0xff]  ;;  %24395 = vst [vmem:[#allocation52_spill] sm:$0xff] %v19738_v62 }
  0xac   : > { %16905 = vmatprep.subr.bf16.mxu1 %v19702_v1  ;;  %v19740_v59 = vpack.c.bf16 %v912_v3, %v911_v48  ;;  %v12720_v48 = vpack.c.bf16 %v2212_v46, %v2211_v15  ;;  %v19762_v3 = vpack.c.bf16 %v914_v5, %v913_v52  ;;  %v2213_v56 = vld [vmem:[#allocation2 + $0xcf] sm:$0xff] }
  0xad   : > { %v2280_v15 = vld [vmem:[#allocation2 + $0xe8] sm:$0xff] }
  0xae   : > { %16890 = vmatmul.mubr.msk.bf16.gmra.mrb[64].mxu1 %vm19675_vm3, %v19707_v37  ;;  %24396 = vst [vmem:[#allocation53_spill] sm:$0xff] %v19740_v59  ;;  %vm19750_vm3 = vmpackc.low %vm722_vm15, %vm24357_vm11  ;;  %vm24407_vm15 = vnez %v24282_v8  ;;  %v2387_v5 = vpack.c.bf16 %v2280_v15, %v2279_v22  ;;  %v18460_v22 = vld [vmem:[%s23926_s1 + $0x88] sm:$0xff]   ;;  %v2218_v15 = vld [vmem:[#allocation2 + $0xf7] sm:$0xff] }
  0xaf   : > { %16893 = vmatprep.mubr.msk.bf16.mxu1 %vm19682_vm0, %v19709_v53  ;;  %v24401_v0 = vsel %vm19750_vm3, 4294967295, %v24400_v0  ;;  %vm724_vm0 = vcmp.lt.s32.totalorder %v498_v9, 15  ;;  %24403 = vst [vmem:[#allocation56_spill] sm:$0xff] %v19762_v3  ;;  %v2384_v9 = vpack.c.bf16 %v2278_v50, %v2277_v55  ;;  %v1146_v53 = vld [vmem:[#allocation2 + $0x119] sm:$0xff]  ;;  %v24443_v8 = vld [vmem:[#allocation33_spill] sm:$0xff] }
  0xb0   : > { %24402 = vst [vmem:[#allocation55_spill] sm:$0xff] %v24401_v0  ;;  %12718 = vmatmul.mubr.msk.bf16.gmra.mrb[48].mxu0 %vm19237_vm10, %v12717_v39  ;;  %vm19767_vm14 = vmpackc.low %vm724_vm0, %vm24357_vm11  ;;  %v24404_v39 = vmov 0  ;;  %v18763_v55 = vld [vmem:[#allocation2] sm:$0xff]  ;;  %vm24408_vm11 = vnez %v24290_v49  ;;  %vm24409_vm0 = vnez %v24294_v54 }
  0xb1   : > { %2698 = vmatprep.mubr.bf16.mxu0 %v2381_v27  ;;  %v24405_v39 = vsel %vm19767_vm14, 4294967295, %v24404_v39  ;;  %v2214_v27 = vld [vmem:[#allocation2 + $0xd7] sm:$0xff]  ;;  %v19779_v50 = vpack.c.bf16 %v18763_v55, %v18763_v55 }
  0xb2   : > { %24406 = vst [vmem:[#allocation57_spill] sm:$0xff] %v24405_v39  ;;  %v12723_v46 = vpack.c.bf16 %v2214_v27, %v2213_v56  ;;  %v12726_v56 = vpack.c.bf16 %v2216_v4, %v2215_v58  ;;  %v2217_v27 = vld [vmem:[#allocation2 + $0xef] sm:$0xff]  ;;  %v2219_v58 = vld [vmem:[#allocation2 + $0xff] sm:$0xff]  ;;  %v2220_v4 = vld [vmem:[#allocation2 + $0x107] sm:$0xff] }
  0xb6   : > { %16894 = vmatmul.mubr.msk.bf16.gmra.mrb[68].mxu1 %vm19714_vm12, %v19738_v62  ;;  %v1145_v62 = vld [vmem:[#allocation2 + $0x111] sm:$0xff] }
  0xb7   : > { %16897 = vmatprep.mubr.msk.bf16.mxu1 %vm19721_vm7, %v19740_v59  ;;  %v12498_v52 = vpack.c.bf16 %v1146_v53, %v1145_v62  ;;  %v726_v59 = vld [vmem:[#allocation2 + $0x17] sm:$0xff] }
  0xb8   : > { %12721 = vmatmul.mubr.msk.bf16.gmra.mrb[52].mxu0 %vm24407_vm15, %v12720_v48  ;;  %v725_v48 = vld [vmem:[#allocation2 + $0xf] sm:$0xff] }
  0xb9   : > { %2706 = vmatprep.mubr.bf16.mxu0 %v2384_v9  ;;  %v2282_v9 = vld [vmem:[#allocation2 + $0xf8] sm:$0xff]  ;;  %v12525_v53 = vpack.c.bf16 %v726_v59, %v725_v48  ;;  %v2284_v59 = vld [vmem:[#allocation2 + $0x108] sm:$0xff]  ;;  %v2285_v48 = vld [vmem:[#allocation2 + $0x110] sm:$0xff] }
  0xbe   : > { %16898 = vmatmul.mubr.msk.bf16.gmra.mrb[72].mxu1 %vm19745_vm1, %v19762_v3  ;;  %v2281_v3 = vld [vmem:[#allocation2 + $0xf0] sm:$0xff]  ;;  %vm24415_vm1 = vnez %v24319_v51 }
  0xbf   : > { %16901 = vmatprep.mubr.msk.bf16.mxu1 %vm19750_vm3, %v19764_v18  ;;  %v2390_v62 = vpack.c.bf16 %v2282_v9, %v2281_v3  ;;  %vm24410_vm3 = vnez %v24278_v33  ;;  %v12729_v3 = vpack.c.bf16 %v2218_v15, %v2217_v27  ;;  %v12732_v9 = vpack.c.bf16 %v2220_v4, %v2219_v58  ;;  %v18466_v27 = vld [vmem:[%s23926_s1 + $0xb8] sm:$0xff]  }
  0xc0   : > { %12724 = vmatmul.mubr.msk.bf16.gmra.mrb[56].mxu0 %vm24408_vm11, %v12723_v46  ;;  %v2283_v46 = vld [vmem:[#allocation2 + $0x100] sm:$0xff] }
  0xc1   : > { %2714 = vmatprep.mubr.bf16.mxu0 %v2387_v5  ;;  %v18462_v5 = vld [vmem:[%s23926_s1 + $0x98] sm:$0xff]   ;;  %v2393_v55 = vpack.c.bf16 %v2284_v59, %v2283_v46  ;;  %v2224_v46 = vld [vmem:[#allocation2 + $0x127] sm:$0xff] }
  0xc2   : > { %v2223_v15 = vld [vmem:[#allocation2 + $0x11f] sm:$0xff] }
  0xc6   : > { %16902 = vmatmul.mubr.msk.bf16.gmra.mrb[76].mxu1 %vm19767_vm14, %v12498_v52  ;;  %v18461_v52 = vld [vmem:[%s23926_s1 + $0x90] sm:$0xff]   ;;  %vm24412_vm14 = vnez %v24286_v24 }
  0xc7   : > { %1903 = vmatprep.mubr.bf16.mxu1 %v19779_v50 }
  0xc8   : > { %12727 = vmatmul.mubr.msk.bf16.gmra.mrb[60].mxu0 %vm24409_vm0, %v12726_v56  ;;  %v18464_v56 = vld [vmem:[%s23926_s1 + $0xa8] sm:$0xff]  }
  0xc9   : > { %2722 = vmatprep.mubr.bf16.mxu0 %v2390_v62 }
  0xce   : > { %12526 = vmatmul.mubr.msk.bf16.vlgmr.msra.gmra.mrb[80].mxu1 %vm24410_vm3, %v12525_v53  ;;  %vm24411_vm3 = vnez %v24302_v31 }
  0xcf   : > { %16906 = vmatpush3.bf16.msra.mxu1 %v19702_v1  ;;  %1911 = vmatprep.mubr.bf16.mxu1 %v19168_v7  ;;  %v18463_v7 = vld [vmem:[%s23926_s1 + $0xa0] sm:$0xff]   ;;  %v2286_v1 = vld [vmem:[#allocation2 + $0x118] sm:$0xff] }
  0xd0   : > { %16907 = vmatprep.subr.bf16.mxu1 %v18460_v22  ;;  %12730 = vmatmul.mubr.msk.bf16.gmra.mrb[64].mxu0 %vm24411_vm3, %v12729_v3  ;;  %v2396_v53 = vpack.c.bf16 %v2286_v1, %v2285_v48  ;;  %v24416_v48 = vld [vmem:[#allocation8_spill] sm:$0xff] }
  0xd1   : > { %2730 = vmatprep.mubr.bf16.mxu0 %v2393_v55 }
  0xd3   : > { %16908 = vmatpush3.bf16.msra.mxu1 %v18460_v22  ;;  %v2221_v22 = vld [vmem:[#allocation2 + $0x10f] sm:$0xff] }
  0xd4   : > { %16909 = vmatprep.subr.bf16.mxu1 %v18461_v52 }
  0xd6   : > { %12529 = vmatmul.mubr.msk.bf16.gmra.mrb[84].mxu1 %vm24412_vm14, %v19259_v63  ;;  %vm24413_vm14 = vnez %v24311_v23  ;;  %v2222_v63 = vld [vmem:[#allocation2 + $0x117] sm:$0xff] }
  0xd7   : > { %1919 = vmatprep.mubr.bf16.mxu1 %v19257_v35  ;;  %16910 = vmatpush3.bf16.msra.mxu1 %v18461_v52  ;;  %v18465_v35 = vld [vmem:[%s23926_s1 + $0xb0] sm:$0xff]   ;;  %v12735_v62 = vpack.c.bf16 %v2222_v63, %v2221_v22  ;;  %v24418_v22 = vld [vmem:[#allocation12_spill] sm:$0xff] }
  0xd8   : > { %16911 = vmatprep.subr.bf16.mxu1 %v18462_v5  ;;  %12733 = vmatmul.mubr.msk.bf16.gmra.mrb[68].mxu0 %vm24413_vm14, %v12732_v9 }
  0xd9   : > { %2738 = vmatprep.mubr.bf16.mxu0 %v2396_v53  ;;  %v24417_v53 = vld [vmem:[#allocation10_spill] sm:$0xff] }
  0xdb   : > { %16912 = vmatpush3.bf16.msra.mxu1 %v18462_v5 }
  0xdc   : > { %16913 = vmatprep.subr.bf16.mxu1 %v18463_v7 }
  0xde   : > { %12532 = vmatmul.mubr.msk.bf16.gmra.mrb[88].mxu1 %vm19344_vm13, %v19303_v32  ;;  %vm24414_vm13 = vnez %v24315_v19  ;;  %v12738_v32 = vpack.c.bf16 %v2224_v46, %v2223_v15  ;;  %v24437_v19 = vld [vmem:[#allocation29_spill] sm:$0xff] }
  0xdf   : > { %1927 = vmatprep.mubr.bf16.mxu1 %v19301_v30  ;;  %16914 = vmatpush3.bf16.msra.mxu1 %v18463_v7  ;;  %v19834_v30 = vld [vmem:[%s23926_s1 + $0x200] sm:$0xff]  }
  0xe0   : > { %16915 = vmatprep.subr.bf16.mxu1 %v18464_v56  ;;  %12736 = vmatmul.mubr.msk.bf16.gmra.mrb[72].mxu0 %vm24414_vm13, %v12735_v62 }
  0xe1   : > { %2746 = vmatprep.mubr.bf16.mxu0 %v19779_v50 }
  0xe3   : > { %16916 = vmatpush3.bf16.msra.mxu1 %v18464_v56 }
  0xe4   : > { %16917 = vmatprep.subr.bf16.mxu1 %v18465_v35 }
  0xe6   : > { %12535 = vmatmul.mubr.msk.bf16.gmra.mrb[92].mxu1 %vm19388_vm9, %v19350_v6  ;;  %vm24476_vm9 = vnez %v24405_v39 }
  0xe7   : > { %1935 = vmatprep.mubr.bf16.mxu1 %v19382_v34  ;;  %16918 = vmatpush3.bf16.msra.mxu1 %v18465_v35 }
  0xe8   : > { %16919 = vmatprep.subr.bf16.mxu1 %v18466_v27  ;;  %12739 = vmatmul.mubr.msk.bf16.gmra.mrb[76].mxu0 %vm24415_vm1, %v12738_v32  ;;  %v24421_v32 = vld [vmem:[#allocation14_spill] sm:$0xff] }
  0xeb   : > { %16920 = vmatpush3.bf16.msra.mxu1 %v18466_v27 }
  0xec   : > { %16953 = vmatprep.subr.bf16.mxu1 %v19834_v30 }
  0xee   : > { %12538 = vmatmul.mubr.msk.bf16.gmra.mrb[96].mxu1 %vm19082_vm2, %v19397_v20  ;;  %vm24474_vm2 = vnez %v24401_v0 }
  0xef   : > { %1943 = vmatprep.mubr.bf16.mxu1 %v19014_v16 }
  0xf6   : > { %12541 = vmatmul.mubr.msk.bf16.gmra.mrb[100].mxu1 %vm19138_vm4, %v19079_v40  ;;  %vm24472_vm4 = vnez %v24398_v21 }
  0xf7   : > { %1951 = vmatprep.mubr.bf16.mxu1 %v19086_v42 }
  0xfe   : > { %12544 = vmatmul.mubr.msk.bf16.gmra.mrb[104].mxu1 %vm19184_vm6, %v19127_v57  ;;  %vm24466_vm6 = vnez %v24382_v28 }
  0xff   : > { %1959 = vmatprep.mubr.bf16.mxu1 %v19144_v61 }
 0x101   : > { %v14857_v6 = vpop.f32.mrb[0].mxu1 }
 0x102   : > { %v14858_v34 = vpop.f32.mrb[1].mxu1 }
 0x103   : > { %v19852_v50 = vadd.f32 %v14858_v34, %v14857_v6  ;;  %v14860_v52 = vpop.f32.mrb[2].mxu1  ;;  %v24422_v34 = vld [vmem:[#allocation16_spill] sm:$0xff] }
 0x104   : > { %v14861_v20 = vpop.f32.mrb[3].mxu1 }
 0x105   : > { %v19854_v59 = vadd.f32 %v14861_v20, %v14860_v52 }
 0x106   : > { %12547 = vmatmul.mubr.msk.bf16.gmra.mrb[108].mxu1 %vm19214_vm8, %v19181_v12  ;;  %vm24465_vm8 = vnez %v24379_v11 }
 0x107   : > { %1967 = vmatprep.mubr.bf16.mxu1 %v19190_v14 }
 0x109   : > { %v14863_v16 = vpop.f32.mrb[4].mxu1 }
 0x10a   : > { %v14864_v40 = vpop.f32.mrb[5].mxu1 }
 0x10b   : > { %v19860_v42 = vadd.f32 %v14864_v40, %v14863_v16  ;;  %v14866_v57 = vpop.f32.mrb[6].mxu1 }
 0x10c   : > { %v14867_v61 = vpop.f32.mrb[7].mxu1 }
 0x10d   : > { %v19862_v3 = vadd.f32 %v14867_v61, %v14866_v57 }
 0x10e   : > { %12550 = vmatmul.mubr.msk.bf16.gmra.mrb[112].mxu1 %vm19237_vm10, %v19211_v25  ;;  %vm24464_vm10 = vnez %v24371_v47 }
 0x10f   : > { %1975 = vmatprep.mubr.bf16.mxu1 %v19220_v29 }
 0x110   : > { %v14833_v46 = vpop.f32.mrb[0].mxu0 }
 0x111   : > { %v14869_v5 = vpop.f32.mrb[8].mxu1  ;;  %v14834_v6 = vpop.f32.mrb[1].mxu0 }
 0x112   : > { %v14870_v55 = vpop.f32.mrb[9].mxu1  ;;  %v19892_v52 = vadd.f32 %v14834_v6, %v14833_v46  ;;  %v14836_v20 = vpop.f32.mrb[2].mxu0 }
 0x113   : > { %v19868_v58 = vadd.f32 %v14870_v55, %v14869_v5  ;;  %v14872_v12 = vpop.f32.mrb[10].mxu1  ;;  %v14837_v16 = vpop.f32.mrb[3].mxu0 }
 0x114   : > { %v14873_v14 = vpop.f32.mrb[11].mxu1  ;;  %v19894_v57 = vadd.f32 %v14837_v16, %v14836_v20  ;;  %v24430_v20 = vld [vmem:[#allocation24_spill] sm:$0xff] }
 0x115   : > { %v19870_v4 = vadd.f32 %v14873_v14, %v14872_v12 }
 0x116   : > { %12553 = vmatmul.mubr.msk.bf16.gmra.mrb[116].mxu1 %vm24407_vm15, %v19234_v38 }
 0x117   : > { %1983 = vmatprep.mubr.bf16.mxu1 %v24416_v48  ;;  %v24425_v48 = vld [vmem:[#allocation19_spill] sm:$0xff] }
 0x119   : > { %v14875_v7 = vpop.f32.mrb[12].mxu1 }
 0x11a   : > { %v14876_v1 = vpop.f32.mrb[13].mxu1 }
 0x11b   : > { %v19876_v9 = vadd.f32 %v14876_v1, %v14875_v7  ;;  %v14878_v25 = vpop.f32.mrb[14].mxu1  ;;  %v14839_v7 = vpop.f32.mrb[4].mxu0  ;;  %v24426_v1 = vld [vmem:[#allocation20_spill] sm:$0xff] }
 0x11c   : > { %v14879_v29 = vpop.f32.mrb[15].mxu1 }
 0x11d   : > { %v19878_v56 = vadd.f32 %v14879_v29, %v14878_v25  ;;  %v14840_v25 = vpop.f32.mrb[5].mxu0 }
 0x11e   : > { %12556 = vmatmul.mubr.msk.bf16.gmra.mrb[120].mxu1 %vm24408_vm11, %v24417_v53  ;;  %v19904_v29 = vadd.f32 %v14840_v25, %v14839_v7  ;;  %v14842_v53 = vpop.f32.mrb[6].mxu0 }
 0x11f   : > { %1991 = vmatprep.mubr.bf16.mxu1 %v24418_v22 }
 0x121   : > { %v14881_v35 = vpop.f32.mrb[16].mxu1 }
 0x122   : > { %v14882_v63 = vpop.f32.mrb[17].mxu1 }
 0x123   : > { %v19884_v62 = vadd.f32 %v14882_v63, %v14881_v35  ;;  %v14884_v38 = vpop.f32.mrb[18].mxu1  ;;  %v14843_v35 = vpop.f32.mrb[7].mxu0 }
 0x124   : > { %v14885_v27 = vpop.f32.mrb[19].mxu1  ;;  %v14845_v16 = vpop.f32.mrb[8].mxu0 }
 0x125   : > { %24419 = vst [vmem:[#allocation8_spill] sm:$0xff] %v19884_v62  ;;  %v19886_v15 = vadd.f32 %v14885_v27, %v14884_v38  ;;  %v19906_v38 = vadd.f32 %v14843_v35, %v14842_v53 }
 0x126   : > { %12559 = vmatmul.mubr.msk.bf16.gmra.mrb[124].mxu1 %vm24409_vm0, %v24421_v32  ;;  %vm24454_vm0 = vnez %v24345_v36 }
 0x127   : > { %24420 = vst [vmem:[#allocation10_spill] sm:$0xff] %v19886_v15  ;;  %1999 = vmatprep.mubr.bf16.mxu1 %v24422_v34  ;;  %v24429_v34 = vld [vmem:[#allocation22_spill] sm:$0xff] }
 0x128   : > { %v2298_v15 = vld [vmem:[#allocation2 + $0x79] sm:$0xff] }
 0x129   : > { %v14887_v40 = vpop.f32.mrb[20].mxu1 }
 0x12a   : > { %v14888_v61 = vpop.f32.mrb[21].mxu1 }
 0x12b   : > { %v19896_v5 = vadd.f32 %v14888_v61, %v14887_v40  ;;  %v14890_v55 = vpop.f32.mrb[22].mxu1  ;;  %v14846_v40 = vpop.f32.mrb[9].mxu0 }
 0x12c   : > { %v14891_v12 = vpop.f32.mrb[23].mxu1 }
 0x12d   : > { %24423 = vst [vmem:[#allocation12_spill] sm:$0xff] %v19896_v5  ;;  %v19898_v14 = vadd.f32 %v14891_v12, %v14890_v55  ;;  %v19916_v55 = vadd.f32 %v14846_v40, %v14845_v16  ;;  %v14848_v12 = vpop.f32.mrb[10].mxu0 }
 0x12e   : > { %12562 = vmatmul.mubr.msk.bf16.gmra.mrb[128].mxu1 %vm24411_vm3, %v24425_v48  ;;  %v14849_v7 = vpop.f32.mrb[11].mxu0  ;;  %vm24452_vm3 = vnez %v24451_v2 }
 0x12f   : > { %24424 = vst [vmem:[#allocation14_spill] sm:$0xff] %v19898_v14  ;;  %2007 = vmatprep.mubr.bf16.mxu1 %v24426_v1  ;;  %v19920_v53 = vadd.f32 %v14849_v7, %v14848_v12 }
 0x131   : > { %v14893_v22 = vpop.f32.mrb[24].mxu1 }
 0x132   : > { %v14894_v63 = vpop.f32.mrb[25].mxu1 }
 0x133   : > { %v19908_v27 = vadd.f32 %v14894_v63, %v14893_v22  ;;  %v14896_v46 = vpop.f32.mrb[26].mxu1  ;;  %v24433_v63 = vld [vmem:[#allocation25_spill] sm:$0xff] }
 0x134   : > { %v14897_v32 = vpop.f32.mrb[27].mxu1 }
 0x135   : > { %24427 = vst [vmem:[#allocation16_spill] sm:$0xff] %v19908_v27  ;;  %v19910_v6 = vadd.f32 %v14897_v32, %v14896_v46  ;;  %v885_v46 = vld [vmem:[#allocation2 + $0x11] sm:$0xff]  ;;  %v24434_v32 = vld [vmem:[#allocation27_spill] sm:$0xff] }
 0x136   : > { %12565 = vmatmul.mubr.msk.bf16.gmra.mrb[132].mxu1 %vm24413_vm14, %v24429_v34  ;;  %v886_v34 = vld [vmem:[#allocation2 + $0x19] sm:$0xff] }
 0x137   : > { %24428 = vst [vmem:[#allocation19_spill] sm:$0xff] %v19910_v6  ;;  %2015 = vmatprep.mubr.bf16.mxu1 %v24430_v20  ;;  %v14851_v20 = vpop.f32.mrb[12].mxu0 }
 0x138   : > { %v14852_v40 = vpop.f32.mrb[13].mxu0 }
 0x139   : > { %v14899_v61 = vpop.f32.mrb[28].mxu1 }
 0x13a   : > { %v14900_v48 = vpop.f32.mrb[29].mxu1 }
 0x13b   : > { %v19918_v1 = vadd.f32 %v14900_v48, %v14899_v61  ;;  %v14902_v25 = vpop.f32.mrb[30].mxu1  ;;  %v19928_v61 = vadd.f32 %v14852_v40, %v14851_v20  ;;  %v14854_v48 = vpop.f32.mrb[14].mxu0 }
 0x13c   : > { %v14903_v22 = vpop.f32.mrb[31].mxu1 }
 0x13d   : > { %24431 = vst [vmem:[#allocation20_spill] sm:$0xff] %v19918_v1  ;;  %v19922_v35 = vadd.f32 %v14903_v22, %v14902_v25  ;;  %v12573_v25 = vpack.c.bf16 %v886_v34, %v885_v46  ;;  %v14855_v22 = vpop.f32.mrb[15].mxu0 }
 0x13e   : > { %12568 = vmatmul.mubr.msk.bf16.gmra.mrb[136].mxu1 %vm24414_vm13, %v24433_v63  ;;  %v19932_v54 = vadd.f32 %v14855_v22, %v14854_v48  ;;  %v15105_v20 = vpop.f32.mrb[16].mxu0 }
 0x13f   : > { %24432 = vst [vmem:[#allocation22_spill] sm:$0xff] %v19922_v35  ;;  %2023 = vmatprep.mubr.bf16.mxu1 %v24434_v32  ;;  %v24438_v32 = vld [vmem:[#allocation31_spill] sm:$0xff]  ;;  %v15106_v49 = vpop.f32.mrb[17].mxu0 }
 0x140   : > { %vm24439_vm13 = vnez %v24438_v32  ;;  %v15108_v46 = vpop.f32.mrb[18].mxu0  ;;  %v2297_v32 = vld [vmem:[#allocation2 + $0x71] sm:$0xff] }
 0x141   : > { %v14905_v16 = vpop.f32.mrb[32].mxu1  ;;  %v15109_v22 = vpop.f32.mrb[19].mxu0 }
 0x142   : > { %v14906_v23 = vpop.f32.mrb[33].mxu1 }
 0x143   : > { %v19930_v12 = vadd.f32 %v14906_v23, %v14905_v16  ;;  %v14908_v7 = vpop.f32.mrb[34].mxu1  ;;  %v19941_v16 = vadd.f32 %v15106_v49, %v15105_v20  ;;  %v24445_v49 = vld [vmem:[#allocation35_spill] sm:$0xff]  ;;  %v24446_v20 = vld [vmem:[#allocation34_spill] sm:$0xff] }
 0x144   : > { %v14909_v31 = vpop.f32.mrb[35].mxu1  ;;  %vm24447_vm14 = vnez %v24446_v20 }
 0x145   : > { %24435 = vst [vmem:[#allocation24_spill] sm:$0xff] %v19930_v12  ;;  %v19934_v63 = vadd.f32 %v14909_v31, %v14908_v7  ;;  %v18468_v7 = vld [vmem:[%s23926_s1 + $0x208] sm:$0xff]  }
 0x146   : > { %12571 = vmatmul.mubr.msk.bf16.gmra.mrb[140].mxu1 %vm24415_vm1, %v24437_v19  ;;  %v19948_v19 = vadd.f32 %v15109_v22, %v15108_v46  ;;  %vm24444_vm1 = vnez %v24443_v8 }
 0x147   : > { %24436 = vst [vmem:[#allocation25_spill] sm:$0xff] %v19934_v63  ;;  %16921 = vmatprep.mubr.msk.bf16.mxu1 %vm24439_vm13, %v12573_v25  ;;  %v24442_v25 = vld [vmem:[#allocation32_spill] sm:$0xff] }
 0x149   : > { %v14911_v40 = vpop.f32.mrb[36].mxu1 }
 0x14a   : > { %v14912_v23 = vpop.f32.mrb[37].mxu1 }
 0x14b   : > { %v19943_v34 = vadd.f32 %v14912_v23, %v14911_v40  ;;  %v14914_v48 = vpop.f32.mrb[38].mxu1  ;;  %v18469_v40 = vld [vmem:[%s23926_s1 + $0x210] sm:$0xff]   ;;  %v15111_v23 = vpop.f32.mrb[20].mxu0 }
 0x14c   : > { %v14915_v31 = vpop.f32.mrb[39].mxu1  ;;  %v15112_v22 = vpop.f32.mrb[21].mxu0 }
 0x14d   : > { %24440 = vst [vmem:[#allocation27_spill] sm:$0xff] %v19943_v34  ;;  %v19950_v51 = vadd.f32 %v14915_v31, %v14914_v48  ;;  %v19962_v31 = vadd.f32 %v15112_v22, %v15111_v23  ;;  %v15114_v44 = vpop.f32.mrb[22].mxu0  ;;  %v24453_v23 = vld [vmem:[#allocation39_spill] sm:$0xff] }
 0x14e   : > { %16922 = vmatmul.mubr.msk.bf16.vlgmr.msra.gmra.mrb[48].mxu1 %vm24444_vm1, %v24442_v25 }
 0x14f   : > { %24441 = vst [vmem:[#allocation29_spill] sm:$0xff] %v19950_v51  ;;  %16954 = vmatpush3.bf16.msra.mxu1 %v19834_v30  ;;  %16925 = vmatprep.mubr.msk.bf16.mxu1 %vm24447_vm14, %v24445_v49  ;;  %v15115_v30 = vpop.f32.mrb[23].mxu0  ;;  %v18470_v49 = vld [vmem:[%s23926_s1 + $0x218] sm:$0xff]   ;;  %v24458_v51 = vld [vmem:[#allocation41_spill] sm:$0xff] }
 0x150   : > { %16955 = vmatprep.subr.bf16.mxu1 %v18468_v7  ;;  %v19969_v60 = vadd.f32 %v15115_v30, %v15114_v44  ;;  %vm24459_vm11 = vnez %v24458_v51 }
 0x151   : > { %v14917_v46 = vpop.f32.mrb[40].mxu1 }
 0x152   : > { %v14918_v48 = vpop.f32.mrb[41].mxu1 }
 0x153   : > { %v19964_v26 = vadd.f32 %v14918_v48, %v14917_v46  ;;  %v14920_v25 = vpop.f32.mrb[42].mxu1  ;;  %16956 = vmatpush3.bf16.msra.mxu1 %v18468_v7  ;;  %v18471_v7 = vld [vmem:[%s23926_s1 + $0x220] sm:$0xff]   ;;  %v15117_v46 = vpop.f32.mrb[24].mxu0 }
 0x154   : > { %v14921_v13 = vpop.f32.mrb[43].mxu1  ;;  %16957 = vmatprep.subr.bf16.mxu1 %v18469_v40  ;;  %v15118_v44 = vpop.f32.mrb[25].mxu0 }
 0x155   : > { %24448 = vst [vmem:[#allocation32_spill] sm:$0xff] %v19964_v26  ;;  %v19971_v41 = vadd.f32 %v14921_v13, %v14920_v25  ;;  %v19982_v13 = vadd.f32 %v15118_v44, %v15117_v46  ;;  %v15120_v25 = vpop.f32.mrb[26].mxu0  ;;  %v24457_v26 = vld [vmem:[#allocation40_spill] sm:$0xff]  ;;  %v24460_v46 = vld [vmem:[#allocation43_spill] sm:$0xff] }
 0x156   : > { %16926 = vmatmul.mubr.msk.bf16.gmra.mrb[52].mxu1 %vm24452_vm3, %v24450_v43  ;;  %v15121_v24 = vpop.f32.mrb[27].mxu0 }
 0x157   : > { %24449 = vst [vmem:[#allocation35_spill] sm:$0xff] %v19971_v41  ;;  %16929 = vmatprep.mubr.msk.bf16.mxu1 %vm24454_vm0, %v24453_v23  ;;  %16958 = vmatpush3.bf16.msra.mxu1 %v18469_v40  ;;  %v18472_v40 = vld [vmem:[%s23926_s1 + $0x228] sm:$0xff]   ;;  %v19989_v23 = vadd.f32 %v15121_v24, %v15120_v25  ;;  %v15123_v44 = vpop.f32.mrb[28].mxu0 }
 0x158   : > { %16959 = vmatprep.subr.bf16.mxu1 %v18470_v49 }
 0x159   : > { %v14923_v22 = vpop.f32.mrb[44].mxu1 }
 0x15a   : > { %v14924_v48 = vpop.f32.mrb[45].mxu1 }
 0x15b   : > { %v19984_v30 = vadd.f32 %v14924_v48, %v14923_v22  ;;  %v14926_v43 = vpop.f32.mrb[46].mxu1  ;;  %16960 = vmatpush3.bf16.msra.mxu1 %v18470_v49  ;;  %v24461_v22 = vld [vmem:[#allocation42_spill] sm:$0xff]  ;;  %v18473_v49 = vld [vmem:[%s23926_s1 + $0x230] sm:$0xff]   ;;  %v15124_v48 = vpop.f32.mrb[29].mxu0 }
 0x15c   : > { %v14927_v33 = vpop.f32.mrb[47].mxu1  ;;  %16961 = vmatprep.subr.bf16.mxu1 %v18471_v7  ;;  %vm24462_vm15 = vnez %v24461_v22  ;;  %v20002_v24 = vadd.f32 %v15124_v48, %v15123_v44 }
 0x15d   : > { %24455 = vst [vmem:[#allocation36_spill] sm:$0xff] %v19984_v30  ;;  %v19991_v41 = vadd.f32 %v14927_v33, %v14926_v43  ;;  %v15126_v33 = vpop.f32.mrb[30].mxu0 }
 0x15e   : > { %16930 = vmatmul.mubr.msk.bf16.gmra.mrb[56].mxu1 %vm24459_vm11, %v24457_v26  ;;  %v18474_v26 = vld [vmem:[%s23926_s1 + $0x238] sm:$0xff]   ;;  %v15127_v25 = vpop.f32.mrb[31].mxu0 }
 0x15f   : > { %24456 = vst [vmem:[#allocation39_spill] sm:$0xff] %v19991_v41  ;;  %16933 = vmatprep.mubr.msk.bf16.mxu1 %vm24462_vm15, %v24460_v46  ;;  %16962 = vmatpush3.bf16.msra.mxu1 %v18471_v7  ;;  %v20007_v43 = vadd.f32 %v15127_v25, %v15126_v33  ;;  %v24463_v7 = vld [vmem:[#allocation46_spill] sm:$0xff]  ;;  %v15129_v46 = vpop.f32.mrb[32].mxu0 }
 0x160   : > { %16963 = vmatprep.subr.bf16.mxu1 %v18472_v40 }
 0x163   : > { %16964 = vmatpush3.bf16.msra.mxu1 %v18472_v40  ;;  %v15130_v40 = vpop.f32.mrb[33].mxu0 }
 0x164   : > { %16965 = vmatprep.subr.bf16.mxu1 %v18473_v49  ;;  %v20015_v44 = vadd.f32 %v15130_v40, %v15129_v46  ;;  %v15132_v48 = vpop.f32.mrb[34].mxu0  ;;  %v4615_v40 = vld [vmem:[#allocation2 + $0x129] sm:$0xff] }
 0x165   : > { %v15133_v41 = vpop.f32.mrb[35].mxu0 }
 0x166   : > { %16934 = vmatmul.mubr.msk.bf16.gmra.mrb[60].mxu1 %vm19624_vm5, %v19619_v45  ;;  %v20017_v30 = vadd.f32 %v15133_v41, %v15132_v48  ;;  %v24469_v41 = vld [vmem:[#allocation52_spill] sm:$0xff]  ;;  %v24470_v48 = vld [vmem:[#allocation51_spill] sm:$0xff] }
 0x167   : > { %16937 = vmatprep.mubr.msk.bf16.mxu1 %vm24464_vm10, %v24463_v7  ;;  %16966 = vmatpush3.bf16.msra.mxu1 %v18473_v49 }
 0x168   : > { %16967 = vmatprep.subr.bf16.mxu1 %v18474_v26 }
 0x16b   : > { %16968 = vmatpush3.bf16.msra.mxu1 %v18474_v26  ;;  %v15135_v45 = vpop.f32.mrb[36].mxu0  ;;  %v24467_v26 = vld [vmem:[#allocation49_spill] sm:$0xff] }
 0x16c   : > { %v15136_v49 = vpop.f32.mrb[37].mxu0 }
 0x16d   : > { %v20025_v33 = vadd.f32 %v15136_v49, %v15135_v45  ;;  %v15138_v25 = vpop.f32.mrb[38].mxu0  ;;  %v24471_v49 = vld [vmem:[#allocation53_spill] sm:$0xff] }
 0x16e   : > { %16938 = vmatmul.mubr.msk.bf16.gmra.mrb[64].mxu1 %vm24465_vm8, %v19670_v10  ;;  %v15139_v7 = vpop.f32.mrb[39].mxu0 }
 0x16f   : > { %16941 = vmatprep.mubr.msk.bf16.mxu1 %vm24466_vm6, %v19707_v37  ;;  %v20027_v46 = vadd.f32 %v15139_v7, %v15138_v25  ;;  %v24473_v25 = vld [vmem:[#allocation56_spill] sm:$0xff]  ;;  %v2289_v7 = vld [vmem:[#allocation2 + $0x31] sm:$0xff] }
 0x173   : > { %v15141_v10 = vpop.f32.mrb[40].mxu0 }
 0x174   : > { %v15142_v34 = vpop.f32.mrb[41].mxu0 }
 0x175   : > { %v20035_v63 = vadd.f32 %v15142_v34, %v15141_v10  ;;  %v15144_v37 = vpop.f32.mrb[42].mxu0 }
 0x176   : > { %16942 = vmatmul.mubr.msk.bf16.gmra.mrb[68].mxu1 %vm19714_vm12, %v24467_v26  ;;  %v15145_v12 = vpop.f32.mrb[43].mxu0  ;;  %v2290_v26 = vld [vmem:[#allocation2 + $0x39] sm:$0xff] }
 0x177   : > { %16945 = vmatprep.mubr.msk.bf16.mxu1 %vm19721_vm7, %v24469_v41  ;;  %v20037_v45 = vadd.f32 %v15145_v12, %v15144_v37  ;;  %v12741_v10 = vpack.c.bf16 %v2290_v26, %v2289_v7  ;;  %v2291_v12 = vld [vmem:[#allocation2 + $0x41] sm:$0xff]  ;;  %v2292_v37 = vld [vmem:[#allocation2 + $0x49] sm:$0xff] }
 0x17b   : > { %v15147_v35 = vpop.f32.mrb[44].mxu0 }
 0x17c   : > { %v15148_v41 = vpop.f32.mrb[45].mxu0 }
 0x17d   : > { %v20045_v1 = vadd.f32 %v15148_v41, %v15147_v35  ;;  %v15150_v34 = vpop.f32.mrb[46].mxu0  ;;  %v12744_v35 = vpack.c.bf16 %v2292_v37, %v2291_v12  ;;  %v12753_v37 = vpack.c.bf16 %v2298_v15, %v2297_v32 }
 0x17e   : > { %16946 = vmatmul.mubr.msk.bf16.gmra.mrb[72].mxu1 %vm24472_vm4, %v24471_v49  ;;  %v15151_v6 = vpop.f32.mrb[47].mxu0  ;;  %v2293_v49 = vld [vmem:[#allocation2 + $0x51] sm:$0xff] }
 0x17f   : > { %16949 = vmatprep.mubr.msk.bf16.mxu1 %vm24474_vm2, %v24473_v25  ;;  %v20047_v27 = vadd.f32 %v15151_v6, %v15150_v34  ;;  %v2294_v25 = vld [vmem:[#allocation2 + $0x59] sm:$0xff] }
 0x180   : > { %v12747_v26 = vpack.c.bf16 %v2294_v25, %v2293_v49 }
 0x181   : > { %24475 = vst [vmem:[#allocation40_spill] sm:$0xff] %v20047_v27 }
 0x183   : > { %v15153_v14 = vpop.f32.mrb[48].mxu0 }
 0x184   : > { %v15154_v5 = vpop.f32.mrb[49].mxu0 }
 0x185   : > { %v20054_v41 = vadd.f32 %v15154_v5, %v15153_v14  ;;  %v15156_v7 = vpop.f32.mrb[50].mxu0 }
 0x186   : > { %16950 = vmatmul.mubr.msk.bf16.gmra.mrb[76].mxu1 %vm24476_vm9, %v19764_v18  ;;  %v15157_v6 = vpop.f32.mrb[51].mxu0  ;;  %v2295_v18 = vld [vmem:[#allocation2 + $0x61] sm:$0xff] }
 0x187   : > { %16969 = vmatprep.mubr.msk.bf16.mxu1 %vm24439_vm13, %v12741_v10  ;;  %v20056_v34 = vadd.f32 %v15157_v6, %v15156_v7  ;;  %v2296_v10 = vld [vmem:[#allocation2 + $0x69] sm:$0xff]  ;;  %v2302_v6 = vld [vmem:[#allocation2 + $0x99] sm:$0xff] }
 0x188   : > { %v12750_v12 = vpack.c.bf16 %v2296_v10, %v2295_v18  ;;  %v2300_v7 = vld [vmem:[#allocation2 + $0x89] sm:$0xff] }
 0x18b   : > { %v15159_v62 = vpop.f32.mrb[52].mxu0 }
 0x18c   : > { %v15160_v27 = vpop.f32.mrb[53].mxu0 }
 0x18d   : > { %v20062_v5 = vadd.f32 %v15160_v27, %v15159_v62  ;;  %v15162_v14 = vpop.f32.mrb[54].mxu0 }
 0x18e   : > { %16970 = vmatmul.mubr.msk.bf16.vlgmr.msra.gmra.mrb[48].mxu1 %vm24444_vm1, %v12744_v35  ;;  %v15163_v49 = vpop.f32.mrb[55].mxu0  ;;  %v2299_v35 = vld [vmem:[#allocation2 + $0x81] sm:$0xff] }
 0x18f   : > { %16973 = vmatprep.mubr.msk.bf16.mxu1 %vm24447_vm14, %v12747_v26  ;;  %v20064_v25 = vadd.f32 %v15163_v49, %v15162_v14  ;;  %v2301_v26 = vld [vmem:[#allocation2 + $0x91] sm:$0xff]  ;;  %v12756_v18 = vpack.c.bf16 %v2300_v7, %v2299_v35  ;;  %v2304_v14 = vld [vmem:[#allocation2 + $0xa9] sm:$0xff]  ;;  %v2306_v49 = vld [vmem:[#allocation2 + $0xb9] sm:$0xff] }
 0x190   : > { %v12759_v15 = vpack.c.bf16 %v2302_v6, %v2301_v26 }
 0x193   : > { %v15165_v20 = vpop.f32.mrb[56].mxu0 }
 0x194   : > { %v15166_v8 = vpop.f32.mrb[57].mxu0 }
 0x195   : > { %v20070_v62 = vadd.f32 %v15166_v8, %v15165_v20  ;;  %v15168_v27 = vpop.f32.mrb[58].mxu0  ;;  %v18475_v8 = vld [vmem:[%s23926_s1 + $0x380] sm:$0xff]   ;;  %v18476_v20 = vld [vmem:[%s23926_s1 + $0x388] sm:$0xff]  }
 0x196   : > { %16974 = vmatmul.mubr.msk.bf16.gmra.mrb[52].mxu1 %vm24452_vm3, %v12750_v12  ;;  %v15169_v32 = vpop.f32.mrb[59].mxu0  ;;  %v2303_v12 = vld [vmem:[#allocation2 + $0xa1] sm:$0xff]  ;;  %17001 = vmatprep.subr.bf16.mxu1 %v18475_v8 }
 0x197   : > { %16977 = vmatprep.mubr.msk.bf16.mxu1 %vm24454_vm0, %v12753_v37  ;;  %v20072_v10 = vadd.f32 %v15169_v32, %v15168_v27  ;;  %v2305_v37 = vld [vmem:[#allocation2 + $0xb1] sm:$0xff]  ;;  %v12762_v26 = vpack.c.bf16 %v2304_v14, %v2303_v12  ;;  %v18479_v27 = vld [vmem:[%s23926_s1 + $0x340] sm:$0xff]   ;;  %v18481_v12 = vld [vmem:[%s23926_s1 + $0x348] sm:$0xff]   ;;  %17002 = vmatpush3.bf16.msra.mxu1 %v18475_v8 }
 0x198   : > { %v12765_v51 = vpack.c.bf16 %v2306_v49, %v2305_v37  ;;  %15225 = vmatprep.subr.bf16.mxu0 %v18479_v27  ;;  %17003 = vmatprep.subr.bf16.mxu1 %v18476_v20  ;;  %v18482_v37 = vld [vmem:[%s23926_s1 + $0x308] sm:$0xff]   ;;  %v2309_v8 = vld [vmem:[#allocation2 + $0xd1] sm:$0xff] }
 0x199   : > { %24477 = vst [vmem:[#allocation43_spill] sm:$0xff] %v20072_v10 }
 0x19b   : > { %v15171_v36 = vpop.f32.mrb[60].mxu0  ;;  %17004 = vmatpush3.bf16.msra.mxu1 %v18476_v20 }
 0x19c   : > { %v15172_v35 = vpop.f32.mrb[61].mxu0 }
 0x19d   : > { %v20084_v6 = vadd.f32 %v15172_v35, %v15171_v36 }
 0x19e   : > { %16978 = vmatmul.mubr.msk.bf16.gmra.mrb[56].mxu1 %vm24459_vm11, %v12756_v18  ;;  %v15174_v18 = vpop.f32.mrb[62].mxu0 }
 0x19f   : > { %16981 = vmatprep.mubr.msk.bf16.mxu1 %vm24462_vm15, %v12759_v15  ;;  %24478 = vst [vmem:[#allocation46_spill] sm:$0xff] %v20084_v6  ;;  %v18480_v15 = vld [vmem:[%s23926_s1 + $0x300] sm:$0xff]   ;;  %v15175_v10 = vpop.f32.mrb[63].mxu0 }
 0x1a0   : > { %v20095_v14 = vadd.f32 %v15175_v10, %v15174_v18  ;;  %15226 = vmatpush3.bf16.msra.mxu0 %v18480_v15 }
 0x1a1   : > { %v14969_v2 = vpop.f32.mrb[80].mxu1  ;;  %15227 = vmatprep.subr.bf16.mxu0 %v18481_v12 }
 0x1a2   : > { %v14970_v7 = vpop.f32.mrb[81].mxu1  ;;  %24479 = vst [vmem:[#allocation49_spill] sm:$0xff] %v20095_v14 }
 0x1a3   : > { %v14971_v32 = vadd.f32 %v14970_v7, %v14969_v2  ;;  %v14972_v22 = vpop.f32.mrb[82].mxu1  ;;  %v18477_v2 = vld [vmem:[%s23926_s1 + $0x390] sm:$0xff]   ;;  %v2310_v7 = vld [vmem:[#allocation2 + $0xd9] sm:$0xff]  ;;  %v15177_v18 = vpop.f32.mrb[64].mxu0 }
 0x1a4   : > { %v14973_v36 = vpop.f32.mrb[83].mxu1  ;;  %v15178_v15 = vpop.f32.mrb[65].mxu0  ;;  %17005 = vmatprep.subr.bf16.mxu1 %v18477_v2  ;;  %15228 = vmatpush3.bf16.msra.mxu0 %v18482_v37 }
 0x1a5   : > { %v17596_v35 = vadd.f32 %v14971_v32, %v19892_v52  ;;  %v14974_v6 = vadd.f32 %v14973_v36, %v14972_v22  ;;  %v2307_v52 = vld [vmem:[#allocation2 + $0xc1] sm:$0xff]  ;;  %v2308_v22 = vld [vmem:[#allocation2 + $0xc9] sm:$0xff]  ;;  %v20118_v32 = vadd.f32 %v15178_v15, %v15177_v18  ;;  %17006 = vmatpush3.bf16.msra.mxu1 %v18477_v2 }
 0x1a6   : > { %16982 = vmatmul.mubr.msk.bf16.gmra.mrb[60].mxu1 %vm19624_vm5, %v12762_v26  ;;  %v18478_v26 = vld [vmem:[%s23926_s1 + $0x398] sm:$0xff]  }
 0x1a7   : > { %v17602_v10 = vadd.f32 %v14974_v6, %v19894_v57  ;;  %16985 = vmatprep.mubr.msk.bf16.mxu1 %vm24464_vm10, %v12765_v51  ;;  %v20110_v49 = vadd.f32 %v17596_v35, %v19941_v16  ;;  %v12768_v6 = vpack.c.bf16 %v2308_v22, %v2307_v52  ;;  %v15180_v16 = vpop.f32.mrb[66].mxu0  ;;  %v12771_v35 = vpack.c.bf16 %v2310_v7, %v2309_v8  ;;  %v2312_v52 = vld [vmem:[#allocation2 + $0xe9] sm:$0xff] }
 0x1a8   : > { %v15181_v20 = vpop.f32.mrb[67].mxu0  ;;  %17007 = vmatprep.subr.bf16.mxu1 %v18478_v26 }
 0x1a9   : > { %24480 = vst [vmem:[#allocation52_spill] sm:$0xff] %v20110_v49  ;;  %v14975_v27 = vpop.f32.mrb[84].mxu1  ;;  %v20116_v57 = vadd.f32 %v17602_v10, %v19948_v19  ;;  %v20120_v17 = vadd.f32 %v15181_v20, %v15180_v16  ;;  %v18483_v19 = vld [vmem:[%s23926_s1 + $0x3a0] sm:$0xff]   ;;  %17008 = vmatpush3.bf16.msra.mxu1 %v18478_v26  ;;  %v2316_v20 = vld [vmem:[#allocation2 + $0x109] sm:$0xff] }
 0x1aa   : > { %v14976_v51 = vpop.f32.mrb[85].mxu1  ;;  %v2311_v10 = vld [vmem:[#allocation2 + $0xe1] sm:$0xff]  ;;  %17009 = vmatprep.subr.bf16.mxu1 %v18483_v19 }
 0x1ab   : > { %v14977_v12 = vadd.f32 %v14976_v51, %v14975_v27  ;;  %v14978_v36 = vpop.f32.mrb[86].mxu1  ;;  %v15183_v22 = vpop.f32.mrb[68].mxu0 }
 0x1ac   : > { %v14979_v47 = vpop.f32.mrb[87].mxu1  ;;  %v15184_v7 = vpop.f32.mrb[69].mxu0 }
 0x1ad   : > { %v17593_v49 = vadd.f32 %v14977_v12, %v19904_v29  ;;  %v14980_v14 = vadd.f32 %v14979_v47, %v14978_v36  ;;  %v2313_v29 = vld [vmem:[#allocation2 + $0xf1] sm:$0xff]  ;;  %v2314_v47 = vld [vmem:[#allocation2 + $0xf9] sm:$0xff]  ;;  %v15186_v15 = vpop.f32.mrb[70].mxu0  ;;  %17010 = vmatpush3.bf16.msra.mxu1 %v18483_v19 }
 0x1ae   : > { %16986 = vmatmul.mubr.msk.bf16.gmra.mrb[64].mxu1 %vm24465_vm8, %v12768_v6  ;;  %v12777_v16 = vpack.c.bf16 %v2314_v47, %v2313_v29 }
 0x1af   : > { %v17599_v37 = vadd.f32 %v14980_v14, %v19906_v38  ;;  %16989 = vmatprep.mubr.msk.bf16.mxu1 %vm24466_vm6, %v12771_v35  ;;  %v20132_v2 = vadd.f32 %v17593_v49, %v19962_v31  ;;  %v12774_v38 = vpack.c.bf16 %v2312_v52, %v2311_v10  ;;  %v20137_v14 = vadd.f32 %v15184_v7, %v15183_v22  ;;  %v15187_v31 = vpop.f32.mrb[71].mxu0  ;;  %v2315_v35 = vld [vmem:[#allocation2 + $0x101] sm:$0xff]  ;;  %v2317_v10 = vld [vmem:[#allocation2 + $0x111] sm:$0xff]  ;;  %v2318_v52 = vld [vmem:[#allocation2 + $0x119] sm:$0xff] }
 0x1b0   : > { %v20139_v12 = vadd.f32 %v15187_v31, %v15186_v15  ;;  %v12783_v15 = vpack.c.bf16 %v2318_v52, %v2317_v10 }
 0x1b1   : > { %v14981_v8 = vpop.f32.mrb[88].mxu1  ;;  %v20135_v18 = vadd.f32 %v17599_v37, %v19969_v60 }
 0x1b2   : > { %v14982_v27 = vpop.f32.mrb[89].mxu1 }
 0x1b3   : > { %v14983_v51 = vadd.f32 %v14982_v27, %v14981_v8  ;;  %v14984_v6 = vpop.f32.mrb[90].mxu1  ;;  %v15189_v29 = vpop.f32.mrb[72].mxu0  ;;  %v12780_v8 = vpack.c.bf16 %v2316_v20, %v2315_v35 }
 0x1b4   : > { %v14985_v49 = vpop.f32.mrb[91].mxu1  ;;  %v15190_v47 = vpop.f32.mrb[73].mxu0 }
 0x1b5   : > { %v17608_v26 = vadd.f32 %v14983_v51, %v19916_v55  ;;  %v14986_v36 = vadd.f32 %v14985_v49, %v14984_v6  ;;  %v20153_v7 = vadd.f32 %v15190_v47, %v15189_v29  ;;  %v2319_v49 = vld [vmem:[#allocation2 + $0x121] sm:$0xff] }
 0x1b6   : > { %16990 = vmatmul.mubr.msk.bf16.gmra.mrb[68].mxu1 %vm19714_vm12, %v12774_v38 }
 0x1b7   : > { %v17614_v60 = vadd.f32 %v14986_v36, %v19920_v53  ;;  %16993 = vmatprep.mubr.msk.bf16.mxu1 %vm19721_vm7, %v12777_v16  ;;  %v20148_v37 = vadd.f32 %v17608_v26, %v19982_v13  ;;  %v15192_v53 = vpop.f32.mrb[74].mxu0  ;;  %v2320_v26 = vld [vmem:[#allocation2 + $0x129] sm:$0xff] }
 0x1b8   : > { %v15193_v51 = vpop.f32.mrb[75].mxu0  ;;  %v12786_v52 = vpack.c.bf16 %v2320_v26, %v2319_v49 }
 0x1b9   : > { %v14987_v19 = vpop.f32.mrb[92].mxu1  ;;  %v20151_v55 = vadd.f32 %v17614_v60, %v19989_v23  ;;  %v20155_v13 = vadd.f32 %v15193_v51, %v15192_v53 }
 0x1ba   : > { %v14988_v22 = vpop.f32.mrb[93].mxu1 }
 0x1bb   : > { %v14989_v27 = vadd.f32 %v14988_v22, %v14987_v19  ;;  %v14990_v38 = vpop.f32.mrb[94].mxu1  ;;  %v15195_v60 = vpop.f32.mrb[76].mxu0 }
 0x1bc   : > { %v14991_v6 = vpop.f32.mrb[95].mxu1  ;;  %v15196_v20 = vpop.f32.mrb[77].mxu0 }
 0x1bd   : > { %v17605_v16 = vadd.f32 %v14989_v27, %v19928_v61  ;;  %v14992_v31 = vadd.f32 %v14991_v6, %v14990_v38  ;;  %v20169_v29 = vadd.f32 %v15196_v20, %v15195_v60  ;;  %v15198_v19 = vpop.f32.mrb[78].mxu0 }
 0x1be   : > { %16994 = vmatmul.mubr.msk.bf16.gmra.mrb[72].mxu1 %vm24472_vm4, %v12780_v8  ;;  %v15199_v22 = vpop.f32.mrb[79].mxu0 }
 0x1bf   : > { %v17611_v23 = vadd.f32 %v14992_v31, %v19932_v54  ;;  %16997 = vmatprep.mubr.msk.bf16.mxu1 %vm24474_vm2, %v12783_v15  ;;  %v20164_v36 = vadd.f32 %v17605_v16, %v20002_v24  ;;  %v20171_v53 = vadd.f32 %v15199_v22, %v15198_v19 }
 0x1c1   : > { %v14993_v35 = vpop.f32.mrb[96].mxu1  ;;  %v20167_v10 = vadd.f32 %v17611_v23, %v20007_v43 }
 0x1c2   : > { %v14994_v61 = vpop.f32.mrb[97].mxu1 }
 0x1c3   : > { %v14995_v54 = vadd.f32 %v14994_v61, %v14993_v35  ;;  %v14996_v47 = vpop.f32.mrb[98].mxu1 }
 0x1c4   : > { %v14997_v8 = vpop.f32.mrb[99].mxu1 }
 0x1c5   : > { %v17620_v24 = vadd.f32 %v14995_v54, %v19852_v50  ;;  %v14998_v27 = vadd.f32 %v14997_v8, %v14996_v47 }
 0x1c6   : > { %16998 = vmatmul.mubr.msk.bf16.gmra.mrb[76].mxu1 %vm24476_vm9, %v12786_v52 }
 0x1c7   : > { %v17626_v43 = vadd.f32 %v14998_v27, %v19854_v59  ;;  %v20178_v38 = vadd.f32 %v17620_v24, %v20015_v44 }
 0x1c9   : > { %v14999_v15 = vpop.f32.mrb[100].mxu1  ;;  %v20181_v51 = vadd.f32 %v17626_v43, %v20017_v30 }
 0x1ca   : > { %v15000_v6 = vpop.f32.mrb[101].mxu1 }
 0x1cb   : > { %v15001_v16 = vadd.f32 %v15000_v6, %v14999_v15  ;;  %v15002_v31 = vpop.f32.mrb[102].mxu1  ;;  %v24481_v15 = vld [vmem:[#allocation40_spill] sm:$0xff] }
 0x1cc   : > { %v15003_v23 = vpop.f32.mrb[103].mxu1 }
 0x1cd   : > { %v17617_v49 = vadd.f32 %v15001_v16, %v19860_v42  ;;  %v15004_v50 = vadd.f32 %v15003_v23, %v15002_v31  ;;  %v18486_v16 = vld [vmem:[%s23926_s1 + $0x358] sm:$0xff]  }
 0x1ce   : > { %v18487_v23 = vld [vmem:[%s23926_s1 + $0x318] sm:$0xff]  }
 0x1cf   : > { %v17623_v26 = vadd.f32 %v15004_v50, %v19862_v3  ;;  %v20186_v60 = vadd.f32 %v17617_v49, %v20025_v33 }
 0x1d1   : > { %v15005_v59 = vpop.f32.mrb[104].mxu1  ;;  %v20189_v44 = vadd.f32 %v17623_v26, %v20027_v46 }
 0x1d2   : > { %v15006_v35 = vpop.f32.mrb[105].mxu1 }
 0x1d3   : > { %v15007_v20 = vadd.f32 %v15006_v35, %v15005_v59  ;;  %v15008_v30 = vpop.f32.mrb[106].mxu1  ;;  %v18489_v59 = vld [vmem:[%s23926_s1 + $0x360] sm:$0xff]   ;;  %v24483_v35 = vld [vmem:[#allocation10_spill] sm:$0xff] }
 0x1d4   : > { %v15009_v61 = vpop.f32.mrb[107].mxu1 }
 0x1d5   : > { %v17632_v52 = vadd.f32 %v15007_v20, %v19868_v58  ;;  %v15010_v19 = vadd.f32 %v15009_v61, %v15008_v30  ;;  %v18484_v58 = vld [vmem:[%s23926_s1 + $0x350] sm:$0xff]   ;;  %v18490_v61 = vld [vmem:[%s23926_s1 + $0x320] sm:$0xff]  }
 0x1d6   : > { %15229 = vmatprep.subr.bf16.mxu0 %v18484_v58  ;;  %v18494_v58 = vld [vmem:[%s23926_s1 + $0x370] sm:$0xff]  }
 0x1d7   : > { %v17638_v54 = vadd.f32 %v15010_v19, %v19870_v4  ;;  %v20194_v42 = vadd.f32 %v17632_v52, %v20035_v63  ;;  %v18485_v63 = vld [vmem:[%s23926_s1 + $0x310] sm:$0xff]  }
 0x1d8   : > { %15230 = vmatpush3.bf16.msra.mxu0 %v18485_v63 }
 0x1d9   : > { %v15011_v3 = vpop.f32.mrb[108].mxu1  ;;  %v20197_v33 = vadd.f32 %v17638_v54, %v20037_v45  ;;  %15231 = vmatprep.subr.bf16.mxu0 %v18486_v16 }
 0x1da   : > { %v15012_v47 = vpop.f32.mrb[109].mxu1 }
 0x1db   : > { %v15013_v22 = vadd.f32 %v15012_v47, %v15011_v3  ;;  %v15014_v46 = vpop.f32.mrb[110].mxu1  ;;  %v18491_v3 = vld [vmem:[%s23926_s1 + $0x368] sm:$0xff]  }
 0x1dc   : > { %v15015_v8 = vpop.f32.mrb[111].mxu1  ;;  %15232 = vmatpush3.bf16.msra.mxu0 %v18487_v23 }
 0x1dd   : > { %v17629_v24 = vadd.f32 %v15013_v22, %v19876_v9  ;;  %v15016_v27 = vadd.f32 %v15015_v8, %v15014_v46  ;;  %15233 = vmatprep.subr.bf16.mxu0 %v18489_v59  ;;  %v24484_v8 = vld [vmem:[#allocation12_spill] sm:$0xff] }
 0x1df   : > { %v17635_v4 = vadd.f32 %v15016_v27, %v19878_v56  ;;  %v20208_v45 = vadd.f32 %v17629_v24, %v20045_v1  ;;  %v24482_v1 = vld [vmem:[#allocation8_spill] sm:$0xff] }
 0x1e0   : > { %15234 = vmatpush3.bf16.msra.mxu0 %v18490_v61 }
 0x1e1   : > { %v15017_v43 = vpop.f32.mrb[112].mxu1  ;;  %v20211_v6 = vadd.f32 %v17635_v4, %v24481_v15  ;;  %15235 = vmatprep.subr.bf16.mxu0 %v18491_v3  ;;  %v24485_v4 = vld [vmem:[#allocation14_spill] sm:$0xff]  ;;  %v18495_v15 = vld [vmem:[%s23926_s1 + $0x330] sm:$0xff]  }
 0x1e2   : > { %v15018_v9 = vpop.f32.mrb[113].mxu1 }
 0x1e3   : > { %v15019_v31 = vadd.f32 %v15018_v9, %v15017_v43  ;;  %v15020_v56 = vpop.f32.mrb[114].mxu1 }
 0x1e4   : > { %v15021_v49 = vpop.f32.mrb[115].mxu1 }
 0x1e5   : > { %v17644_v50 = vadd.f32 %v15019_v31, %v24482_v1  ;;  %v15022_v26 = vadd.f32 %v15021_v49, %v15020_v56  ;;  %v18496_v56 = vld [vmem:[%s23926_s1 + $0x378] sm:$0xff]  }
 0x1e6   : > { %v18497_v49 = vld [vmem:[%s23926_s1 + $0x338] sm:$0xff]  }
 0x1e7   : > { %v17650_v20 = vadd.f32 %v15022_v26, %v24483_v35  ;;  %v20225_v30 = vadd.f32 %v17644_v50, %v20054_v41  ;;  %v18492_v41 = vld [vmem:[%s23926_s1 + $0x328] sm:$0xff]   ;;  %v24487_v35 = vld [vmem:[#allocation19_spill] sm:$0xff] }
 0x1e8   : > { %15236 = vmatpush3.bf16.msra.mxu0 %v18492_v41  ;;  %v24486_v50 = vld [vmem:[#allocation16_spill] sm:$0xff] }
 0x1e9   : > { %v20231_v52 = vadd.f32 %v17650_v20, %v20056_v34  ;;  %v15023_v19 = vpop.f32.mrb[116].mxu1  ;;  %v18488_v34 = vld [vmem:[%s23926_s1 + $0x3a8] sm:$0xff]   ;;  %15237 = vmatprep.subr.bf16.mxu0 %v18494_v58 }
 0x1ea   : > { %v15024_v54 = vpop.f32.mrb[117].mxu1  ;;  %17011 = vmatprep.subr.bf16.mxu1 %v18488_v34 }
 0x1eb   : > { %v15025_v47 = vadd.f32 %v15024_v54, %v15023_v19  ;;  %v15026_v22 = vpop.f32.mrb[118].mxu1  ;;  %17012 = vmatpush3.bf16.msra.mxu1 %v18488_v34  ;;  %v18498_v19 = vld [vmem:[%s23926_s1 + $0x3b8] sm:$0xff]   ;;  %v24488_v54 = vld [vmem:[#allocation43_spill] sm:$0xff] }
 0x1ec   : > { %v15027_v46 = vpop.f32.mrb[119].mxu1  ;;  %15238 = vmatpush3.bf16.msra.mxu0 %v18495_v15  ;;  %v24492_v15 = vld [vmem:[#allocation49_spill] sm:$0xff] }
 0x1ed   : > { %v17641_v24 = vadd.f32 %v15025_v47, %v24484_v8  ;;  %v15028_v27 = vadd.f32 %v15027_v46, %v15026_v22  ;;  %15239 = vmatprep.subr.bf16.mxu0 %v18496_v56 }
 0x1ef   : > { %v17647_v63 = vadd.f32 %v15028_v27, %v24485_v4  ;;  %v20248_v43 = vadd.f32 %v17641_v24, %v20062_v5  ;;  %v24489_v24 = vld [vmem:[#allocation20_spill] sm:$0xff]  ;;  %v24491_v4 = vld [vmem:[#allocation46_spill] sm:$0xff] }
 0x1f0   : > { %15240 = vmatpush3.bf16.msra.mxu0 %v18497_v49 }
 0x1f1   : > { %v20254_v9 = vadd.f32 %v17647_v63, %v20064_v25  ;;  %v15029_v16 = vpop.f32.mrb[120].mxu1  ;;  %v18493_v25 = vld [vmem:[%s23926_s1 + $0x3b0] sm:$0xff]  }
 0x1f2   : > { %v15030_v31 = vpop.f32.mrb[121].mxu1  ;;  %17013 = vmatprep.subr.bf16.mxu1 %v18493_v25 }
 0x1f3   : > { %v15031_v23 = vadd.f32 %v15030_v31, %v15029_v16  ;;  %v15032_v5 = vpop.f32.mrb[122].mxu1  ;;  %17014 = vmatpush3.bf16.msra.mxu1 %v18493_v25 }
 0x1f4   : > { %v15033_v1 = vpop.f32.mrb[123].mxu1  ;;  %17015 = vmatprep.subr.bf16.mxu1 %v18498_v19 }
 0x1f5   : > { %v17656_v26 = vadd.f32 %v15031_v23, %v24486_v50  ;;  %v15034_v59 = vadd.f32 %v15033_v1, %v15032_v5  ;;  %v24493_v1 = vld [vmem:[#allocation24_spill] sm:$0xff] }
 0x1f7   : > { %v17662_v20 = vadd.f32 %v15034_v59, %v24487_v35  ;;  %v20268_v61 = vadd.f32 %v17656_v26, %v20070_v62  ;;  %17016 = vmatpush3.bf16.msra.mxu1 %v18498_v19  ;;  %v24490_v62 = vld [vmem:[#allocation22_spill] sm:$0xff]  ;;  %v20288_v26 = vld [vmem:[%s23926_s1 + $0x2c0] sm:$0xff]   ;;  %v24494_v59 = vld [vmem:[#allocation25_spill] sm:$0xff] }
 0x1f8   : > { %17049 = vmatprep.subr.bf16.mxu1 %v20288_v26 }
 0x1f9   : > { %v20274_v3 = vadd.f32 %v17662_v20, %v24488_v54  ;;  %v15035_v47 = vpop.f32.mrb[124].mxu1 }
 0x1fa   : > { %v15036_v22 = vpop.f32.mrb[125].mxu1 }
 0x1fb   : > { %v15037_v41 = vadd.f32 %v15036_v22, %v15035_v47  ;;  %v15038_v46 = vpop.f32.mrb[126].mxu1 }
 0x1fc   : > { %v15039_v8 = vpop.f32.mrb[127].mxu1 }
 0x1fd   : > { %v17653_v27 = vadd.f32 %v15037_v41, %v24489_v24  ;;  %v15040_v34 = vadd.f32 %v15039_v8, %v15038_v46  ;;  %v24495_v8 = vld [vmem:[#allocation27_spill] sm:$0xff] }
 0x1ff   : > { %v17659_v58 = vadd.f32 %v15040_v34, %v24490_v62  ;;  %v20279_v63 = vadd.f32 %v17653_v27, %v24491_v4  ;;  %v24496_v34 = vld [vmem:[#allocation29_spill] sm:$0xff] }
 0x201   : > { %v20282_v16 = vadd.f32 %v17659_v58, %v24492_v15  ;;  %v15041_v31 = vpop.f32.mrb[128].mxu1 }
 0x202   : > { %v15042_v56 = vpop.f32.mrb[129].mxu1 }
 0x203   : > { %v15043_v23 = vadd.f32 %v15042_v56, %v15041_v31  ;;  %v15044_v5 = vpop.f32.mrb[130].mxu1 }
 0x204   : > { %v15045_v49 = vpop.f32.mrb[131].mxu1 }
 0x205   : > { %v17668_v25 = vadd.f32 %v15043_v23, %v24493_v1  ;;  %v15046_v50 = vadd.f32 %v15045_v49, %v15044_v5  ;;  %v24497_v23 = vld [vmem:[#allocation32_spill] sm:$0xff]  ;;  %v24498_v1 = vld [vmem:[#allocation35_spill] sm:$0xff] }
 0x207   : > { %v17674_v35 = vadd.f32 %v15046_v50, %v24494_v59  ;;  %v20292_v20 = vadd.f32 %v17668_v25, %v20118_v32 }
 0x209   : > { %v20296_v19 = vadd.f32 %v17674_v35, %v20120_v17  ;;  %v15047_v54 = vpop.f32.mrb[132].mxu1 }
 0x20a   : > { %v15048_v47 = vpop.f32.mrb[133].mxu1 }
 0x20b   : > { %v15049_v22 = vadd.f32 %v15048_v47, %v15047_v54  ;;  %v15050_v41 = vpop.f32.mrb[134].mxu1 }
 0x20c   : > { %v15051_v46 = vpop.f32.mrb[135].mxu1 }
 0x20d   : > { %v17665_v24 = vadd.f32 %v15049_v22, %v24495_v8  ;;  %v15052_v27 = vadd.f32 %v15051_v46, %v15050_v41  ;;  %v24499_v22 = vld [vmem:[#allocation36_spill] sm:$0xff]  ;;  %v24500_v8 = vld [vmem:[#allocation39_spill] sm:$0xff] }
 0x20f   : > { %v17671_v62 = vadd.f32 %v15052_v27, %v24496_v34  ;;  %v20301_v58 = vadd.f32 %v17665_v24, %v20137_v14 }
 0x211   : > { %v20304_v32 = vadd.f32 %v17671_v62, %v20139_v12  ;;  %v15053_v4 = vpop.f32.mrb[136].mxu1  ;;  %v20328_v62 = vld [vmem:[%s23927_s2] ss:$0 sm:$0xff] }
 0x212   : > { %v15054_v15 = vpop.f32.mrb[137].mxu1 }
 0x213   : > { %v15055_v17 = vadd.f32 %v15054_v15, %v15053_v4  ;;  %v15056_v31 = vpop.f32.mrb[138].mxu1 }
 0x214   : > { %v15057_v56 = vpop.f32.mrb[139].mxu1 }
 0x215   : > { %v17680_v5 = vadd.f32 %v15055_v17, %v24497_v23  ;;  %v15058_v49 = vadd.f32 %v15057_v56, %v15056_v31  ;;  %v24501_v17 = vld [vmem:[#allocation52_spill] sm:$0xff] }
 0x217   : > { %v17686_v25 = vadd.f32 %v15058_v49, %v24498_v1  ;;  %v20309_v50 = vadd.f32 %v17680_v5, %v20153_v7  ;;  %v18515_v7 = vld [vmem:[%s23926_s1 + $0x280] sm:$0xff]  }
 0x218   : > { %15361 = vmatprep.subr.bf16.mxu0 %v18515_v7 }
 0x219   : > { %v20312_v59 = vadd.f32 %v17686_v25, %v20155_v13  ;;  %v15059_v14 = vpop.f32.mrb[140].mxu1 }
 0x21a   : > { %v15060_v35 = vpop.f32.mrb[141].mxu1 }
 0x21b   : > { %v15061_v12 = vadd.f32 %v15060_v35, %v15059_v14  ;;  %v15062_v54 = vpop.f32.mrb[142].mxu1 }
 0x21c   : > { %v15063_v47 = vpop.f32.mrb[143].mxu1 }
 0x21d   : > { %v17677_v41 = vadd.f32 %v15061_v12, %v24499_v22  ;;  %v15064_v46 = vadd.f32 %v15063_v47, %v15062_v54  ;;  %v18764_v54 = vld [vmem:[#allocation2 + $0x30] sm:$0xff] }
 0x21f   : > { %v17683_v24 = vadd.f32 %v15064_v46, %v24500_v8  ;;  %v20317_v27 = vadd.f32 %v17677_v41, %v20169_v29  ;;  %v18765_v46 = vld [vmem:[#allocation2 + $0x20] sm:$0xff] }
 0x221   : > { %v20320_v34 = vadd.f32 %v17683_v24, %v20171_v53 }
 0x261   : > { %v16971_v13 = vpop.f32.mrb[48].mxu1 }
 0x262   : > { %v17595_v4 = vadd.f32 %v20132_v2, %v16971_v13  ;;  %v2789_v15 = vpop.f32.mrb[49].mxu1  ;;  %v18766_v13 = vld [vmem:[#allocation2 + $0x38] sm:$0xff] }
 0x263   : > { %v17598_v29 = vadd.f32 %v24501_v17, %v2789_v15  ;;  %v16972_v31 = vpop.f32.mrb[50].mxu1 }
 0x264   : > { %v2957_v53 = vadd.f32 %v17595_v4, %v20328_v62  ;;  %v17601_v56 = vadd.f32 %v20135_v18, %v16972_v31  ;;  %v2792_v23 = vpop.f32.mrb[51].mxu1  ;;  %v18767_v31 = vld [vmem:[#allocation2 + $0x28] sm:$0xff] }
 0x265   : > { %v2955_v5 = vadd.f32 %v17598_v29, %v20328_v62  ;;  %v17604_v49 = vadd.f32 %v20116_v57, %v2792_v23 }
 0x266   : > { %vm2989_vm9 = vcmp.ge.f32.partialorder %v2957_v53, 0.0  ;;  %v3021_v1 = vmul.f32 0.2, %v2957_v53  ;;  %v2958_v25 = vadd.f32 %v17601_v56, %v20328_v62 }
 0x267   : > { %vm2987_vm2 = vcmp.ge.f32.partialorder %v2955_v5, 0.0  ;;  %v3019_v14 = vmul.f32 0.2, %v2955_v5  ;;  %v2956_v2 = vadd.f32 %v17604_v49, %v20328_v62 }
 0x268   : > { %v3053_v35 = vsel %vm2989_vm9, %v2957_v53, %v3021_v1  ;;  %vm2990_vm4 = vcmp.ge.f32.partialorder %v2958_v25, 0.0  ;;  %v3022_v12 = vmul.f32 0.2, %v2958_v25 }
 0x269   : > { %v20338_v47 = vadd.f32 %v18764_v54, %v3053_v35  ;;  %v3051_v18 = vsel %vm2987_vm2, %v2955_v5, %v3019_v14  ;;  %vm2988_vm7 = vcmp.ge.f32.partialorder %v2956_v2, 0.0  ;;  %v3020_v22 = vmul.f32 0.2, %v2956_v2  ;;  %v16975_v41 = vpop.f32.mrb[52].mxu1 }
 0x26a   : > { %v3083_v57 = vadd.f32 %v18765_v46, %v3051_v18  ;;  %v3054_v8 = vsel %vm2990_vm4, %v2958_v25, %v3022_v12  ;;  %v17607_v24 = vadd.f32 %v20164_v36, %v16975_v41  ;;  %v2805_v7 = vpop.f32.mrb[53].mxu1  ;;  %v18768_v12 = vld [vmem:[#allocation2 + $0x50] sm:$0xff]  ;;  %v18769_v41 = vld [vmem:[#allocation2 + $0x40] sm:$0xff] }
 0x26b   : > { %3117 = vst [vmem:[#allocation2 + $0x30] sm:$0xff] %v20338_v47  ;;  %v20342_v4 = vadd.f32 %v18766_v13, %v3054_v8  ;;  %v3052_v15 = vsel %vm2988_vm7, %v2956_v2, %v3020_v22  ;;  %v17610_v17 = vadd.f32 %v20148_v37, %v2805_v7  ;;  %v16976_v29 = vpop.f32.mrb[54].mxu1  ;;  %v18770_v7 = vld [vmem:[#allocation2 + $0x58] sm:$0xff] }
 0x26c   : > { %3115 = vst [vmem:[#allocation2 + $0x20] sm:$0xff] %v3083_v57  ;;  %v3084_v53 = vadd.f32 %v18767_v31, %v3052_v15  ;;  %v2961_v56 = vadd.f32 %v17607_v24, %v20328_v62  ;;  %v17613_v23 = vadd.f32 %v20167_v10, %v16976_v29  ;;  %v2808_v5 = vpop.f32.mrb[55].mxu1  ;;  %v18771_v31 = vld [vmem:[#allocation2 + $0x48] sm:$0xff] }
 0x26d   : > { %3118 = vst [vmem:[#allocation2 + $0x38] sm:$0xff] %v20342_v4  ;;  %v2959_v36 = vadd.f32 %v17610_v17, %v20328_v62  ;;  %v17616_v49 = vadd.f32 %v20151_v55, %v2808_v5 }
 0x26e   : > { %3116 = vst [vmem:[#allocation2 + $0x28] sm:$0xff] %v3084_v53  ;;  %vm2993_vm2 = vcmp.ge.f32.partialorder %v2961_v56, 0.0  ;;  %v3025_v1 = vmul.f32 0.2, %v2961_v56  ;;  %v2962_v37 = vadd.f32 %v17613_v23, %v20328_v62  ;;  %v20351_v25 = vpack.c.bf16 %v3084_v53, %v3083_v57 }
 0x26f   : > { %vm2991_vm4 = vcmp.ge.f32.partialorder %v2959_v36, 0.0  ;;  %v3023_v14 = vmul.f32 0.2, %v2959_v36  ;;  %v2960_v2 = vadd.f32 %v17616_v49, %v20328_v62 }
 0x270   : > { %24502 = vst [vmem:[#allocation53_spill] sm:$0xff] %v20351_v25  ;;  %v3057_v35 = vsel %vm2993_vm2, %v2961_v56, %v3025_v1  ;;  %vm2994_vm9 = vcmp.ge.f32.partialorder %v2962_v37, 0.0  ;;  %v3026_v10 = vmul.f32 0.2, %v2962_v37  ;;  %3732 = vmatprep.mubr.bf16.mxu0 %v20351_v25 }
 0x271   : > { %v20355_v54 = vadd.f32 %v18768_v12, %v3057_v35  ;;  %v3055_v55 = vsel %vm2991_vm4, %v2959_v36, %v3023_v14  ;;  %vm2992_vm7 = vcmp.ge.f32.partialorder %v2960_v2, 0.0  ;;  %v3024_v18 = vmul.f32 0.2, %v2960_v2  ;;  %v16979_v22 = vpop.f32.mrb[56].mxu1 }
 0x272   : > { %v20357_v46 = vadd.f32 %v18769_v41, %v3055_v55  ;;  %v3058_v57 = vsel %vm2994_vm9, %v2962_v37, %v3026_v10  ;;  %v17619_v8 = vadd.f32 %v20186_v60, %v16979_v22  ;;  %v2821_v24 = vpop.f32.mrb[57].mxu1  ;;  %v20387_v41 = vpack.c.bf16 %v20342_v4, %v20338_v47 }
 0x273   : > { %3121 = vst [vmem:[#allocation2 + $0x50] sm:$0xff] %v20355_v54  ;;  %v20361_v13 = vadd.f32 %v18770_v7, %v3058_v57  ;;  %v3056_v15 = vsel %vm2992_vm7, %v2960_v2, %v3024_v18  ;;  %v17622_v17 = vadd.f32 %v20178_v38, %v2821_v24  ;;  %v16980_v29 = vpop.f32.mrb[58].mxu1  ;;  %v3149_v35 = vld [vmem:[#allocation2 + $0x1f] sm:$0xff]  ;;  %v18517_v57 = vld [vmem:[%s23926_s1 + $0x288] sm:$0xff]  }
 0x274   : > { %3119 = vst [vmem:[#allocation2 + $0x40] sm:$0xff] %v20357_v46  ;;  %v20365_v53 = vadd.f32 %v18771_v31, %v3056_v15  ;;  %v2965_v56 = vadd.f32 %v17619_v8, %v20328_v62  ;;  %v17625_v23 = vadd.f32 %v20189_v44, %v16980_v29  ;;  %v2824_v60 = vpop.f32.mrb[59].mxu1  ;;  %24505 = vst [vmem:[#allocation40_spill] sm:$0xff] %v20387_v41  ;;  %v18772_v8 = vld [vmem:[#allocation2 + $0x70] sm:$0xff]  ;;  %v18773_v31 = vld [vmem:[#allocation2 + $0x60] sm:$0xff] }
 0x275   : > { %3122 = vst [vmem:[#allocation2 + $0x58] sm:$0xff] %v20361_v13  ;;  %v2963_v5 = vadd.f32 %v17622_v17, %v20328_v62  ;;  %v17628_v36 = vadd.f32 %v20181_v51, %v2824_v60  ;;  %v3245_v49 = vld [vmem:[#allocation2 + $0x21] sm:$0xff]  ;;  %v3246_v1 = vld [vmem:[#allocation2 + $0x29] sm:$0xff]  ;;  %v18774_v60 = vld [vmem:[#allocation2 + $0x78] sm:$0xff] }
 0x276   : > { %v3150_v38 = vld [vmem:[#allocation2 + $0x27] sm:$0xff]  ;;  %3120 = vst [vmem:[#allocation2 + $0x48] sm:$0xff] %v20365_v53  ;;  %vm2997_vm2 = vcmp.ge.f32.partialorder %v2965_v56, 0.0  ;;  %v3029_v37 = vmul.f32 0.2, %v2965_v56  ;;  %v2966_v14 = vadd.f32 %v17625_v23, %v20328_v62  ;;  %v20374_v2 = vpack.c.bf16 %v3246_v1, %v3245_v49  ;;  %v24506_v29 = vld [vmem:[#allocation9_spill] sm:$0xff] }
 0x277   : > { %vm2995_vm4 = vcmp.ge.f32.partialorder %v2963_v5, 0.0  ;;  %v3027_v44 = vmul.f32 0.2, %v2963_v5  ;;  %v2964_v10 = vadd.f32 %v17628_v36, %v20328_v62  ;;  %v20377_v12 = vpack.c.bf16 %v3150_v38, %v3149_v35  ;;  %v18516_v51 = vld [vmem:[%s23926_s1 + $0x240] sm:$0xff]   ;;  %v3247_v38 = vld [vmem:[#allocation2 + $0x31] sm:$0xff] }
 0x278   : > { %v3061_v55 = vsel %vm2997_vm2, %v2965_v56, %v3029_v37  ;;  %vm2998_vm9 = vcmp.ge.f32.partialorder %v2966_v14, 0.0  ;;  %v3030_v18 = vmul.f32 0.2, %v2966_v14  ;;  %17017 = vmatprep.mubr.msk.bf16.mxu1 %vm24439_vm13, %v20374_v2  ;;  %vm24507_vm2 = vnez %v24506_v29 }
 0x279   : > { %24503 = vst [vmem:[#allocation56_spill] sm:$0xff] %v20377_v12  ;;  %v20392_v24 = vadd.f32 %v18772_v8, %v3061_v55  ;;  %v3059_v7 = vsel %vm2995_vm4, %v2963_v5, %v3027_v44  ;;  %vm2996_vm7 = vcmp.ge.f32.partialorder %v2964_v10, 0.0  ;;  %v3028_v15 = vmul.f32 0.2, %v2964_v10  ;;  %v16983_v17 = vpop.f32.mrb[60].mxu1  ;;  %12911 = vmatmul.mubr.msk.bf16.vlgmr.msra.gmra.mrb[80].mxu0 %vm24507_vm2, %v20377_v12  ;;  %v3152_v8 = vld [vmem:[#allocation2 + $0x37] sm:$0xff] }
 0x27a   : > { %v20397_v56 = vadd.f32 %v18773_v31, %v3059_v7  ;;  %v3062_v47 = vsel %vm2998_vm9, %v2966_v14, %v3030_v18  ;;  %v17631_v4 = vadd.f32 %v20208_v45, %v16983_v17  ;;  %v2837_v23 = vpop.f32.mrb[61].mxu1  ;;  %3740 = vmatprep.mubr.bf16.mxu0 %v20387_v41  ;;  %15362 = vmatpush3.bf16.msra.mxu0 %v18516_v51  ;;  %v18518_v14 = vld [vmem:[%s23926_s1 + $0x248] sm:$0xff]  }
 0x27b   : > { %3125 = vst [vmem:[#allocation2 + $0x70] sm:$0xff] %v20392_v24  ;;  %v20402_v5 = vadd.f32 %v18774_v60, %v3062_v47  ;;  %v3060_v36 = vsel %vm2996_vm7, %v2964_v10, %v3028_v15  ;;  %v17634_v49 = vadd.f32 %v20194_v42, %v2837_v23  ;;  %v16984_v1 = vpop.f32.mrb[62].mxu1  ;;  %v3248_v37 = vld [vmem:[#allocation2 + $0x39] sm:$0xff]  ;;  %v18775_v45 = vld [vmem:[#allocation2 + $0x68] sm:$0xff]  ;;  %15363 = vmatprep.subr.bf16.mxu0 %v18517_v57  ;;  %v24508_v57 = vld [vmem:[#allocation33_spill] sm:$0xff] }
 0x27c   : > { %3123 = vst [vmem:[#allocation2 + $0x60] sm:$0xff] %v20397_v56  ;;  %v20409_v35 = vadd.f32 %v18775_v45, %v3060_v36  ;;  %v2969_v44 = vadd.f32 %v17631_v4, %v20328_v62  ;;  %v17637_v55 = vadd.f32 %v20211_v6, %v16984_v1  ;;  %v2840_v10 = vpop.f32.mrb[63].mxu1  ;;  %v20413_v18 = vpack.c.bf16 %v3248_v37, %v3247_v38  ;;  %v3151_v42 = vld [vmem:[#allocation2 + $0x2f] sm:$0xff] }
 0x27d   : > { %v18500_v51 = vld [vmem:[%s23926_s1 + $0x2c8] sm:$0xff]   ;;  %3126 = vst [vmem:[#allocation2 + $0x78] sm:$0xff] %v20402_v5  ;;  %v2967_v7 = vadd.f32 %v17634_v49, %v20328_v62  ;;  %v17640_v15 = vadd.f32 %v20197_v33, %v2840_v10  ;;  %v18521_v6 = vld [vmem:[%s23926_s1 + $0x290] sm:$0xff]   ;;  %v20433_v36 = vpack.c.bf16 %v3152_v8, %v3151_v42  ;;  %v20443_v45 = vpack.c.bf16 %v20365_v53, %v20357_v46  ;;  %v18523_v46 = vld [vmem:[%s23926_s1 + $0x298] sm:$0xff]  }
 0x27e   : > { %v3249_v17 = vld [vmem:[#allocation2 + $0x41] sm:$0xff]  ;;  %v3250_v31 = vld [vmem:[#allocation2 + $0x49] sm:$0xff]  ;;  %3124 = vst [vmem:[#allocation2 + $0x68] sm:$0xff] %v20409_v35  ;;  %vm3001_vm4 = vcmp.ge.f32.partialorder %v2969_v44, 0.0  ;;  %v3033_v47 = vmul.f32 0.2, %v2969_v44  ;;  %v2970_v4 = vadd.f32 %v17637_v55, %v20328_v62  ;;  %17018 = vmatmul.mubr.msk.bf16.vlgmr.msra.gmra.mrb[144].mxu1 %vm24444_vm1, %v20413_v18  ;;  %15364 = vmatpush3.bf16.msra.mxu0 %v18518_v14 }
 0x27f   : > { %v20429_v23 = vpack.c.bf16 %v3250_v31, %v3249_v17  ;;  %vm2999_vm9 = vcmp.ge.f32.partialorder %v2967_v7, 0.0  ;;  %v3031_v33 = vmul.f32 0.2, %v2967_v7  ;;  %v2968_v60 = vadd.f32 %v17640_v15, %v20328_v62  ;;  %17050 = vmatpush3.bf16.msra.mxu1 %v20288_v26  ;;  %24509 = vst [vmem:[#allocation8_spill] sm:$0xff] %v20433_v36  ;;  %v18522_v49 = vld [vmem:[%s23926_s1 + $0x250] sm:$0xff]   ;;  %24511 = vst [vmem:[#allocation10_spill] sm:$0xff] %v20443_v45 }
 0x280   : > { %v3065_v1 = vsel %vm3001_vm4, %v2969_v44, %v3033_v47  ;;  %v3034_v38 = vmul.f32 0.2, %v2970_v4  ;;  %17051 = vmatprep.subr.bf16.mxu1 %v18500_v51  ;;  %v18501_v26 = vld [vmem:[%s23926_s1 + $0x2d0] sm:$0xff]   ;;  %15365 = vmatprep.subr.bf16.mxu0 %v18521_v6  ;;  %v18777_v53 = vld [vmem:[#allocation2 + $0x80] sm:$0xff]  ;;  %vm24514_vm2 = vcmp.ge.f32.partialorder %v2970_v4, 0.0  ;;  %v18778_v47 = vld [vmem:[#allocation2 + $0x98] sm:$0xff] }
 0x281   : > { %17021 = vmatprep.mubr.msk.bf16.mxu1 %vm24447_vm14, %v20429_v23  ;;  %v18776_v14 = vld [vmem:[#allocation2 + $0x90] sm:$0xff]  ;;  %v3063_v44 = vsel %vm2999_vm9, %v2967_v7, %v3031_v33  ;;  %vm3000_vm4 = vcmp.ge.f32.partialorder %v2968_v60, 0.0  ;;  %v3032_v10 = vmul.f32 0.2, %v2968_v60  ;;  %v16987_v42 = vpop.f32.mrb[64].mxu1 }
 0x282   : > { %v20448_v55 = vadd.f32 %v18776_v14, %v3065_v1  ;;  %v24512_v8 = vld [vmem:[#allocation13_spill] sm:$0xff]  ;;  %v20457_v15 = vadd.f32 %v18777_v53, %v3063_v44  ;;  %v3066_v17 = vsel %vm24514_vm2, %v2970_v4, %v3034_v38  ;;  %v17643_v31 = vadd.f32 %v20248_v43, %v16987_v42  ;;  %v2853_v7 = vpop.f32.mrb[65].mxu1  ;;  %15366 = vmatpush3.bf16.msra.mxu0 %v18522_v49  ;;  %v18524_v43 = vld [vmem:[%s23926_s1 + $0x258] sm:$0xff]   ;;  %v18779_v4 = vld [vmem:[#allocation2 + $0x88] sm:$0xff] }
 0x283   : > { %vm24513_vm7 = vnez %v24512_v8  ;;  %v20463_v33 = vadd.f32 %v18778_v47, %v3066_v17  ;;  %v3064_v6 = vsel %vm3000_vm4, %v2968_v60, %v3032_v10  ;;  %v17646_v1 = vadd.f32 %v20225_v30, %v2853_v7  ;;  %v16988_v14 = vpop.f32.mrb[66].mxu1  ;;  %v3251_v41 = vld [vmem:[#allocation2 + $0x51] sm:$0xff]  ;;  %v3252_v8 = vld [vmem:[#allocation2 + $0x59] sm:$0xff]  ;;  %17052 = vmatpush3.bf16.msra.mxu1 %v18500_v51  ;;  %v3154_v42 = vld [vmem:[#allocation2 + $0x47] sm:$0xff]  ;;  %15367 = vmatprep.subr.bf16.mxu0 %v18523_v46 }
 0x284   : > { %12914 = vmatmul.mubr.msk.bf16.gmra.mrb[84].mxu0 %vm24513_vm7, %v20433_v36  ;;  %3129 = vst [vmem:[#allocation2 + $0x90] sm:$0xff] %v20448_v55  ;;  %3127 = vst [vmem:[#allocation2 + $0x80] sm:$0xff] %v20457_v15  ;;  %v20470_v38 = vadd.f32 %v18779_v4, %v3064_v6  ;;  %v2973_v44 = vadd.f32 %v17643_v31, %v20328_v62  ;;  %v17649_v60 = vadd.f32 %v20254_v9, %v16988_v14  ;;  %v2856_v10 = vpop.f32.mrb[67].mxu1  ;;  %v18502_v51 = vld [vmem:[%s23926_s1 + $0x2d8] sm:$0xff]   ;;  %v18527_v9 = vld [vmem:[%s23926_s1 + $0x2a0] sm:$0xff]  }
 0x285   : > { %3748 = vmatprep.mubr.bf16.mxu0 %v20443_v45  ;;  %v20474_v30 = vpack.c.bf16 %v3252_v8, %v3251_v41  ;;  %17053 = vmatprep.subr.bf16.mxu1 %v18501_v26  ;;  %3130 = vst [vmem:[#allocation2 + $0x98] sm:$0xff] %v20463_v33  ;;  %v2971_v49 = vadd.f32 %v17646_v1, %v20328_v62  ;;  %v3253_v17 = vld [vmem:[#allocation2 + $0x61] sm:$0xff]  ;;  %v3254_v7 = vld [vmem:[#allocation2 + $0x69] sm:$0xff]  ;;  %v3255_v12 = vld [vmem:[#allocation2 + $0x71] sm:$0xff] }
 0x286   : > { %v17652_v53 = vadd.f32 %v20231_v52, %v2856_v10  ;;  %3128 = vst [vmem:[#allocation2 + $0x88] sm:$0xff] %v20470_v38  ;;  %vm3005_vm2 = vcmp.ge.f32.partialorder %v2973_v44, 0.0  ;;  %v3037_v41 = vmul.f32 0.2, %v2973_v44  ;;  %v2974_v8 = vadd.f32 %v17649_v60, %v20328_v62  ;;  %v24515_v31 = vld [vmem:[#allocation37_spill] sm:$0xff]  ;;  %v3153_v52 = vld [vmem:[#allocation2 + $0x3f] sm:$0xff]  ;;  %15368 = vmatpush3.bf16.msra.mxu0 %v18524_v43 }
 0x287   : > { %17022 = vmatmul.mubr.msk.bf16.gmra.mrb[148].mxu1 %vm24452_vm3, %v20474_v30  ;;  %v20490_v47 = vpack.c.bf16 %v3254_v7, %v3253_v17  ;;  %vm3003_vm9 = vcmp.ge.f32.partialorder %v2971_v49, 0.0  ;;  %v3035_v6 = vmul.f32 0.2, %v2971_v49  ;;  %v20493_v1 = vpack.c.bf16 %v3154_v42, %v3153_v52  ;;  %v18528_v14 = vld [vmem:[%s23926_s1 + $0x260] sm:$0xff]   ;;  %v18780_v43 = vld [vmem:[#allocation2 + $0xb0] sm:$0xff]  ;;  %15369 = vmatprep.subr.bf16.mxu0 %v18527_v9 }
 0x288   : > { %v2972_v46 = vadd.f32 %v17652_v53, %v20328_v62  ;;  %17054 = vmatpush3.bf16.msra.mxu1 %v18501_v26  ;;  %v3069_v4 = vsel %vm3005_vm2, %v2973_v44, %v3037_v41  ;;  %v3038_v60 = vmul.f32 0.2, %v2974_v8  ;;  %v20503_v17 = vpack.c.bf16 %v20361_v13, %v20355_v54  ;;  %v18503_v26 = vld [vmem:[%s23926_s1 + $0x2e0] sm:$0xff]   ;;  %v24519_v41 = vld [vmem:[#allocation18_spill] sm:$0xff]  ;;  %v18529_v54 = vld [vmem:[%s23926_s1 + $0x2a8] sm:$0xff]  }
 0x289   : > { %24516 = vst [vmem:[#allocation12_spill] sm:$0xff] %v20493_v1  ;;  %17025 = vmatprep.mubr.msk.bf16.mxu1 %vm24454_vm0, %v20490_v47  ;;  %17055 = vmatprep.subr.bf16.mxu1 %v18502_v51  ;;  %v20508_v42 = vadd.f32 %v18780_v43, %v3069_v4  ;;  %v3067_v44 = vsel %vm3003_vm9, %v2971_v49, %v3035_v6  ;;  %v16991_v7 = vpop.f32.mrb[68].mxu1  ;;  %vm24520_vm4 = vnez %v24519_v41  ;;  %v18781_v13 = vld [vmem:[#allocation2 + $0xa0] sm:$0xff]  ;;  %vm24521_vm7 = vcmp.ge.f32.partialorder %v2974_v8, 0.0  ;;  %v18782_v6 = vld [vmem:[#allocation2 + $0xb8] sm:$0xff] }
 0x28a   : > { %24518 = vst [vmem:[#allocation14_spill] sm:$0xff] %v20503_v17  ;;  %vm3004_vm2 = vcmp.ge.f32.partialorder %v2972_v46, 0.0  ;;  %v3036_v53 = vmul.f32 0.2, %v2972_v46  ;;  %v20517_v52 = vadd.f32 %v18781_v13, %v3067_v44  ;;  %v3070_v4 = vsel %vm24521_vm7, %v2974_v8, %v3038_v60  ;;  %v2869_v49 = vpop.f32.mrb[69].mxu1  ;;  %15370 = vmatpush3.bf16.msra.mxu0 %v18528_v14  ;;  %v18783_v8 = vld [vmem:[#allocation2 + $0xa8] sm:$0xff] }
 0x28b   : > { %v17655_v43 = vadd.f32 %v20279_v63, %v16991_v7  ;;  %3133 = vst [vmem:[#allocation2 + $0xb0] sm:$0xff] %v20508_v42  ;;  %v20523_v45 = vadd.f32 %v18782_v6, %v3070_v4  ;;  %v17658_v41 = vadd.f32 %v20268_v61, %v2869_v49  ;;  %v3256_v36 = vld [vmem:[#allocation2 + $0x79] sm:$0xff]  ;;  %v18530_v63 = vld [vmem:[%s23926_s1 + $0x268] sm:$0xff]   ;;  %15371 = vmatprep.subr.bf16.mxu0 %v18529_v54 }
 0x28c   : > { %12917 = vmatmul.mubr.msk.bf16.gmra.mrb[88].mxu0 %vm24520_vm4, %v20493_v1  ;;  %v3068_v9 = vsel %vm3004_vm2, %v2972_v46, %v3036_v53  ;;  %v16992_v1 = vpop.f32.mrb[70].mxu1  ;;  %17056 = vmatpush3.bf16.msra.mxu1 %v18502_v51  ;;  %3131 = vst [vmem:[#allocation2 + $0xa0] sm:$0xff] %v20517_v52  ;;  %v20534_v61 = vpack.c.bf16 %v3256_v36, %v3255_v12  ;;  %v3155_v7 = vld [vmem:[#allocation2 + $0x4f] sm:$0xff]  ;;  %v3156_v13 = vld [vmem:[#allocation2 + $0x57] sm:$0xff] }
 0x28d   : > { %3756 = vmatprep.mubr.bf16.mxu0 %v20503_v17  ;;  %v20530_v60 = vadd.f32 %v18783_v8, %v3068_v9  ;;  %v2977_v44 = vadd.f32 %v17655_v43, %v20328_v62  ;;  %v17661_v46 = vadd.f32 %v20282_v16, %v16992_v1  ;;  %v2872_v53 = vpop.f32.mrb[71].mxu1  ;;  %17057 = vmatprep.subr.bf16.mxu1 %v18503_v26  ;;  %v18504_v51 = vld [vmem:[%s23926_s1 + $0x2e8] sm:$0xff]   ;;  %v18533_v16 = vld [vmem:[%s23926_s1 + $0x2b0] sm:$0xff]  }
 0x28e   : > { %3134 = vst [vmem:[#allocation2 + $0xb8] sm:$0xff] %v20523_v45  ;;  %v2975_v14 = vadd.f32 %v17658_v41, %v20328_v62  ;;  %v17664_v4 = vadd.f32 %v20274_v3, %v2872_v53  ;;  %v3257_v49 = vld [vmem:[#allocation2 + $0x81] sm:$0xff]  ;;  %v3258_v43 = vld [vmem:[#allocation2 + $0x89] sm:$0xff]  ;;  %v20553_v6 = vpack.c.bf16 %v3156_v13, %v3155_v7  ;;  %15372 = vmatpush3.bf16.msra.mxu0 %v18530_v63  ;;  %v24524_v53 = vld [vmem:[#allocation42_spill] sm:$0xff] }
 0x28f   : > { %3132 = vst [vmem:[#allocation2 + $0xa8] sm:$0xff] %v20530_v60  ;;  %vm3009_vm7 = vcmp.ge.f32.partialorder %v2977_v44, 0.0  ;;  %v3041_v12 = vmul.f32 0.2, %v2977_v44  ;;  %v2978_v36 = vadd.f32 %v17661_v46, %v20328_v62  ;;  %v24522_v1 = vld [vmem:[#allocation41_spill] sm:$0xff]  ;;  %17026 = vmatmul.mubr.msk.bf16.gmra.mrb[152].mxu1 %vm24459_vm11, %v20534_v61  ;;  %v20550_v41 = vpack.c.bf16 %v3258_v43, %v3257_v49  ;;  %v24526_v43 = vld [vmem:[#allocation23_spill] sm:$0xff]  ;;  %15373 = vmatprep.subr.bf16.mxu0 %v18533_v16 }
 0x290   : > { %vm3007_vm9 = vcmp.ge.f32.partialorder %v2975_v14, 0.0  ;;  %v3039_v3 = vmul.f32 0.2, %v2975_v14  ;;  %v2976_v54 = vadd.f32 %v17664_v4, %v20328_v62  ;;  %24523 = vst [vmem:[#allocation16_spill] sm:$0xff] %v20553_v6  ;;  %17058 = vmatpush3.bf16.msra.mxu1 %v18503_v26  ;;  %v18534_v9 = vld [vmem:[%s23926_s1 + $0x270] sm:$0xff]   ;;  %v20563_v49 = vpack.c.bf16 %v20409_v35, %v20397_v56  ;;  %v18535_v56 = vld [vmem:[%s23926_s1 + $0x2b8] sm:$0xff]  }
 0x291   : > { %v3073_v8 = vsel %vm3009_vm7, %v2977_v44, %v3041_v12  ;;  %v3042_v46 = vmul.f32 0.2, %v2978_v36  ;;  %17029 = vmatprep.mubr.msk.bf16.mxu1 %vm24462_vm15, %v20550_v41  ;;  %17059 = vmatprep.subr.bf16.mxu1 %v18504_v51  ;;  %v18505_v26 = vld [vmem:[%s23926_s1 + $0x2f0] sm:$0xff]   ;;  %v16995_v4 = vpop.f32.mrb[72].mxu1  ;;  %vm24527_vm2 = vnez %v24526_v43  ;;  %v18785_v35 = vld [vmem:[#allocation2 + $0xc0] sm:$0xff]  ;;  %vm24528_vm4 = vcmp.ge.f32.partialorder %v2978_v36, 0.0 }
 0x292   : > { %24525 = vst [vmem:[#allocation19_spill] sm:$0xff] %v20563_v49  ;;  %v18784_v63 = vld [vmem:[#allocation2 + $0xd0] sm:$0xff]  ;;  %v3071_v44 = vsel %vm3007_vm9, %v2975_v14, %v3039_v3  ;;  %vm3008_vm7 = vcmp.ge.f32.partialorder %v2976_v54, 0.0  ;;  %v3040_v13 = vmul.f32 0.2, %v2976_v54  ;;  %v2885_v14 = vpop.f32.mrb[73].mxu1  ;;  %15374 = vmatpush3.bf16.msra.mxu0 %v18534_v9 }
 0x293   : > { %v20568_v7 = vadd.f32 %v18784_v63, %v3073_v8  ;;  %v20577_v12 = vadd.f32 %v18785_v35, %v3071_v44  ;;  %v3074_v8 = vsel %vm24528_vm4, %v2978_v36, %v3042_v46  ;;  %v17667_v63 = vadd.f32 %v20301_v58, %v16995_v4  ;;  %v18786_v3 = vld [vmem:[#allocation2 + $0xd8] sm:$0xff]  ;;  %v18787_v36 = vld [vmem:[#allocation2 + $0xc8] sm:$0xff]  ;;  %15375 = vmatprep.subr.bf16.mxu0 %v18535_v56 }
 0x294   : > { %12920 = vmatmul.mubr.msk.bf16.gmra.mrb[92].mxu0 %vm24527_vm2, %v20553_v6  ;;  %v20583_v17 = vadd.f32 %v18786_v3, %v3074_v8  ;;  %v3072_v16 = vsel %vm3008_vm7, %v2976_v54, %v3040_v13  ;;  %v17670_v43 = vadd.f32 %v20292_v20, %v2885_v14  ;;  %v16996_v6 = vpop.f32.mrb[74].mxu1  ;;  %v3259_v25 = vld [vmem:[#allocation2 + $0x91] sm:$0xff]  ;;  %v3260_v29 = vld [vmem:[#allocation2 + $0x99] sm:$0xff]  ;;  %17060 = vmatpush3.bf16.msra.mxu1 %v18504_v51  ;;  %v3158_v4 = vld [vmem:[#allocation2 + $0x67] sm:$0xff] }
 0x295   : > { %3764 = vmatprep.mubr.bf16.mxu0 %v20563_v49  ;;  %3137 = vst [vmem:[#allocation2 + $0xd0] sm:$0xff] %v20568_v7  ;;  %v18536_v58 = vld [vmem:[%s23926_s1 + $0x278] sm:$0xff]   ;;  %3135 = vst [vmem:[#allocation2 + $0xc0] sm:$0xff] %v20577_v12  ;;  %v20590_v46 = vadd.f32 %v18787_v36, %v3072_v16  ;;  %v2981_v44 = vadd.f32 %v17667_v63, %v20328_v62  ;;  %v17673_v54 = vadd.f32 %v20304_v32, %v16996_v6  ;;  %v2888_v13 = vpop.f32.mrb[75].mxu1  ;;  %v24531_v36 = vld [vmem:[#allocation45_spill] sm:$0xff] }
 0x296   : > { %v20594_v20 = vpack.c.bf16 %v3260_v29, %v3259_v25  ;;  %17061 = vmatprep.subr.bf16.mxu1 %v18505_v26  ;;  %v18506_v51 = vld [vmem:[%s23926_s1 + $0x2f8] sm:$0xff]   ;;  %3138 = vst [vmem:[#allocation2 + $0xd8] sm:$0xff] %v20583_v17  ;;  %v2979_v9 = vadd.f32 %v17670_v43, %v20328_v62  ;;  %v17676_v35 = vadd.f32 %v20296_v19, %v2888_v13  ;;  %v3261_v8 = vld [vmem:[#allocation2 + $0xa1] sm:$0xff]  ;;  %v3262_v14 = vld [vmem:[#allocation2 + $0xa9] sm:$0xff] }
 0x297   : > { %3136 = vst [vmem:[#allocation2 + $0xc8] sm:$0xff] %v20590_v46  ;;  %vm3013_vm4 = vcmp.ge.f32.partialorder %v2981_v44, 0.0  ;;  %v3045_v32 = vmul.f32 0.2, %v2981_v44  ;;  %v2982_v25 = vadd.f32 %v17673_v54, %v20328_v62  ;;  %v24529_v29 = vld [vmem:[#allocation44_spill] sm:$0xff]  ;;  %v20607_v6 = vpack.c.bf16 %v3262_v14, %v3261_v8  ;;  %v3157_v63 = vld [vmem:[#allocation2 + $0x5f] sm:$0xff]  ;;  %15376 = vmatpush3.bf16.msra.mxu0 %v18536_v58 }
 0x298   : > { %17030 = vmatmul.mubr.msk.bf16.gmra.mrb[156].mxu1 %vm19624_vm5, %v20594_v20  ;;  %vm3011_vm9 = vcmp.ge.f32.partialorder %v2979_v9, 0.0  ;;  %v3043_v43 = vmul.f32 0.2, %v2979_v9  ;;  %v2980_v19 = vadd.f32 %v17676_v35, %v20328_v62  ;;  %v20610_v3 = vpack.c.bf16 %v3158_v4, %v3157_v63  ;;  %v18507_v13 = vld [vmem:[%s23926_s1 + $0x400] sm:$0xff]   ;;  %v18788_v4 = vld [vmem:[#allocation2 + $0xf0] sm:$0xff] }
 0x299   : > { %17062 = vmatpush3.bf16.msra.mxu1 %v18505_v26  ;;  %v3077_v56 = vsel %vm3013_vm4, %v2981_v44, %v3045_v32  ;;  %vm3014_vm7 = vcmp.ge.f32.partialorder %v2982_v25, 0.0  ;;  %v3046_v16 = vmul.f32 0.2, %v2982_v25  ;;  %17033 = vmatprep.mubr.msk.bf16.mxu1 %vm24464_vm10, %v20607_v6  ;;  %v20617_v54 = vpack.c.bf16 %v20402_v5, %v20392_v24  ;;  %v16999_v44 = vpop.f32.mrb[76].mxu1  ;;  %v24532_v8 = vld [vmem:[#allocation3_spill] sm:$0xff] }
 0x29a   : > { %24530 = vst [vmem:[#allocation43_spill] sm:$0xff] %v20610_v3  ;;  %17063 = vmatprep.subr.bf16.mxu1 %v18506_v51  ;;  %v20622_v35 = vadd.f32 %v18788_v4, %v3077_v56  ;;  %v3075_v26 = vsel %vm3011_vm9, %v2979_v9, %v3043_v43  ;;  %vm3012_vm4 = vcmp.ge.f32.partialorder %v2980_v19, 0.0  ;;  %v3044_v58 = vmul.f32 0.2, %v2980_v19  ;;  %v18789_v14 = vld [vmem:[#allocation2 + $0xe0] sm:$0xff]  ;;  %v2901_v63 = vpop.f32.mrb[77].mxu1 }
 0x29b   : > { %vm24533_vm2 = vnez %v24532_v8  ;;  %v20627_v32 = vadd.f32 %v18789_v14, %v3075_v26  ;;  %v3078_v24 = vsel %vm3014_vm7, %v2982_v25, %v3046_v16  ;;  %v17679_v5 = vadd.f32 %v20317_v27, %v16999_v44  ;;  %v18790_v56 = vld [vmem:[#allocation2 + $0xf8] sm:$0xff]  ;;  %v17000_v49 = vpop.f32.mrb[78].mxu1  ;;  %v18791_v25 = vld [vmem:[#allocation2 + $0xe8] sm:$0xff] }
 0x29c   : > { %12923 = vmatmul.mubr.msk.bf16.gmra.mrb[96].mxu0 %vm24533_vm2, %v20610_v3  ;;  %3141 = vst [vmem:[#allocation2 + $0xf0] sm:$0xff] %v20622_v35  ;;  %v20632_v9 = vadd.f32 %v18790_v56, %v3078_v24  ;;  %v3076_v43 = vsel %vm3012_vm4, %v2980_v19, %v3044_v58  ;;  %v17682_v4 = vadd.f32 %v20309_v50, %v2901_v63  ;;  %v3263_v8 = vld [vmem:[#allocation2 + $0xb1] sm:$0xff]  ;;  %v3264_v3 = vld [vmem:[#allocation2 + $0xb9] sm:$0xff]  ;;  %v2904_v44 = vpop.f32.mrb[79].mxu1 }
 0x29d   : > { %3772 = vmatprep.mubr.bf16.mxu0 %v20617_v54  ;;  %17064 = vmatpush3.bf16.msra.mxu1 %v18506_v51  ;;  %3139 = vst [vmem:[#allocation2 + $0xe0] sm:$0xff] %v20627_v32  ;;  %v20636_v16 = vadd.f32 %v18791_v25, %v3076_v43  ;;  %v2985_v27 = vadd.f32 %v17679_v5, %v20328_v62  ;;  %v3159_v24 = vld [vmem:[#allocation2 + $0x6f] sm:$0xff]  ;;  %v3160_v19 = vld [vmem:[#allocation2 + $0x77] sm:$0xff] }
 0x29e   : > { %v17685_v26 = vadd.f32 %v20320_v34, %v17000_v49  ;;  %v20640_v14 = vpack.c.bf16 %v3264_v3, %v3263_v8  ;;  %15497 = vmatprep.subr.bf16.mxu1 %v18507_v13  ;;  %3142 = vst [vmem:[#allocation2 + $0xf8] sm:$0xff] %v20632_v9  ;;  %v2983_v50 = vadd.f32 %v17682_v4, %v20328_v62  ;;  %v3265_v58 = vld [vmem:[#allocation2 + $0xc1] sm:$0xff]  ;;  %v3266_v63 = vld [vmem:[#allocation2 + $0xc9] sm:$0xff] }
 0x29f   : > { %v17688_v51 = vadd.f32 %v20312_v59, %v2904_v44  ;;  %3140 = vst [vmem:[#allocation2 + $0xe8] sm:$0xff] %v20636_v16  ;;  %vm3017_vm9 = vcmp.ge.f32.partialorder %v2985_v27, 0.0  ;;  %v3049_v5 = vmul.f32 0.2, %v2985_v27  ;;  %v20650_v49 = vpack.c.bf16 %v3266_v63, %v3265_v58  ;;  %v18792_v4 = vld [vmem:[#allocation2 + $0x110] sm:$0xff]  ;;  %v18795_v63 = vld [vmem:[#allocation2 + $0x108] sm:$0xff] }
 0x2a0   : > { %v2986_v34 = vadd.f32 %v17685_v26, %v20328_v62  ;;  %17034 = vmatmul.mubr.msk.bf16.gmra.mrb[160].mxu1 %vm24465_vm8, %v20640_v14  ;;  %vm3015_vm7 = vcmp.ge.f32.partialorder %v2983_v50, 0.0  ;;  %v3047_v3 = vmul.f32 0.2, %v2983_v50  ;;  %v20653_v8 = vpack.c.bf16 %v3160_v19, %v3159_v24  ;;  %v3267_v58 = vld [vmem:[#allocation2 + $0xd1] sm:$0xff] }
 0x2a1   : > { %v2984_v13 = vadd.f32 %v17688_v51, %v20328_v62  ;;  %v3081_v59 = vsel %vm3017_vm9, %v2985_v27, %v3049_v5  ;;  %17037 = vmatprep.mubr.msk.bf16.mxu1 %vm24466_vm6, %v20650_v49  ;;  %v20660_v43 = vpack.c.bf16 %v20470_v38, %v20457_v15  ;;  %v24534_v62 = vld [vmem:[#allocation4_spill] sm:$0xff]  ;;  %v18793_v27 = vld [vmem:[#allocation2 + $0x100] sm:$0xff]  ;;  %v18794_v15 = vld [vmem:[#allocation2 + $0x118] sm:$0xff] }
 0x2a2   : > { %vm3018_vm4 = vcmp.ge.f32.partialorder %v2986_v34, 0.0  ;;  %v3050_v56 = vmul.f32 0.2, %v2986_v34  ;;  %v20662_v25 = vadd.f32 %v18792_v4, %v3081_v59  ;;  %v3079_v26 = vsel %vm3015_vm7, %v2983_v50, %v3047_v3  ;;  %v3162_v59 = vld [vmem:[#allocation2 + $0x87] sm:$0xff]  ;;  %v3161_v4 = vld [vmem:[#allocation2 + $0x7f] sm:$0xff] }
 0x2a3   : > { %vm3016_vm2 = vcmp.ge.f32.partialorder %v2984_v13, 0.0  ;;  %v3048_v44 = vmul.f32 0.2, %v2984_v13  ;;  %vm24535_vm8 = vnez %v24534_v62  ;;  %v20667_v24 = vadd.f32 %v18793_v27, %v3079_v26  ;;  %v24538_v27 = vld [vmem:[#allocation5_spill] sm:$0xff] }
 0x2a4   : > { %12926 = vmatmul.mubr.msk.bf16.gmra.mrb[100].mxu0 %vm24535_vm8, %v20653_v8  ;;  %v3082_v19 = vsel %vm3018_vm4, %v2986_v34, %v3050_v56  ;;  %3145 = vst [vmem:[#allocation2 + $0x110] sm:$0xff] %v20662_v25  ;;  %v3268_v50 = vld [vmem:[#allocation2 + $0xd9] sm:$0xff]  ;;  %v20685_v26 = vpack.c.bf16 %v3162_v59, %v3161_v4  ;;  %vm24539_vm9 = vnez %v24538_v27  ;;  %vm24540_vm7 = vnez %v24398_v21 }
 0x2a5   : > { %3780 = vmatprep.mubr.bf16.mxu0 %v20660_v43  ;;  %v20671_v38 = vadd.f32 %v18794_v15, %v3082_v19  ;;  %v3080_v51 = vsel %vm3016_vm2, %v2984_v13, %v3048_v44  ;;  %3143 = vst [vmem:[#allocation2 + $0x100] sm:$0xff] %v20667_v24  ;;  %v20676_v3 = vpack.c.bf16 %v3268_v50, %v3267_v58  ;;  %v3271_v19 = vld [vmem:[#allocation2 + $0xf1] sm:$0xff] }
 0x2a6   : > { %v20674_v5 = vadd.f32 %v18795_v63, %v3080_v51  ;;  %v3269_v34 = vld [vmem:[#allocation2 + $0xe1] sm:$0xff]  ;;  %v3270_v56 = vld [vmem:[#allocation2 + $0xe9] sm:$0xff]  ;;  %vm24536_vm2 = vnez %v24470_v48  ;;  %v20692_v44 = vpack.c.bf16 %v20463_v33, %v20448_v55  ;;  %v3164_v50 = vld [vmem:[#allocation2 + $0x97] sm:$0xff]  ;;  %vm24541_vm4 = vnez %v24401_v0 }
 0x2a7   : > { %3146 = vst [vmem:[#allocation2 + $0x118] sm:$0xff] %v20671_v38  ;;  %v20683_v13 = vpack.c.bf16 %v3270_v56, %v3269_v34  ;;  %v3163_v58 = vld [vmem:[#allocation2 + $0x8f] sm:$0xff]  ;;  %v20712_v34 = vpack.c.bf16 %v20530_v60, %v20517_v52  ;;  %v24543_v56 = vld [vmem:[#allocation6_spill] sm:$0xff]  ;;  %vm24545_vm8 = vnez %v24405_v39  ;;  %v20726_v60 = vpack.c.bf16 %v20523_v45, %v20508_v42 }
 0x2a8   : > { %3144 = vst [vmem:[#allocation2 + $0x108] sm:$0xff] %v20674_v5  ;;  %17038 = vmatmul.mubr.msk.bf16.gmra.mrb[164].mxu1 %vm19714_vm12, %v20676_v3  ;;  %24537 = vst [vmem:[#allocation20_spill] sm:$0xff] %v20692_v44  ;;  %v20705_v33 = vpack.c.bf16 %v3164_v50, %v3163_v58  ;;  %v3166_v50 = vld [vmem:[#allocation2 + $0xa7] sm:$0xff] }
 0x2a9   : > { %17041 = vmatprep.mubr.msk.bf16.mxu1 %vm24536_vm2, %v20683_v13  ;;  %24542 = vst [vmem:[#allocation22_spill] sm:$0xff] %v20712_v34  ;;  %v18510_v42 = vld [vmem:[%s23926_s1 + $0x3c8] sm:$0xff]  }
 0x2aa   : > { %v24566_v0 = vld [vmem:[#allocation8_spill] sm:$0xff] }
 0x2ac   : > { %12929 = vmatmul.mubr.msk.bf16.gmra.mrb[104].mxu0 %vm24539_vm9, %v20685_v26  ;;  %v3272_v15 = vld [vmem:[#allocation2 + $0xf9] sm:$0xff]  ;;  %vm24544_vm9 = vnez %v24543_v56 }
 0x2ad   : > { %3788 = vmatprep.mubr.bf16.mxu0 %v20692_v44  ;;  %v20698_v51 = vpack.c.bf16 %v3272_v15, %v3271_v19  ;;  %v3243_v15 = vld [vmem:[#allocation2 + $0x11] sm:$0xff]  ;;  %v3165_v44 = vld [vmem:[#allocation2 + $0x9f] sm:$0xff] }
 0x2ae   : > { %v3440_v4 = vld [vmem:[#allocation2 + $0x111] sm:$0xff]  ;;  %v3441_v19 = vld [vmem:[#allocation2 + $0x119] sm:$0xff]  ;;  %v20722_v52 = vpack.c.bf16 %v3166_v50, %v3165_v44  ;;  %v18509_v44 = vld [vmem:[%s23926_s1 + $0x408] sm:$0xff]  }
 0x2af   : > { %v3273_v63 = vld [vmem:[#allocation2 + $0x101] sm:$0xff]  ;;  %v3274_v59 = vld [vmem:[#allocation2 + $0x109] sm:$0xff]  ;;  %v13003_v58 = vpack.c.bf16 %v3441_v19, %v3440_v4 }
 0x2b0   : > { %17042 = vmatmul.mubr.msk.bf16.gmra.mrb[168].mxu1 %vm24540_vm7, %v20698_v51  ;;  %v20703_v55 = vpack.c.bf16 %v3274_v59, %v3273_v63  ;;  %v3244_v63 = vld [vmem:[#allocation2 + $0x19] sm:$0xff]  ;;  %v3167_v19 = vld [vmem:[#allocation2 + $0xaf] sm:$0xff]  ;;  %v3170_v50 = vld [vmem:[#allocation2 + $0xc7] sm:$0xff] }
 0x2b1   : > { %v13078_v59 = vpack.c.bf16 %v3244_v63, %v3243_v15  ;;  %v18508_v4 = vld [vmem:[%s23926_s1 + $0x3c0] sm:$0xff]   ;;  %v3168_v15 = vld [vmem:[#allocation2 + $0xb7] sm:$0xff]  ;;  %v20751_v63 = vpack.c.bf16 %v20590_v46, %v20577_v12 }
 0x2b2   : > { %17045 = vmatprep.mubr.msk.bf16.mxu1 %vm24541_vm4, %v20703_v55  ;;  %v20744_v45 = vpack.c.bf16 %v3168_v15, %v3167_v19  ;;  %v18513_v12 = vld [vmem:[%s23926_s1 + $0x418] sm:$0xff]   ;;  %v20779_v15 = vpack.c.bf16 %v20583_v17, %v20568_v7  ;;  %v18525_v17 = vld [vmem:[%s23926_s1 + $0x428] sm:$0xff]  }
 0x2b3   : > { %v18514_v19 = vld [vmem:[%s23926_s1 + $0x3d8] sm:$0xff]  }
 0x2b4   : > { %12932 = vmatmul.mubr.msk.bf16.gmra.mrb[108].mxu0 %vm24544_vm9, %v20705_v33 }
 0x2b5   : > { %3796 = vmatprep.mubr.bf16.mxu0 %v20712_v34  ;;  %v24546_v34 = vld [vmem:[#allocation7_spill] sm:$0xff] }
 0x2b6   : > { %vm24547_vm9 = vnez %v24546_v34 }
 0x2b8   : > { %17046 = vmatmul.mubr.msk.bf16.gmra.mrb[172].mxu1 %vm24545_vm8, %v13003_v58  ;;  %v24548_v58 = vld [vmem:[#allocation11_spill] sm:$0xff] }
 0x2b9   : > { %17065 = vmatprep.mubr.msk.bf16.mxu1 %vm24439_vm13, %v13078_v59  ;;  %v3169_v59 = vld [vmem:[#allocation2 + $0xbf] sm:$0xff] }
 0x2bc   : > { %12935 = vmatmul.mubr.msk.bf16.gmra.mrb[112].mxu0 %vm24547_vm9, %v20722_v52 }
 0x2bd   : > { %3804 = vmatprep.mubr.bf16.mxu0 %v20726_v60 }
 0x2c0   : > { %17066 = vmatmul.mubr.msk.bf16.vlgmr.msra.gmra.mrb[144].mxu1 %vm24444_vm1, %v20374_v2  ;;  %v18511_v2 = vld [vmem:[%s23926_s1 + $0x410] sm:$0xff]   ;;  %vm24549_vm1 = vnez %v24548_v58 }
 0x2c1   : > { %17069 = vmatprep.mubr.msk.bf16.mxu1 %vm24447_vm14, %v20413_v18  ;;  %15498 = vmatpush3.bf16.msra.mxu1 %v18508_v4  ;;  %v18512_v18 = vld [vmem:[%s23926_s1 + $0x3d0] sm:$0xff]   ;;  %v20772_v4 = vpack.c.bf16 %v3170_v50, %v3169_v59  ;;  %v20807_v50 = vpack.c.bf16 %v20636_v16, %v20627_v32  ;;  %v3174_v59 = vld [vmem:[#allocation2 + $0xe7] sm:$0xff]  ;;  %v18537_v32 = vld [vmem:[%s23926_s1 + $0x438] sm:$0xff]  }
 0x2c2   : > { %15499 = vmatprep.subr.bf16.mxu1 %v18509_v44  ;;  %v24550_v44 = vld [vmem:[#allocation15_spill] sm:$0xff] }
 0x2c3   : > { %v3173_v16 = vld [vmem:[#allocation2 + $0xdf] sm:$0xff] }
 0x2c4   : > { %12938 = vmatmul.mubr.msk.bf16.gmra.mrb[116].mxu0 %vm24549_vm1, %v20744_v45 }
 0x2c5   : > { %3812 = vmatprep.mubr.bf16.mxu0 %v20751_v63  ;;  %15500 = vmatpush3.bf16.msra.mxu1 %v18510_v42  ;;  %v3171_v42 = vld [vmem:[#allocation2 + $0xcf] sm:$0xff] }
 0x2c6   : > { %15501 = vmatprep.subr.bf16.mxu1 %v18511_v2  ;;  %v3172_v2 = vld [vmem:[#allocation2 + $0xd7] sm:$0xff] }
 0x2c7   : > { %v20800_v7 = vpack.c.bf16 %v3172_v2, %v3171_v42  ;;  %v24554_v42 = vld [vmem:[#allocation21_spill] sm:$0xff] }
 0x2c8   : > { %17070 = vmatmul.mubr.msk.bf16.gmra.mrb[148].mxu1 %vm24452_vm3, %v20429_v23  ;;  %v18519_v23 = vld [vmem:[%s23926_s1 + $0x420] sm:$0xff]   ;;  %vm24551_vm3 = vnez %v24550_v44  ;;  %v3176_v2 = vld [vmem:[#allocation2 + $0xf7] sm:$0xff] }
 0x2c9   : > { %17073 = vmatprep.mubr.msk.bf16.mxu1 %vm24454_vm0, %v20474_v30  ;;  %15502 = vmatpush3.bf16.msra.mxu1 %v18512_v18  ;;  %v18520_v30 = vld [vmem:[%s23926_s1 + $0x3e0] sm:$0xff]   ;;  %v18526_v18 = vld [vmem:[%s23926_s1 + $0x3e8] sm:$0xff]  }
 0x2ca   : > { %15503 = vmatprep.subr.bf16.mxu1 %v18513_v12  ;;  %v24552_v12 = vld [vmem:[#allocation17_spill] sm:$0xff] }
 0x2cc   : > { %12941 = vmatmul.mubr.msk.bf16.gmra.mrb[120].mxu0 %vm24551_vm3, %v20772_v4 }
 0x2cd   : > { %3820 = vmatprep.mubr.bf16.mxu0 %v20779_v15  ;;  %15504 = vmatpush3.bf16.msra.mxu1 %v18514_v19  ;;  %v20828_v19 = vpack.c.bf16 %v3174_v59, %v3173_v16  ;;  %v3405_v59 = vld [vmem:[#allocation2 + $0x117] sm:$0xff] }
 0x2ce   : > { %15505 = vmatprep.subr.bf16.mxu1 %v18519_v23  ;;  %v18538_v23 = vld [vmem:[%s23926_s1 + $0x3f8] sm:$0xff]  }
 0x2cf   : > { %v4553_v16 = vld [vmem:[#allocation2 + $0x38] sm:$0xff] }
 0x2d0   : > { %17074 = vmatmul.mubr.msk.bf16.gmra.mrb[152].mxu1 %vm24459_vm11, %v20490_v47  ;;  %v18531_v47 = vld [vmem:[%s23926_s1 + $0x430] sm:$0xff]   ;;  %vm24553_vm11 = vnez %v24552_v12 }
 0x2d1   : > { %17077 = vmatprep.mubr.msk.bf16.mxu1 %vm24462_vm15, %v20534_v61  ;;  %15506 = vmatpush3.bf16.msra.mxu1 %v18520_v30  ;;  %v18532_v61 = vld [vmem:[%s23926_s1 + $0x3f0] sm:$0xff]   ;;  %v20835_v30 = vpack.c.bf16 %v20632_v9, %v20622_v35 }
 0x2d2   : > { %15507 = vmatprep.subr.bf16.mxu1 %v18525_v17  ;;  %v20854_v17 = vpack.c.bf16 %v20674_v5, %v20667_v24  ;;  %v3505_v24 = vpack.c.bf16 %v20671_v38, %v20662_v25  ;;  %v24559_v5 = vld [vmem:[#allocation28_spill] sm:$0xff]  ;;  %v24561_v25 = vld [vmem:[#allocation30_spill] sm:$0xff] }
 0x2d4   : > { %12944 = vmatmul.mubr.msk.bf16.gmra.mrb[124].mxu0 %vm24553_vm11, %v20800_v7 }
 0x2d5   : > { %3828 = vmatprep.mubr.bf16.mxu0 %v20807_v50  ;;  %15508 = vmatpush3.bf16.msra.mxu1 %v18526_v18  ;;  %v24557_v18 = vld [vmem:[#allocation26_spill] sm:$0xff] }
 0x2d6   : > { %15509 = vmatprep.subr.bf16.mxu1 %v18531_v47  ;;  %vm24558_vm15 = vnez %v24557_v18  ;;  %v3178_v47 = vld [vmem:[#allocation2 + $0x107] sm:$0xff] }
 0x2d8   : > { %17078 = vmatmul.mubr.msk.bf16.gmra.mrb[156].mxu1 %vm19624_vm5, %v20550_v41  ;;  %v18539_v41 = vld [vmem:[%s23926_s1 + $0x440] sm:$0xff]   ;;  %vm24555_vm5 = vnez %v24554_v42 }
 0x2d9   : > { %17081 = vmatprep.mubr.msk.bf16.mxu1 %vm24464_vm10, %v20594_v20  ;;  %15510 = vmatpush3.bf16.msra.mxu1 %v18532_v61  ;;  %v3175_v20 = vld [vmem:[#allocation2 + $0xef] sm:$0xff]  ;;  %vm24556_vm10 = vnez %v24379_v11 }
 0x2da   : > { %15511 = vmatprep.subr.bf16.mxu1 %v18537_v32  ;;  %v20850_v35 = vpack.c.bf16 %v3176_v2, %v3175_v20  ;;  %v3404_v61 = vld [vmem:[#allocation2 + $0x10f] sm:$0xff]  ;;  %v3148_v20 = vld [vmem:[#allocation2 + $0x17] sm:$0xff] }
 0x2db   : > { %v4552_v2 = vld [vmem:[#allocation2 + $0x30] sm:$0xff] }
 0x2dc   : > { %12947 = vmatmul.mubr.msk.bf16.gmra.mrb[128].mxu0 %vm24555_vm5, %v20828_v19 }
 0x2dd   : > { %3836 = vmatprep.mubr.bf16.mxu0 %v20835_v30  ;;  %15512 = vmatpush3.bf16.msra.mxu1 %v18538_v23  ;;  %v3147_v23 = vld [vmem:[#allocation2 + $0xf] sm:$0xff] }
 0x2de   : > { %17097 = vmatprep.subr.bf16.mxu1 %v18539_v41 }
 0x2e0   : > { %17082 = vmatmul.mubr.msk.bf16.gmra.mrb[160].mxu1 %vm24556_vm10, %v20607_v6  ;;  %v3177_v6 = vld [vmem:[#allocation2 + $0xff] sm:$0xff] }
 0x2e1   : > { %17085 = vmatprep.mubr.msk.bf16.mxu1 %vm24466_vm6, %v20640_v14  ;;  %v20866_v14 = vpack.c.bf16 %v3178_v47, %v3177_v6  ;;  %vm24560_vm6 = vnez %v24559_v5  ;;  %v13030_v47 = vpack.c.bf16 %v3148_v20, %v3147_v23  ;;  %v24565_v6 = vld [vmem:[#allocation53_spill] sm:$0xff]  ;;  %v24570_v20 = vld [vmem:[#allocation40_spill] sm:$0xff] }
 0x2e2   : > { %v24568_v23 = vld [vmem:[#allocation13_spill] sm:$0xff] }
 0x2e4   : > { %12950 = vmatmul.mubr.msk.bf16.gmra.mrb[132].mxu0 %vm24558_vm15, %v20850_v35 }
 0x2e5   : > { %3844 = vmatprep.mubr.bf16.mxu0 %v20854_v17 }
 0x2e8   : > { %17086 = vmatmul.mubr.msk.bf16.gmra.mrb[164].mxu1 %vm19714_vm12, %v20650_v49  ;;  %v18796_v49 = vld [vmem:[#allocation2] sm:$0xff] }
 0x2e9   : > { %17089 = vmatprep.mubr.msk.bf16.mxu1 %vm24536_vm2, %v20676_v3  ;;  %v20876_v32 = vpack.c.bf16 %v18796_v49, %v18796_v49  ;;  %v20881_v3 = vpack.c.bf16 %v3405_v59, %v3404_v61  ;;  %vm24562_vm2 = vnez %v24561_v25  ;;  %v4554_v61 = vld [vmem:[#allocation2 + $0x40] sm:$0xff]  ;;  %v18540_v59 = vld [vmem:[%s23926_s1 + $0x448] sm:$0xff]  }
 0x2ec   : > { %12953 = vmatmul.mubr.msk.bf16.gmra.mrb[136].mxu0 %vm24560_vm6, %v20866_v14 }
 0x2ed   : > { %3852 = vmatprep.mubr.bf16.mxu0 %v3505_v24  ;;  %v4555_v24 = vld [vmem:[#allocation2 + $0x48] sm:$0xff] }
 0x2ee   : > { %v4652_v49 = vpack.c.bf16 %v4555_v24, %v4554_v61  ;;  %v18543_v24 = vld [vmem:[%s23926_s1 + $0x460] sm:$0xff]   ;;  %v24572_v61 = vld [vmem:[#allocation18_spill] sm:$0xff] }
 0x2f0   : > { %17090 = vmatmul.mubr.msk.bf16.gmra.mrb[168].mxu1 %vm24540_vm7, %v20683_v13  ;;  %v4649_v13 = vpack.c.bf16 %v4553_v16, %v4552_v2  ;;  %v24567_v16 = vld [vmem:[#allocation56_spill] sm:$0xff]  ;;  %v4557_v2 = vld [vmem:[#allocation2 + $0x58] sm:$0xff]  ;;  %vm24584_vm7 = vnez %v24538_v27 }
 0x2f1   : > { %17093 = vmatprep.mubr.msk.bf16.mxu1 %vm24541_vm4, %v20698_v51  ;;  %v24563_v51 = vld [vmem:[#allocation9_spill] sm:$0xff] }
 0x2f2   : > { %vm24564_vm4 = vnez %v24563_v51 }
 0x2f4   : > { %12956 = vmatmul.mubr.msk.bf16.gmra.mrb[140].mxu0 %vm24562_vm2, %v20881_v3 }
 0x2f5   : > { %4198 = vmatprep.mubr.bf16.mxu0 %v20876_v32 }
 0x2f8   : > { %17094 = vmatmul.mubr.msk.bf16.gmra.mrb[172].mxu1 %vm24545_vm8, %v20703_v55  ;;  %v18541_v55 = vld [vmem:[%s23926_s1 + $0x450] sm:$0xff]   ;;  %vm24569_vm8 = vnez %v24568_v23 }
 0x2f9   : > { %4921 = vmatprep.mubr.bf16.mxu1 %v4649_v13  ;;  %v4556_v13 = vld [vmem:[#allocation2 + $0x50] sm:$0xff] }
 0x2fc   : > { %13031 = vmatmul.mubr.msk.bf16.vlgmr.msra.gmra.mrb[144].mxu0 %vm24564_vm4, %v13030_v47  ;;  %v18542_v47 = vld [vmem:[%s23926_s1 + $0x458] sm:$0xff]  }
 0x2fd   : > { %4206 = vmatprep.mubr.bf16.mxu0 %v24565_v6  ;;  %v24571_v6 = vld [vmem:[#allocation12_spill] sm:$0xff] }
 0x300   : > { %13199 = vmatmul.mubr.msk.bf16.vlgmr.msra.gmra.mrb[176].mxu1 %vm24564_vm4, %v24566_v0  ;;  %vm24573_vm4 = vnez %v24572_v61 }
 0x301   : > { %4929 = vmatprep.mubr.bf16.mxu1 %v4652_v49  ;;  %17098 = vmatpush3.bf16.msra.mxu1 %v18539_v41  ;;  %v4655_v41 = vpack.c.bf16 %v4557_v2, %v4556_v13  ;;  %v4559_v49 = vld [vmem:[#allocation2 + $0x68] sm:$0xff]  ;;  %v24576_v13 = vld [vmem:[#allocation23_spill] sm:$0xff] }
 0x302   : > { %17099 = vmatprep.subr.bf16.mxu1 %v18540_v59  ;;  %v24575_v2 = vld [vmem:[#allocation16_spill] sm:$0xff] }
 0x304   : > { %13034 = vmatmul.mubr.msk.bf16.gmra.mrb[148].mxu0 %vm24569_vm8, %v24567_v16  ;;  %v4558_v16 = vld [vmem:[#allocation2 + $0x60] sm:$0xff] }
 0x305   : > { %4214 = vmatprep.mubr.bf16.mxu0 %v24570_v20  ;;  %17100 = vmatpush3.bf16.msra.mxu1 %v18540_v59  ;;  %v24574_v59 = vld [vmem:[#allocation10_spill] sm:$0xff]  ;;  %v18544_v20 = vld [vmem:[%s23926_s1 + $0x468] sm:$0xff]  }
 0x306   : > { %17101 = vmatprep.subr.bf16.mxu1 %v18541_v55 }
 0x308   : > { %13202 = vmatmul.mubr.msk.bf16.gmra.mrb[180].mxu1 %vm24569_vm8, %v24571_v6  ;;  %vm24577_vm8 = vnez %v24576_v13 }
 0x309   : > { %4937 = vmatprep.mubr.bf16.mxu1 %v4655_v41  ;;  %17102 = vmatpush3.bf16.msra.mxu1 %v18541_v55  ;;  %v4658_v55 = vpack.c.bf16 %v4559_v49, %v4558_v16  ;;  %v4561_v41 = vld [vmem:[#allocation2 + $0x78] sm:$0xff]  ;;  %v24579_v16 = vld [vmem:[#allocation43_spill] sm:$0xff] }
 0x30a   : > { %17103 = vmatprep.subr.bf16.mxu1 %v18542_v47  ;;  %v18546_v49 = vld [vmem:[%s23926_s1 + $0x478] sm:$0xff]  }
 0x30c   : > { %13037 = vmatmul.mubr.msk.bf16.gmra.mrb[152].mxu0 %vm24573_vm4, %v24566_v0  ;;  %v18545_v0 = vld [vmem:[%s23926_s1 + $0x470] sm:$0xff]  }
 0x30d   : > { %4222 = vmatprep.mubr.bf16.mxu0 %v24574_v59  ;;  %17104 = vmatpush3.bf16.msra.mxu1 %v18542_v47  ;;  %v24578_v47 = vld [vmem:[#allocation14_spill] sm:$0xff]  ;;  %v4560_v59 = vld [vmem:[#allocation2 + $0x70] sm:$0xff] }
 0x30e   : > { %17105 = vmatprep.subr.bf16.mxu1 %v18543_v24 }
 0x310   : > { %13205 = vmatmul.mubr.msk.bf16.gmra.mrb[184].mxu1 %vm24573_vm4, %v24575_v2 }
 0x311   : > { %4945 = vmatprep.mubr.bf16.mxu1 %v4658_v55  ;;  %17106 = vmatpush3.bf16.msra.mxu1 %v18543_v24  ;;  %v4661_v24 = vpack.c.bf16 %v4561_v41, %v4560_v59  ;;  %v24582_v55 = vld [vmem:[#allocation19_spill] sm:$0xff]  ;;  %v4564_v41 = vld [vmem:[#allocation2 + $0x90] sm:$0xff] }
 0x312   : > { %17107 = vmatprep.subr.bf16.mxu1 %v18544_v20  ;;  %v4566_v59 = vld [vmem:[#allocation2 + $0xa0] sm:$0xff] }
 0x314   : > { %13040 = vmatmul.mubr.msk.bf16.gmra.mrb[156].mxu0 %vm24577_vm8, %v24571_v6  ;;  %v24580_v6 = vld [vmem:[#allocation3_spill] sm:$0xff] }
 0x315   : > { %4230 = vmatprep.mubr.bf16.mxu0 %v24578_v47  ;;  %17108 = vmatpush3.bf16.msra.mxu1 %v18544_v20  ;;  %vm24581_vm4 = vnez %v24580_v6  ;;  %v4563_v20 = vld [vmem:[#allocation2 + $0x88] sm:$0xff]  ;;  %v4562_v47 = vld [vmem:[#allocation2 + $0x80] sm:$0xff] }
 0x316   : > { %17109 = vmatprep.subr.bf16.mxu1 %v18545_v0  ;;  %v4664_v61 = vpack.c.bf16 %v4563_v20, %v4562_v47  ;;  %v4572_v47 = vld [vmem:[#allocation2 + $0xd0] sm:$0xff] }
 0x318   : > { %13208 = vmatmul.mubr.msk.bf16.gmra.mrb[188].mxu1 %vm24577_vm8, %v24579_v16  ;;  %vm24583_vm8 = vnez %v24534_v62 }
 0x319   : > { %4953 = vmatprep.mubr.bf16.mxu1 %v4661_v24  ;;  %17110 = vmatpush3.bf16.msra.mxu1 %v18545_v0  ;;  %v4565_v0 = vld [vmem:[#allocation2 + $0x98] sm:$0xff] }
 0x31a   : > { %17111 = vmatprep.subr.bf16.mxu1 %v18546_v49  ;;  %v4569_v24 = vld [vmem:[#allocation2 + $0xb8] sm:$0xff] }
 0x31c   : > { %13043 = vmatmul.mubr.msk.bf16.gmra.mrb[160].mxu0 %vm24581_vm4, %v24575_v2  ;;  %v4667_v2 = vpack.c.bf16 %v4565_v0, %v4564_v41 }
 0x31d   : > { %4238 = vmatprep.mubr.bf16.mxu0 %v24582_v55  ;;  %17112 = vmatpush3.bf16.msra.mxu1 %v18546_v49 }
 0x320   : > { %13211 = vmatmul.mubr.msk.bf16.gmra.mrb[192].mxu1 %vm24581_vm4, %v20653_v8  ;;  %vm24585_vm4 = vnez %v24543_v56 }
 0x321   : > { %4961 = vmatprep.mubr.bf16.mxu1 %v4664_v61  ;;  %v4567_v61 = vld [vmem:[#allocation2 + $0xa8] sm:$0xff] }
 0x322   : > { %v4670_v49 = vpack.c.bf16 %v4567_v61, %v4566_v59 }
 0x324   : > { %13046 = vmatmul.mubr.msk.bf16.gmra.mrb[164].mxu0 %vm24583_vm8, %v24579_v16  ;;  %v4568_v16 = vld [vmem:[#allocation2 + $0xb0] sm:$0xff] }
 0x325   : > { %4246 = vmatprep.mubr.bf16.mxu0 %v20617_v54  ;;  %v24586_v54 = vld [vmem:[#allocation20_spill] sm:$0xff]  ;;  %v4673_v55 = vpack.c.bf16 %v4569_v24, %v4568_v16 }
 0x328   : > { %13214 = vmatmul.mubr.msk.bf16.gmra.mrb[196].mxu1 %vm24583_vm8, %v20685_v26 }
 0x329   : > { %4969 = vmatprep.mubr.bf16.mxu1 %v4667_v2 }
 0x32c   : > { %13049 = vmatmul.mubr.msk.bf16.gmra.mrb[168].mxu0 %vm24584_vm7, %v20653_v8  ;;  %v24587_v8 = vld [vmem:[#allocation22_spill] sm:$0xff] }
 0x32d   : > { %4254 = vmatprep.mubr.bf16.mxu0 %v20660_v43  ;;  %v4570_v43 = vld [vmem:[#allocation2 + $0xc0] sm:$0xff] }
 0x32e   : > { %v4676_v20 = vpack.c.bf16 %v20590_v46, %v4570_v43 }
 0x330   : > { %13217 = vmatmul.mubr.msk.bf16.gmra.mrb[200].mxu1 %vm24584_vm7, %v20705_v33 }
 0x331   : > { %4977 = vmatprep.mubr.bf16.mxu1 %v4670_v49 }
 0x334   : > { %13052 = vmatmul.mubr.msk.bf16.gmra.mrb[172].mxu0 %vm24585_vm4, %v20685_v26  ;;  %v4573_v26 = vld [vmem:[#allocation2 + $0xd8] sm:$0xff] }
 0x335   : > { %4262 = vmatprep.mubr.bf16.mxu0 %v24586_v54  ;;  %v4679_v0 = vpack.c.bf16 %v4573_v26, %v4572_v47 }
 0x338   : > { %13220 = vmatmul.mubr.msk.bf16.gmra.mrb[204].mxu1 %vm24585_vm4, %v20722_v52 }
 0x339   : > { %4985 = vmatprep.mubr.bf16.mxu1 %v4673_v55 }
 0x33c   : > { %13055 = vmatmul.mubr.msk.bf16.gmra.mrb[176].mxu0 %vm24547_vm9, %v20705_v33 }
 0x33d   : > { %4270 = vmatprep.mubr.bf16.mxu0 %v24587_v8 }
 0x340   : > { %13223 = vmatmul.mubr.msk.bf16.gmra.mrb[208].mxu1 %vm24547_vm9, %v20744_v45 }
 0x341   : > { %4993 = vmatprep.mubr.bf16.mxu1 %v4676_v20 }
 0x344   : > { %13058 = vmatmul.mubr.msk.bf16.gmra.mrb[180].mxu0 %vm24549_vm1, %v20722_v52 }
 0x345   : > { %4278 = vmatprep.mubr.bf16.mxu0 %v20726_v60 }
 0x348   : > { %13226 = vmatmul.mubr.msk.bf16.gmra.mrb[212].mxu1 %vm24549_vm1, %v20772_v4 }
 0x349   : > { %5001 = vmatprep.mubr.bf16.mxu1 %v4679_v0 }
 0x34c   : > { %13061 = vmatmul.mubr.msk.bf16.gmra.mrb[184].mxu0 %vm24551_vm3, %v20744_v45  ;;  %v15241_v46 = vpop.f32.mrb[80].mxu0  ;;  %v4576_v45 = vld [vmem:[#allocation2 + $0xf0] sm:$0xff] }
 0x34d   : > { %4286 = vmatprep.mubr.bf16.mxu0 %v20751_v63  ;;  %v15242_v33 = vpop.f32.mrb[81].mxu0  ;;  %v4685_v59 = vpack.c.bf16 %v20632_v9, %v4576_v45 }
 0x34e   : > { %v20985_v41 = vadd.f32 %v15242_v33, %v15241_v46  ;;  %v15244_v52 = vpop.f32.mrb[82].mxu0 }
 0x34f   : > { %v15245_v60 = vpop.f32.mrb[83].mxu0 }
 0x350   : > { %13229 = vmatmul.mubr.msk.bf16.gmra.mrb[216].mxu1 %vm24551_vm3, %v20800_v7  ;;  %v20991_v2 = vadd.f32 %v15245_v60, %v15244_v52 }
 0x351   : > { %5009 = vmatprep.mubr.bf16.mxu1 %v20807_v50 }
 0x354   : > { %13064 = vmatmul.mubr.msk.bf16.gmra.mrb[188].mxu0 %vm24553_vm11, %v20772_v4 }
 0x355   : > { %4294 = vmatprep.mubr.bf16.mxu0 %v20779_v15 }
 0x357   : > { %v15247_v63 = vpop.f32.mrb[84].mxu0 }
 0x358   : > { %v15248_v61 = vpop.f32.mrb[85].mxu0  ;;  %13232 = vmatmul.mubr.msk.bf16.gmra.mrb[220].mxu1 %vm24553_vm11, %v20828_v19 }
 0x359   : > { %v20998_v49 = vadd.f32 %v15248_v61, %v15247_v63  ;;  %v15250_v54 = vpop.f32.mrb[86].mxu0  ;;  %5017 = vmatprep.mubr.bf16.mxu1 %v4685_v59  ;;  %v4518_v63 = vld [vmem:[#allocation2 + $0x11f] sm:$0xff]  ;;  %v4519_v61 = vld [vmem:[#allocation2 + $0x127] sm:$0xff] }
 0x35a   : > { %v15251_v24 = vpop.f32.mrb[87].mxu0  ;;  %v4585_v59 = vld [vmem:[#allocation2 + $0x39] sm:$0xff] }
 0x35b   : > { %v21003_v16 = vadd.f32 %v15251_v24, %v15250_v54  ;;  %v13243_v24 = vpack.c.bf16 %v4519_v61, %v4518_v63 }
 0x35c   : > { %13067 = vmatmul.mubr.msk.bf16.gmra.mrb[192].mxu0 %vm24555_vm5, %v20800_v7  ;;  %v4580_v7 = vld [vmem:[#allocation2 + $0x110] sm:$0xff] }
 0x35d   : > { %4302 = vmatprep.mubr.bf16.mxu0 %v20807_v50  ;;  %v4691_v26 = vpack.c.bf16 %v20671_v38, %v4580_v7  ;;  %v18547_v38 = vld [vmem:[%s23926_s1 + $0x580] sm:$0xff]  }
 0x35e   : > { %15633 = vmatprep.subr.bf16.mxu0 %v18547_v38 }
 0x35f   : > { %v15253_v4 = vpop.f32.mrb[88].mxu0 }
 0x360   : > { %v15254_v15 = vpop.f32.mrb[89].mxu0  ;;  %13235 = vmatmul.mubr.msk.bf16.gmra.mrb[224].mxu1 %vm24555_vm5, %v20850_v35 }
 0x361   : > { %v21009_v9 = vadd.f32 %v15254_v15, %v15253_v4  ;;  %v15256_v55 = vpop.f32.mrb[90].mxu0  ;;  %5025 = vmatprep.mubr.bf16.mxu1 %v20854_v17  ;;  %v4584_v4 = vld [vmem:[#allocation2 + $0x31] sm:$0xff] }
 0x362   : > { %v15257_v8 = vpop.f32.mrb[91].mxu0 }
 0x363   : > { %v21015_v43 = vadd.f32 %v15257_v8, %v15256_v55  ;;  %v13246_v55 = vpack.c.bf16 %v4585_v59, %v4584_v4  ;;  %v4593_v4 = vld [vmem:[#allocation2 + $0x79] sm:$0xff] }
 0x364   : > { %13070 = vmatmul.mubr.msk.bf16.gmra.mrb[196].mxu0 %vm24558_vm15, %v20828_v19  ;;  %v18548_v19 = vld [vmem:[%s23926_s1 + $0x540] sm:$0xff]  }
 0x365   : > { %4310 = vmatprep.mubr.bf16.mxu0 %v20835_v30  ;;  %15634 = vmatpush3.bf16.msra.mxu0 %v18548_v19 }
 0x367   : > { %v15259_v50 = vpop.f32.mrb[92].mxu0 }
 0x368   : > { %v15260_v20 = vpop.f32.mrb[93].mxu0  ;;  %13238 = vmatmul.mubr.msk.bf16.gmra.mrb[228].mxu1 %vm24558_vm15, %v20866_v14 }
 0x369   : > { %v21022_v47 = vadd.f32 %v15260_v20, %v15259_v50  ;;  %v15262_v0 = vpop.f32.mrb[94].mxu0  ;;  %5033 = vmatprep.mubr.bf16.mxu1 %v4691_v26  ;;  %v4587_v20 = vld [vmem:[#allocation2 + $0x49] sm:$0xff]  ;;  %v4589_v26 = vld [vmem:[#allocation2 + $0x59] sm:$0xff] }
 0x36a   : > { %v15263_v46 = vpop.f32.mrb[95].mxu0 }
 0x36b   : > { %v21027_v33 = vadd.f32 %v15263_v46, %v15262_v0  ;;  %v18549_v0 = vld [vmem:[%s23926_s1 + $0x588] sm:$0xff]  }
 0x36c   : > { %13073 = vmatmul.mubr.msk.bf16.gmra.mrb[200].mxu0 %vm24560_vm6, %v20850_v35  ;;  %v18550_v46 = vld [vmem:[%s23926_s1 + $0x548] sm:$0xff]   ;;  %15635 = vmatprep.subr.bf16.mxu0 %v18549_v0 }
 0x36d   : > { %4318 = vmatprep.mubr.bf16.mxu0 %v20854_v17  ;;  %15636 = vmatpush3.bf16.msra.mxu0 %v18550_v46 }
 0x36f   : > { %v15265_v30 = vpop.f32.mrb[96].mxu0 }
 0x370   : > { %v15266_v52 = vpop.f32.mrb[97].mxu0  ;;  %13241 = vmatmul.mubr.msk.bf16.gmra.mrb[232].mxu1 %vm24560_vm6, %v20881_v3 }
 0x371   : > { %v21039_v60 = vadd.f32 %v15266_v52, %v15265_v30  ;;  %v15268_v45 = vpop.f32.mrb[98].mxu0  ;;  %5041 = vmatprep.mubr.bf16.mxu1 %v20876_v32  ;;  %v4588_v30 = vld [vmem:[#allocation2 + $0x51] sm:$0xff] }
 0x372   : > { %v15269_v35 = vpop.f32.mrb[99].mxu0 }
 0x373   : > { %v21045_v17 = vadd.f32 %v15269_v35, %v15268_v45  ;;  %v13252_v45 = vpack.c.bf16 %v4589_v26, %v4588_v30  ;;  %v4597_v30 = vld [vmem:[#allocation2 + $0x99] sm:$0xff] }
 0x374   : > { %13076 = vmatmul.mubr.msk.bf16.gmra.mrb[204].mxu0 %vm24562_vm2, %v20866_v14  ;;  %v4586_v14 = vld [vmem:[#allocation2 + $0x41] sm:$0xff] }
 0x375   : > { %v13249_v19 = vpack.c.bf16 %v4587_v20, %v4586_v14 }
 0x377   : > { %v15271_v54 = vpop.f32.mrb[100].mxu0 }
 0x378   : > { %v15272_v15 = vpop.f32.mrb[101].mxu0  ;;  %13244 = vmatmul.mubr.msk.bf16.gmra.mrb[236].mxu1 %vm24562_vm2, %v13243_v24  ;;  %v4591_v24 = vld [vmem:[#allocation2 + $0x69] sm:$0xff]  ;;  %vm24589_vm2 = vnez %v24515_v31 }
 0x379   : > { %v21050_v8 = vadd.f32 %v15272_v15, %v15271_v54  ;;  %v15274_v3 = vpop.f32.mrb[102].mxu0  ;;  %17113 = vmatprep.mubr.msk.bf16.mxu1 %vm24439_vm13, %v13246_v55  ;;  %vm24588_vm13 = vnez %v24508_v57  ;;  %v4590_v54 = vld [vmem:[#allocation2 + $0x61] sm:$0xff] }
 0x37a   : > { %v15275_v7 = vpop.f32.mrb[103].mxu0  ;;  %v13255_v55 = vpack.c.bf16 %v4591_v24, %v4590_v54  ;;  %v4596_v54 = vld [vmem:[#allocation2 + $0x91] sm:$0xff] }
 0x37b   : > { %v21056_v50 = vadd.f32 %v15275_v7, %v15274_v3  ;;  %v4592_v3 = vld [vmem:[#allocation2 + $0x71] sm:$0xff] }
 0x37c   : > { %v13258_v14 = vpack.c.bf16 %v4593_v4, %v4592_v3  ;;  %v13264_v4 = vpack.c.bf16 %v4597_v30, %v4596_v54 }
 0x37f   : > { %v15277_v38 = vpop.f32.mrb[104].mxu0 }
 0x380   : > { %v15278_v52 = vpop.f32.mrb[105].mxu0  ;;  %17114 = vmatmul.mubr.msk.bf16.vlgmr.msra.gmra.mrb[144].mxu1 %vm24588_vm13, %v13249_v19  ;;  %v4595_v19 = vld [vmem:[#allocation2 + $0x89] sm:$0xff] }
 0x381   : > { %v21064_v35 = vadd.f32 %v15278_v52, %v15277_v38  ;;  %v15280_v63 = vpop.f32.mrb[106].mxu0  ;;  %17117 = vmatprep.mubr.msk.bf16.mxu1 %vm24447_vm14, %v13252_v45  ;;  %v4594_v38 = vld [vmem:[#allocation2 + $0x81] sm:$0xff]  ;;  %v18551_v52 = vld [vmem:[%s23926_s1 + $0x590] sm:$0xff]   ;;  %vm24592_vm14 = vnez %v24529_v29 }
 0x382   : > { %v15281_v61 = vpop.f32.mrb[107].mxu0  ;;  %v18552_v45 = vld [vmem:[%s23926_s1 + $0x550] sm:$0xff]   ;;  %15637 = vmatprep.subr.bf16.mxu0 %v18551_v52  ;;  %v4606_v29 = vld [vmem:[#allocation2 + $0xe1] sm:$0xff] }
 0x383   : > { %v21070_v59 = vadd.f32 %v15281_v61, %v15280_v63  ;;  %v13261_v61 = vpack.c.bf16 %v4595_v19, %v4594_v38  ;;  %15638 = vmatpush3.bf16.msra.mxu0 %v18552_v45  ;;  %v4600_v52 = vld [vmem:[#allocation2 + $0xb1] sm:$0xff] }
 0x387   : > { %v15283_v15 = vpop.f32.mrb[108].mxu0 }
 0x388   : > { %v15284_v7 = vpop.f32.mrb[109].mxu0  ;;  %17118 = vmatmul.mubr.msk.bf16.gmra.mrb[148].mxu1 %vm24589_vm2, %v13255_v55  ;;  %vm24591_vm2 = vnez %v24524_v53  ;;  %v4607_v53 = vld [vmem:[#allocation2 + $0xe9] sm:$0xff] }
 0x389   : > { %v21072_v20 = vadd.f32 %v15284_v7, %v15283_v15  ;;  %v15286_v26 = vpop.f32.mrb[110].mxu0  ;;  %17121 = vmatprep.mubr.msk.bf16.mxu1 %vm24454_vm0, %v13258_v14  ;;  %vm24590_vm0 = vnez %v24522_v1  ;;  %v4598_v14 = vld [vmem:[#allocation2 + $0xa1] sm:$0xff]  ;;  %v4608_v1 = vld [vmem:[#allocation2 + $0xf1] sm:$0xff] }
 0x38a   : > { %v15287_v0 = vpop.f32.mrb[111].mxu0 }
 0x38b   : > { %v21078_v46 = vadd.f32 %v15287_v0, %v15286_v26  ;;  %v4599_v26 = vld [vmem:[#allocation2 + $0xa9] sm:$0xff]  ;;  %v4601_v0 = vld [vmem:[#allocation2 + $0xb9] sm:$0xff] }
 0x38c   : > { %v13267_v19 = vpack.c.bf16 %v4599_v26, %v4598_v14  ;;  %v13270_v45 = vpack.c.bf16 %v4601_v0, %v4600_v52  ;;  %v18553_v14 = vld [vmem:[%s23926_s1 + $0x598] sm:$0xff]  }
 0x38d   : > { %v18554_v26 = vld [vmem:[%s23926_s1 + $0x558] sm:$0xff]   ;;  %15639 = vmatprep.subr.bf16.mxu0 %v18553_v14  ;;  %v13279_v14 = vpack.c.bf16 %v4607_v53, %v4606_v29  ;;  %v18556_v53 = vld [vmem:[%s23926_s1 + $0x560] sm:$0xff]  }
 0x38e   : > { %15640 = vmatpush3.bf16.msra.mxu0 %v18554_v26 }
 0x38f   : > { %v15289_v63 = vpop.f32.mrb[112].mxu0 }
 0x390   : > { %v15290_v24 = vpop.f32.mrb[113].mxu0  ;;  %17122 = vmatmul.mubr.msk.bf16.gmra.mrb[152].mxu1 %vm24590_vm0, %v13261_v61  ;;  %vm24593_vm0 = vnez %v24531_v36 }
 0x391   : > { %v21086_v15 = vadd.f32 %v15290_v24, %v15289_v63  ;;  %v15292_v55 = vpop.f32.mrb[114].mxu0  ;;  %17125 = vmatprep.mubr.msk.bf16.mxu1 %vm24591_vm2, %v13264_v4  ;;  %v4602_v4 = vld [vmem:[#allocation2 + $0xc1] sm:$0xff] }
 0x392   : > { %v15293_v3 = vpop.f32.mrb[115].mxu0 }
 0x393   : > { %v21092_v7 = vadd.f32 %v15293_v3, %v15292_v55  ;;  %v4603_v55 = vld [vmem:[#allocation2 + $0xc9] sm:$0xff]  ;;  %v4605_v3 = vld [vmem:[#allocation2 + $0xd9] sm:$0xff] }
 0x397   : > { %v15295_v38 = vpop.f32.mrb[116].mxu0 }
 0x398   : > { %v15296_v30 = vpop.f32.mrb[117].mxu0  ;;  %17126 = vmatmul.mubr.msk.bf16.gmra.mrb[156].mxu1 %vm24592_vm14, %v13267_v19  ;;  %v4604_v19 = vld [vmem:[#allocation2 + $0xd1] sm:$0xff] }
 0x399   : > { %v21094_v63 = vadd.f32 %v15296_v30, %v15295_v38  ;;  %v15298_v54 = vpop.f32.mrb[118].mxu0  ;;  %17129 = vmatprep.mubr.msk.bf16.mxu1 %vm24593_vm0, %v13270_v45  ;;  %v13273_v38 = vpack.c.bf16 %v4603_v55, %v4602_v4  ;;  %v13276_v30 = vpack.c.bf16 %v4605_v3, %v4604_v19  ;;  %vm24594_vm0 = vnez %v24382_v28  ;;  %v4609_v4 = vld [vmem:[#allocation2 + $0xf9] sm:$0xff] }
 0x39a   : > { %v15299_v61 = vpop.f32.mrb[119].mxu0  ;;  %v13282_v26 = vpack.c.bf16 %v4609_v4, %v4608_v1  ;;  %v4613_v28 = vld [vmem:[#allocation2 + $0x119] sm:$0xff] }
 0x39b   : > { %v21100_v24 = vadd.f32 %v15299_v61, %v15298_v54  ;;  %v18555_v1 = vld [vmem:[%s23926_s1 + $0x5a0] sm:$0xff]  }
 0x39c   : > { %15641 = vmatprep.subr.bf16.mxu0 %v18555_v1 }
 0x39d   : > { %15642 = vmatpush3.bf16.msra.mxu0 %v18556_v53 }
 0x39f   : > { %v15301_v0 = vpop.f32.mrb[120].mxu0 }
 0x3a0   : > { %v15302_v52 = vpop.f32.mrb[121].mxu0  ;;  %17130 = vmatmul.mubr.msk.bf16.gmra.mrb[160].mxu1 %vm24556_vm10, %v13273_v38  ;;  %vm24595_vm10 = vnez %v24470_v48  ;;  %v4614_v48 = vld [vmem:[#allocation2 + $0x121] sm:$0xff] }
 0x3a1   : > { %v21108_v45 = vadd.f32 %v15302_v52, %v15301_v0  ;;  %v15304_v54 = vpop.f32.mrb[122].mxu0  ;;  %17133 = vmatprep.mubr.msk.bf16.mxu1 %vm24594_vm0, %v13276_v30  ;;  %v4610_v30 = vld [vmem:[#allocation2 + $0x101] sm:$0xff]  ;;  %v13291_v10 = vpack.c.bf16 %v4615_v40, %v4614_v48  ;;  %vm24599_vm0 = vnez %v24405_v39 }
 0x3a2   : > { %v15305_v61 = vpop.f32.mrb[123].mxu0 }
 0x3a3   : > { %v21114_v36 = vadd.f32 %v15305_v61, %v15304_v54  ;;  %v4611_v54 = vld [vmem:[#allocation2 + $0x109] sm:$0xff]  ;;  %v4612_v61 = vld [vmem:[#allocation2 + $0x111] sm:$0xff] }
 0x3a4   : > { %v13285_v4 = vpack.c.bf16 %v4611_v54, %v4610_v30 }
 0x3a7   : > { %v15307_v55 = vpop.f32.mrb[124].mxu0 }
 0x3a8   : > { %v15308_v3 = vpop.f32.mrb[125].mxu0  ;;  %17134 = vmatmul.mubr.msk.bf16.gmra.mrb[164].mxu1 %vm19714_vm12, %v13279_v14  ;;  %v13288_v14 = vpack.c.bf16 %v4613_v28, %v4612_v61 }
 0x3a9   : > { %v21116_v0 = vadd.f32 %v15308_v3, %v15307_v55  ;;  %v15310_v19 = vpop.f32.mrb[126].mxu0  ;;  %17137 = vmatprep.mubr.msk.bf16.mxu1 %vm24595_vm10, %v13282_v26  ;;  %vm24596_vm10 = vnez %v24398_v21 }
 0x3aa   : > { %v15311_v38 = vpop.f32.mrb[127].mxu0 }
 0x3ab   : > { %v21122_v52 = vadd.f32 %v15311_v38, %v15310_v19  ;;  %v24597_v38 = vld [vmem:[#allocation55_spill] sm:$0xff] }
 0x3ac   : > { %vm24598_vm12 = vnez %v24597_v38  ;;  %v18568_v38 = vld [vmem:[%s23926_s1 + $0x498] sm:$0xff]  }
 0x3af   : > { %v15313_v29 = vpop.f32.mrb[128].mxu0 }
 0x3b0   : > { %v15314_v55 = vpop.f32.mrb[129].mxu0  ;;  %17138 = vmatmul.mubr.msk.bf16.gmra.mrb[168].mxu1 %vm24596_vm10, %v13285_v4  ;;  %v18558_v4 = vld [vmem:[%s23926_s1 + $0x568] sm:$0xff]  }
 0x3b1   : > { %v21130_v3 = vadd.f32 %v15314_v55, %v15313_v29  ;;  %v15316_v26 = vpop.f32.mrb[130].mxu0  ;;  %17141 = vmatprep.mubr.msk.bf16.mxu1 %vm24598_vm12, %v13288_v14  ;;  %v18557_v29 = vld [vmem:[%s23926_s1 + $0x5a8] sm:$0xff]  }
 0x3b2   : > { %v15317_v19 = vpop.f32.mrb[131].mxu0  ;;  %15643 = vmatprep.subr.bf16.mxu0 %v18557_v29 }
 0x3b3   : > { %v21136_v11 = vadd.f32 %v15317_v19, %v15316_v26  ;;  %15644 = vmatpush3.bf16.msra.mxu0 %v18558_v4  ;;  %v18559_v19 = vld [vmem:[%s23926_s1 + $0x4c0] sm:$0xff]  }
 0x3b4   : > { %15769 = vmatprep.subr.bf16.mxu1 %v18559_v19  ;;  %v18564_v19 = vld [vmem:[%s23926_s1 + $0x4d0] sm:$0xff]  }
 0x3b7   : > { %v15319_v30 = vpop.f32.mrb[132].mxu0 }
 0x3b8   : > { %v15320_v54 = vpop.f32.mrb[133].mxu0  ;;  %17142 = vmatmul.mubr.msk.bf16.gmra.mrb[172].mxu1 %vm24599_vm0, %v13291_v10  ;;  %vm24600_vm0 = vnez %v24563_v51 }
 0x3b9   : > { %v21138_v1 = vadd.f32 %v15320_v54, %v15319_v30  ;;  %v15322_v28 = vpop.f32.mrb[134].mxu0  ;;  %v18560_v30 = vld [vmem:[%s23926_s1 + $0x480] sm:$0xff]   ;;  %6494 = vmatprep.mubr.bf16.mxu1 %v20876_v32 }
 0x3ba   : > { %v15323_v61 = vpop.f32.mrb[135].mxu0  ;;  %15770 = vmatpush3.bf16.msra.mxu1 %v18560_v30  ;;  %v18565_v30 = vld [vmem:[%s23926_s1 + $0x570] sm:$0xff]  }
 0x3bb   : > { %v21142_v53 = vadd.f32 %v15323_v61, %v15322_v28 }
 0x3bf   : > { %v15325_v40 = vpop.f32.mrb[136].mxu0 }
 0x3c0   : > { %v15326_v48 = vpop.f32.mrb[137].mxu0 }
 0x3c1   : > { %v21150_v55 = vadd.f32 %v15326_v48, %v15325_v40  ;;  %v15328_v14 = vpop.f32.mrb[138].mxu0  ;;  %v18561_v48 = vld [vmem:[%s23926_s1 + $0x4c8] sm:$0xff]  }
 0x3c2   : > { %v15329_v26 = vpop.f32.mrb[139].mxu0  ;;  %15771 = vmatprep.subr.bf16.mxu1 %v18561_v48 }
 0x3c3   : > { %v21152_v10 = vadd.f32 %v15329_v26, %v15328_v14  ;;  %v18562_v14 = vld [vmem:[%s23926_s1 + $0x488] sm:$0xff]   ;;  %v18563_v26 = vld [vmem:[%s23926_s1 + $0x5b0] sm:$0xff]  }
 0x3c4   : > { %15772 = vmatpush3.bf16.msra.mxu1 %v18562_v14  ;;  %15645 = vmatprep.subr.bf16.mxu0 %v18563_v26 }
 0x3c5   : > { %15773 = vmatprep.subr.bf16.mxu1 %v18564_v19  ;;  %15646 = vmatpush3.bf16.msra.mxu0 %v18565_v30 }
 0x3c7   : > { %v15331_v54 = vpop.f32.mrb[140].mxu0 }
 0x3c8   : > { %v15332_v28 = vpop.f32.mrb[141].mxu0 }
 0x3c9   : > { %v21160_v61 = vadd.f32 %v15332_v28, %v15331_v54  ;;  %v15334_v29 = vpop.f32.mrb[142].mxu0  ;;  %v18566_v54 = vld [vmem:[%s23926_s1 + $0x490] sm:$0xff]  }
 0x3ca   : > { %v15335_v4 = vpop.f32.mrb[143].mxu0  ;;  %15774 = vmatpush3.bf16.msra.mxu1 %v18566_v54 }
 0x3cb   : > { %v21162_v40 = vadd.f32 %v15335_v4, %v15334_v29  ;;  %v18567_v4 = vld [vmem:[%s23926_s1 + $0x4d8] sm:$0xff]  }
 0x3cc   : > { %15775 = vmatprep.subr.bf16.mxu1 %v18567_v4 }
 0x3ce   : > { %15776 = vmatpush3.bf16.msra.mxu1 %v18568_v38 }
 0x3cf   : > { %v15377_v28 = vpop.f32.mrb[144].mxu0 }
 0x3d0   : > { %v15378_v29 = vpop.f32.mrb[145].mxu0 }
 0x3d1   : > { %v15379_v48 = vadd.f32 %v15378_v29, %v15377_v28  ;;  %v15380_v39 = vpop.f32.mrb[146].mxu0 }
 0x3d2   : > { %v15381_v14 = vpop.f32.mrb[147].mxu0 }
 0x3d3   : > { %v17692_v21 = vadd.f32 %v15379_v48, %v20985_v41  ;;  %v15382_v31 = vadd.f32 %v15381_v14, %v15380_v39  ;;  %v15513_v26 = vpop.f32.mrb[176].mxu1 }
 0x3d4   : > { %v15514_v30 = vpop.f32.mrb[177].mxu1 }
 0x3d5   : > { %v17698_v19 = vadd.f32 %v15382_v31, %v20991_v2  ;;  %v15515_v37 = vadd.f32 %v15514_v30, %v15513_v26  ;;  %v15516_v57 = vpop.f32.mrb[178].mxu1 }
 0x3d6   : > { %v15517_v28 = vpop.f32.mrb[179].mxu1 }
 0x3d7   : > { %v15383_v22 = vpop.f32.mrb[148].mxu0  ;;  %v15518_v29 = vadd.f32 %v15517_v28, %v15516_v57  ;;  %v21190_v54 = vadd.f32 %v17692_v21, %v15515_v37  ;;  %v18569_v57 = vld [vmem:[%s23926_s1 + $0x4e0] sm:$0xff]  }
 0x3d8   : > { %v15384_v25 = vpop.f32.mrb[149].mxu0  ;;  %15777 = vmatprep.subr.bf16.mxu1 %v18569_v57 }
 0x3d9   : > { %v15385_v5 = vadd.f32 %v15384_v25, %v15383_v22  ;;  %v15386_v18 = vpop.f32.mrb[150].mxu0  ;;  %v21192_v12 = vadd.f32 %v17698_v19, %v15518_v29  ;;  %v18570_v22 = vld [vmem:[%s23926_s1 + $0x4a0] sm:$0xff]  }
 0x3da   : > { %v15387_v42 = vpop.f32.mrb[151].mxu0  ;;  %15778 = vmatpush3.bf16.msra.mxu1 %v18570_v22 }
 0x3db   : > { %v17689_v39 = vadd.f32 %v15385_v5, %v20998_v49  ;;  %v15388_v41 = vadd.f32 %v15387_v42, %v15386_v18  ;;  %v15519_v4 = vpop.f32.mrb[180].mxu1  ;;  %v18571_v49 = vld [vmem:[%s23926_s1 + $0x4e8] sm:$0xff]  }
 0x3dc   : > { %v15520_v2 = vpop.f32.mrb[181].mxu1  ;;  %15779 = vmatprep.subr.bf16.mxu1 %v18571_v49 }
 0x3dd   : > { %v17695_v31 = vadd.f32 %v15388_v41, %v21003_v16  ;;  %v15521_v48 = vadd.f32 %v15520_v2, %v15519_v4  ;;  %v15522_v38 = vpop.f32.mrb[182].mxu1  ;;  %v18572_v16 = vld [vmem:[%s23926_s1 + $0x4a8] sm:$0xff]  }
 0x3de   : > { %v15523_v37 = vpop.f32.mrb[183].mxu1  ;;  %15780 = vmatpush3.bf16.msra.mxu1 %v18572_v16 }
 0x3df   : > { %v15389_v21 = vpop.f32.mrb[152].mxu0  ;;  %v15524_v25 = vadd.f32 %v15523_v37, %v15522_v38  ;;  %v21202_v5 = vadd.f32 %v17689_v39, %v15521_v48  ;;  %v18573_v48 = vld [vmem:[%s23926_s1 + $0x5b8] sm:$0xff]  }
 0x3e0   : > { %v15390_v14 = vpop.f32.mrb[153].mxu0  ;;  %15647 = vmatprep.subr.bf16.mxu0 %v18573_v48  ;;  %v5443_v48 = vld [vmem:[#allocation2 + $0xf] sm:$0xff] }
 0x3e1   : > { %v15391_v42 = vadd.f32 %v15390_v14, %v15389_v21  ;;  %v15392_v18 = vpop.f32.mrb[154].mxu0  ;;  %v21210_v19 = vadd.f32 %v17695_v31, %v15524_v25  ;;  %v18574_v31 = vld [vmem:[%s23926_s1 + $0x4f0] sm:$0xff]  }
 0x3e2   : > { %v15393_v26 = vpop.f32.mrb[155].mxu0  ;;  %15781 = vmatprep.subr.bf16.mxu1 %v18574_v31  ;;  %v5444_v31 = vld [vmem:[#allocation2 + $0x17] sm:$0xff] }
 0x3e3   : > { %v17704_v30 = vadd.f32 %v15391_v42, %v21009_v9  ;;  %v15394_v28 = vadd.f32 %v15393_v26, %v15392_v18  ;;  %v15525_v29 = vpop.f32.mrb[184].mxu1  ;;  %v18575_v9 = vld [vmem:[%s23926_s1 + $0x578] sm:$0xff]  }
 0x3e4   : > { %v15526_v41 = vpop.f32.mrb[185].mxu1  ;;  %15648 = vmatpush3.bf16.msra.mxu0 %v18575_v9  ;;  %v18577_v42 = vld [vmem:[%s23926_s1 + $0x4f8] sm:$0xff]   ;;  %v13536_v9 = vpack.c.bf16 %v5444_v31, %v5443_v48 }
 0x3e5   : > { %v17710_v39 = vadd.f32 %v15394_v28, %v21015_v43  ;;  %v15527_v4 = vadd.f32 %v15526_v41, %v15525_v29  ;;  %v15528_v2 = vpop.f32.mrb[186].mxu1  ;;  %v18576_v43 = vld [vmem:[%s23926_s1 + $0x4b0] sm:$0xff]   ;;  %v18578_v18 = vld [vmem:[%s23926_s1 + $0x4b8] sm:$0xff]  }
 0x3e6   : > { %v15529_v57 = vpop.f32.mrb[187].mxu1  ;;  %15782 = vmatpush3.bf16.msra.mxu1 %v18576_v43 }
 0x3e7   : > { %v15395_v38 = vpop.f32.mrb[156].mxu0  ;;  %v15530_v21 = vadd.f32 %v15529_v57, %v15528_v2  ;;  %v21226_v22 = vadd.f32 %v17704_v30, %v15527_v4  ;;  %15783 = vmatprep.subr.bf16.mxu1 %v18577_v42 }
 0x3e8   : > { %v15396_v37 = vpop.f32.mrb[157].mxu0 }
 0x3e9   : > { %v15397_v25 = vadd.f32 %v15396_v37, %v15395_v38  ;;  %v15398_v14 = vpop.f32.mrb[158].mxu0  ;;  %v21234_v16 = vadd.f32 %v17710_v39, %v15530_v21 }
 0x3ea   : > { %v15399_v49 = vpop.f32.mrb[159].mxu0  ;;  %15784 = vmatpush3.bf16.msra.mxu1 %v18578_v18 }
 0x3eb   : > { %v17701_v26 = vadd.f32 %v15397_v25, %v21022_v47  ;;  %v15400_v28 = vadd.f32 %v15399_v49, %v15398_v14  ;;  %v15531_v30 = vpop.f32.mrb[188].mxu1 }
 0x3ec   : > { %v15532_v41 = vpop.f32.mrb[189].mxu1 }
 0x3ed   : > { %v17707_v29 = vadd.f32 %v15400_v28, %v21027_v33  ;;  %v15533_v4 = vadd.f32 %v15532_v41, %v15531_v30  ;;  %v15534_v2 = vpop.f32.mrb[190].mxu1  ;;  %13537 = vmatmul.mubr.msk.bf16.vlgmr.msra.gmra.mrb[240].mxu1 %vm24600_vm0, %v13536_v9 }
 0x3ee   : > { %v15535_v57 = vpop.f32.mrb[191].mxu1 }
 0x3ef   : > { %v15401_v38 = vpop.f32.mrb[160].mxu0  ;;  %v15536_v39 = vadd.f32 %v15535_v57, %v15534_v2  ;;  %v21239_v21 = vadd.f32 %v17701_v26, %v15533_v4  ;;  %v21250_v26 = vld [vmem:[%s23926_s1 + $0x5c0] sm:$0xff]  }
 0x3f0   : > { %v15402_v43 = vpop.f32.mrb[161].mxu0  ;;  %17145 = vmatprep.subr.bf16.mxu0 %v21250_v26 }
 0x3f1   : > { %v15403_v47 = vadd.f32 %v15402_v43, %v15401_v38  ;;  %v15404_v37 = vpop.f32.mrb[162].mxu0  ;;  %v21243_v33 = vadd.f32 %v17707_v29, %v15536_v39 }
 0x3f2   : > { %v15405_v32 = vpop.f32.mrb[163].mxu0 }
 0x3f3   : > { %v17716_v25 = vadd.f32 %v15403_v47, %v21039_v60  ;;  %v15406_v14 = vadd.f32 %v15405_v32, %v15404_v37  ;;  %v15537_v42 = vpop.f32.mrb[192].mxu1 }
 0x3f4   : > { %v15538_v49 = vpop.f32.mrb[193].mxu1 }
 0x3f5   : > { %v17722_v18 = vadd.f32 %v15406_v14, %v21045_v17  ;;  %v15539_v28 = vadd.f32 %v15538_v49, %v15537_v42  ;;  %v15540_v30 = vpop.f32.mrb[194].mxu1 }
 0x3f6   : > { %v15541_v4 = vpop.f32.mrb[195].mxu1 }
 0x3f7   : > { %v15407_v41 = vpop.f32.mrb[164].mxu0  ;;  %v15542_v2 = vadd.f32 %v15541_v4, %v15540_v30  ;;  %v21252_v29 = vadd.f32 %v17716_v25, %v15539_v28 }
 0x3f8   : > { %v15408_v48 = vpop.f32.mrb[165].mxu0 }
 0x3f9   : > { %v15409_v60 = vadd.f32 %v15408_v48, %v15407_v41  ;;  %v15410_v31 = vpop.f32.mrb[166].mxu0  ;;  %v21255_v17 = vadd.f32 %v17722_v18, %v15542_v2 }
 0x3fa   : > { %v15411_v38 = vpop.f32.mrb[167].mxu0 }
 0x3fb   : > { %v17713_v57 = vadd.f32 %v15409_v60, %v21050_v8  ;;  %v15412_v9 = vadd.f32 %v15411_v38, %v15410_v31  ;;  %v15543_v39 = vpop.f32.mrb[196].mxu1 }
 0x3fc   : > { %v15544_v47 = vpop.f32.mrb[197].mxu1 }
 0x3fd   : > { %v17719_v43 = vadd.f32 %v15412_v9, %v21056_v50  ;;  %v15545_v37 = vadd.f32 %v15544_v47, %v15543_v39  ;;  %v15546_v32 = vpop.f32.mrb[198].mxu1 }
 0x3fe   : > { %v15547_v42 = vpop.f32.mrb[199].mxu1 }
 0x3ff   : > { %v15413_v14 = vpop.f32.mrb[168].mxu0  ;;  %v15548_v25 = vadd.f32 %v15547_v42, %v15546_v32  ;;  %v21259_v28 = vadd.f32 %v17713_v57, %v15545_v37 }
 0x400   : > { %v15414_v49 = vpop.f32.mrb[169].mxu0 }
 0x401   : > { %v15415_v30 = vadd.f32 %v15414_v49, %v15413_v14  ;;  %v15416_v41 = vpop.f32.mrb[170].mxu0  ;;  %v21261_v18 = vadd.f32 %v17719_v43, %v15548_v25 }
 0x402   : > { %v15417_v4 = vpop.f32.mrb[171].mxu0 }
 0x403   : > { %v17728_v8 = vadd.f32 %v15415_v30, %v21064_v35  ;;  %v15418_v2 = vadd.f32 %v15417_v4, %v15416_v41  ;;  %v15549_v48 = vpop.f32.mrb[200].mxu1 }
 0x404   : > { %v15550_v60 = vpop.f32.mrb[201].mxu1 }
 0x405   : > { %v17734_v50 = vadd.f32 %v15418_v2, %v21070_v59  ;;  %v15551_v31 = vadd.f32 %v15550_v60, %v15549_v48  ;;  %v15552_v38 = vpop.f32.mrb[202].mxu1 }
 0x406   : > { %v15553_v39 = vpop.f32.mrb[203].mxu1 }
 0x407   : > { %v15419_v9 = vpop.f32.mrb[172].mxu0  ;;  %v15554_v47 = vadd.f32 %v15553_v39, %v15552_v38  ;;  %v21265_v57 = vadd.f32 %v17728_v8, %v15551_v31 }
 0x408   : > { %v15420_v32 = vpop.f32.mrb[173].mxu0 }
 0x409   : > { %v15421_v37 = vadd.f32 %v15420_v32, %v15419_v9  ;;  %v15422_v14 = vpop.f32.mrb[174].mxu0  ;;  %v21267_v43 = vadd.f32 %v17734_v50, %v15554_v47 }
 0x40a   : > { %v15423_v42 = vpop.f32.mrb[175].mxu0 }
 0x40b   : > { %v17725_v35 = vadd.f32 %v15421_v37, %v21072_v20  ;;  %v15424_v25 = vadd.f32 %v15423_v42, %v15422_v14  ;;  %v15555_v49 = vpop.f32.mrb[204].mxu1 }
 0x40c   : > { %v15556_v30 = vpop.f32.mrb[205].mxu1 }
 0x40d   : > { %v17731_v59 = vadd.f32 %v15424_v25, %v21078_v46  ;;  %v15557_v41 = vadd.f32 %v15556_v30, %v15555_v49  ;;  %v15558_v4 = vpop.f32.mrb[206].mxu1 }
 0x40e   : > { %v15559_v48 = vpop.f32.mrb[207].mxu1 }
 0x40f   : > { %v15425_v2 = vpop.f32.mrb[176].mxu0  ;;  %v15560_v60 = vadd.f32 %v15559_v48, %v15558_v4  ;;  %v21271_v8 = vadd.f32 %v17725_v35, %v15557_v41 }
 0x410   : > { %v15426_v38 = vpop.f32.mrb[177].mxu0 }
 0x411   : > { %v15427_v31 = vadd.f32 %v15426_v38, %v15425_v2  ;;  %v15428_v9 = vpop.f32.mrb[178].mxu0  ;;  %v21273_v50 = vadd.f32 %v17731_v59, %v15560_v60 }
 0x412   : > { %v15429_v39 = vpop.f32.mrb[179].mxu0 }
 0x413   : > { %v17740_v20 = vadd.f32 %v15427_v31, %v21086_v15  ;;  %v15430_v47 = vadd.f32 %v15429_v39, %v15428_v9  ;;  %v15561_v32 = vpop.f32.mrb[208].mxu1 }
 0x414   : > { %v15562_v37 = vpop.f32.mrb[209].mxu1 }
 0x415   : > { %v17746_v46 = vadd.f32 %v15430_v47, %v21092_v7  ;;  %v15563_v14 = vadd.f32 %v15562_v37, %v15561_v32  ;;  %v15564_v42 = vpop.f32.mrb[210].mxu1 }
 0x416   : > { %v15565_v49 = vpop.f32.mrb[211].mxu1 }
 0x417   : > { %v15431_v25 = vpop.f32.mrb[180].mxu0  ;;  %v15566_v30 = vadd.f32 %v15565_v49, %v15564_v42  ;;  %v21277_v35 = vadd.f32 %v17740_v20, %v15563_v14 }
 0x418   : > { %v15432_v4 = vpop.f32.mrb[181].mxu0 }
 0x419   : > { %v15433_v41 = vadd.f32 %v15432_v4, %v15431_v25  ;;  %v15434_v2 = vpop.f32.mrb[182].mxu0  ;;  %v21279_v59 = vadd.f32 %v17746_v46, %v15566_v30 }
 0x41a   : > { %v15435_v48 = vpop.f32.mrb[183].mxu0 }
 0x41b   : > { %v17737_v15 = vadd.f32 %v15433_v41, %v21094_v63  ;;  %v15436_v60 = vadd.f32 %v15435_v48, %v15434_v2  ;;  %v15567_v38 = vpop.f32.mrb[212].mxu1 }
 0x41c   : > { %v15568_v31 = vpop.f32.mrb[213].mxu1 }
 0x41d   : > { %v17743_v7 = vadd.f32 %v15436_v60, %v21100_v24  ;;  %v15569_v9 = vadd.f32 %v15568_v31, %v15567_v38  ;;  %v15570_v39 = vpop.f32.mrb[214].mxu1 }
 0x41e   : > { %v15571_v32 = vpop.f32.mrb[215].mxu1 }
 0x41f   : > { %v15437_v47 = vpop.f32.mrb[184].mxu0  ;;  %v15572_v37 = vadd.f32 %v15571_v32, %v15570_v39  ;;  %v21283_v20 = vadd.f32 %v17737_v15, %v15569_v9 }
 0x420   : > { %v15438_v42 = vpop.f32.mrb[185].mxu0 }
 0x421   : > { %v15439_v14 = vadd.f32 %v15438_v42, %v15437_v47  ;;  %v15440_v25 = vpop.f32.mrb[186].mxu0  ;;  %v21285_v46 = vadd.f32 %v17743_v7, %v15572_v37 }
 0x422   : > { %v15441_v49 = vpop.f32.mrb[187].mxu0 }
 0x423   : > { %v17752_v63 = vadd.f32 %v15439_v14, %v21108_v45  ;;  %v15442_v30 = vadd.f32 %v15441_v49, %v15440_v25  ;;  %v15573_v4 = vpop.f32.mrb[216].mxu1 }
 0x424   : > { %v15574_v41 = vpop.f32.mrb[217].mxu1 }
 0x425   : > { %v17758_v24 = vadd.f32 %v15442_v30, %v21114_v36  ;;  %v15575_v2 = vadd.f32 %v15574_v41, %v15573_v4  ;;  %v15576_v48 = vpop.f32.mrb[218].mxu1 }
 0x426   : > { %v15577_v38 = vpop.f32.mrb[219].mxu1 }
 0x427   : > { %v15443_v60 = vpop.f32.mrb[188].mxu0  ;;  %v15578_v31 = vadd.f32 %v15577_v38, %v15576_v48  ;;  %v21289_v15 = vadd.f32 %v17752_v63, %v15575_v2 }
 0x428   : > { %v15444_v39 = vpop.f32.mrb[189].mxu0 }
 0x429   : > { %v15445_v9 = vadd.f32 %v15444_v39, %v15443_v60  ;;  %v15446_v47 = vpop.f32.mrb[190].mxu0  ;;  %v21291_v7 = vadd.f32 %v17758_v24, %v15578_v31 }
 0x42a   : > { %v15447_v32 = vpop.f32.mrb[191].mxu0 }
 0x42b   : > { %v17749_v45 = vadd.f32 %v15445_v9, %v21116_v0  ;;  %v15448_v37 = vadd.f32 %v15447_v32, %v15446_v47  ;;  %v15579_v42 = vpop.f32.mrb[220].mxu1 }
 0x42c   : > { %v15580_v14 = vpop.f32.mrb[221].mxu1 }
 0x42d   : > { %v17755_v36 = vadd.f32 %v15448_v37, %v21122_v52  ;;  %v15581_v25 = vadd.f32 %v15580_v14, %v15579_v42  ;;  %v15582_v49 = vpop.f32.mrb[222].mxu1 }
 0x42e   : > { %v15583_v4 = vpop.f32.mrb[223].mxu1 }
 0x42f   : > { %v15449_v30 = vpop.f32.mrb[192].mxu0  ;;  %v15584_v41 = vadd.f32 %v15583_v4, %v15582_v49  ;;  %v21295_v63 = vadd.f32 %v17749_v45, %v15581_v25 }
 0x430   : > { %v15450_v48 = vpop.f32.mrb[193].mxu0 }
 0x431   : > { %v15451_v2 = vadd.f32 %v15450_v48, %v15449_v30  ;;  %v15452_v60 = vpop.f32.mrb[194].mxu0  ;;  %v21297_v24 = vadd.f32 %v17755_v36, %v15584_v41 }
 0x432   : > { %v15453_v38 = vpop.f32.mrb[195].mxu0 }
 0x433   : > { %v17764_v0 = vadd.f32 %v15451_v2, %v21130_v3  ;;  %v15454_v31 = vadd.f32 %v15453_v38, %v15452_v60  ;;  %v15585_v39 = vpop.f32.mrb[224].mxu1 }
 0x434   : > { %v15586_v9 = vpop.f32.mrb[225].mxu1 }
 0x435   : > { %v17770_v52 = vadd.f32 %v15454_v31, %v21136_v11  ;;  %v15587_v47 = vadd.f32 %v15586_v9, %v15585_v39  ;;  %v15588_v32 = vpop.f32.mrb[226].mxu1 }
 0x436   : > { %v15589_v42 = vpop.f32.mrb[227].mxu1 }
 0x437   : > { %v15455_v37 = vpop.f32.mrb[196].mxu0  ;;  %v15590_v14 = vadd.f32 %v15589_v42, %v15588_v32  ;;  %v21301_v45 = vadd.f32 %v17764_v0, %v15587_v47 }
 0x438   : > { %v15456_v49 = vpop.f32.mrb[197].mxu0 }
 0x439   : > { %v15457_v25 = vadd.f32 %v15456_v49, %v15455_v37  ;;  %v15458_v30 = vpop.f32.mrb[198].mxu0  ;;  %v21303_v36 = vadd.f32 %v17770_v52, %v15590_v14 }
 0x43a   : > { %v15459_v4 = vpop.f32.mrb[199].mxu0 }
 0x43b   : > { %v17761_v3 = vadd.f32 %v15457_v25, %v21138_v1  ;;  %v15460_v41 = vadd.f32 %v15459_v4, %v15458_v30  ;;  %v15591_v48 = vpop.f32.mrb[228].mxu1 }
 0x43c   : > { %v15592_v2 = vpop.f32.mrb[229].mxu1 }
 0x43d   : > { %v17767_v11 = vadd.f32 %v15460_v41, %v21142_v53  ;;  %v15593_v60 = vadd.f32 %v15592_v2, %v15591_v48  ;;  %v15594_v38 = vpop.f32.mrb[230].mxu1 }
 0x43e   : > { %v15595_v39 = vpop.f32.mrb[231].mxu1 }
 0x43f   : > { %v15461_v31 = vpop.f32.mrb[200].mxu0  ;;  %v15596_v9 = vadd.f32 %v15595_v39, %v15594_v38  ;;  %v21307_v0 = vadd.f32 %v17761_v3, %v15593_v60 }
 0x440   : > { %v15462_v32 = vpop.f32.mrb[201].mxu0 }
 0x441   : > { %v15463_v47 = vadd.f32 %v15462_v32, %v15461_v31  ;;  %v15464_v37 = vpop.f32.mrb[202].mxu0  ;;  %v21309_v52 = vadd.f32 %v17767_v11, %v15596_v9 }
 0x442   : > { %v15465_v42 = vpop.f32.mrb[203].mxu0 }
 0x443   : > { %v17776_v1 = vadd.f32 %v15463_v47, %v21150_v55  ;;  %v15466_v14 = vadd.f32 %v15465_v42, %v15464_v37  ;;  %v15597_v49 = vpop.f32.mrb[232].mxu1 }
 0x444   : > { %v15598_v25 = vpop.f32.mrb[233].mxu1 }
 0x445   : > { %v17782_v53 = vadd.f32 %v15466_v14, %v21152_v10  ;;  %v15599_v30 = vadd.f32 %v15598_v25, %v15597_v49  ;;  %v15600_v4 = vpop.f32.mrb[234].mxu1 }
 0x446   : > { %v15601_v48 = vpop.f32.mrb[235].mxu1 }
 0x447   : > { %v15467_v41 = vpop.f32.mrb[204].mxu0  ;;  %v15602_v2 = vadd.f32 %v15601_v48, %v15600_v4  ;;  %v21313_v3 = vadd.f32 %v17776_v1, %v15599_v30 }
 0x448   : > { %v15468_v38 = vpop.f32.mrb[205].mxu0 }
 0x449   : > { %v15469_v60 = vadd.f32 %v15468_v38, %v15467_v41  ;;  %v15470_v31 = vpop.f32.mrb[206].mxu0  ;;  %v21315_v11 = vadd.f32 %v17782_v53, %v15602_v2  ;;  %v21326_v53 = vld [vmem:[%s23927_s2 + $0x1] ss:$0 sm:$0xff] }
 0x44a   : > { %v15471_v39 = vpop.f32.mrb[207].mxu0 }
 0x44b   : > { %v17773_v55 = vadd.f32 %v15469_v60, %v21160_v61  ;;  %v15472_v9 = vadd.f32 %v15471_v39, %v15470_v31  ;;  %v15603_v32 = vpop.f32.mrb[236].mxu1 }
 0x44c   : > { %v15604_v47 = vpop.f32.mrb[237].mxu1 }
 0x44d   : > { %v17779_v10 = vadd.f32 %v15472_v9, %v21162_v40  ;;  %v15605_v37 = vadd.f32 %v15604_v47, %v15603_v32  ;;  %v15606_v42 = vpop.f32.mrb[238].mxu1 }
 0x44e   : > { %v15607_v14 = vpop.f32.mrb[239].mxu1 }
 0x44f   : > { %v15608_v49 = vadd.f32 %v15607_v14, %v15606_v42  ;;  %v21319_v25 = vadd.f32 %v17773_v55, %v15605_v37  ;;  %v18798_v14 = vld [vmem:[#allocation2 + $0x20] sm:$0xff] }
 0x451   : > { %v21321_v1 = vadd.f32 %v17779_v10, %v15608_v49  ;;  %v18797_v10 = vld [vmem:[#allocation2 + $0x30] sm:$0xff] }
 0x453   : > { %v17115_v30 = vpop.f32.mrb[144].mxu1 }
 0x454   : > { %v17691_v61 = vadd.f32 %v21202_v5, %v17115_v30  ;;  %v5084_v4 = vpop.f32.mrb[145].mxu1 }
 0x455   : > { %v17694_v40 = vadd.f32 %v21190_v54, %v5084_v4  ;;  %v17116_v41 = vpop.f32.mrb[146].mxu1  ;;  %v18799_v4 = vld [vmem:[#allocation2 + $0x38] sm:$0xff] }
 0x456   : > { %v5253_v48 = vadd.f32 %v17691_v61, %v21326_v53  ;;  %v17697_v2 = vadd.f32 %v21210_v19, %v17116_v41  ;;  %v5087_v38 = vpop.f32.mrb[147].mxu1 }
 0x457   : > { %v5251_v60 = vadd.f32 %v17694_v40, %v21326_v53  ;;  %v17700_v31 = vadd.f32 %v21192_v12, %v5087_v38  ;;  %v18800_v38 = vld [vmem:[#allocation2 + $0x28] sm:$0xff] }
 0x458   : > { %vm5285_vm12 = vcmp.ge.f32.partialorder %v5253_v48, 0.0  ;;  %v5317_v39 = vmul.f32 0.2, %v5253_v48  ;;  %v5254_v55 = vadd.f32 %v17697_v2, %v21326_v53 }
 0x459   : > { %vm5283_vm10 = vcmp.ge.f32.partialorder %v5251_v60, 0.0  ;;  %v5315_v9 = vmul.f32 0.2, %v5251_v60  ;;  %v5252_v5 = vadd.f32 %v17700_v31, %v21326_v53 }
 0x45a   : > { %v5349_v32 = vsel %vm5285_vm12, %v5253_v48, %v5317_v39  ;;  %vm5286_vm14 = vcmp.ge.f32.partialorder %v5254_v55, 0.0  ;;  %v5318_v54 = vmul.f32 0.2, %v5254_v55 }
 0x45b   : > { %v21336_v47 = vadd.f32 %v18797_v10, %v5349_v32  ;;  %v5347_v19 = vsel %vm5283_vm10, %v5251_v60, %v5315_v9  ;;  %vm5284_vm2 = vcmp.ge.f32.partialorder %v5252_v5, 0.0  ;;  %v5316_v37 = vmul.f32 0.2, %v5252_v5  ;;  %v17119_v42 = vpop.f32.mrb[148].mxu1 }
 0x45c   : > { %v5379_v12 = vadd.f32 %v18798_v14, %v5347_v19  ;;  %v5350_v49 = vsel %vm5286_vm14, %v5254_v55, %v5318_v54  ;;  %v17703_v30 = vadd.f32 %v21239_v21, %v17119_v42  ;;  %v5100_v61 = vpop.f32.mrb[149].mxu1 }
 0x45d   : > { %5413 = vst [vmem:[#allocation2 + $0x30] sm:$0xff] %v21336_v47  ;;  %v21340_v40 = vadd.f32 %v18799_v4, %v5350_v49  ;;  %v5348_v41 = vsel %vm5284_vm2, %v5252_v5, %v5316_v37  ;;  %v17706_v48 = vadd.f32 %v21226_v22, %v5100_v61  ;;  %v17120_v2 = vpop.f32.mrb[150].mxu1  ;;  %v18801_v37 = vld [vmem:[#allocation2 + $0x50] sm:$0xff] }
 0x45e   : > { %5411 = vst [vmem:[#allocation2 + $0x20] sm:$0xff] %v5379_v12  ;;  %v5380_v60 = vadd.f32 %v18800_v38, %v5348_v41  ;;  %v5257_v31 = vadd.f32 %v17703_v30, %v21326_v53  ;;  %v17709_v39 = vadd.f32 %v21243_v33, %v17120_v2  ;;  %v5103_v55 = vpop.f32.mrb[151].mxu1  ;;  %v18802_v30 = vld [vmem:[#allocation2 + $0x40] sm:$0xff] }
 0x45f   : > { %5414 = vst [vmem:[#allocation2 + $0x38] sm:$0xff] %v21340_v40  ;;  %v5255_v21 = vadd.f32 %v17706_v48, %v21326_v53  ;;  %v17712_v9 = vadd.f32 %v21234_v16, %v5103_v55  ;;  %v18803_v48 = vld [vmem:[#allocation2 + $0x58] sm:$0xff] }
 0x460   : > { %5412 = vst [vmem:[#allocation2 + $0x28] sm:$0xff] %v5380_v60  ;;  %vm5289_vm10 = vcmp.ge.f32.partialorder %v5257_v31, 0.0  ;;  %v5321_v5 = vmul.f32 0.2, %v5257_v31  ;;  %v5258_v22 = vadd.f32 %v17709_v39, %v21326_v53  ;;  %v5607_v32 = vpack.c.bf16 %v5380_v60, %v5379_v12  ;;  %v18804_v39 = vld [vmem:[#allocation2 + $0x48] sm:$0xff] }
 0x461   : > { %vm5287_vm12 = vcmp.ge.f32.partialorder %v5255_v21, 0.0  ;;  %v5319_v54 = vmul.f32 0.2, %v5255_v21  ;;  %v5256_v10 = vadd.f32 %v17712_v9, %v21326_v53 }
 0x462   : > { %v5353_v19 = vsel %vm5289_vm10, %v5257_v31, %v5321_v5  ;;  %vm5290_vm14 = vcmp.ge.f32.partialorder %v5258_v22, 0.0  ;;  %v5322_v33 = vmul.f32 0.2, %v5258_v22  ;;  %6028 = vmatprep.mubr.bf16.mxu0 %v5607_v32  ;;  %6502 = vmatprep.mubr.bf16.mxu1 %v5607_v32 }
 0x463   : > { %v21350_v42 = vadd.f32 %v18801_v37, %v5353_v19  ;;  %v5351_v14 = vsel %vm5287_vm12, %v5255_v21, %v5319_v54  ;;  %vm5288_vm2 = vcmp.ge.f32.partialorder %v5256_v10, 0.0  ;;  %v5320_v16 = vmul.f32 0.2, %v5256_v10  ;;  %v17123_v49 = vpop.f32.mrb[152].mxu1 }
 0x464   : > { %v21352_v61 = vadd.f32 %v18802_v30, %v5351_v14  ;;  %v5354_v12 = vsel %vm5290_vm14, %v5258_v22, %v5322_v33  ;;  %v17715_v4 = vadd.f32 %v21259_v28, %v17123_v49  ;;  %v5116_v41 = vpop.f32.mrb[153].mxu1  ;;  %v18805_v49 = vld [vmem:[#allocation2 + $0x70] sm:$0xff] }
 0x465   : > { %5417 = vst [vmem:[#allocation2 + $0x50] sm:$0xff] %v21350_v42  ;;  %v21356_v2 = vadd.f32 %v18803_v48, %v5354_v12  ;;  %v5352_v38 = vsel %vm5288_vm2, %v5256_v10, %v5320_v16  ;;  %v17718_v60 = vadd.f32 %v21252_v29, %v5116_v41  ;;  %v17124_v31 = vpop.f32.mrb[154].mxu1  ;;  %v5445_v32 = vld [vmem:[#allocation2 + $0x1f] sm:$0xff]  ;;  %vm24601_vm2 = vnez %v24568_v23 }
 0x466   : > { %5415 = vst [vmem:[#allocation2 + $0x40] sm:$0xff] %v21352_v61  ;;  %v21360_v55 = vadd.f32 %v18804_v39, %v5352_v38  ;;  %v5261_v21 = vadd.f32 %v17715_v4, %v21326_v53  ;;  %v17721_v9 = vadd.f32 %v21261_v18, %v17124_v31  ;;  %v5119_v28 = vpop.f32.mrb[155].mxu1  ;;  %v18580_v18 = vld [vmem:[%s23926_s1 + $0x5c8] sm:$0xff]   ;;  %v18581_v31 = vld [vmem:[%s23926_s1 + $0x5d0] sm:$0xff]   ;;  %v18807_v39 = vld [vmem:[#allocation2 + $0x78] sm:$0xff] }
 0x467   : > { %5418 = vst [vmem:[#allocation2 + $0x58] sm:$0xff] %v21356_v2  ;;  %v5259_v5 = vadd.f32 %v17718_v60, %v21326_v53  ;;  %v17724_v22 = vadd.f32 %v21255_v17, %v5119_v28  ;;  %v5446_v54 = vld [vmem:[#allocation2 + $0x27] sm:$0xff]  ;;  %v5610_v17 = vpack.c.bf16 %v21340_v40, %v21336_v47 }
 0x468   : > { %5416 = vst [vmem:[#allocation2 + $0x48] sm:$0xff] %v21360_v55  ;;  %vm5293_vm10 = vcmp.ge.f32.partialorder %v5261_v21, 0.0  ;;  %v5325_v29 = vmul.f32 0.2, %v5261_v21  ;;  %v5262_v10 = vadd.f32 %v17721_v9, %v21326_v53  ;;  %v13416_v19 = vpack.c.bf16 %v5446_v54, %v5445_v32  ;;  %v18806_v47 = vld [vmem:[#allocation2 + $0x60] sm:$0xff] }
 0x469   : > { %vm5291_vm12 = vcmp.ge.f32.partialorder %v5259_v5, 0.0  ;;  %v5323_v33 = vmul.f32 0.2, %v5259_v5  ;;  %v5260_v37 = vadd.f32 %v17724_v22, %v21326_v53  ;;  %v5448_v22 = vld [vmem:[#allocation2 + $0x37] sm:$0xff] }
 0x46a   : > { %v5357_v14 = vsel %vm5293_vm10, %v5261_v21, %v5325_v29  ;;  %vm5294_vm14 = vcmp.ge.f32.partialorder %v5262_v10, 0.0  ;;  %v5326_v16 = vmul.f32 0.2, %v5262_v10  ;;  %13417 = vmatmul.mubr.msk.bf16.vlgmr.msra.gmra.mrb[208].mxu0 %vm24600_vm0, %v13416_v19  ;;  %13540 = vmatmul.mubr.msk.bf16.gmra.mrb[244].mxu1 %vm24601_vm2, %v13416_v19 }
 0x46b   : > { %v21379_v30 = vadd.f32 %v18805_v49, %v5357_v14  ;;  %v5355_v12 = vsel %vm5291_vm12, %v5259_v5, %v5323_v33  ;;  %vm5292_vm13 = vcmp.ge.f32.partialorder %v5260_v37, 0.0  ;;  %v5324_v4 = vmul.f32 0.2, %v5260_v37  ;;  %v17127_v41 = vpop.f32.mrb[156].mxu1  ;;  %6036 = vmatprep.mubr.bf16.mxu0 %v5610_v17  ;;  %17146 = vmatpush3.bf16.msra.mxu0 %v21250_v26  ;;  %v5447_v5 = vld [vmem:[#allocation2 + $0x2f] sm:$0xff] }
 0x46c   : > { %v21382_v40 = vadd.f32 %v18806_v47, %v5355_v12  ;;  %v5358_v48 = vsel %vm5294_vm14, %v5262_v10, %v5326_v16  ;;  %v17727_v38 = vadd.f32 %v21271_v8, %v17127_v41  ;;  %v5132_v60 = vpop.f32.mrb[157].mxu1  ;;  %6510 = vmatprep.mubr.bf16.mxu1 %v5610_v17  ;;  %17147 = vmatprep.subr.bf16.mxu0 %v18580_v18  ;;  %v18808_v8 = vld [vmem:[#allocation2 + $0x68] sm:$0xff]  ;;  %v24602_v12 = vld [vmem:[#allocation18_spill] sm:$0xff] }
 0x46d   : > { %5421 = vst [vmem:[#allocation2 + $0x70] sm:$0xff] %v21379_v30  ;;  %v21389_v21 = vadd.f32 %v18807_v39, %v5358_v48  ;;  %v5356_v26 = vsel %vm5292_vm13, %v5260_v37, %v5324_v4  ;;  %v17730_v9 = vadd.f32 %v21265_v57, %v5132_v60  ;;  %v17128_v28 = vpop.f32.mrb[158].mxu1  ;;  %v13419_v17 = vpack.c.bf16 %v5448_v22, %v5447_v5  ;;  %v18809_v4 = vld [vmem:[#allocation2 + $0x90] sm:$0xff] }
 0x46e   : > { %5419 = vst [vmem:[#allocation2 + $0x60] sm:$0xff] %v21382_v40  ;;  %v21394_v32 = vadd.f32 %v18808_v8, %v5356_v26  ;;  %v5265_v54 = vadd.f32 %v17727_v38, %v21326_v53  ;;  %v17733_v29 = vadd.f32 %v21273_v50, %v17128_v28  ;;  %v5135_v10 = vpop.f32.mrb[159].mxu1  ;;  %v5613_v16 = vpack.c.bf16 %v21360_v55, %v21352_v61  ;;  %v18810_v55 = vld [vmem:[#allocation2 + $0x80] sm:$0xff] }
 0x46f   : > { %5422 = vst [vmem:[#allocation2 + $0x78] sm:$0xff] %v21389_v21  ;;  %v5263_v19 = vadd.f32 %v17730_v9, %v21326_v53  ;;  %v17736_v33 = vadd.f32 %v21267_v43, %v5135_v10  ;;  %17148 = vmatpush3.bf16.msra.mxu0 %v18580_v18  ;;  %v18582_v43 = vld [vmem:[%s23926_s1 + $0x5d8] sm:$0xff]   ;;  %vm24603_vm14 = vnez %v24602_v12 }
 0x470   : > { %5420 = vst [vmem:[#allocation2 + $0x68] sm:$0xff] %v21394_v32  ;;  %vm5297_vm13 = vcmp.ge.f32.partialorder %v5265_v54, 0.0  ;;  %v5329_v57 = vmul.f32 0.2, %v5265_v54  ;;  %v5266_v37 = vadd.f32 %v17733_v29, %v21326_v53  ;;  %17149 = vmatprep.subr.bf16.mxu0 %v18581_v31  ;;  %v18811_v9 = vld [vmem:[#allocation2 + $0x98] sm:$0xff]  ;;  %v18583_v29 = vld [vmem:[%s23926_s1 + $0x5e0] sm:$0xff]  }
 0x471   : > { %vm5295_vm10 = vcmp.ge.f32.partialorder %v5263_v19, 0.0  ;;  %v5327_v14 = vmul.f32 0.2, %v5263_v19  ;;  %v5264_v50 = vadd.f32 %v17736_v33, %v21326_v53 }
 0x472   : > { %v5361_v18 = vsel %vm5297_vm13, %v5265_v54, %v5329_v57  ;;  %vm5298_vm12 = vcmp.ge.f32.partialorder %v5266_v37, 0.0  ;;  %v5330_v49 = vmul.f32 0.2, %v5266_v37  ;;  %13420 = vmatmul.mubr.msk.bf16.gmra.mrb[212].mxu0 %vm24601_vm2, %v13419_v17  ;;  %13543 = vmatmul.mubr.msk.bf16.gmra.mrb[248].mxu1 %vm24603_vm14, %v13419_v17  ;;  %v5450_v54 = vld [vmem:[#allocation2 + $0x47] sm:$0xff] }
 0x473   : > { %v21413_v41 = vadd.f32 %v18809_v4, %v5361_v18  ;;  %v5359_v47 = vsel %vm5295_vm10, %v5263_v19, %v5327_v14  ;;  %vm5296_vm0 = vcmp.ge.f32.partialorder %v5264_v50, 0.0  ;;  %v5328_v48 = vmul.f32 0.2, %v5264_v50  ;;  %v17131_v61 = vpop.f32.mrb[160].mxu1  ;;  %6044 = vmatprep.mubr.bf16.mxu0 %v5613_v16  ;;  %6518 = vmatprep.mubr.bf16.mxu1 %v5613_v16 }
 0x474   : > { %v21415_v38 = vadd.f32 %v18810_v55, %v5359_v47  ;;  %v5362_v60 = vsel %vm5298_vm12, %v5266_v37, %v5330_v49  ;;  %v17739_v39 = vadd.f32 %v21283_v20, %v17131_v61  ;;  %v5148_v26 = vpop.f32.mrb[161].mxu1  ;;  %17150 = vmatpush3.bf16.msra.mxu0 %v18581_v31  ;;  %v18812_v20 = vld [vmem:[#allocation2 + $0x88] sm:$0xff]  ;;  %v5449_v37 = vld [vmem:[#allocation2 + $0x3f] sm:$0xff]  ;;  %v5616_v18 = vpack.c.bf16 %v21356_v2, %v21350_v42 }
 0x475   : > { %5425 = vst [vmem:[#allocation2 + $0x90] sm:$0xff] %v21413_v41  ;;  %v21419_v28 = vadd.f32 %v18811_v9, %v5362_v60  ;;  %v5360_v5 = vsel %vm5296_vm0, %v5264_v50, %v5328_v48  ;;  %v17742_v22 = vadd.f32 %v21277_v35, %v5148_v26  ;;  %v17132_v8 = vpop.f32.mrb[162].mxu1  ;;  %17151 = vmatprep.subr.bf16.mxu0 %v18582_v43  ;;  %v18814_v61 = vld [vmem:[#allocation2 + $0xa0] sm:$0xff]  ;;  %v18815_v9 = vld [vmem:[#allocation2 + $0xb8] sm:$0xff] }
 0x476   : > { %5423 = vst [vmem:[#allocation2 + $0x80] sm:$0xff] %v21415_v38  ;;  %v21426_v10 = vadd.f32 %v18812_v20, %v5360_v5  ;;  %v5269_v31 = vadd.f32 %v17739_v39, %v21326_v53  ;;  %v17745_v19 = vadd.f32 %v21285_v46, %v17132_v8  ;;  %v5151_v33 = vpop.f32.mrb[163].mxu1  ;;  %v13422_v50 = vpack.c.bf16 %v5450_v54, %v5449_v37  ;;  %v5451_v20 = vld [vmem:[#allocation2 + $0x4f] sm:$0xff] }
 0x477   : > { %5426 = vst [vmem:[#allocation2 + $0x98] sm:$0xff] %v21419_v28  ;;  %v5267_v35 = vadd.f32 %v17742_v22, %v21326_v53  ;;  %v17748_v57 = vadd.f32 %v21279_v59, %v5151_v33  ;;  %v18584_v59 = vld [vmem:[%s23926_s1 + $0x5e8] sm:$0xff]   ;;  %vm24604_vm12 = vnez %v24576_v13 }
 0x478   : > { %5424 = vst [vmem:[#allocation2 + $0x88] sm:$0xff] %v21426_v10  ;;  %vm5301_vm0 = vcmp.ge.f32.partialorder %v5269_v31, 0.0  ;;  %v5333_v17 = vmul.f32 0.2, %v5269_v31  ;;  %v5270_v14 = vadd.f32 %v17745_v19, %v21326_v53  ;;  %17152 = vmatpush3.bf16.msra.mxu0 %v18582_v43  ;;  %v18813_v43 = vld [vmem:[#allocation2 + $0xb0] sm:$0xff] }
 0x479   : > { %vm5299_vm13 = vcmp.ge.f32.partialorder %v5267_v35, 0.0  ;;  %v5331_v16 = vmul.f32 0.2, %v5267_v35  ;;  %v5268_v46 = vadd.f32 %v17748_v57, %v21326_v53  ;;  %17153 = vmatprep.subr.bf16.mxu0 %v18583_v29  ;;  %v18585_v19 = vld [vmem:[%s23926_s1 + $0x5f0] sm:$0xff]  }
 0x47a   : > { %v5365_v49 = vsel %vm5301_vm0, %v5269_v31, %v5333_v17  ;;  %vm5302_vm10 = vcmp.ge.f32.partialorder %v5270_v14, 0.0  ;;  %v5334_v4 = vmul.f32 0.2, %v5270_v14  ;;  %13423 = vmatmul.mubr.msk.bf16.gmra.mrb[216].mxu0 %vm24603_vm14, %v13422_v50  ;;  %13546 = vmatmul.mubr.msk.bf16.gmra.mrb[252].mxu1 %vm24604_vm12, %v13422_v50  ;;  %v5452_v31 = vld [vmem:[#allocation2 + $0x57] sm:$0xff] }
 0x47b   : > { %v21445_v47 = vadd.f32 %v18813_v43, %v5365_v49  ;;  %v5363_v48 = vsel %vm5299_vm13, %v5267_v35, %v5331_v16  ;;  %vm5300_vm2 = vcmp.ge.f32.partialorder %v5268_v46, 0.0  ;;  %v5332_v42 = vmul.f32 0.2, %v5268_v46  ;;  %v17135_v2 = vpop.f32.mrb[164].mxu1  ;;  %6052 = vmatprep.mubr.bf16.mxu0 %v5616_v18  ;;  %6526 = vmatprep.mubr.bf16.mxu1 %v5616_v18 }
 0x47c   : > { %v21447_v55 = vadd.f32 %v18814_v61, %v5363_v48  ;;  %v5366_v60 = vsel %vm5302_vm10, %v5270_v14, %v5334_v4  ;;  %v17751_v39 = vadd.f32 %v21295_v63, %v17135_v2  ;;  %v5164_v26 = vpop.f32.mrb[165].mxu1  ;;  %17154 = vmatpush3.bf16.msra.mxu0 %v18583_v29  ;;  %v18816_v63 = vld [vmem:[#allocation2 + $0xa8] sm:$0xff]  ;;  %v13425_v50 = vpack.c.bf16 %v5452_v31, %v5451_v20  ;;  %v18818_v48 = vld [vmem:[#allocation2 + $0xc0] sm:$0xff] }
 0x47d   : > { %5429 = vst [vmem:[#allocation2 + $0xb0] sm:$0xff] %v21445_v47  ;;  %v21451_v5 = vadd.f32 %v18815_v9, %v5366_v60  ;;  %v5364_v22 = vsel %vm5300_vm2, %v5268_v46, %v5332_v42  ;;  %v17754_v8 = vadd.f32 %v21289_v15, %v5164_v26  ;;  %v17136_v54 = vpop.f32.mrb[166].mxu1  ;;  %17155 = vmatprep.subr.bf16.mxu0 %v18584_v59  ;;  %v21489_v20 = vld [vmem:[%s23926_s1 + $0x500] sm:$0xff]  }
 0x47e   : > { %5427 = vst [vmem:[#allocation2 + $0xa0] sm:$0xff] %v21447_v55  ;;  %v21458_v29 = vadd.f32 %v18816_v63, %v5364_v22  ;;  %v5273_v33 = vadd.f32 %v17751_v39, %v21326_v53  ;;  %v17757_v35 = vadd.f32 %v21297_v24, %v17136_v54  ;;  %v5167_v57 = vpop.f32.mrb[167].mxu1  ;;  %v5619_v24 = vpack.c.bf16 %v21394_v32, %v21382_v40  ;;  %v18819_v39 = vld [vmem:[#allocation2 + $0xd8] sm:$0xff]  ;;  %v5454_v54 = vld [vmem:[#allocation2 + $0x67] sm:$0xff] }
 0x47f   : > { %5430 = vst [vmem:[#allocation2 + $0xb8] sm:$0xff] %v21451_v5  ;;  %v5271_v15 = vadd.f32 %v17754_v8, %v21326_v53  ;;  %v17760_v37 = vadd.f32 %v21291_v7, %v5167_v57  ;;  %v18586_v7 = vld [vmem:[%s23926_s1 + $0x5f8] sm:$0xff]   ;;  %vm24605_vm10 = vnez %v24580_v6 }
 0x480   : > { %5428 = vst [vmem:[#allocation2 + $0xa8] sm:$0xff] %v21458_v29  ;;  %vm5305_vm2 = vcmp.ge.f32.partialorder %v5273_v33, 0.0  ;;  %v5337_v17 = vmul.f32 0.2, %v5273_v33  ;;  %v5274_v14 = vadd.f32 %v17757_v35, %v21326_v53  ;;  %17156 = vmatpush3.bf16.msra.mxu0 %v18584_v59  ;;  %v18817_v59 = vld [vmem:[#allocation2 + $0xd0] sm:$0xff]  ;;  %v5453_v57 = vld [vmem:[#allocation2 + $0x5f] sm:$0xff] }
 0x481   : > { %vm5303_vm0 = vcmp.ge.f32.partialorder %v5271_v15, 0.0  ;;  %v5335_v16 = vmul.f32 0.2, %v5271_v15  ;;  %v5272_v46 = vadd.f32 %v17760_v37, %v21326_v53  ;;  %17157 = vmatprep.subr.bf16.mxu0 %v18585_v19 }
 0x482   : > { %v5369_v18 = vsel %vm5305_vm2, %v5273_v33, %v5337_v17  ;;  %vm5306_vm13 = vcmp.ge.f32.partialorder %v5274_v14, 0.0  ;;  %v5338_v49 = vmul.f32 0.2, %v5274_v14  ;;  %13426 = vmatmul.mubr.msk.bf16.gmra.mrb[220].mxu0 %vm24604_vm12, %v13425_v50  ;;  %13549 = vmatmul.mubr.msk.bf16.gmra.mrb[0].mxu1 %vm24605_vm10, %v13425_v50  ;;  %v21501_v17 = vpack.c.bf16 %v5454_v54, %v5453_v57 }
 0x483   : > { %v21477_v4 = vadd.f32 %v18817_v59, %v5369_v18  ;;  %v5367_v43 = vsel %vm5303_vm0, %v5271_v15, %v5335_v16  ;;  %vm5304_vm14 = vcmp.ge.f32.partialorder %v5272_v46, 0.0  ;;  %v5336_v40 = vmul.f32 0.2, %v5272_v46  ;;  %v17139_v32 = vpop.f32.mrb[168].mxu1  ;;  %6060 = vmatprep.mubr.bf16.mxu0 %v5619_v24  ;;  %6534 = vmatprep.mubr.bf16.mxu1 %v5619_v24 }
 0x484   : > { %v21479_v42 = vadd.f32 %v18818_v48, %v5367_v43  ;;  %v5370_v2 = vsel %vm5306_vm13, %v5274_v14, %v5338_v49  ;;  %v17763_v61 = vadd.f32 %v21307_v0, %v17139_v32  ;;  %v5180_v60 = vpop.f32.mrb[169].mxu1  ;;  %17158 = vmatpush3.bf16.msra.mxu0 %v18585_v19  ;;  %v18820_v0 = vld [vmem:[#allocation2 + $0xc8] sm:$0xff]  ;;  %v5622_v50 = vpack.c.bf16 %v21389_v21, %v21379_v30  ;;  %v18822_v21 = vld [vmem:[#allocation2 + $0xe0] sm:$0xff]  ;;  %v18823_v32 = vld [vmem:[#allocation2 + $0xf8] sm:$0xff] }
 0x485   : > { %5433 = vst [vmem:[#allocation2 + $0xd0] sm:$0xff] %v21477_v4  ;;  %v21483_v26 = vadd.f32 %v18819_v39, %v5370_v2  ;;  %v5368_v9 = vsel %vm5304_vm14, %v5272_v46, %v5336_v40  ;;  %v17766_v22 = vadd.f32 %v21301_v45, %v5180_v60  ;;  %v17140_v8 = vpop.f32.mrb[170].mxu1  ;;  %17159 = vmatprep.subr.bf16.mxu0 %v18586_v7  ;;  %v18821_v46 = vld [vmem:[#allocation2 + $0xf0] sm:$0xff] }
 0x486   : > { %5431 = vst [vmem:[#allocation2 + $0xc0] sm:$0xff] %v21479_v42  ;;  %v21492_v31 = vadd.f32 %v18820_v0, %v5368_v9  ;;  %v5277_v19 = vadd.f32 %v17763_v61, %v21326_v53  ;;  %v17769_v63 = vadd.f32 %v21309_v52, %v17140_v8  ;;  %v5183_v33 = vpop.f32.mrb[171].mxu1  ;;  %v5455_v39 = vld [vmem:[#allocation2 + $0x6f] sm:$0xff]  ;;  %v5456_v9 = vld [vmem:[#allocation2 + $0x77] sm:$0xff] }
 0x487   : > { %5434 = vst [vmem:[#allocation2 + $0xd8] sm:$0xff] %v21483_v26  ;;  %v5275_v45 = vadd.f32 %v17766_v22, %v21326_v53  ;;  %v17772_v35 = vadd.f32 %v21303_v36, %v5183_v33  ;;  %v18824_v22 = vld [vmem:[#allocation2 + $0xe8] sm:$0xff] }
 0x488   : > { %5432 = vst [vmem:[#allocation2 + $0xc8] sm:$0xff] %v21492_v31  ;;  %vm5309_vm14 = vcmp.ge.f32.partialorder %v5277_v19, 0.0  ;;  %v5341_v15 = vmul.f32 0.2, %v5277_v19  ;;  %v5278_v37 = vadd.f32 %v17769_v63, %v21326_v53  ;;  %17160 = vmatpush3.bf16.msra.mxu0 %v18586_v7 }
 0x489   : > { %vm5307_vm2 = vcmp.ge.f32.partialorder %v5275_v45, 0.0  ;;  %v5339_v14 = vmul.f32 0.2, %v5275_v45  ;;  %v5276_v52 = vadd.f32 %v17772_v35, %v21326_v53  ;;  %17193 = vmatprep.subr.bf16.mxu0 %v21489_v20 }
 0x48a   : > { %v5373_v36 = vsel %vm5309_vm14, %v5277_v19, %v5341_v15  ;;  %vm5310_vm0 = vcmp.ge.f32.partialorder %v5278_v37, 0.0  ;;  %v5342_v16 = vmul.f32 0.2, %v5278_v37  ;;  %13429 = vmatmul.mubr.msk.bf16.gmra.mrb[224].mxu0 %vm24605_vm10, %v21501_v17  ;;  %13552 = vmatmul.mubr.msk.bf16.gmra.mrb[4].mxu1 %vm24583_vm8, %v21501_v17 }
 0x48b   : > { %v21513_v24 = vadd.f32 %v18821_v46, %v5373_v36  ;;  %v5371_v7 = vsel %vm5307_vm2, %v5275_v45, %v5339_v14  ;;  %vm5308_vm13 = vcmp.ge.f32.partialorder %v5276_v52, 0.0  ;;  %v5340_v18 = vmul.f32 0.2, %v5276_v52  ;;  %v17143_v30 = vpop.f32.mrb[172].mxu1  ;;  %6068 = vmatprep.mubr.bf16.mxu0 %v5622_v50  ;;  %6542 = vmatprep.mubr.bf16.mxu1 %v5622_v50  ;;  %v18827_v36 = vld [vmem:[#allocation2 + $0x118] sm:$0xff] }
 0x48c   : > { %v21515_v49 = vadd.f32 %v18822_v21, %v5371_v7  ;;  %v5374_v59 = vsel %vm5310_vm0, %v5278_v37, %v5342_v16  ;;  %v17775_v43 = vadd.f32 %v21319_v25, %v17143_v30  ;;  %v5196_v40 = vpop.f32.mrb[173].mxu1  ;;  %v21532_v45 = vpack.c.bf16 %v5456_v9, %v5455_v39  ;;  %v5458_v7 = vld [vmem:[#allocation2 + $0x87] sm:$0xff]  ;;  %v5457_v21 = vld [vmem:[#allocation2 + $0x7f] sm:$0xff] }
 0x48d   : > { %5437 = vst [vmem:[#allocation2 + $0xf0] sm:$0xff] %v21513_v24  ;;  %v21519_v48 = vadd.f32 %v18823_v32, %v5374_v59  ;;  %v5372_v2 = vsel %vm5308_vm13, %v5276_v52, %v5340_v18  ;;  %v17778_v61 = vadd.f32 %v21313_v3, %v5196_v40  ;;  %v17144_v60 = vpop.f32.mrb[174].mxu1  ;;  %v18828_v18 = vld [vmem:[#allocation2 + $0x108] sm:$0xff]  ;;  %v21555_v59 = vpack.c.bf16 %v5458_v7, %v5457_v21  ;;  %v5460_v32 = vld [vmem:[#allocation2 + $0x97] sm:$0xff] }
 0x48e   : > { %5435 = vst [vmem:[#allocation2 + $0xe0] sm:$0xff] %v21515_v49  ;;  %v21523_v8 = vadd.f32 %v18824_v22, %v5372_v2  ;;  %v5281_v54 = vadd.f32 %v17775_v43, %v21326_v53  ;;  %v17781_v25 = vadd.f32 %v21321_v1, %v17144_v60  ;;  %v5199_v0 = vpop.f32.mrb[175].mxu1  ;;  %v5625_v1 = vpack.c.bf16 %v21426_v10, %v21415_v38  ;;  %v18826_v38 = vld [vmem:[#allocation2 + $0x100] sm:$0xff]  ;;  %v5459_v40 = vld [vmem:[#allocation2 + $0x8f] sm:$0xff] }
 0x48f   : > { %5438 = vst [vmem:[#allocation2 + $0xf8] sm:$0xff] %v21519_v48  ;;  %v5279_v19 = vadd.f32 %v17778_v61, %v21326_v53  ;;  %v17784_v63 = vadd.f32 %v21315_v11, %v5199_v0  ;;  %v18825_v11 = vld [vmem:[#allocation2 + $0x110] sm:$0xff]  ;;  %v5628_v43 = vpack.c.bf16 %v21419_v28, %v21413_v41  ;;  %v21565_v2 = vpack.c.bf16 %v5460_v32, %v5459_v40  ;;  %v5462_v41 = vld [vmem:[#allocation2 + $0xa7] sm:$0xff]  ;;  %v5461_v28 = vld [vmem:[#allocation2 + $0x9f] sm:$0xff] }
 0x490   : > { %5436 = vst [vmem:[#allocation2 + $0xe8] sm:$0xff] %v21523_v8  ;;  %vm5313_vm14 = vcmp.ge.f32.partialorder %v5281_v54, 0.0  ;;  %v5345_v3 = vmul.f32 0.2, %v5281_v54  ;;  %v5282_v33 = vadd.f32 %v17781_v25, %v21326_v53  ;;  %v5631_v61 = vpack.c.bf16 %v21458_v29, %v21447_v55  ;;  %v5463_v55 = vld [vmem:[#allocation2 + $0xaf] sm:$0xff]  ;;  %v5464_v29 = vld [vmem:[#allocation2 + $0xb7] sm:$0xff] }
 0x491   : > { %vm5311_vm2 = vcmp.ge.f32.partialorder %v5279_v19, 0.0  ;;  %v5343_v35 = vmul.f32 0.2, %v5279_v19  ;;  %v5280_v57 = vadd.f32 %v17784_v63, %v21326_v53  ;;  %v21575_v60 = vpack.c.bf16 %v5462_v41, %v5461_v28  ;;  %v24606_v0 = vld [vmem:[#allocation17_spill] sm:$0xff]  ;;  %v5541_v21 = vld [vmem:[#allocation2 + $0x21] sm:$0xff] }
 0x492   : > { %v5377_v15 = vsel %vm5313_vm14, %v5281_v54, %v5345_v3  ;;  %vm5314_vm0 = vcmp.ge.f32.partialorder %v5282_v33, 0.0  ;;  %v5346_v37 = vmul.f32 0.2, %v5282_v33  ;;  %13432 = vmatmul.mubr.msk.bf16.gmra.mrb[228].mxu0 %vm24583_vm8, %v21532_v45  ;;  %13555 = vmatmul.mubr.msk.bf16.gmra.mrb[8].mxu1 %vm24584_vm7, %v21532_v45  ;;  %v5634_v39 = vpack.c.bf16 %v21451_v5, %v21445_v47  ;;  %v5466_v47 = vld [vmem:[#allocation2 + $0xc7] sm:$0xff]  ;;  %v5465_v5 = vld [vmem:[#allocation2 + $0xbf] sm:$0xff]  ;;  %v24607_v3 = vld [vmem:[#allocation21_spill] sm:$0xff] }
 0x493   : > { %v21543_v14 = vadd.f32 %v18825_v11, %v5377_v15  ;;  %v5375_v52 = vsel %vm5311_vm2, %v5279_v19, %v5343_v35  ;;  %vm5312_vm13 = vcmp.ge.f32.partialorder %v5280_v57, 0.0  ;;  %v5344_v53 = vmul.f32 0.2, %v5280_v57  ;;  %6076 = vmatprep.mubr.bf16.mxu0 %v5625_v1  ;;  %6550 = vmatprep.mubr.bf16.mxu1 %v5625_v1  ;;  %v5546_v41 = vld [vmem:[#allocation2 + $0x49] sm:$0xff]  ;;  %v5543_v28 = vld [vmem:[#allocation2 + $0x31] sm:$0xff] }
 0x494   : > { %v21545_v10 = vadd.f32 %v18826_v38, %v5375_v52  ;;  %v5378_v50 = vsel %vm5314_vm0, %v5282_v33, %v5346_v37  ;;  %v13443_v9 = vpack.c.bf16 %v5464_v29, %v5463_v55  ;;  %v5637_v22 = vpack.c.bf16 %v21492_v31, %v21479_v42  ;;  %v5467_v42 = vld [vmem:[#allocation2 + $0xcf] sm:$0xff]  ;;  %v5468_v31 = vld [vmem:[#allocation2 + $0xd7] sm:$0xff] }
 0x495   : > { %5441 = vst [vmem:[#allocation2 + $0x110] sm:$0xff] %v21543_v14  ;;  %v21548_v16 = vadd.f32 %v18827_v36, %v5378_v50  ;;  %v5376_v46 = vsel %vm5312_vm13, %v5280_v57, %v5344_v53  ;;  %v13446_v54 = vpack.c.bf16 %v5466_v47, %v5465_v5  ;;  %v5640_v25 = vpack.c.bf16 %v21483_v26, %v21477_v4  ;;  %v5469_v15 = vld [vmem:[#allocation2 + $0xdf] sm:$0xff]  ;;  %v24609_v36 = vld [vmem:[#allocation28_spill] sm:$0xff]  ;;  %v18589_v47 = vld [vmem:[%s23926_s1 + $0x510] sm:$0xff]  }
 0x496   : > { %5439 = vst [vmem:[#allocation2 + $0x100] sm:$0xff] %v21545_v10  ;;  %v21551_v30 = vadd.f32 %v18828_v18, %v5376_v46  ;;  %v13449_v19 = vpack.c.bf16 %v5468_v31, %v5467_v42  ;;  %v5643_v63 = vpack.c.bf16 %v21523_v8, %v21515_v49  ;;  %v5646_v49 = vpack.c.bf16 %v21519_v48, %v21513_v24  ;;  %v24608_v8 = vld [vmem:[#allocation26_spill] sm:$0xff]  ;;  %v18588_v55 = vld [vmem:[%s23926_s1 + $0x508] sm:$0xff]  }
 0x497   : > { %5442 = vst [vmem:[#allocation2 + $0x118] sm:$0xff] %v21548_v16  ;;  %v5470_v33 = vld [vmem:[#allocation2 + $0xe7] sm:$0xff]  ;;  %v5471_v52 = vld [vmem:[#allocation2 + $0xef] sm:$0xff]  ;;  %v5472_v53 = vld [vmem:[#allocation2 + $0xf7] sm:$0xff]  ;;  %v5801_v7 = vpack.c.bf16 %v21548_v16, %v21543_v14 }
 0x498   : > { %5440 = vst [vmem:[#allocation2 + $0x108] sm:$0xff] %v21551_v30  ;;  %v13452_v11 = vpack.c.bf16 %v5470_v33, %v5469_v15  ;;  %v13455_v38 = vpack.c.bf16 %v5472_v53, %v5471_v52  ;;  %v5649_v50 = vpack.c.bf16 %v21551_v30, %v21545_v10  ;;  %v24610_v18 = vld [vmem:[#allocation30_spill] sm:$0xff]  ;;  %v5545_v16 = vld [vmem:[#allocation2 + $0x41] sm:$0xff]  ;;  %v24622_v53 = vld [vmem:[#allocation41_spill] sm:$0xff] }
 0x499   : > { %vm24611_vm14 = vnez %v24610_v18  ;;  %v5544_v14 = vld [vmem:[#allocation2 + $0x39] sm:$0xff]  ;;  %v21637_v29 = vpack.c.bf16 %v5546_v41, %v5545_v16  ;;  %v5547_v42 = vld [vmem:[#allocation2 + $0x51] sm:$0xff]  ;;  %v5561_v41 = vld [vmem:[#allocation2 + $0xc1] sm:$0xff] }
 0x49a   : > { %13435 = vmatmul.mubr.msk.bf16.gmra.mrb[232].mxu0 %vm24584_vm7, %v21555_v59  ;;  %13558 = vmatmul.mubr.msk.bf16.gmra.mrb[12].mxu1 %vm24585_vm4, %v21555_v59  ;;  %v5548_v5 = vld [vmem:[#allocation2 + $0x59] sm:$0xff]  ;;  %v5551_v15 = vld [vmem:[#allocation2 + $0x71] sm:$0xff] }
 0x49b   : > { %6084 = vmatprep.mubr.bf16.mxu0 %v5628_v43  ;;  %6558 = vmatprep.mubr.bf16.mxu1 %v5628_v43  ;;  %v5542_v43 = vld [vmem:[#allocation2 + $0x29] sm:$0xff]  ;;  %v21649_v31 = vpack.c.bf16 %v5548_v5, %v5547_v42  ;;  %v5552_v33 = vld [vmem:[#allocation2 + $0x79] sm:$0xff] }
 0x49c   : > { %v21625_v32 = vpack.c.bf16 %v5542_v43, %v5541_v21  ;;  %v24626_v43 = vld [vmem:[#allocation44_spill] sm:$0xff]  ;;  %v5560_v16 = vld [vmem:[#allocation2 + $0xb9] sm:$0xff] }
 0x49d   : > { %v5473_v48 = vld [vmem:[#allocation2 + $0xff] sm:$0xff] }
 0x49e   : > { %v5701_v30 = vld [vmem:[#allocation2 + $0x117] sm:$0xff] }
 0x49f   : > { %v5474_v24 = vld [vmem:[#allocation2 + $0x107] sm:$0xff]  ;;  %v5700_v10 = vld [vmem:[#allocation2 + $0x10f] sm:$0xff]  ;;  %v5564_v42 = vld [vmem:[#allocation2 + $0xd9] sm:$0xff] }
 0x4a0   : > { %v13458_v46 = vpack.c.bf16 %v5474_v24, %v5473_v48  ;;  %v13461_v40 = vpack.c.bf16 %v5701_v30, %v5700_v10  ;;  %v5556_v24 = vld [vmem:[#allocation2 + $0x99] sm:$0xff]  ;;  %v5557_v48 = vld [vmem:[#allocation2 + $0xa1] sm:$0xff] }
 0x4a1   : > { %v18594_v30 = vld [vmem:[%s23926_s1 + $0x538] sm:$0xff]  }
 0x4a2   : > { %13438 = vmatmul.mubr.msk.bf16.gmra.mrb[236].mxu0 %vm24585_vm4, %v21565_v2  ;;  %13561 = vmatmul.mubr.msk.bf16.gmra.mrb[16].mxu1 %vm24547_vm9, %v21565_v2 }
 0x4a3   : > { %6092 = vmatprep.mubr.bf16.mxu0 %v5631_v61  ;;  %6566 = vmatprep.mubr.bf16.mxu1 %v5631_v61  ;;  %v24612_v61 = vld [vmem:[#allocation31_spill] sm:$0xff] }
 0x4a4   : > { %vm24613_vm2 = vnez %v24612_v61 }
 0x4aa   : > { %13441 = vmatmul.mubr.msk.bf16.gmra.mrb[240].mxu0 %vm24547_vm9, %v21575_v60  ;;  %13564 = vmatmul.mubr.msk.bf16.gmra.mrb[20].mxu1 %vm24549_vm1, %v21575_v60 }
 0x4ab   : > { %6100 = vmatprep.mubr.bf16.mxu0 %v5634_v39  ;;  %6574 = vmatprep.mubr.bf16.mxu1 %v5634_v39  ;;  %v21632_v39 = vpack.c.bf16 %v5544_v14, %v5543_v28  ;;  %v18595_v14 = vld [vmem:[%s23926_s1 + $0x640] sm:$0xff]   ;;  %v5562_v28 = vld [vmem:[#allocation2 + $0xc9] sm:$0xff] }
 0x4ac   : > { %v21699_v5 = vpack.c.bf16 %v5562_v28, %v5561_v41  ;;  %v5736_v41 = vld [vmem:[#allocation2 + $0x111] sm:$0xff]  ;;  %v5737_v28 = vld [vmem:[#allocation2 + $0x119] sm:$0xff] }
 0x4b2   : > { %13444 = vmatmul.mubr.msk.bf16.gmra.mrb[244].mxu0 %vm24549_vm1, %v13443_v9  ;;  %13567 = vmatmul.mubr.msk.bf16.gmra.mrb[24].mxu1 %vm24551_vm3, %v13443_v9  ;;  %v24614_v9 = vld [vmem:[#allocation33_spill] sm:$0xff] }
 0x4b3   : > { %6108 = vmatprep.mubr.bf16.mxu0 %v5637_v22  ;;  %6582 = vmatprep.mubr.bf16.mxu1 %v5637_v22  ;;  %vm24615_vm0 = vnez %v24614_v9  ;;  %v24616_v22 = vld [vmem:[#allocation34_spill] sm:$0xff] }
 0x4b4   : > { %vm24617_vm13 = vnez %v24616_v22 }
 0x4ba   : > { %13447 = vmatmul.mubr.msk.bf16.gmra.mrb[248].mxu0 %vm24551_vm3, %v13446_v54  ;;  %13570 = vmatmul.mubr.msk.bf16.gmra.mrb[28].mxu1 %vm24553_vm11, %v13446_v54  ;;  %v5549_v54 = vld [vmem:[#allocation2 + $0x61] sm:$0xff] }
 0x4bb   : > { %6116 = vmatprep.mubr.bf16.mxu0 %v5640_v25  ;;  %6590 = vmatprep.mubr.bf16.mxu1 %v5640_v25  ;;  %v5550_v25 = vld [vmem:[#allocation2 + $0x69] sm:$0xff] }
 0x4c0   : > { %v15785_v4 = vpop.f32.mrb[240].mxu1 }
 0x4c1   : > { %v15786_v26 = vpop.f32.mrb[241].mxu1 }
 0x4c2   : > { %13450 = vmatmul.mubr.msk.bf16.gmra.mrb[252].mxu0 %vm24553_vm11, %v13449_v19  ;;  %13573 = vmatmul.mubr.msk.bf16.gmra.mrb[32].mxu1 %vm24555_vm5, %v13449_v19  ;;  %v21603_v35 = vadd.f32 %v15786_v26, %v15785_v4  ;;  %v15788_v57 = vpop.f32.mrb[242].mxu1  ;;  %v18590_v19 = vld [vmem:[%s23926_s1 + $0x518] sm:$0xff]   ;;  %v18591_v26 = vld [vmem:[%s23926_s1 + $0x520] sm:$0xff]   ;;  %vm24627_vm11 = vnez %v24626_v43 }
 0x4c3   : > { %6124 = vmatprep.mubr.bf16.mxu0 %v5643_v63  ;;  %6598 = vmatprep.mubr.bf16.mxu1 %v5643_v63  ;;  %v15789_v1 = vpop.f32.mrb[243].mxu1  ;;  %v21654_v63 = vpack.c.bf16 %v5550_v25, %v5549_v54  ;;  %v24620_v4 = vld [vmem:[#allocation38_spill] sm:$0xff]  ;;  %v24630_v54 = vld [vmem:[#allocation47_spill] sm:$0xff]  ;;  %v24632_v25 = vld [vmem:[#allocation48_spill] sm:$0xff] }
 0x4c4   : > { %v21605_v37 = vadd.f32 %v15789_v1, %v15788_v57  ;;  %v5553_v57 = vld [vmem:[#allocation2 + $0x81] sm:$0xff]  ;;  %v5554_v1 = vld [vmem:[#allocation2 + $0x89] sm:$0xff]  ;;  %vm24631_vm1 = vnez %v24630_v54  ;;  %vm24633_vm9 = vnez %v24632_v25 }
 0x4c5   : > { %v21670_v52 = vpack.c.bf16 %v5554_v1, %v5553_v57 }
 0x4ca   : > { %13453 = vmatmul.mubr.msk.bf16.gmra.mrb[0].mxu0 %vm24555_vm5, %v13452_v11  ;;  %13576 = vmatmul.mubr.msk.bf16.gmra.mrb[36].mxu1 %vm24558_vm15, %v13452_v11  ;;  %v21665_v11 = vpack.c.bf16 %v5552_v33, %v5551_v15  ;;  %v5563_v33 = vld [vmem:[#allocation2 + $0xd1] sm:$0xff] }
 0x4cb   : > { %6132 = vmatprep.mubr.bf16.mxu0 %v5646_v49  ;;  %6606 = vmatprep.mubr.bf16.mxu1 %v5646_v49  ;;  %v18592_v49 = vld [vmem:[%s23926_s1 + $0x528] sm:$0xff]   ;;  %v21707_v57 = vpack.c.bf16 %v5564_v42, %v5563_v33  ;;  %v24634_v15 = vld [vmem:[#allocation50_spill] sm:$0xff]  ;;  %v24644_v33 = vld [vmem:[#allocation57_spill] sm:$0xff] }
 0x4cc   : > { %vm24635_vm4 = vnez %v24634_v15  ;;  %v5540_v42 = vld [vmem:[#allocation2 + $0x19] sm:$0xff]  ;;  %vm24645_vm12 = vnez %v24644_v33 }
 0x4d2   : > { %13456 = vmatmul.mubr.msk.bf16.gmra.mrb[4].mxu0 %vm24558_vm15, %v13455_v38  ;;  %13579 = vmatmul.mubr.msk.bf16.gmra.mrb[40].mxu1 %vm24560_vm6, %v13455_v38  ;;  %vm24623_vm15 = vnez %v24622_v53  ;;  %v24624_v38 = vld [vmem:[#allocation42_spill] sm:$0xff] }
 0x4d3   : > { %6140 = vmatprep.mubr.bf16.mxu0 %v5649_v50  ;;  %6614 = vmatprep.mubr.bf16.mxu1 %v5649_v50  ;;  %vm24625_vm5 = vnez %v24624_v38  ;;  %v18593_v50 = vld [vmem:[%s23926_s1 + $0x530] sm:$0xff]  }
 0x4da   : > { %13459 = vmatmul.mubr.msk.bf16.gmra.mrb[8].mxu0 %vm24560_vm6, %v13458_v46  ;;  %13582 = vmatmul.mubr.msk.bf16.gmra.mrb[44].mxu1 %vm24611_vm14, %v13458_v46  ;;  %vm24621_vm6 = vnez %v24620_v4  ;;  %v5558_v46 = vld [vmem:[#allocation2 + $0xa9] sm:$0xff] }
 0x4db   : > { %6148 = vmatprep.mubr.bf16.mxu0 %v5801_v7  ;;  %v5555_v7 = vld [vmem:[#allocation2 + $0x91] sm:$0xff]  ;;  %v21686_v21 = vpack.c.bf16 %v5558_v46, %v5557_v48  ;;  %v5570_v48 = vld [vmem:[#allocation2 + $0x109] sm:$0xff] }
 0x4dc   : > { %v21681_v10 = vpack.c.bf16 %v5556_v24, %v5555_v7  ;;  %v5569_v24 = vld [vmem:[#allocation2 + $0x101] sm:$0xff]  ;;  %v5567_v46 = vld [vmem:[#allocation2 + $0xf1] sm:$0xff] }
 0x4e2   : > { %13462 = vmatmul.mubr.msk.bf16.gmra.mrb[12].mxu0 %vm24611_vm14, %v13461_v40  ;;  %v24628_v40 = vld [vmem:[#allocation45_spill] sm:$0xff] }
 0x4e3   : > { %17161 = vmatprep.mubr.msk.bf16.mxu0 %vm24613_vm2, %v21625_v32  ;;  %vm24629_vm3 = vnez %v24628_v40 }
 0x4ea   : > { %17162 = vmatmul.mubr.msk.bf16.vlgmr.msra.gmra.mrb[16].mxu0 %vm24615_vm0, %v21632_v39 }
 0x4eb   : > { %17165 = vmatprep.mubr.msk.bf16.mxu0 %vm24617_vm13, %v21637_v29  ;;  %17194 = vmatpush3.bf16.msra.mxu0 %v21489_v20  ;;  %v24618_v20 = vld [vmem:[#allocation37_spill] sm:$0xff] }
 0x4ec   : > { %17195 = vmatprep.subr.bf16.mxu0 %v18588_v55  ;;  %vm24619_vm14 = vnez %v24618_v20 }
 0x4ef   : > { %17196 = vmatpush3.bf16.msra.mxu0 %v18588_v55  ;;  %v5559_v55 = vld [vmem:[#allocation2 + $0xb1] sm:$0xff] }
 0x4f0   : > { %17197 = vmatprep.subr.bf16.mxu0 %v18589_v47 }
 0x4f2   : > { %17166 = vmatmul.mubr.msk.bf16.gmra.mrb[20].mxu0 %vm24619_vm14, %v21649_v31 }
 0x4f3   : > { %17169 = vmatprep.mubr.msk.bf16.mxu0 %vm24621_vm6, %v21654_v63  ;;  %17198 = vmatpush3.bf16.msra.mxu0 %v18589_v47  ;;  %v21697_v47 = vpack.c.bf16 %v5560_v16, %v5559_v55  ;;  %v24641_v16 = vld [vmem:[#allocation55_spill] sm:$0xff]  ;;  %v5539_v55 = vld [vmem:[#allocation2 + $0x11] sm:$0xff] }
 0x4f4   : > { %17199 = vmatprep.subr.bf16.mxu0 %v18590_v19  ;;  %vm24642_vm10 = vnez %v24641_v16  ;;  %v6851_v16 = vld [vmem:[#allocation2 + $0x48] sm:$0xff] }
 0x4f7   : > { %17200 = vmatpush3.bf16.msra.mxu0 %v18590_v19  ;;  %v5565_v19 = vld [vmem:[#allocation2 + $0xe1] sm:$0xff] }
 0x4f8   : > { %17201 = vmatprep.subr.bf16.mxu0 %v18591_v26 }
 0x4fa   : > { %17170 = vmatmul.mubr.msk.bf16.gmra.mrb[24].mxu0 %vm24623_vm15, %v21665_v11 }
 0x4fb   : > { %17173 = vmatprep.mubr.msk.bf16.mxu0 %vm24625_vm5, %v21670_v52  ;;  %17202 = vmatpush3.bf16.msra.mxu0 %v18591_v26  ;;  %v5566_v26 = vld [vmem:[#allocation2 + $0xe9] sm:$0xff] }
 0x4fc   : > { %17203 = vmatprep.subr.bf16.mxu0 %v18592_v49  ;;  %v21709_v1 = vpack.c.bf16 %v5566_v26, %v5565_v19  ;;  %v21727_v19 = vpack.c.bf16 %v5737_v28, %v5736_v41  ;;  %v13584_v26 = vpack.c.bf16 %v5540_v42, %v5539_v55  ;;  %v18600_v41 = vld [vmem:[%s23926_s1 + $0x610] sm:$0xff]   ;;  %v18603_v28 = vld [vmem:[%s23926_s1 + $0x660] sm:$0xff]  }
 0x4fd   : > { %v18604_v55 = vld [vmem:[%s23926_s1 + $0x620] sm:$0xff]   ;;  %v18607_v42 = vld [vmem:[%s23926_s1 + $0x670] sm:$0xff]  }
 0x4fe   : > { %24643 = vst [vmem:[#allocation49_spill] sm:$0xff] %v21727_v19 }
 0x4ff   : > { %17204 = vmatpush3.bf16.msra.mxu0 %v18592_v49  ;;  %v24636_v49 = vld [vmem:[#allocation51_spill] sm:$0xff] }
 0x500   : > { %17205 = vmatprep.subr.bf16.mxu0 %v18593_v50  ;;  %vm24637_vm7 = vnez %v24636_v49 }
 0x502   : > { %17174 = vmatmul.mubr.msk.bf16.gmra.mrb[28].mxu0 %vm24627_vm11, %v21681_v10 }
 0x503   : > { %17177 = vmatprep.mubr.msk.bf16.mxu0 %vm24629_vm3, %v21686_v21  ;;  %17206 = vmatpush3.bf16.msra.mxu0 %v18593_v50  ;;  %v5568_v50 = vld [vmem:[#allocation2 + $0xf9] sm:$0xff] }
 0x504   : > { %17207 = vmatprep.subr.bf16.mxu0 %v18594_v30  ;;  %v21717_v7 = vpack.c.bf16 %v5568_v50, %v5567_v46  ;;  %v18596_v50 = vld [vmem:[%s23926_s1 + $0x600] sm:$0xff]   ;;  %v18599_v46 = vld [vmem:[%s23926_s1 + $0x650] sm:$0xff]  }
 0x506   : > { %24638 = vst [vmem:[#allocation46_spill] sm:$0xff] %v21717_v7 }
 0x507   : > { %17208 = vmatpush3.bf16.msra.mxu0 %v18594_v30  ;;  %v21719_v30 = vpack.c.bf16 %v5570_v48, %v5569_v24  ;;  %v18597_v24 = vld [vmem:[%s23926_s1 + $0x648] sm:$0xff]  }
 0x508   : > { %15905 = vmatprep.subr.bf16.mxu0 %v18595_v14  ;;  %v24639_v14 = vld [vmem:[#allocation54_spill] sm:$0xff]  ;;  %v18598_v48 = vld [vmem:[%s23926_s1 + $0x608] sm:$0xff]  }
 0x509   : > { %vm24640_vm8 = vnez %v24639_v14 }
 0x50a   : > { %17178 = vmatmul.mubr.msk.bf16.gmra.mrb[32].mxu0 %vm24631_vm1, %v21697_v47 }
 0x50b   : > { %17181 = vmatprep.mubr.msk.bf16.mxu0 %vm24633_vm9, %v21699_v5 }
 0x512   : > { %17182 = vmatmul.mubr.msk.bf16.gmra.mrb[36].mxu0 %vm24635_vm4, %v21707_v57 }
 0x513   : > { %17185 = vmatprep.mubr.msk.bf16.mxu0 %vm24637_vm7, %v21709_v1 }
 0x51a   : > { %17186 = vmatmul.mubr.msk.bf16.gmra.mrb[40].mxu0 %vm24640_vm8, %v21717_v7 }
 0x51b   : > { %17189 = vmatprep.mubr.msk.bf16.mxu0 %vm24642_vm10, %v21719_v30 }
 0x522   : > { %17190 = vmatmul.mubr.msk.bf16.gmra.mrb[44].mxu0 %vm24645_vm12, %v21727_v19 }
 0x523   : > { %17209 = vmatprep.mubr.msk.bf16.mxu0 %vm24613_vm2, %v13584_v26 }
 0x52a   : > { %17210 = vmatmul.mubr.msk.bf16.vlgmr.msra.gmra.mrb[16].mxu0 %vm24615_vm0, %v21625_v32  ;;  %v18601_v32 = vld [vmem:[%s23926_s1 + $0x658] sm:$0xff]  }
 0x52b   : > { %17213 = vmatprep.mubr.msk.bf16.mxu0 %vm24617_vm13, %v21632_v39  ;;  %15906 = vmatpush3.bf16.msra.mxu0 %v18596_v50  ;;  %v18602_v39 = vld [vmem:[%s23926_s1 + $0x618] sm:$0xff]  }
 0x52c   : > { %15907 = vmatprep.subr.bf16.mxu0 %v18597_v24 }
 0x52f   : > { %15908 = vmatpush3.bf16.msra.mxu0 %v18598_v48 }
 0x530   : > { %15909 = vmatprep.subr.bf16.mxu0 %v18599_v46 }
 0x532   : > { %17214 = vmatmul.mubr.msk.bf16.gmra.mrb[20].mxu0 %vm24619_vm14, %v21637_v29  ;;  %v18605_v29 = vld [vmem:[%s23926_s1 + $0x668] sm:$0xff]  }
 0x533   : > { %17217 = vmatprep.mubr.msk.bf16.mxu0 %vm24621_vm6, %v21649_v31  ;;  %15910 = vmatpush3.bf16.msra.mxu0 %v18600_v41  ;;  %v18606_v31 = vld [vmem:[%s23926_s1 + $0x628] sm:$0xff]  }
 0x534   : > { %15911 = vmatprep.subr.bf16.mxu0 %v18601_v32 }
 0x537   : > { %15912 = vmatpush3.bf16.msra.mxu0 %v18602_v39 }
 0x538   : > { %15913 = vmatprep.subr.bf16.mxu0 %v18603_v28 }
 0x53a   : > { %17218 = vmatmul.mubr.msk.bf16.gmra.mrb[24].mxu0 %vm24623_vm15, %v21654_v63 }
 0x53b   : > { %17221 = vmatprep.mubr.msk.bf16.mxu0 %vm24625_vm5, %v21665_v11  ;;  %15914 = vmatpush3.bf16.msra.mxu0 %v18604_v55  ;;  %v18608_v11 = vld [vmem:[%s23926_s1 + $0x630] sm:$0xff]   ;;  %v18609_v55 = vld [vmem:[%s23926_s1 + $0x678] sm:$0xff]  }
 0x53c   : > { %15915 = vmatprep.subr.bf16.mxu0 %v18605_v29 }
 0x53d   : > { %v15649_v26 = vpop.f32.mrb[208].mxu0  ;;  %v15791_v50 = vpop.f32.mrb[244].mxu1 }
 0x53e   : > { %v15650_v24 = vpop.f32.mrb[209].mxu0  ;;  %v15792_v48 = vpop.f32.mrb[245].mxu1 }
 0x53f   : > { %v15651_v46 = vadd.f32 %v15650_v24, %v15649_v26  ;;  %v15793_v63 = vadd.f32 %v15792_v48, %v15791_v50  ;;  %v15652_v41 = vpop.f32.mrb[210].mxu0  ;;  %v15794_v32 = vpop.f32.mrb[246].mxu1  ;;  %15916 = vmatpush3.bf16.msra.mxu0 %v18606_v31  ;;  %v18610_v31 = vld [vmem:[%s23926_s1 + $0x638] sm:$0xff]  }
 0x540   : > { %v15653_v39 = vpop.f32.mrb[211].mxu0  ;;  %v15795_v28 = vpop.f32.mrb[247].mxu1  ;;  %15917 = vmatprep.subr.bf16.mxu0 %v18607_v42 }
 0x541   : > { %v15654_v29 = vadd.f32 %v15653_v39, %v15652_v41  ;;  %v15796_v19 = vadd.f32 %v15795_v28, %v15794_v32  ;;  %v21795_v38 = vadd.f32 %v21603_v35, %v15651_v46  ;;  %v21812_v35 = vld [vmem:[%s23926_s1 + $0x680] sm:$0xff]  }
 0x542   : > { %17222 = vmatmul.mubr.msk.bf16.gmra.mrb[28].mxu0 %vm24627_vm11, %v21670_v52 }
 0x543   : > { %24646 = vst [vmem:[#allocation24_spill] sm:$0xff] %v21795_v38  ;;  %17225 = vmatprep.mubr.msk.bf16.mxu0 %vm24629_vm3, %v21681_v10  ;;  %15918 = vmatpush3.bf16.msra.mxu0 %v18608_v11  ;;  %v21807_v42 = vadd.f32 %v21605_v37, %v15654_v29 }
 0x544   : > { %15919 = vmatprep.subr.bf16.mxu0 %v18609_v55 }
 0x545   : > { %24647 = vst [vmem:[#allocation25_spill] sm:$0xff] %v21807_v42  ;;  %v15655_v26 = vpop.f32.mrb[212].mxu0  ;;  %v15797_v52 = vpop.f32.mrb[248].mxu1 }
 0x546   : > { %v15656_v50 = vpop.f32.mrb[213].mxu0  ;;  %v15798_v24 = vpop.f32.mrb[249].mxu1 }
 0x547   : > { %v15657_v48 = vadd.f32 %v15656_v50, %v15655_v26  ;;  %v15799_v46 = vadd.f32 %v15798_v24, %v15797_v52  ;;  %v15658_v41 = vpop.f32.mrb[214].mxu0  ;;  %v15800_v32 = vpop.f32.mrb[250].mxu1  ;;  %15920 = vmatpush3.bf16.msra.mxu0 %v18610_v31 }
 0x548   : > { %v15659_v11 = vpop.f32.mrb[215].mxu0  ;;  %v15801_v39 = vpop.f32.mrb[251].mxu1  ;;  %17241 = vmatprep.subr.bf16.mxu0 %v21812_v35 }
 0x549   : > { %v15660_v37 = vadd.f32 %v15659_v11, %v15658_v41  ;;  %v15802_v28 = vadd.f32 %v15801_v39, %v15800_v32  ;;  %v21815_v55 = vadd.f32 %v15793_v63, %v15657_v48 }
 0x54a   : > { %17226 = vmatmul.mubr.msk.bf16.gmra.mrb[32].mxu0 %vm24631_vm1, %v21686_v21 }
 0x54b   : > { %24648 = vst [vmem:[#allocation27_spill] sm:$0xff] %v21815_v55  ;;  %17229 = vmatprep.mubr.msk.bf16.mxu0 %vm24633_vm9, %v21697_v47  ;;  %v21823_v29 = vadd.f32 %v15796_v19, %v15660_v37 }
 0x54d   : > { %24649 = vst [vmem:[#allocation29_spill] sm:$0xff] %v21823_v29  ;;  %v15661_v26 = vpop.f32.mrb[216].mxu0  ;;  %v15803_v31 = vpop.f32.mrb[252].mxu1 }
 0x54e   : > { %v15662_v52 = vpop.f32.mrb[217].mxu0  ;;  %v15804_v50 = vpop.f32.mrb[253].mxu1 }
 0x54f   : > { %v15663_v24 = vadd.f32 %v15662_v52, %v15661_v26  ;;  %v15805_v42 = vadd.f32 %v15804_v50, %v15803_v31  ;;  %v15664_v41 = vpop.f32.mrb[218].mxu0  ;;  %v15806_v32 = vpop.f32.mrb[254].mxu1 }
 0x550   : > { %v15665_v63 = vpop.f32.mrb[219].mxu0  ;;  %v15807_v48 = vpop.f32.mrb[255].mxu1 }
 0x551   : > { %v15666_v11 = vadd.f32 %v15665_v63, %v15664_v41  ;;  %v15808_v39 = vadd.f32 %v15807_v48, %v15806_v32  ;;  %v21825_v55 = vadd.f32 %v15799_v46, %v15663_v24 }
 0x552   : > { %17230 = vmatmul.mubr.msk.bf16.gmra.mrb[36].mxu0 %vm24635_vm4, %v21699_v5 }
 0x553   : > { %24650 = vst [vmem:[#allocation32_spill] sm:$0xff] %v21825_v55  ;;  %17233 = vmatprep.mubr.msk.bf16.mxu0 %vm24637_vm7, %v21707_v57  ;;  %v21833_v19 = vadd.f32 %v15802_v28, %v15666_v11 }
 0x555   : > { %24651 = vst [vmem:[#allocation35_spill] sm:$0xff] %v21833_v19  ;;  %v15667_v37 = vpop.f32.mrb[220].mxu0  ;;  %v15809_v26 = vpop.f32.mrb[0].mxu1 }
 0x556   : > { %v15668_v31 = vpop.f32.mrb[221].mxu0  ;;  %v15810_v52 = vpop.f32.mrb[1].mxu1 }
 0x557   : > { %v15669_v50 = vadd.f32 %v15668_v31, %v15667_v37  ;;  %v15811_v29 = vadd.f32 %v15810_v52, %v15809_v26  ;;  %v15670_v41 = vpop.f32.mrb[222].mxu0  ;;  %v15812_v32 = vpop.f32.mrb[2].mxu1  ;;  %v6849_v52 = vld [vmem:[#allocation2 + $0x38] sm:$0xff] }
 0x558   : > { %v15671_v46 = vpop.f32.mrb[223].mxu0  ;;  %v15813_v24 = vpop.f32.mrb[3].mxu1 }
 0x559   : > { %v15672_v63 = vadd.f32 %v15671_v46, %v15670_v41  ;;  %v15814_v48 = vadd.f32 %v15813_v24, %v15812_v32  ;;  %v21835_v55 = vadd.f32 %v15805_v42, %v15669_v50  ;;  %v6848_v24 = vld [vmem:[#allocation2 + $0x30] sm:$0xff] }
 0x55a   : > { %17234 = vmatmul.mubr.msk.bf16.gmra.mrb[40].mxu0 %vm24640_vm8, %v21709_v1  ;;  %v6945_v14 = vpack.c.bf16 %v6849_v52, %v6848_v24  ;;  %vm24675_vm8 = vnez %v24608_v8 }
 0x55b   : > { %24652 = vst [vmem:[#allocation36_spill] sm:$0xff] %v21835_v55  ;;  %17237 = vmatprep.mubr.msk.bf16.mxu0 %vm24642_vm10, %v21717_v7  ;;  %v21843_v28 = vadd.f32 %v15808_v39, %v15672_v63  ;;  %vm24672_vm10 = vnez %v24550_v44 }
 0x55d   : > { %24653 = vst [vmem:[#allocation39_spill] sm:$0xff] %v21843_v28  ;;  %v15673_v11 = vpop.f32.mrb[224].mxu0  ;;  %v15815_v37 = vpop.f32.mrb[4].mxu1 }
 0x55e   : > { %v15674_v26 = vpop.f32.mrb[225].mxu0  ;;  %v15816_v31 = vpop.f32.mrb[5].mxu1 }
 0x55f   : > { %v15675_v19 = vadd.f32 %v15674_v26, %v15673_v11  ;;  %v15817_v41 = vadd.f32 %v15816_v31, %v15815_v37  ;;  %v15676_v32 = vpop.f32.mrb[226].mxu0  ;;  %v15818_v42 = vpop.f32.mrb[6].mxu1  ;;  %v6784_v37 = vld [vmem:[#allocation2 + $0x2f] sm:$0xff]  ;;  %v6785_v26 = vld [vmem:[#allocation2 + $0x37] sm:$0xff] }
 0x560   : > { %v15677_v50 = vpop.f32.mrb[227].mxu0  ;;  %v15819_v46 = vpop.f32.mrb[7].mxu1 }
 0x561   : > { %v15678_v55 = vadd.f32 %v15677_v50, %v15676_v32  ;;  %v15820_v38 = vadd.f32 %v15819_v46, %v15818_v42  ;;  %v21845_v49 = vadd.f32 %v15811_v29, %v15675_v19  ;;  %v13704_v50 = vpack.c.bf16 %v6785_v26, %v6784_v37  ;;  %v6850_v46 = vld [vmem:[#allocation2 + $0x40] sm:$0xff] }
 0x562   : > { %17238 = vmatmul.mubr.msk.bf16.gmra.mrb[44].mxu0 %vm24645_vm12, %v21719_v30  ;;  %v6948_v24 = vpack.c.bf16 %v6851_v16, %v6850_v46  ;;  %vm24657_vm12 = vnez %v24563_v51  ;;  %v6787_v26 = vld [vmem:[#allocation2 + $0x47] sm:$0xff]  ;;  %v6852_v46 = vld [vmem:[#allocation2 + $0x50] sm:$0xff] }
 0x563   : > { %24654 = vst [vmem:[#allocation52_spill] sm:$0xff] %v21845_v49  ;;  %7217 = vmatprep.mubr.bf16.mxu0 %v6945_v14  ;;  %v21850_v39 = vadd.f32 %v15814_v48, %v15678_v55  ;;  %v18612_v14 = vld [vmem:[%s23926_s1 + $0x688] sm:$0xff]  }
 0x565   : > { %24655 = vst [vmem:[#allocation11_spill] sm:$0xff] %v21850_v39  ;;  %v15679_v63 = vpop.f32.mrb[228].mxu0  ;;  %v15821_v11 = vpop.f32.mrb[8].mxu1 }
 0x566   : > { %v15680_v31 = vpop.f32.mrb[229].mxu0  ;;  %v15822_v28 = vpop.f32.mrb[9].mxu1 }
 0x567   : > { %v15681_v7 = vadd.f32 %v15680_v31, %v15679_v63  ;;  %v15823_v32 = vadd.f32 %v15822_v28, %v15821_v11  ;;  %v15682_v42 = vpop.f32.mrb[230].mxu0  ;;  %v15824_v52 = vpop.f32.mrb[10].mxu1  ;;  %v18613_v63 = vld [vmem:[%s23926_s1 + $0x690] sm:$0xff]  }
 0x568   : > { %v15683_v29 = vpop.f32.mrb[231].mxu0  ;;  %v15825_v19 = vpop.f32.mrb[11].mxu1 }
 0x569   : > { %v15684_v55 = vadd.f32 %v15683_v29, %v15682_v42  ;;  %v15826_v48 = vadd.f32 %v15825_v19, %v15824_v52  ;;  %v21855_v39 = vadd.f32 %v15817_v41, %v15681_v7  ;;  %v6853_v7 = vld [vmem:[#allocation2 + $0x58] sm:$0xff] }
 0x56a   : > { %13705 = vmatmul.mubr.msk.bf16.vlgmr.msra.gmra.mrb[48].mxu0 %vm24657_vm12, %v13704_v50  ;;  %v6786_v19 = vld [vmem:[#allocation2 + $0x3f] sm:$0xff]  ;;  %vm24659_vm12 = vnez %v24568_v23 }
 0x56b   : > { %24656 = vst [vmem:[#allocation15_spill] sm:$0xff] %v21855_v39  ;;  %7225 = vmatprep.mubr.bf16.mxu0 %v6948_v24  ;;  %17242 = vmatpush3.bf16.msra.mxu0 %v21812_v35  ;;  %v21860_v28 = vadd.f32 %v15820_v38, %v15684_v55  ;;  %v13707_v50 = vpack.c.bf16 %v6787_v26, %v6786_v19  ;;  %v18614_v55 = vld [vmem:[%s23926_s1 + $0x698] sm:$0xff]  }
 0x56c   : > { %17243 = vmatprep.subr.bf16.mxu0 %v18612_v14  ;;  %v6951_v39 = vpack.c.bf16 %v6853_v7, %v6852_v46 }
 0x56d   : > { %24658 = vst [vmem:[#allocation9_spill] sm:$0xff] %v21860_v28  ;;  %v15685_v11 = vpop.f32.mrb[232].mxu0  ;;  %v15827_v37 = vpop.f32.mrb[12].mxu1 }
 0x56e   : > { %v15686_v31 = vpop.f32.mrb[233].mxu0  ;;  %v15828_v16 = vpop.f32.mrb[13].mxu1 }
 0x56f   : > { %v15687_v41 = vadd.f32 %v15686_v31, %v15685_v11  ;;  %v15829_v42 = vadd.f32 %v15828_v16, %v15827_v37  ;;  %v15688_v52 = vpop.f32.mrb[234].mxu0  ;;  %v15830_v29 = vpop.f32.mrb[14].mxu1  ;;  %17244 = vmatpush3.bf16.msra.mxu0 %v18612_v14  ;;  %v18615_v11 = vld [vmem:[%s23926_s1 + $0x6a0] sm:$0xff]   ;;  %v6788_v31 = vld [vmem:[#allocation2 + $0x4f] sm:$0xff]  ;;  %v6789_v16 = vld [vmem:[#allocation2 + $0x57] sm:$0xff] }
 0x570   : > { %v15689_v35 = vpop.f32.mrb[235].mxu0  ;;  %v15831_v38 = vpop.f32.mrb[15].mxu1  ;;  %17245 = vmatprep.subr.bf16.mxu0 %v18613_v63 }
 0x571   : > { %v15690_v24 = vadd.f32 %v15689_v35, %v15688_v52  ;;  %v15832_v28 = vadd.f32 %v15831_v38, %v15830_v29  ;;  %v21868_v49 = vadd.f32 %v15823_v32, %v15687_v41  ;;  %v6855_v32 = vld [vmem:[#allocation2 + $0x68] sm:$0xff]  ;;  %v6854_v38 = vld [vmem:[#allocation2 + $0x60] sm:$0xff] }
 0x572   : > { %13708 = vmatmul.mubr.msk.bf16.gmra.mrb[52].mxu0 %vm24659_vm12, %v13707_v50  ;;  %v18616_v50 = vld [vmem:[%s23926_s1 + $0x6a8] sm:$0xff]   ;;  %v6954_v23 = vpack.c.bf16 %v6855_v32, %v6854_v38  ;;  %vm24661_vm12 = vnez %v24602_v12 }
 0x573   : > { %7233 = vmatprep.mubr.bf16.mxu0 %v6951_v39  ;;  %17246 = vmatpush3.bf16.msra.mxu0 %v18613_v63  ;;  %v21872_v14 = vadd.f32 %v15826_v48, %v15690_v24  ;;  %v13710_v63 = vpack.c.bf16 %v6789_v16, %v6788_v31 }
 0x574   : > { %17247 = vmatprep.subr.bf16.mxu0 %v18614_v55 }
 0x575   : > { %24660 = vst [vmem:[#allocation53_spill] sm:$0xff] %v21872_v14  ;;  %v15691_v37 = vpop.f32.mrb[236].mxu0  ;;  %v15833_v26 = vpop.f32.mrb[16].mxu1 }
 0x576   : > { %v15692_v52 = vpop.f32.mrb[237].mxu0  ;;  %v15834_v7 = vpop.f32.mrb[17].mxu1 }
 0x577   : > { %v15693_v41 = vadd.f32 %v15692_v52, %v15691_v37  ;;  %v15835_v29 = vadd.f32 %v15834_v7, %v15833_v26  ;;  %v15694_v19 = vpop.f32.mrb[238].mxu0  ;;  %v15836_v35 = vpop.f32.mrb[18].mxu1  ;;  %17248 = vmatpush3.bf16.msra.mxu0 %v18614_v55  ;;  %v18617_v37 = vld [vmem:[%s23926_s1 + $0x6b0] sm:$0xff]   ;;  %v6857_v7 = vld [vmem:[#allocation2 + $0x78] sm:$0xff] }
 0x578   : > { %v15695_v39 = vpop.f32.mrb[239].mxu0  ;;  %v15837_v48 = vpop.f32.mrb[19].mxu1  ;;  %17249 = vmatprep.subr.bf16.mxu0 %v18615_v11 }
 0x579   : > { %v15696_v46 = vadd.f32 %v15695_v39, %v15694_v19  ;;  %v15838_v24 = vadd.f32 %v15837_v48, %v15836_v35  ;;  %v21880_v14 = vadd.f32 %v15829_v42, %v15693_v41 }
 0x57a   : > { %13711 = vmatmul.mubr.msk.bf16.gmra.mrb[56].mxu0 %vm24661_vm12, %v13710_v63  ;;  %vm24662_vm12 = vnez %v24576_v13 }
 0x57b   : > { %7241 = vmatprep.mubr.bf16.mxu0 %v6954_v23  ;;  %17250 = vmatpush3.bf16.msra.mxu0 %v18615_v11  ;;  %v21884_v55 = vadd.f32 %v15832_v28, %v15696_v46  ;;  %v6856_v11 = vld [vmem:[#allocation2 + $0x70] sm:$0xff]  ;;  %v18618_v28 = vld [vmem:[%s23926_s1 + $0x6b8] sm:$0xff]  }
 0x57c   : > { %17251 = vmatprep.subr.bf16.mxu0 %v18616_v50  ;;  %v6957_v48 = vpack.c.bf16 %v6857_v7, %v6856_v11 }
 0x57d   : > { %v15697_v26 = vpop.f32.mrb[240].mxu0  ;;  %v15839_v31 = vpop.f32.mrb[20].mxu1 }
 0x57e   : > { %v15698_v16 = vpop.f32.mrb[241].mxu0  ;;  %v15840_v52 = vpop.f32.mrb[21].mxu1 }
 0x57f   : > { %v15841_v32 = vadd.f32 %v15840_v52, %v15839_v31  ;;  %v15700_v42 = vpop.f32.mrb[242].mxu0  ;;  %v15842_v41 = vpop.f32.mrb[22].mxu1  ;;  %17252 = vmatpush3.bf16.msra.mxu0 %v18616_v50  ;;  %v15699_v19 = vadd.f32 %v15698_v16, %v15697_v26  ;;  %v6859_v52 = vld [vmem:[#allocation2 + $0x88] sm:$0xff] }
 0x580   : > { %v15701_v35 = vpop.f32.mrb[243].mxu0  ;;  %v15843_v23 = vpop.f32.mrb[23].mxu1  ;;  %17253 = vmatprep.subr.bf16.mxu0 %v18617_v37 }
 0x581   : > { %v15844_v39 = vadd.f32 %v15843_v23, %v15842_v41  ;;  %v21892_v63 = vadd.f32 %v15835_v29, %v15699_v19  ;;  %v15702_v38 = vadd.f32 %v15701_v35, %v15700_v42  ;;  %v6858_v35 = vld [vmem:[#allocation2 + $0x80] sm:$0xff] }
 0x582   : > { %13714 = vmatmul.mubr.msk.bf16.gmra.mrb[60].mxu0 %vm24662_vm12, %v21501_v17  ;;  %v6960_v17 = vpack.c.bf16 %v6859_v52, %v6858_v35  ;;  %vm24663_vm12 = vnez %v24580_v6 }
 0x583   : > { %7249 = vmatprep.mubr.bf16.mxu0 %v6957_v48  ;;  %17254 = vmatpush3.bf16.msra.mxu0 %v18617_v37  ;;  %v21897_v50 = vadd.f32 %v15838_v24, %v15702_v38 }
 0x584   : > { %17255 = vmatprep.subr.bf16.mxu0 %v18618_v28 }
 0x585   : > { %v15703_v46 = vpop.f32.mrb[244].mxu0  ;;  %v15845_v26 = vpop.f32.mrb[24].mxu1 }
 0x586   : > { %v15704_v31 = vpop.f32.mrb[245].mxu0  ;;  %v15846_v16 = vpop.f32.mrb[25].mxu1 }
 0x587   : > { %v15847_v12 = vadd.f32 %v15846_v16, %v15845_v26  ;;  %v15706_v41 = vpop.f32.mrb[246].mxu0  ;;  %v15848_v7 = vpop.f32.mrb[26].mxu1  ;;  %17256 = vmatpush3.bf16.msra.mxu0 %v18618_v28  ;;  %v15705_v29 = vadd.f32 %v15704_v31, %v15703_v46  ;;  %v6861_v46 = vld [vmem:[#allocation2 + $0x98] sm:$0xff] }
 0x588   : > { %v15707_v42 = vpop.f32.mrb[247].mxu0  ;;  %v15849_v19 = vpop.f32.mrb[27].mxu1 }
 0x589   : > { %v15850_v23 = vadd.f32 %v15849_v19, %v15848_v7  ;;  %v21899_v11 = vadd.f32 %v15841_v32, %v15705_v29  ;;  %v15708_v24 = vadd.f32 %v15707_v42, %v15706_v41  ;;  %v6860_v29 = vld [vmem:[#allocation2 + $0x90] sm:$0xff] }
 0x58a   : > { %13717 = vmatmul.mubr.msk.bf16.gmra.mrb[64].mxu0 %vm24663_vm12, %v21532_v45  ;;  %v6963_v42 = vpack.c.bf16 %v6861_v46, %v6860_v29  ;;  %vm24664_vm12 = vnez %v24534_v62 }
 0x58b   : > { %7257 = vmatprep.mubr.bf16.mxu0 %v6960_v17  ;;  %v21904_v37 = vadd.f32 %v15844_v39, %v15708_v24 }
 0x58d   : > { %v15709_v48 = vpop.f32.mrb[248].mxu0  ;;  %v15851_v38 = vpop.f32.mrb[28].mxu1 }
 0x58e   : > { %v15710_v26 = vpop.f32.mrb[249].mxu0  ;;  %v15852_v28 = vpop.f32.mrb[29].mxu1 }
 0x58f   : > { %v15853_v31 = vadd.f32 %v15852_v28, %v15851_v38  ;;  %v15712_v16 = vpop.f32.mrb[250].mxu0  ;;  %v15854_v13 = vpop.f32.mrb[30].mxu1  ;;  %v15711_v7 = vadd.f32 %v15710_v26, %v15709_v48  ;;  %v6863_v48 = vld [vmem:[#allocation2 + $0xa8] sm:$0xff] }
 0x590   : > { %v15713_v52 = vpop.f32.mrb[251].mxu0  ;;  %v15855_v32 = vpop.f32.mrb[31].mxu1 }
 0x591   : > { %v15856_v41 = vadd.f32 %v15855_v32, %v15854_v13  ;;  %v21906_v19 = vadd.f32 %v15847_v12, %v15711_v7  ;;  %v15714_v45 = vadd.f32 %v15713_v52, %v15712_v16  ;;  %v6862_v7 = vld [vmem:[#allocation2 + $0xa0] sm:$0xff] }
 0x592   : > { %13720 = vmatmul.mubr.msk.bf16.gmra.mrb[68].mxu0 %vm24664_vm12, %v21555_v59  ;;  %v6966_v52 = vpack.c.bf16 %v6863_v48, %v6862_v7  ;;  %vm24665_vm12 = vnez %v24538_v27 }
 0x593   : > { %7265 = vmatprep.mubr.bf16.mxu0 %v6963_v42  ;;  %v21911_v39 = vadd.f32 %v15850_v23, %v15714_v45 }
 0x595   : > { %v15715_v35 = vpop.f32.mrb[252].mxu0  ;;  %v15857_v17 = vpop.f32.mrb[32].mxu1 }
 0x596   : > { %v15716_v24 = vpop.f32.mrb[253].mxu0  ;;  %v15858_v38 = vpop.f32.mrb[33].mxu1 }
 0x597   : > { %v15859_v26 = vadd.f32 %v15858_v38, %v15857_v17  ;;  %v15718_v28 = vpop.f32.mrb[254].mxu0  ;;  %v15860_v6 = vpop.f32.mrb[34].mxu1  ;;  %v15717_v13 = vadd.f32 %v15716_v24, %v15715_v35  ;;  %v6865_v35 = vld [vmem:[#allocation2 + $0xb8] sm:$0xff] }
 0x598   : > { %v15719_v46 = vpop.f32.mrb[255].mxu0  ;;  %v15861_v12 = vpop.f32.mrb[35].mxu1 }
 0x599   : > { %v15862_v16 = vadd.f32 %v15861_v12, %v15860_v6  ;;  %v21913_v32 = vadd.f32 %v15853_v31, %v15717_v13  ;;  %v15720_v59 = vadd.f32 %v15719_v46, %v15718_v28  ;;  %v6864_v13 = vld [vmem:[#allocation2 + $0xb0] sm:$0xff] }
 0x59a   : > { %13723 = vmatmul.mubr.msk.bf16.gmra.mrb[72].mxu0 %vm24665_vm12, %v21565_v2  ;;  %v6969_v46 = vpack.c.bf16 %v6865_v35, %v6864_v13  ;;  %vm24667_vm12 = vnez %v24543_v56 }
 0x59b   : > { %7273 = vmatprep.mubr.bf16.mxu0 %v6966_v52  ;;  %v21918_v23 = vadd.f32 %v15856_v41, %v15720_v59  ;;  %v6800_v59 = vld [vmem:[#allocation2 + $0xaf] sm:$0xff] }
 0x59d   : > { %v15721_v29 = vpop.f32.mrb[0].mxu0  ;;  %v15863_v42 = vpop.f32.mrb[36].mxu1 }
 0x59e   : > { %v15722_v45 = vpop.f32.mrb[1].mxu0  ;;  %v15864_v17 = vpop.f32.mrb[37].mxu1 }
 0x59f   : > { %v15865_v24 = vadd.f32 %v15864_v17, %v15863_v42  ;;  %v15724_v38 = vpop.f32.mrb[2].mxu0  ;;  %v15866_v62 = vpop.f32.mrb[38].mxu1  ;;  %v15723_v6 = vadd.f32 %v15722_v45, %v15721_v29  ;;  %v6801_v42 = vld [vmem:[#allocation2 + $0xb7] sm:$0xff]  ;;  %v6867_v17 = vld [vmem:[#allocation2 + $0xc8] sm:$0xff] }
 0x5a0   : > { %v15725_v48 = vpop.f32.mrb[3].mxu0  ;;  %v15867_v31 = vpop.f32.mrb[39].mxu1 }
 0x5a1   : > { %v15868_v28 = vadd.f32 %v15867_v31, %v15866_v62  ;;  %v21920_v12 = vadd.f32 %v15859_v26, %v15723_v6  ;;  %v15726_v2 = vadd.f32 %v15725_v48, %v15724_v38  ;;  %v13728_v48 = vpack.c.bf16 %v6801_v42, %v6800_v59  ;;  %v6866_v31 = vld [vmem:[#allocation2 + $0xc0] sm:$0xff] }
 0x5a2   : > { %13726 = vmatmul.mubr.msk.bf16.gmra.mrb[76].mxu0 %vm24667_vm12, %v21575_v60  ;;  %v6972_v60 = vpack.c.bf16 %v6867_v17, %v6866_v31  ;;  %vm24669_vm12 = vnez %v24546_v34 }
 0x5a3   : > { %24666 = vst [vmem:[#allocation8_spill] sm:$0xff] %v21920_v12  ;;  %7281 = vmatprep.mubr.bf16.mxu0 %v6969_v46  ;;  %v21925_v41 = vadd.f32 %v15862_v16, %v15726_v2 }
 0x5a5   : > { %24668 = vst [vmem:[#allocation56_spill] sm:$0xff] %v21925_v41  ;;  %v15727_v7 = vpop.f32.mrb[4].mxu0  ;;  %v15869_v52 = vpop.f32.mrb[40].mxu1 }
 0x5a6   : > { %v15728_v29 = vpop.f32.mrb[5].mxu0  ;;  %v15870_v45 = vpop.f32.mrb[41].mxu1 }
 0x5a7   : > { %v15871_v27 = vadd.f32 %v15870_v45, %v15869_v52  ;;  %v15730_v62 = vpop.f32.mrb[6].mxu0  ;;  %v15872_v35 = vpop.f32.mrb[42].mxu1  ;;  %v15729_v26 = vadd.f32 %v15728_v29, %v15727_v7  ;;  %v6803_v45 = vld [vmem:[#allocation2 + $0xc7] sm:$0xff]  ;;  %v6869_v29 = vld [vmem:[#allocation2 + $0xd8] sm:$0xff] }
 0x5a8   : > { %v15731_v6 = vpop.f32.mrb[7].mxu0  ;;  %v15873_v38 = vpop.f32.mrb[43].mxu1 }
 0x5a9   : > { %v15874_v13 = vadd.f32 %v15873_v38, %v15872_v35  ;;  %v21927_v46 = vadd.f32 %v15865_v24, %v15729_v26  ;;  %v15732_v16 = vadd.f32 %v15731_v6, %v15730_v62  ;;  %v6802_v35 = vld [vmem:[#allocation2 + $0xbf] sm:$0xff]  ;;  %v6868_v6 = vld [vmem:[#allocation2 + $0xd0] sm:$0xff] }
 0x5aa   : > { %13729 = vmatmul.mubr.msk.bf16.gmra.mrb[80].mxu0 %vm24669_vm12, %v13728_v48  ;;  %v13731_v62 = vpack.c.bf16 %v6803_v45, %v6802_v35  ;;  %v6975_v48 = vpack.c.bf16 %v6869_v29, %v6868_v6  ;;  %vm24671_vm12 = vnez %v24548_v58  ;;  %v6872_v6 = vld [vmem:[#allocation2 + $0xf0] sm:$0xff] }
 0x5ab   : > { %7289 = vmatprep.mubr.bf16.mxu0 %v6972_v60  ;;  %v21931_v2 = vadd.f32 %v15868_v28, %v15732_v16 }
 0x5ac   : > { %v24702_v54 = vld [vmem:[#allocation56_spill] sm:$0xff] }
 0x5ad   : > { %24670 = vst [vmem:[#allocation40_spill] sm:$0xff] %v21931_v2  ;;  %v15733_v56 = vpop.f32.mrb[8].mxu0  ;;  %v15875_v52 = vpop.f32.mrb[44].mxu1 }
 0x5ae   : > { %v15734_v41 = vpop.f32.mrb[9].mxu0  ;;  %v15876_v7 = vpop.f32.mrb[45].mxu1 }
 0x5af   : > { %v15877_v12 = vadd.f32 %v15876_v7, %v15875_v52  ;;  %v15736_v59 = vpop.f32.mrb[10].mxu0  ;;  %v15878_v42 = vpop.f32.mrb[46].mxu1  ;;  %v15735_v17 = vadd.f32 %v15734_v41, %v15733_v56  ;;  %v6804_v52 = vld [vmem:[#allocation2 + $0xcf] sm:$0xff]  ;;  %v6805_v7 = vld [vmem:[#allocation2 + $0xd7] sm:$0xff] }
 0x5b0   : > { %v15737_v24 = vpop.f32.mrb[11].mxu0  ;;  %v15879_v26 = vpop.f32.mrb[47].mxu1  ;;  %v6871_v56 = vld [vmem:[#allocation2 + $0xe8] sm:$0xff]  ;;  %v13734_v35 = vpack.c.bf16 %v6805_v7, %v6804_v52  ;;  %v6877_v7 = vld [vmem:[#allocation2 + $0x118] sm:$0xff] }
 0x5b1   : > { %v15880_v38 = vadd.f32 %v15879_v26, %v15878_v42  ;;  %v21933_v31 = vadd.f32 %v15871_v27, %v15735_v17  ;;  %v15738_v28 = vadd.f32 %v15737_v24, %v15736_v59  ;;  %v6870_v42 = vld [vmem:[#allocation2 + $0xe0] sm:$0xff]  ;;  %v6873_v24 = vld [vmem:[#allocation2 + $0xf8] sm:$0xff] }
 0x5b2   : > { %13732 = vmatmul.mubr.msk.bf16.gmra.mrb[84].mxu0 %vm24671_vm12, %v13731_v62  ;;  %v6978_v29 = vpack.c.bf16 %v6871_v56, %v6870_v42  ;;  %v6807_v17 = vld [vmem:[#allocation2 + $0xe7] sm:$0xff]  ;;  %v6806_v26 = vld [vmem:[#allocation2 + $0xdf] sm:$0xff]  ;;  %vm24673_vm12 = vnez %v24606_v0  ;;  %v6812_v42 = vld [vmem:[#allocation2 + $0x10f] sm:$0xff] }
 0x5b3   : > { %7297 = vmatprep.mubr.bf16.mxu0 %v6975_v48  ;;  %v21937_v60 = vadd.f32 %v15874_v13, %v15738_v28  ;;  %v13737_v62 = vpack.c.bf16 %v6807_v17, %v6806_v26  ;;  %v6981_v48 = vpack.c.bf16 %v6873_v24, %v6872_v6  ;;  %v6810_v56 = vld [vmem:[#allocation2 + $0xff] sm:$0xff] }
 0x5b4   : > { %v18829_v17 = vld [vmem:[#allocation2] sm:$0xff] }
 0x5b5   : > { %v15739_v16 = vpop.f32.mrb[12].mxu0  ;;  %v21954_v24 = vpack.c.bf16 %v18829_v17, %v18829_v17  ;;  %v18620_v26 = vld [vmem:[%s23926_s1 + $0x780] sm:$0xff]  }
 0x5b6   : > { %v15740_v34 = vpop.f32.mrb[13].mxu0  ;;  %v6814_v6 = vld [vmem:[#allocation2 + $0x11f] sm:$0xff] }
 0x5b7   : > { %v15742_v41 = vpop.f32.mrb[14].mxu0  ;;  %v15741_v2 = vadd.f32 %v15740_v34, %v15739_v16  ;;  %v6808_v34 = vld [vmem:[#allocation2 + $0xef] sm:$0xff]  ;;  %v6874_v16 = vld [vmem:[#allocation2 + $0x100] sm:$0xff] }
 0x5b8   : > { %v15743_v45 = vpop.f32.mrb[15].mxu0 }
 0x5b9   : > { %v21939_v27 = vadd.f32 %v15877_v12, %v15741_v2  ;;  %v15744_v59 = vadd.f32 %v15743_v45, %v15742_v41  ;;  %v6809_v12 = vld [vmem:[#allocation2 + $0xf7] sm:$0xff]  ;;  %v6875_v2 = vld [vmem:[#allocation2 + $0x108] sm:$0xff] }
 0x5ba   : > { %13735 = vmatmul.mubr.msk.bf16.gmra.mrb[88].mxu0 %vm24672_vm10, %v13734_v35  ;;  %v13740_v28 = vpack.c.bf16 %v6809_v12, %v6808_v34  ;;  %v6984_v52 = vpack.c.bf16 %v6875_v2, %v6874_v16  ;;  %vm24674_vm10 = vnez %v24607_v3  ;;  %v6876_v45 = vld [vmem:[#allocation2 + $0x110] sm:$0xff]  ;;  %v6881_v34 = vld [vmem:[#allocation2 + $0x39] sm:$0xff]  ;;  %v6882_v16 = vld [vmem:[#allocation2 + $0x41] sm:$0xff] }
 0x5bb   : > { %7305 = vmatprep.mubr.bf16.mxu0 %v6978_v29  ;;  %v21943_v13 = vadd.f32 %v15880_v38, %v15744_v59  ;;  %v6811_v38 = vld [vmem:[#allocation2 + $0x107] sm:$0xff]  ;;  %v6987_v35 = vpack.c.bf16 %v6877_v7, %v6876_v45  ;;  %v6813_v29 = vld [vmem:[#allocation2 + $0x117] sm:$0xff] }
 0x5bc   : > { %v13743_v41 = vpack.c.bf16 %v6811_v38, %v6810_v56  ;;  %v18619_v59 = vld [vmem:[%s23926_s1 + $0x7c0] sm:$0xff]   ;;  %v6880_v2 = vld [vmem:[#allocation2 + $0x31] sm:$0xff]  ;;  %v18621_v38 = vld [vmem:[%s23926_s1 + $0x7c8] sm:$0xff]  }
 0x5bd   : > { %16041 = vmatprep.subr.bf16.mxu1 %v18619_v59  ;;  %v6885_v7 = vld [vmem:[#allocation2 + $0x59] sm:$0xff]  ;;  %v18622_v56 = vld [vmem:[%s23926_s1 + $0x788] sm:$0xff]   ;;  %v6884_v45 = vld [vmem:[#allocation2 + $0x51] sm:$0xff] }
 0x5be   : > { %16042 = vmatpush3.bf16.msra.mxu1 %v18620_v26  ;;  %v6889_v59 = vld [vmem:[#allocation2 + $0x79] sm:$0xff]  ;;  %v6888_v26 = vld [vmem:[#allocation2 + $0x71] sm:$0xff] }
 0x5bf   : > { %16043 = vmatprep.subr.bf16.mxu1 %v18621_v38  ;;  %v24683_v38 = vld [vmem:[#allocation49_spill] sm:$0xff] }
 0x5c2   : > { %13738 = vmatmul.mubr.msk.bf16.gmra.mrb[92].mxu0 %vm24673_vm12, %v13737_v62  ;;  %v13746_v62 = vpack.c.bf16 %v6813_v29, %v6812_v42  ;;  %16044 = vmatpush3.bf16.msra.mxu1 %v18622_v56  ;;  %v6886_v42 = vld [vmem:[#allocation2 + $0x61] sm:$0xff]  ;;  %v6887_v29 = vld [vmem:[#allocation2 + $0x69] sm:$0xff] }
 0x5c3   : > { %7313 = vmatprep.mubr.bf16.mxu0 %v6981_v48  ;;  %v6815_v48 = vld [vmem:[#allocation2 + $0x127] sm:$0xff]  ;;  %v13761_v17 = vpack.c.bf16 %v6887_v29, %v6886_v42 }
 0x5c4   : > { %v13749_v12 = vpack.c.bf16 %v6815_v48, %v6814_v6  ;;  %v6890_v6 = vld [vmem:[#allocation2 + $0x81] sm:$0xff]  ;;  %v6891_v48 = vld [vmem:[#allocation2 + $0x89] sm:$0xff] }
 0x5c5   : > { %v6911_v56 = vld [vmem:[#allocation2 + $0x129] sm:$0xff]  ;;  %v18632_v42 = vld [vmem:[%s23926_s1 + $0x6c0] sm:$0xff]  }
 0x5c6   : > { %v18634_v29 = vld [vmem:[%s23926_s1 + $0x6c8] sm:$0xff]  }
 0x5ca   : > { %13741 = vmatmul.mubr.msk.bf16.gmra.mrb[96].mxu0 %vm24674_vm10, %v13740_v28  ;;  %vm24676_vm10 = vnez %v24609_v36  ;;  %v13752_v28 = vpack.c.bf16 %v6881_v34, %v6880_v2  ;;  %v18623_v34 = vld [vmem:[%s23926_s1 + $0x7d0] sm:$0xff]   ;;  %v13767_v2 = vpack.c.bf16 %v6891_v48, %v6890_v6  ;;  %v18639_v6 = vld [vmem:[%s23926_s1 + $0x718] sm:$0xff]  }
 0x5cb   : > { %7321 = vmatprep.mubr.bf16.mxu0 %v6984_v52  ;;  %v6883_v52 = vld [vmem:[#allocation2 + $0x49] sm:$0xff]  ;;  %16045 = vmatprep.subr.bf16.mxu1 %v18623_v34  ;;  %v18640_v48 = vld [vmem:[%s23926_s1 + $0x6d8] sm:$0xff]  }
 0x5d2   : > { %13744 = vmatmul.mubr.msk.bf16.gmra.mrb[100].mxu0 %vm24675_vm8, %v13743_v41  ;;  %vm24677_vm8 = vnez %v24610_v18  ;;  %v13755_v41 = vpack.c.bf16 %v6883_v52, %v6882_v16  ;;  %v18625_v16 = vld [vmem:[%s23926_s1 + $0x7d8] sm:$0xff]  }
 0x5d3   : > { %7329 = vmatprep.mubr.bf16.mxu0 %v6987_v35  ;;  %v13758_v35 = vpack.c.bf16 %v6885_v7, %v6884_v45  ;;  %v18626_v52 = vld [vmem:[%s23926_s1 + $0x798] sm:$0xff]   ;;  %v6910_v7 = vld [vmem:[#allocation2 + $0x121] sm:$0xff] }
 0x5d4   : > { %v18629_v45 = vld [vmem:[%s23926_s1 + $0x7e8] sm:$0xff]  }
 0x5da   : > { %13747 = vmatmul.mubr.msk.bf16.gmra.mrb[104].mxu0 %vm24676_vm10, %v13746_v62  ;;  %v13764_v62 = vpack.c.bf16 %v6889_v59, %v6888_v26  ;;  %v18635_v59 = vld [vmem:[%s23926_s1 + $0x7f0] sm:$0xff]  }
 0x5db   : > { %7337 = vmatprep.mubr.bf16.mxu0 %v21954_v24  ;;  %v18637_v26 = vld [vmem:[%s23926_s1 + $0x7b0] sm:$0xff]  }
 0x5e2   : > { %13750 = vmatmul.mubr.msk.bf16.gmra.mrb[108].mxu0 %vm24677_vm8, %v13749_v12  ;;  %v18624_v12 = vld [vmem:[%s23926_s1 + $0x790] sm:$0xff]  }
 0x5e3   : > { %17257 = vmatprep.mubr.msk.bf16.mxu0 %vm24613_vm2, %v13752_v28  ;;  %16046 = vmatpush3.bf16.msra.mxu1 %v18624_v12  ;;  %v18832_v28 = vld [vmem:[#allocation2 + $0x38] sm:$0xff] }
 0x5e4   : > { %16047 = vmatprep.subr.bf16.mxu1 %v18625_v16 }
 0x5e7   : > { %16048 = vmatpush3.bf16.msra.mxu1 %v18626_v52 }
 0x5ea   : > { %17258 = vmatmul.mubr.msk.bf16.vlgmr.msra.gmra.mrb[16].mxu0 %vm24615_vm0, %v13755_v41  ;;  %v13797_v41 = vpack.c.bf16 %v6911_v56, %v6910_v7 }
 0x5eb   : > { %17261 = vmatprep.mubr.msk.bf16.mxu0 %vm24617_vm13, %v13758_v35  ;;  %v18631_v35 = vld [vmem:[%s23926_s1 + $0x700] sm:$0xff]  }
 0x5ec   : > { %16177 = vmatprep.subr.bf16.mxu0 %v18631_v35  ;;  %v18641_v35 = vld [vmem:[%s23926_s1 + $0x720] sm:$0xff]  }
 0x5ed   : > { %16178 = vmatpush3.bf16.msra.mxu0 %v18632_v42 }
 0x5f2   : > { %17262 = vmatmul.mubr.msk.bf16.gmra.mrb[20].mxu0 %vm24619_vm14, %v13761_v17  ;;  %v18636_v17 = vld [vmem:[%s23926_s1 + $0x710] sm:$0xff]  }
 0x5f3   : > { %17265 = vmatprep.mubr.msk.bf16.mxu0 %vm24621_vm6, %v13764_v62  ;;  %v18638_v62 = vld [vmem:[%s23926_s1 + $0x6d0] sm:$0xff]  }
 0x5fa   : > { %17266 = vmatmul.mubr.msk.bf16.gmra.mrb[24].mxu0 %vm24623_vm15, %v13767_v2 }
 0x5fb   : > { %17269 = vmatprep.mubr.msk.bf16.mxu0 %vm24625_vm5, %v21681_v10  ;;  %v24679_v10 = vld [vmem:[#allocation46_spill] sm:$0xff] }
 0x602   : > { %17270 = vmatmul.mubr.msk.bf16.gmra.mrb[28].mxu0 %vm24627_vm11, %v21686_v21 }
 0x603   : > { %17273 = vmatprep.mubr.msk.bf16.mxu0 %vm24629_vm3, %v21697_v47  ;;  %v18627_v47 = vld [vmem:[%s23926_s1 + $0x7e0] sm:$0xff]  }
 0x604   : > { %16049 = vmatprep.subr.bf16.mxu1 %v18627_v47  ;;  %v24687_v47 = vld [vmem:[#allocation24_spill] sm:$0xff] }
 0x60a   : > { %17274 = vmatmul.mubr.msk.bf16.gmra.mrb[32].mxu0 %vm24631_vm1, %v21699_v5  ;;  %v18628_v5 = vld [vmem:[%s23926_s1 + $0x7a0] sm:$0xff]  }
 0x60b   : > { %17277 = vmatprep.mubr.msk.bf16.mxu0 %vm24633_vm9, %v21707_v57  ;;  %16050 = vmatpush3.bf16.msra.mxu1 %v18628_v5  ;;  %v24681_v57 = vld [vmem:[#allocation54_spill] sm:$0xff] }
 0x60c   : > { %vm24682_vm9 = vnez %v24681_v57  ;;  %16051 = vmatprep.subr.bf16.mxu1 %v18629_v45 }
 0x612   : > { %17278 = vmatmul.mubr.msk.bf16.gmra.mrb[36].mxu0 %vm24635_vm4, %v21709_v1  ;;  %v24684_v1 = vld [vmem:[#allocation55_spill] sm:$0xff] }
 0x613   : > { %17281 = vmatprep.mubr.msk.bf16.mxu0 %vm24637_vm7, %v24679_v10  ;;  %vm24685_vm4 = vnez %v24684_v1  ;;  %vm24686_vm7 = vnez %v24644_v33  ;;  %v24699_v1 = vld [vmem:[#allocation9_spill] sm:$0xff] }
 0x61a   : > { %17282 = vmatmul.mubr.msk.bf16.gmra.mrb[40].mxu0 %vm24682_vm9, %v21719_v30  ;;  %v18630_v30 = vld [vmem:[%s23926_s1 + $0x7a8] sm:$0xff]  }
 0x61b   : > { %17285 = vmatprep.mubr.msk.bf16.mxu0 %vm24685_vm4, %v24683_v38  ;;  %16052 = vmatpush3.bf16.msra.mxu1 %v18630_v30  ;;  %v24688_v38 = vld [vmem:[#allocation25_spill] sm:$0xff] }
 0x61c   : > { %16053 = vmatprep.subr.bf16.mxu1 %v18635_v59  ;;  %v24689_v59 = vld [vmem:[#allocation27_spill] sm:$0xff] }
 0x61f   : > { %16054 = vmatpush3.bf16.msra.mxu1 %v18637_v26  ;;  %v18643_v26 = vld [vmem:[%s23926_s1 + $0x728] sm:$0xff]  }
 0x622   : > { %17286 = vmatmul.mubr.msk.bf16.gmra.mrb[44].mxu0 %vm24686_vm7, %v13797_v41  ;;  %vm24694_vm7 = vnez %v24563_v51 }
 0x623   : > { %8790 = vmatprep.mubr.bf16.mxu0 %v21954_v24  ;;  %v18633_v24 = vld [vmem:[%s23926_s1 + $0x708] sm:$0xff]  }
 0x624   : > { %16179 = vmatprep.subr.bf16.mxu0 %v18633_v24  ;;  %v18642_v24 = vld [vmem:[%s23926_s1 + $0x6e0] sm:$0xff]  }
 0x625   : > { %16180 = vmatpush3.bf16.msra.mxu0 %v18634_v29 }
 0x626   : > { %16181 = vmatprep.subr.bf16.mxu0 %v18636_v17 }
 0x629   : > { %16182 = vmatpush3.bf16.msra.mxu0 %v18638_v62  ;;  %v18644_v62 = vld [vmem:[%s23926_s1 + $0x6e8] sm:$0xff]  }
 0x62a   : > { %16183 = vmatprep.subr.bf16.mxu0 %v18639_v6  ;;  %v24690_v6 = vld [vmem:[#allocation29_spill] sm:$0xff] }
 0x62d   : > { %16184 = vmatpush3.bf16.msra.mxu0 %v18640_v48 }
 0x62e   : > { %16185 = vmatprep.subr.bf16.mxu0 %v18641_v35  ;;  %v18649_v35 = vld [vmem:[%s23926_s1 + $0x738] sm:$0xff]  }
 0x631   : > { %16186 = vmatpush3.bf16.msra.mxu0 %v18642_v24  ;;  %v24692_v24 = vld [vmem:[#allocation35_spill] sm:$0xff] }
 0x632   : > { %16187 = vmatprep.subr.bf16.mxu0 %v18643_v26 }
 0x635   : > { %16188 = vmatpush3.bf16.msra.mxu0 %v18644_v62 }
 0x63d   : > { %v15921_v34 = vpop.f32.mrb[48].mxu0 }
 0x63e   : > { %v15922_v12 = vpop.f32.mrb[49].mxu0 }
 0x63f   : > { %v15923_v2 = vadd.f32 %v15922_v12, %v15921_v34  ;;  %v15924_v16 = vpop.f32.mrb[50].mxu0 }
 0x640   : > { %v15925_v52 = vpop.f32.mrb[51].mxu0 }
 0x641   : > { %v15926_v10 = vadd.f32 %v15925_v52, %v15924_v16  ;;  %v22067_v5 = vadd.f32 %v24687_v47, %v15923_v2  ;;  %v18645_v52 = vld [vmem:[%s23926_s1 + $0x7f8] sm:$0xff]  }
 0x642   : > { %16055 = vmatprep.subr.bf16.mxu1 %v18645_v52 }
 0x643   : > { %v22070_v7 = vadd.f32 %v24688_v38, %v15926_v10  ;;  %v18646_v10 = vld [vmem:[%s23926_s1 + $0x730] sm:$0xff]   ;;  %v18647_v38 = vld [vmem:[%s23926_s1 + $0x7b8] sm:$0xff]  }
 0x644   : > { %16189 = vmatprep.subr.bf16.mxu0 %v18646_v10  ;;  %16056 = vmatpush3.bf16.msra.mxu1 %v18647_v38  ;;  %v24693_v10 = vld [vmem:[#allocation36_spill] sm:$0xff]  ;;  %v24695_v38 = vld [vmem:[#allocation39_spill] sm:$0xff] }
 0x645   : > { %v15927_v56 = vpop.f32.mrb[52].mxu0 }
 0x646   : > { %v15928_v41 = vpop.f32.mrb[53].mxu0 }
 0x647   : > { %v15929_v45 = vadd.f32 %v15928_v41, %v15927_v56  ;;  %v15930_v30 = vpop.f32.mrb[54].mxu0  ;;  %v18648_v56 = vld [vmem:[%s23926_s1 + $0x6f0] sm:$0xff]  }
 0x648   : > { %v15931_v42 = vpop.f32.mrb[55].mxu0  ;;  %16190 = vmatpush3.bf16.msra.mxu0 %v18648_v56 }
 0x649   : > { %v15932_v29 = vadd.f32 %v15931_v42, %v15930_v30  ;;  %v22079_v17 = vadd.f32 %v24689_v59, %v15929_v45  ;;  %v24691_v45 = vld [vmem:[#allocation32_spill] sm:$0xff]  ;;  %v18650_v42 = vld [vmem:[%s23926_s1 + $0x6f8] sm:$0xff]   ;;  %16191 = vmatprep.subr.bf16.mxu0 %v18649_v35 }
 0x64b   : > { %v22088_v48 = vadd.f32 %v24690_v6, %v15932_v29 }
 0x64c   : > { %16192 = vmatpush3.bf16.msra.mxu0 %v18650_v42 }
 0x64d   : > { %v15933_v34 = vpop.f32.mrb[56].mxu0 }
 0x64e   : > { %v15934_v12 = vpop.f32.mrb[57].mxu0 }
 0x64f   : > { %v15935_v2 = vadd.f32 %v15934_v12, %v15933_v34  ;;  %v15936_v16 = vpop.f32.mrb[58].mxu0  ;;  %v7739_v34 = vld [vmem:[#allocation2 + $0xf] sm:$0xff]  ;;  %v7740_v12 = vld [vmem:[#allocation2 + $0x17] sm:$0xff] }
 0x650   : > { %v15937_v47 = vpop.f32.mrb[59].mxu0 }
 0x651   : > { %v15938_v41 = vadd.f32 %v15937_v47, %v15936_v16  ;;  %v22103_v30 = vadd.f32 %v24691_v45, %v15935_v2  ;;  %v14042_v16 = vpack.c.bf16 %v7740_v12, %v7739_v34  ;;  %v24697_v34 = vld [vmem:[#allocation11_spill] sm:$0xff] }
 0x653   : > { %v22112_v29 = vadd.f32 %v24692_v24, %v15938_v41  ;;  %14043 = vmatmul.mubr.msk.bf16.vlgmr.msra.gmra.mrb[112].mxu0 %vm24694_vm7, %v14042_v16  ;;  %v22125_v24 = vld [vmem:[%s23926_s1 + $0x800] sm:$0xff]  }
 0x654   : > { %17289 = vmatprep.subr.bf16.mxu1 %v22125_v24 }
 0x655   : > { %v15939_v59 = vpop.f32.mrb[60].mxu0 }
 0x656   : > { %v15940_v26 = vpop.f32.mrb[61].mxu0 }
 0x657   : > { %v15941_v62 = vadd.f32 %v15940_v26, %v15939_v59  ;;  %v15942_v6 = vpop.f32.mrb[62].mxu0 }
 0x658   : > { %v15943_v2 = vpop.f32.mrb[63].mxu0 }
 0x659   : > { %v15944_v52 = vadd.f32 %v15943_v2, %v15942_v6  ;;  %v22115_v47 = vadd.f32 %v24693_v10, %v15941_v62  ;;  %v24696_v6 = vld [vmem:[#allocation52_spill] sm:$0xff] }
 0x65b   : > { %v22120_v56 = vadd.f32 %v24695_v38, %v15944_v52 }
 0x65d   : > { %v15945_v41 = vpop.f32.mrb[64].mxu0 }
 0x65e   : > { %v15946_v45 = vpop.f32.mrb[65].mxu0 }
 0x65f   : > { %v15947_v35 = vadd.f32 %v15946_v45, %v15945_v41  ;;  %v15948_v42 = vpop.f32.mrb[66].mxu0  ;;  %v24698_v45 = vld [vmem:[#allocation15_spill] sm:$0xff] }
 0x660   : > { %v15949_v59 = vpop.f32.mrb[67].mxu0 }
 0x661   : > { %v15950_v26 = vadd.f32 %v15949_v59, %v15948_v42  ;;  %v22128_v62 = vadd.f32 %v24696_v6, %v15947_v35 }
 0x663   : > { %v22132_v12 = vadd.f32 %v24697_v34, %v15950_v26  ;;  %v24700_v34 = vld [vmem:[#allocation53_spill] sm:$0xff] }
 0x665   : > { %v15951_v2 = vpop.f32.mrb[68].mxu0 }
 0x666   : > { %v15952_v16 = vpop.f32.mrb[69].mxu0 }
 0x667   : > { %v15953_v52 = vadd.f32 %v15952_v16, %v15951_v2  ;;  %v15954_v10 = vpop.f32.mrb[70].mxu0 }
 0x668   : > { %v15955_v38 = vpop.f32.mrb[71].mxu0 }
 0x669   : > { %v15956_v41 = vadd.f32 %v15955_v38, %v15954_v10  ;;  %v22135_v33 = vadd.f32 %v24698_v45, %v15953_v52 }
 0x66b   : > { %v22138_v57 = vadd.f32 %v24699_v1, %v15956_v41 }
 0x66d   : > { %v15957_v42 = vpop.f32.mrb[72].mxu0 }
 0x66e   : > { %v15958_v35 = vpop.f32.mrb[73].mxu0 }
 0x66f   : > { %v15959_v59 = vadd.f32 %v15958_v35, %v15957_v42  ;;  %v15960_v6 = vpop.f32.mrb[74].mxu0 }
 0x670   : > { %v15961_v21 = vpop.f32.mrb[75].mxu0 }
 0x671   : > { %v15962_v15 = vadd.f32 %v15961_v21, %v15960_v6  ;;  %v22141_v26 = vadd.f32 %v21868_v49, %v15959_v59 }
 0x673   : > { %v22144_v2 = vadd.f32 %v24700_v34, %v15962_v15 }
 0x675   : > { %v15963_v16 = vpop.f32.mrb[76].mxu0 }
 0x676   : > { %v15964_v10 = vpop.f32.mrb[77].mxu0 }
 0x677   : > { %v15965_v38 = vadd.f32 %v15964_v10, %v15963_v16  ;;  %v15966_v52 = vpop.f32.mrb[78].mxu0 }
 0x678   : > { %v15967_v45 = vpop.f32.mrb[79].mxu0 }
 0x679   : > { %v15968_v25 = vadd.f32 %v15967_v45, %v15966_v52  ;;  %v22147_v1 = vadd.f32 %v21880_v14, %v15965_v38 }
 0x67b   : > { %v22150_v41 = vadd.f32 %v21884_v55, %v15968_v25 }
 0x67d   : > { %v15969_v42 = vpop.f32.mrb[80].mxu0 }
 0x67e   : > { %v15970_v21 = vpop.f32.mrb[81].mxu0 }
 0x67f   : > { %v15971_v35 = vadd.f32 %v15970_v21, %v15969_v42  ;;  %v15972_v49 = vpop.f32.mrb[82].mxu0 }
 0x680   : > { %v15973_v59 = vpop.f32.mrb[83].mxu0 }
 0x681   : > { %v15974_v6 = vadd.f32 %v15973_v59, %v15972_v49  ;;  %v22153_v15 = vadd.f32 %v21892_v63, %v15971_v35 }
 0x683   : > { %v22156_v34 = vadd.f32 %v21897_v50, %v15974_v6 }
 0x685   : > { %v15975_v16 = vpop.f32.mrb[84].mxu0 }
 0x686   : > { %v15976_v10 = vpop.f32.mrb[85].mxu0 }
 0x687   : > { %v15977_v52 = vadd.f32 %v15976_v10, %v15975_v16  ;;  %v15978_v14 = vpop.f32.mrb[86].mxu0 }
 0x688   : > { %v15979_v38 = vpop.f32.mrb[87].mxu0 }
 0x689   : > { %v15980_v45 = vadd.f32 %v15979_v38, %v15978_v14  ;;  %v22159_v25 = vadd.f32 %v21899_v11, %v15977_v52 }
 0x68b   : > { %v22162_v55 = vadd.f32 %v21904_v37, %v15980_v45 }
 0x68d   : > { %v15981_v42 = vpop.f32.mrb[88].mxu0 }
 0x68e   : > { %v15982_v21 = vpop.f32.mrb[89].mxu0 }
 0x68f   : > { %v15983_v49 = vadd.f32 %v15982_v21, %v15981_v42  ;;  %v15984_v63 = vpop.f32.mrb[90].mxu0 }
 0x690   : > { %v15985_v35 = vpop.f32.mrb[91].mxu0 }
 0x691   : > { %v15986_v59 = vadd.f32 %v15985_v35, %v15984_v63  ;;  %v22165_v50 = vadd.f32 %v21906_v19, %v15983_v49 }
 0x693   : > { %v22168_v6 = vadd.f32 %v21911_v39, %v15986_v59  ;;  %v24701_v39 = vld [vmem:[#allocation8_spill] sm:$0xff] }
 0x695   : > { %v15987_v16 = vpop.f32.mrb[92].mxu0 }
 0x696   : > { %v15988_v10 = vpop.f32.mrb[93].mxu0 }
 0x697   : > { %v15989_v14 = vadd.f32 %v15988_v10, %v15987_v16  ;;  %v15990_v11 = vpop.f32.mrb[94].mxu0 }
 0x698   : > { %v15991_v52 = vpop.f32.mrb[95].mxu0 }
 0x699   : > { %v15992_v38 = vadd.f32 %v15991_v52, %v15990_v11  ;;  %v22171_v37 = vadd.f32 %v21913_v32, %v15989_v14 }
 0x69b   : > { %v22174_v45 = vadd.f32 %v21918_v23, %v15992_v38  ;;  %v24703_v38 = vld [vmem:[#allocation40_spill] sm:$0xff] }
 0x69d   : > { %v15993_v42 = vpop.f32.mrb[96].mxu0 }
 0x69e   : > { %v15994_v21 = vpop.f32.mrb[97].mxu0 }
 0x69f   : > { %v15995_v63 = vadd.f32 %v15994_v21, %v15993_v42  ;;  %v15996_v19 = vpop.f32.mrb[98].mxu0 }
 0x6a0   : > { %v15997_v49 = vpop.f32.mrb[99].mxu0 }
 0x6a1   : > { %v15998_v35 = vadd.f32 %v15997_v49, %v15996_v19  ;;  %v22177_v59 = vadd.f32 %v24701_v39, %v15995_v63 }
 0x6a3   : > { %v22180_v16 = vadd.f32 %v24702_v54, %v15998_v35 }
 0x6a5   : > { %v15999_v10 = vpop.f32.mrb[100].mxu0 }
 0x6a6   : > { %v16000_v11 = vpop.f32.mrb[101].mxu0 }
 0x6a7   : > { %v16001_v52 = vadd.f32 %v16000_v11, %v15999_v10  ;;  %v16002_v32 = vpop.f32.mrb[102].mxu0 }
 0x6a8   : > { %v16003_v14 = vpop.f32.mrb[103].mxu0 }
 0x6a9   : > { %v16004_v40 = vadd.f32 %v16003_v14, %v16002_v32  ;;  %v22183_v23 = vadd.f32 %v21927_v46, %v16001_v52 }
 0x6ab   : > { %v22186_v42 = vadd.f32 %v24703_v38, %v16004_v40 }
 0x6ad   : > { %v16005_v21 = vpop.f32.mrb[104].mxu0 }
 0x6ae   : > { %v16006_v19 = vpop.f32.mrb[105].mxu0 }
 0x6af   : > { %v16007_v49 = vadd.f32 %v16006_v19, %v16005_v21  ;;  %v16008_v63 = vpop.f32.mrb[106].mxu0 }
 0x6b0   : > { %v16009_v39 = vpop.f32.mrb[107].mxu0 }
 0x6b1   : > { %v16010_v43 = vadd.f32 %v16009_v39, %v16008_v63  ;;  %v22189_v54 = vadd.f32 %v21933_v31, %v16007_v49  ;;  %v22203_v31 = vld [vmem:[%s23927_s2 + $0x2] ss:$0 sm:$0xff] }
 0x6b3   : > { %v22192_v35 = vadd.f32 %v21937_v60, %v16010_v43 }
 0x6b5   : > { %v16011_v10 = vpop.f32.mrb[108].mxu0 }
 0x6b6   : > { %v16012_v11 = vpop.f32.mrb[109].mxu0 }
 0x6b7   : > { %v16013_v32 = vadd.f32 %v16012_v11, %v16011_v10  ;;  %v16014_v46 = vpop.f32.mrb[110].mxu0 }
 0x6b8   : > { %v16015_v52 = vpop.f32.mrb[111].mxu0 }
 0x6b9   : > { %v16016_v14 = vadd.f32 %v16015_v52, %v16014_v46  ;;  %v22195_v40 = vadd.f32 %v21939_v27, %v16013_v32 }
 0x6bb   : > { %v22198_v38 = vadd.f32 %v21943_v13, %v16016_v14  ;;  %v18830_v14 = vld [vmem:[#allocation2 + $0x30] sm:$0xff] }
 0x6bd   : > { %v17259_v21 = vpop.f32.mrb[16].mxu0 }
 0x6be   : > { %v17787_v43 = vadd.f32 %v22079_v17, %v17259_v21  ;;  %v7380_v60 = vpop.f32.mrb[17].mxu0 }
 0x6bf   : > { %v17790_v19 = vadd.f32 %v22067_v5, %v7380_v60  ;;  %v17260_v49 = vpop.f32.mrb[18].mxu0 }
 0x6c0   : > { %v7549_v63 = vadd.f32 %v17787_v43, %v22203_v31  ;;  %v17793_v27 = vadd.f32 %v22088_v48, %v17260_v49  ;;  %v7383_v39 = vpop.f32.mrb[19].mxu0 }
 0x6c1   : > { %v7547_v13 = vadd.f32 %v17790_v19, %v22203_v31  ;;  %v17796_v10 = vadd.f32 %v22070_v7, %v7383_v39  ;;  %v18831_v19 = vld [vmem:[#allocation2 + $0x20] sm:$0xff] }
 0x6c2   : > { %vm7581_vm4 = vcmp.ge.f32.partialorder %v7549_v63, 0.0  ;;  %v7613_v11 = vmul.f32 0.2, %v7549_v63  ;;  %v7550_v32 = vadd.f32 %v17793_v27, %v22203_v31 }
 0x6c3   : > { %vm7579_vm9 = vcmp.ge.f32.partialorder %v7547_v13, 0.0  ;;  %v7611_v46 = vmul.f32 0.2, %v7547_v13  ;;  %v7548_v17 = vadd.f32 %v17796_v10, %v22203_v31 }
 0x6c4   : > { %v7645_v52 = vsel %vm7581_vm4, %v7549_v63, %v7613_v11  ;;  %vm7582_vm1 = vcmp.ge.f32.partialorder %v7550_v32, 0.0  ;;  %v7614_v5 = vmul.f32 0.2, %v7550_v32 }
 0x6c5   : > { %v22213_v21 = vadd.f32 %v18830_v14, %v7645_v52  ;;  %v7643_v48 = vsel %vm7579_vm9, %v7547_v13, %v7611_v46  ;;  %vm7580_vm3 = vcmp.ge.f32.partialorder %v7548_v17, 0.0  ;;  %v7612_v43 = vmul.f32 0.2, %v7548_v17  ;;  %v17263_v60 = vpop.f32.mrb[20].mxu0  ;;  %v18833_v13 = vld [vmem:[#allocation2 + $0x28] sm:$0xff] }
 0x6c6   : > { %v7675_v7 = vadd.f32 %v18831_v19, %v7643_v48  ;;  %v7646_v49 = vsel %vm7582_vm1, %v7550_v32, %v7614_v5  ;;  %v17799_v39 = vadd.f32 %v22115_v47, %v17263_v60  ;;  %v7396_v27 = vpop.f32.mrb[21].mxu0 }
 0x6c7   : > { %7709 = vst [vmem:[#allocation2 + $0x30] sm:$0xff] %v22213_v21  ;;  %v22217_v10 = vadd.f32 %v18832_v28, %v7646_v49  ;;  %v7644_v63 = vsel %vm7580_vm3, %v7548_v17, %v7612_v43  ;;  %v17802_v11 = vadd.f32 %v22103_v30, %v7396_v27  ;;  %v17264_v52 = vpop.f32.mrb[22].mxu0  ;;  %v18834_v49 = vld [vmem:[#allocation2 + $0x50] sm:$0xff] }
 0x6c8   : > { %7707 = vst [vmem:[#allocation2 + $0x20] sm:$0xff] %v7675_v7  ;;  %v7676_v46 = vadd.f32 %v18833_v13, %v7644_v63  ;;  %v7553_v14 = vadd.f32 %v17799_v39, %v22203_v31  ;;  %v17805_v48 = vadd.f32 %v22120_v56, %v17264_v52  ;;  %v7399_v32 = vpop.f32.mrb[23].mxu0 }
 0x6c9   : > { %7710 = vst [vmem:[#allocation2 + $0x38] sm:$0xff] %v22217_v10  ;;  %v7551_v47 = vadd.f32 %v17802_v11, %v22203_v31  ;;  %v17808_v5 = vadd.f32 %v22112_v29, %v7399_v32  ;;  %v18835_v11 = vld [vmem:[#allocation2 + $0x40] sm:$0xff] }
 0x6ca   : > { %7708 = vst [vmem:[#allocation2 + $0x28] sm:$0xff] %v7676_v46  ;;  %vm7585_vm1 = vcmp.ge.f32.partialorder %v7553_v14, 0.0  ;;  %v7617_v28 = vmul.f32 0.2, %v7553_v14  ;;  %v7554_v30 = vadd.f32 %v17805_v48, %v22203_v31  ;;  %v7903_v17 = vpack.c.bf16 %v7676_v46, %v7675_v7 }
 0x6cb   : > { %vm7583_vm3 = vcmp.ge.f32.partialorder %v7551_v47, 0.0  ;;  %v7615_v43 = vmul.f32 0.2, %v7551_v47  ;;  %v7552_v60 = vadd.f32 %v17808_v5, %v22203_v31 }
 0x6cc   : > { %v7649_v19 = vsel %vm7585_vm1, %v7553_v14, %v7617_v28  ;;  %vm7586_vm9 = vcmp.ge.f32.partialorder %v7554_v30, 0.0  ;;  %v7618_v56 = vmul.f32 0.2, %v7554_v30  ;;  %8324 = vmatprep.mubr.bf16.mxu1 %v7903_v17  ;;  %8798 = vmatprep.mubr.bf16.mxu0 %v7903_v17  ;;  %v18836_v14 = vld [vmem:[#allocation2 + $0x58] sm:$0xff] }
 0x6cd   : > { %v22227_v39 = vadd.f32 %v18834_v49, %v7649_v19  ;;  %v7647_v27 = vsel %vm7583_vm3, %v7551_v47, %v7615_v43  ;;  %vm7584_vm4 = vcmp.ge.f32.partialorder %v7552_v60, 0.0  ;;  %v7616_v29 = vmul.f32 0.2, %v7552_v60  ;;  %v17267_v63 = vpop.f32.mrb[24].mxu0  ;;  %v18837_v47 = vld [vmem:[#allocation2 + $0x48] sm:$0xff] }
 0x6ce   : > { %v22229_v52 = vadd.f32 %v18835_v11, %v7647_v27  ;;  %v7650_v7 = vsel %vm7586_vm9, %v7554_v30, %v7618_v56  ;;  %v17811_v13 = vadd.f32 %v22135_v33, %v17267_v63  ;;  %v7412_v46 = vpop.f32.mrb[25].mxu0 }
 0x6cf   : > { %7713 = vst [vmem:[#allocation2 + $0x50] sm:$0xff] %v22227_v39  ;;  %v22233_v48 = vadd.f32 %v18836_v14, %v7650_v7  ;;  %v7648_v32 = vsel %vm7584_vm4, %v7552_v60, %v7616_v29  ;;  %v17814_v5 = vadd.f32 %v22128_v62, %v7412_v46  ;;  %v17268_v28 = vpop.f32.mrb[26].mxu0  ;;  %v7741_v60 = vld [vmem:[#allocation2 + $0x1f] sm:$0xff]  ;;  %v24704_v46 = vld [vmem:[#allocation13_spill] sm:$0xff] }
 0x6d0   : > { %7711 = vst [vmem:[#allocation2 + $0x40] sm:$0xff] %v22229_v52  ;;  %v22237_v17 = vadd.f32 %v18837_v47, %v7648_v32  ;;  %v7557_v43 = vadd.f32 %v17811_v13, %v22203_v31  ;;  %v17817_v30 = vadd.f32 %v22138_v57, %v17268_v28  ;;  %v7415_v33 = vpop.f32.mrb[27].mxu0  ;;  %v18652_v57 = vld [vmem:[%s23926_s1 + $0x808] sm:$0xff]   ;;  %vm24705_vm4 = vnez %v24704_v46  ;;  %v18838_v14 = vld [vmem:[#allocation2 + $0x70] sm:$0xff] }
 0x6d1   : > { %7714 = vst [vmem:[#allocation2 + $0x58] sm:$0xff] %v22233_v48  ;;  %v7555_v19 = vadd.f32 %v17814_v5, %v22203_v31  ;;  %v17820_v56 = vadd.f32 %v22132_v12, %v7415_v33  ;;  %v7742_v49 = vld [vmem:[#allocation2 + $0x27] sm:$0xff]  ;;  %v7906_v12 = vpack.c.bf16 %v22217_v10, %v22213_v21 }
 0x6d2   : > { %7712 = vst [vmem:[#allocation2 + $0x48] sm:$0xff] %v22237_v17  ;;  %vm7589_vm1 = vcmp.ge.f32.partialorder %v7557_v43, 0.0  ;;  %v7621_v62 = vmul.f32 0.2, %v7557_v43  ;;  %v7558_v27 = vadd.f32 %v17817_v30, %v22203_v31  ;;  %v13922_v29 = vpack.c.bf16 %v7742_v49, %v7741_v60  ;;  %v18839_v21 = vld [vmem:[#allocation2 + $0x60] sm:$0xff] }
 0x6d3   : > { %vm7587_vm3 = vcmp.ge.f32.partialorder %v7555_v19, 0.0  ;;  %v7619_v63 = vmul.f32 0.2, %v7555_v19  ;;  %v7556_v11 = vadd.f32 %v17820_v56, %v22203_v31  ;;  %v18653_v56 = vld [vmem:[%s23926_s1 + $0x810] sm:$0xff]  }
 0x6d4   : > { %v7653_v7 = vsel %vm7589_vm1, %v7557_v43, %v7621_v62  ;;  %vm7590_vm9 = vcmp.ge.f32.partialorder %v7558_v27, 0.0  ;;  %v7622_v13 = vmul.f32 0.2, %v7558_v27  ;;  %13923 = vmatmul.mubr.msk.bf16.vlgmr.msra.gmra.mrb[80].mxu1 %vm24694_vm7, %v13922_v29  ;;  %14046 = vmatmul.mubr.msk.bf16.gmra.mrb[116].mxu0 %vm24705_vm4, %v13922_v29  ;;  %v7744_v29 = vld [vmem:[#allocation2 + $0x37] sm:$0xff] }
 0x6d5   : > { %v22256_v32 = vadd.f32 %v18838_v14, %v7653_v7  ;;  %v7651_v5 = vsel %vm7587_vm3, %v7555_v19, %v7619_v63  ;;  %vm7588_vm11 = vcmp.ge.f32.partialorder %v7556_v11, 0.0  ;;  %v7620_v28 = vmul.f32 0.2, %v7556_v11  ;;  %v17271_v47 = vpop.f32.mrb[28].mxu0  ;;  %8332 = vmatprep.mubr.bf16.mxu1 %v7906_v12  ;;  %17290 = vmatpush3.bf16.msra.mxu1 %v22125_v24  ;;  %v18840_v19 = vld [vmem:[#allocation2 + $0x78] sm:$0xff] }
 0x6d6   : > { %v22259_v10 = vadd.f32 %v18839_v21, %v7651_v5  ;;  %v7654_v43 = vsel %vm7590_vm9, %v7558_v27, %v7622_v13  ;;  %v17823_v30 = vadd.f32 %v22147_v1, %v17271_v47  ;;  %v7428_v33 = vpop.f32.mrb[29].mxu0  ;;  %8806 = vmatprep.mubr.bf16.mxu0 %v7906_v12  ;;  %17291 = vmatprep.subr.bf16.mxu1 %v18652_v57  ;;  %v7743_v27 = vld [vmem:[#allocation2 + $0x2f] sm:$0xff] }
 0x6d7   : > { %7717 = vst [vmem:[#allocation2 + $0x70] sm:$0xff] %v22256_v32  ;;  %v22266_v60 = vadd.f32 %v18840_v19, %v7654_v43  ;;  %v7652_v24 = vsel %vm7588_vm11, %v7556_v11, %v7620_v28  ;;  %v17826_v49 = vadd.f32 %v22141_v26, %v7428_v33  ;;  %v17272_v62 = vpop.f32.mrb[30].mxu0  ;;  %v18841_v1 = vld [vmem:[#allocation2 + $0x68] sm:$0xff]  ;;  %v13925_v28 = vpack.c.bf16 %v7744_v29, %v7743_v27  ;;  %v18842_v33 = vld [vmem:[#allocation2 + $0x90] sm:$0xff] }
 0x6d8   : > { %7715 = vst [vmem:[#allocation2 + $0x60] sm:$0xff] %v22259_v10  ;;  %v22271_v63 = vadd.f32 %v18841_v1, %v7652_v24  ;;  %v7561_v12 = vadd.f32 %v17823_v30, %v22203_v31  ;;  %v17829_v7 = vadd.f32 %v22150_v41, %v17272_v62  ;;  %v7431_v13 = vpop.f32.mrb[31].mxu0  ;;  %v7909_v21 = vpack.c.bf16 %v22237_v17, %v22229_v52  ;;  %v24706_v30 = vld [vmem:[#allocation18_spill] sm:$0xff]  ;;  %v18843_v17 = vld [vmem:[#allocation2 + $0x80] sm:$0xff] }
 0x6d9   : > { %7718 = vst [vmem:[#allocation2 + $0x78] sm:$0xff] %v22266_v60  ;;  %v7559_v14 = vadd.f32 %v17826_v49, %v22203_v31  ;;  %v17832_v11 = vadd.f32 %v22144_v2, %v7431_v13  ;;  %17292 = vmatpush3.bf16.msra.mxu1 %v18652_v57  ;;  %v18654_v2 = vld [vmem:[%s23926_s1 + $0x818] sm:$0xff]   ;;  %vm24707_vm9 = vnez %v24706_v30 }
 0x6da   : > { %7716 = vst [vmem:[#allocation2 + $0x68] sm:$0xff] %v22271_v63  ;;  %vm7593_vm11 = vcmp.ge.f32.partialorder %v7561_v12, 0.0  ;;  %v7625_v26 = vmul.f32 0.2, %v7561_v12  ;;  %v7562_v5 = vadd.f32 %v17829_v7, %v22203_v31  ;;  %17293 = vmatprep.subr.bf16.mxu1 %v18653_v56 }
 0x6db   : > { %vm7591_vm1 = vcmp.ge.f32.partialorder %v7559_v14, 0.0  ;;  %v7623_v47 = vmul.f32 0.2, %v7559_v14  ;;  %v7560_v41 = vadd.f32 %v17832_v11, %v22203_v31 }
 0x6dc   : > { %v7657_v57 = vsel %vm7593_vm11, %v7561_v12, %v7625_v26  ;;  %vm7594_vm3 = vcmp.ge.f32.partialorder %v7562_v5, 0.0  ;;  %v7626_v43 = vmul.f32 0.2, %v7562_v5  ;;  %13926 = vmatmul.mubr.msk.bf16.gmra.mrb[84].mxu1 %vm24705_vm4, %v13925_v28  ;;  %14049 = vmatmul.mubr.msk.bf16.gmra.mrb[120].mxu0 %vm24707_vm9, %v13925_v28  ;;  %v18844_v12 = vld [vmem:[#allocation2 + $0x98] sm:$0xff]  ;;  %v7746_v26 = vld [vmem:[#allocation2 + $0x47] sm:$0xff] }
 0x6dd   : > { %v22290_v19 = vadd.f32 %v18842_v33, %v7657_v57  ;;  %v7655_v24 = vsel %vm7591_vm1, %v7559_v14, %v7623_v47  ;;  %vm7592_vm7 = vcmp.ge.f32.partialorder %v7560_v41, 0.0  ;;  %v7624_v49 = vmul.f32 0.2, %v7560_v41  ;;  %v17275_v52 = vpop.f32.mrb[32].mxu0  ;;  %8340 = vmatprep.mubr.bf16.mxu1 %v7909_v21  ;;  %8814 = vmatprep.mubr.bf16.mxu0 %v7909_v21  ;;  %v18655_v28 = vld [vmem:[%s23926_s1 + $0x820] sm:$0xff]  }
 0x6de   : > { %v22292_v62 = vadd.f32 %v18843_v17, %v7655_v24  ;;  %v7658_v27 = vsel %vm7594_vm3, %v7562_v5, %v7626_v43  ;;  %v17835_v29 = vadd.f32 %v22159_v25, %v17275_v52  ;;  %v7444_v1 = vpop.f32.mrb[33].mxu0  ;;  %17294 = vmatpush3.bf16.msra.mxu1 %v18653_v56  ;;  %v18845_v25 = vld [vmem:[#allocation2 + $0x88] sm:$0xff]  ;;  %v7745_v57 = vld [vmem:[#allocation2 + $0x3f] sm:$0xff]  ;;  %v7912_v52 = vpack.c.bf16 %v22233_v48, %v22227_v39 }
 0x6df   : > { %7721 = vst [vmem:[#allocation2 + $0x90] sm:$0xff] %v22290_v19  ;;  %v22296_v7 = vadd.f32 %v18844_v12, %v7658_v27  ;;  %v7656_v13 = vsel %vm7592_vm7, %v7560_v41, %v7624_v49  ;;  %v17838_v14 = vadd.f32 %v22153_v15, %v7444_v1  ;;  %v17276_v11 = vpop.f32.mrb[34].mxu0  ;;  %17295 = vmatprep.subr.bf16.mxu1 %v18654_v2 }
 0x6e0   : > { %7719 = vst [vmem:[#allocation2 + $0x80] sm:$0xff] %v22292_v62  ;;  %v22303_v5 = vadd.f32 %v18845_v25, %v7656_v13  ;;  %v7565_v56 = vadd.f32 %v17835_v29, %v22203_v31  ;;  %v17841_v47 = vadd.f32 %v22162_v55, %v17276_v11  ;;  %v7447_v21 = vpop.f32.mrb[35].mxu0  ;;  %v13928_v24 = vpack.c.bf16 %v7746_v26, %v7745_v57  ;;  %v24708_v29 = vld [vmem:[#allocation23_spill] sm:$0xff]  ;;  %v7747_v57 = vld [vmem:[#allocation2 + $0x4f] sm:$0xff] }
 0x6e1   : > { %7722 = vst [vmem:[#allocation2 + $0x98] sm:$0xff] %v22296_v7  ;;  %v7563_v15 = vadd.f32 %v17838_v14, %v22203_v31  ;;  %v17844_v41 = vadd.f32 %v22156_v34, %v7447_v21  ;;  %v18656_v34 = vld [vmem:[%s23926_s1 + $0x828] sm:$0xff]   ;;  %vm24709_vm3 = vnez %v24708_v29  ;;  %v18847_v13 = vld [vmem:[#allocation2 + $0xa0] sm:$0xff] }
 0x6e2   : > { %7720 = vst [vmem:[#allocation2 + $0x88] sm:$0xff] %v22303_v5  ;;  %vm7597_vm7 = vcmp.ge.f32.partialorder %v7565_v56, 0.0  ;;  %v7629_v43 = vmul.f32 0.2, %v7565_v56  ;;  %v7566_v33 = vadd.f32 %v17841_v47, %v22203_v31  ;;  %17296 = vmatpush3.bf16.msra.mxu1 %v18654_v2  ;;  %v18846_v2 = vld [vmem:[#allocation2 + $0xb0] sm:$0xff] }
 0x6e3   : > { %vm7595_vm11 = vcmp.ge.f32.partialorder %v7563_v15, 0.0  ;;  %v7627_v49 = vmul.f32 0.2, %v7563_v15  ;;  %v7564_v55 = vadd.f32 %v17844_v41, %v22203_v31  ;;  %17297 = vmatprep.subr.bf16.mxu1 %v18655_v28 }
 0x6e4   : > { %v7661_v17 = vsel %vm7597_vm7, %v7565_v56, %v7629_v43  ;;  %vm7598_vm1 = vcmp.ge.f32.partialorder %v7566_v33, 0.0  ;;  %v7630_v27 = vmul.f32 0.2, %v7566_v33  ;;  %13929 = vmatmul.mubr.msk.bf16.gmra.mrb[88].mxu1 %vm24707_vm9, %v13928_v24  ;;  %14052 = vmatmul.mubr.msk.bf16.gmra.mrb[124].mxu0 %vm24709_vm3, %v13928_v24  ;;  %v18848_v56 = vld [vmem:[#allocation2 + $0xb8] sm:$0xff] }
 0x6e5   : > { %v22322_v1 = vadd.f32 %v18846_v2, %v7661_v17  ;;  %v7659_v12 = vsel %vm7595_vm11, %v7563_v15, %v7627_v49  ;;  %vm7596_vm4 = vcmp.ge.f32.partialorder %v7564_v55, 0.0  ;;  %v7628_v39 = vmul.f32 0.2, %v7564_v55  ;;  %v17279_v48 = vpop.f32.mrb[36].mxu0  ;;  %8348 = vmatprep.mubr.bf16.mxu1 %v7912_v52  ;;  %8822 = vmatprep.mubr.bf16.mxu0 %v7912_v52  ;;  %v7748_v43 = vld [vmem:[#allocation2 + $0x57] sm:$0xff] }
 0x6e6   : > { %v22324_v14 = vadd.f32 %v18847_v13, %v7659_v12  ;;  %v7662_v11 = vsel %vm7598_vm1, %v7566_v33, %v7630_v27  ;;  %v17847_v26 = vadd.f32 %v22171_v37, %v17279_v48  ;;  %v7460_v25 = vpop.f32.mrb[37].mxu0  ;;  %17298 = vmatpush3.bf16.msra.mxu1 %v18655_v28  ;;  %v18657_v33 = vld [vmem:[%s23926_s1 + $0x830] sm:$0xff]   ;;  %v18849_v37 = vld [vmem:[#allocation2 + $0xa8] sm:$0xff]  ;;  %v13931_v2 = vpack.c.bf16 %v7748_v43, %v7747_v57  ;;  %v18852_v43 = vld [vmem:[#allocation2 + $0xd8] sm:$0xff] }
 0x6e7   : > { %7725 = vst [vmem:[#allocation2 + $0xb0] sm:$0xff] %v22322_v1  ;;  %v22328_v47 = vadd.f32 %v18848_v56, %v7662_v11  ;;  %v7660_v21 = vsel %vm7596_vm4, %v7564_v55, %v7628_v39  ;;  %v17850_v15 = vadd.f32 %v22165_v50, %v7460_v25  ;;  %v17280_v41 = vpop.f32.mrb[38].mxu0  ;;  %17299 = vmatprep.subr.bf16.mxu1 %v18656_v34  ;;  %v24710_v11 = vld [vmem:[#allocation3_spill] sm:$0xff] }
 0x6e8   : > { %7723 = vst [vmem:[#allocation2 + $0xa0] sm:$0xff] %v22324_v14  ;;  %v22335_v28 = vadd.f32 %v18849_v37, %v7660_v21  ;;  %v7569_v24 = vadd.f32 %v17847_v26, %v22203_v31  ;;  %v17853_v49 = vadd.f32 %v22174_v45, %v17280_v41  ;;  %v7463_v55 = vpop.f32.mrb[39].mxu0  ;;  %v7915_v45 = vpack.c.bf16 %v22271_v63, %v22259_v10  ;;  %v18851_v56 = vld [vmem:[#allocation2 + $0xc0] sm:$0xff] }
 0x6e9   : > { %7726 = vst [vmem:[#allocation2 + $0xb8] sm:$0xff] %v22328_v47  ;;  %v7567_v50 = vadd.f32 %v17850_v15, %v22203_v31  ;;  %v17856_v52 = vadd.f32 %v22168_v6, %v7463_v55  ;;  %v18658_v6 = vld [vmem:[%s23926_s1 + $0x838] sm:$0xff]   ;;  %vm24711_vm1 = vnez %v24710_v11 }
 0x6ea   : > { %7724 = vst [vmem:[#allocation2 + $0xa8] sm:$0xff] %v22335_v28  ;;  %vm7601_vm4 = vcmp.ge.f32.partialorder %v7569_v24, 0.0  ;;  %v7633_v17 = vmul.f32 0.2, %v7569_v24  ;;  %v7570_v27 = vadd.f32 %v17853_v49, %v22203_v31  ;;  %17300 = vmatpush3.bf16.msra.mxu1 %v18656_v34  ;;  %v18850_v34 = vld [vmem:[#allocation2 + $0xd0] sm:$0xff] }
 0x6eb   : > { %vm7599_vm7 = vcmp.ge.f32.partialorder %v7567_v50, 0.0  ;;  %v7631_v12 = vmul.f32 0.2, %v7567_v50  ;;  %v7568_v39 = vadd.f32 %v17856_v52, %v22203_v31  ;;  %17301 = vmatprep.subr.bf16.mxu1 %v18657_v33  ;;  %v22366_v52 = vld [vmem:[%s23926_s1 + $0x740] sm:$0xff]  }
 0x6ec   : > { %v7665_v48 = vsel %vm7601_vm4, %v7569_v24, %v7633_v17  ;;  %vm7602_vm11 = vcmp.ge.f32.partialorder %v7570_v27, 0.0  ;;  %v7634_v13 = vmul.f32 0.2, %v7570_v27  ;;  %13932 = vmatmul.mubr.msk.bf16.gmra.mrb[92].mxu1 %vm24709_vm3, %v13931_v2  ;;  %14055 = vmatmul.mubr.msk.bf16.gmra.mrb[128].mxu0 %vm24711_vm1, %v13931_v2 }
 0x6ed   : > { %v22354_v26 = vadd.f32 %v18850_v34, %v7665_v48  ;;  %v7663_v25 = vsel %vm7599_vm7, %v7567_v50, %v7631_v12  ;;  %vm7600_vm9 = vcmp.ge.f32.partialorder %v7568_v39, 0.0  ;;  %v7632_v10 = vmul.f32 0.2, %v7568_v39  ;;  %v17283_v63 = vpop.f32.mrb[40].mxu0  ;;  %8356 = vmatprep.mubr.bf16.mxu1 %v7915_v45  ;;  %8830 = vmatprep.mubr.bf16.mxu0 %v7915_v45  ;;  %v7750_v50 = vld [vmem:[#allocation2 + $0x67] sm:$0xff] }
 0x6ee   : > { %v22356_v21 = vadd.f32 %v18851_v56, %v7663_v25  ;;  %v7666_v15 = vsel %vm7602_vm11, %v7570_v27, %v7634_v13  ;;  %v17859_v41 = vadd.f32 %v22183_v23, %v17283_v63  ;;  %v7476_v57 = vpop.f32.mrb[41].mxu0  ;;  %17302 = vmatpush3.bf16.msra.mxu1 %v18657_v33  ;;  %v18853_v23 = vld [vmem:[#allocation2 + $0xc8] sm:$0xff]  ;;  %v7918_v25 = vpack.c.bf16 %v22266_v60, %v22256_v32  ;;  %v18854_v56 = vld [vmem:[#allocation2 + $0xf0] sm:$0xff]  ;;  %v18855_v32 = vld [vmem:[#allocation2 + $0xe0] sm:$0xff] }
 0x6ef   : > { %7729 = vst [vmem:[#allocation2 + $0xd0] sm:$0xff] %v22354_v26  ;;  %v22360_v37 = vadd.f32 %v18852_v43, %v7666_v15  ;;  %v7664_v24 = vsel %vm7600_vm9, %v7568_v39, %v7632_v10  ;;  %v17862_v49 = vadd.f32 %v22177_v59, %v7476_v57  ;;  %v17284_v55 = vpop.f32.mrb[42].mxu0  ;;  %17303 = vmatprep.subr.bf16.mxu1 %v18658_v6  ;;  %v7749_v39 = vld [vmem:[#allocation2 + $0x5f] sm:$0xff]  ;;  %v24712_v63 = vld [vmem:[#allocation4_spill] sm:$0xff] }
 0x6f0   : > { %7727 = vst [vmem:[#allocation2 + $0xc0] sm:$0xff] %v22356_v21  ;;  %v22369_v33 = vadd.f32 %v18853_v23, %v7664_v24  ;;  %v7573_v17 = vadd.f32 %v17859_v41, %v22203_v31  ;;  %v17865_v27 = vadd.f32 %v22186_v42, %v17284_v55  ;;  %v7479_v2 = vpop.f32.mrb[43].mxu0  ;;  %v13934_v13 = vpack.c.bf16 %v7750_v50, %v7749_v39  ;;  %v18856_v55 = vld [vmem:[#allocation2 + $0xf8] sm:$0xff] }
 0x6f1   : > { %7730 = vst [vmem:[#allocation2 + $0xd8] sm:$0xff] %v22360_v37  ;;  %v7571_v59 = vadd.f32 %v17862_v49, %v22203_v31  ;;  %v17868_v12 = vadd.f32 %v22180_v16, %v7479_v2  ;;  %vm24713_vm11 = vnez %v24712_v63  ;;  %v7751_v2 = vld [vmem:[#allocation2 + $0x6f] sm:$0xff] }
 0x6f2   : > { %7728 = vst [vmem:[#allocation2 + $0xc8] sm:$0xff] %v22369_v33  ;;  %vm7605_vm9 = vcmp.ge.f32.partialorder %v7573_v17, 0.0  ;;  %v7637_v45 = vmul.f32 0.2, %v7573_v17  ;;  %v7574_v48 = vadd.f32 %v17865_v27, %v22203_v31  ;;  %17304 = vmatpush3.bf16.msra.mxu1 %v18658_v6 }
 0x6f3   : > { %vm7603_vm4 = vcmp.ge.f32.partialorder %v7571_v59, 0.0  ;;  %v7635_v34 = vmul.f32 0.2, %v7571_v59  ;;  %v7572_v42 = vadd.f32 %v17868_v12, %v22203_v31  ;;  %17337 = vmatprep.subr.bf16.mxu1 %v22366_v52  ;;  %v18857_v12 = vld [vmem:[#allocation2 + $0xe8] sm:$0xff] }
 0x6f4   : > { %v7669_v10 = vsel %vm7605_vm9, %v7573_v17, %v7637_v45  ;;  %vm7606_vm7 = vcmp.ge.f32.partialorder %v7574_v48, 0.0  ;;  %v7638_v16 = vmul.f32 0.2, %v7574_v48  ;;  %13935 = vmatmul.mubr.msk.bf16.gmra.mrb[96].mxu1 %vm24711_vm1, %v13934_v13  ;;  %14058 = vmatmul.mubr.msk.bf16.gmra.mrb[132].mxu0 %vm24713_vm11, %v13934_v13 }
 0x6f5   : > { %v22386_v6 = vadd.f32 %v18854_v56, %v7669_v10  ;;  %v7667_v15 = vsel %vm7603_vm4, %v7571_v59, %v7635_v34  ;;  %vm7604_vm3 = vcmp.ge.f32.partialorder %v7572_v42, 0.0  ;;  %v7636_v41 = vmul.f32 0.2, %v7572_v42  ;;  %v17287_v57 = vpop.f32.mrb[44].mxu0  ;;  %8364 = vmatprep.mubr.bf16.mxu1 %v7918_v25  ;;  %8838 = vmatprep.mubr.bf16.mxu0 %v7918_v25  ;;  %v7752_v59 = vld [vmem:[#allocation2 + $0x77] sm:$0xff] }
 0x6f6   : > { %v22388_v60 = vadd.f32 %v18855_v32, %v7667_v15  ;;  %v7670_v43 = vsel %vm7606_vm7, %v7574_v48, %v7638_v16  ;;  %v17871_v24 = vadd.f32 %v22195_v40, %v17287_v57  ;;  %v7492_v49 = vpop.f32.mrb[45].mxu0  ;;  %v22405_v25 = vpack.c.bf16 %v7752_v59, %v7751_v2  ;;  %v7753_v2 = vld [vmem:[#allocation2 + $0x7f] sm:$0xff] }
 0x6f7   : > { %7733 = vst [vmem:[#allocation2 + $0xf0] sm:$0xff] %v22386_v6  ;;  %v22392_v50 = vadd.f32 %v18856_v55, %v7670_v43  ;;  %v7668_v23 = vsel %vm7604_vm3, %v7572_v42, %v7636_v41  ;;  %v17874_v17 = vadd.f32 %v22189_v54, %v7492_v49  ;;  %v17288_v27 = vpop.f32.mrb[46].mxu0  ;;  %v18858_v41 = vld [vmem:[#allocation2 + $0x110] sm:$0xff] }
 0x6f8   : > { %7731 = vst [vmem:[#allocation2 + $0xe0] sm:$0xff] %v22388_v60  ;;  %v22396_v39 = vadd.f32 %v18857_v12, %v7668_v23  ;;  %v7577_v45 = vadd.f32 %v17871_v24, %v22203_v31  ;;  %v17877_v40 = vadd.f32 %v22198_v38, %v17288_v27  ;;  %v7495_v48 = vpop.f32.mrb[47].mxu0  ;;  %v7921_v38 = vpack.c.bf16 %v22303_v5, %v22292_v62  ;;  %v18859_v62 = vld [vmem:[#allocation2 + $0x100] sm:$0xff]  ;;  %v18860_v24 = vld [vmem:[#allocation2 + $0x118] sm:$0xff] }
 0x6f9   : > { %7734 = vst [vmem:[#allocation2 + $0xf8] sm:$0xff] %v22392_v50  ;;  %v7575_v13 = vadd.f32 %v17874_v17, %v22203_v31  ;;  %v17880_v34 = vadd.f32 %v22192_v35, %v7495_v48  ;;  %v24714_v35 = vld [vmem:[#allocation5_spill] sm:$0xff]  ;;  %v7754_v23 = vld [vmem:[#allocation2 + $0x87] sm:$0xff]  ;;  %v7924_v12 = vpack.c.bf16 %v22296_v7, %v22290_v19  ;;  %v7757_v7 = vld [vmem:[#allocation2 + $0x9f] sm:$0xff] }
 0x6fa   : > { %7732 = vst [vmem:[#allocation2 + $0xe8] sm:$0xff] %v22396_v39  ;;  %vm7609_vm3 = vcmp.ge.f32.partialorder %v7577_v45, 0.0  ;;  %v7641_v54 = vmul.f32 0.2, %v7577_v45  ;;  %v7578_v42 = vadd.f32 %v17877_v40, %v22203_v31  ;;  %vm24715_vm7 = vnez %v24714_v35  ;;  %v18861_v17 = vld [vmem:[#allocation2 + $0x108] sm:$0xff]  ;;  %v7756_v48 = vld [vmem:[#allocation2 + $0x97] sm:$0xff] }
 0x6fb   : > { %vm7607_vm9 = vcmp.ge.f32.partialorder %v7575_v13, 0.0  ;;  %v7639_v10 = vmul.f32 0.2, %v7575_v13  ;;  %v7576_v16 = vadd.f32 %v17880_v34, %v22203_v31  ;;  %v13940_v59 = vpack.c.bf16 %v7754_v23, %v7753_v2  ;;  %v7755_v40 = vld [vmem:[#allocation2 + $0x8f] sm:$0xff]  ;;  %v7758_v19 = vld [vmem:[#allocation2 + $0xa7] sm:$0xff] }
 0x6fc   : > { %v7673_v56 = vsel %vm7609_vm3, %v7577_v45, %v7641_v54  ;;  %vm7610_vm4 = vcmp.ge.f32.partialorder %v7578_v42, 0.0  ;;  %v7642_v15 = vmul.f32 0.2, %v7578_v42  ;;  %13938 = vmatmul.mubr.msk.bf16.gmra.mrb[100].mxu1 %vm24713_vm11, %v22405_v25  ;;  %14061 = vmatmul.mubr.msk.bf16.gmra.mrb[136].mxu0 %vm24715_vm7, %v22405_v25  ;;  %v24716_v45 = vld [vmem:[#allocation6_spill] sm:$0xff]  ;;  %v7927_v34 = vpack.c.bf16 %v22335_v28, %v22324_v14  ;;  %v24718_v54 = vld [vmem:[#allocation7_spill] sm:$0xff]  ;;  %v7759_v14 = vld [vmem:[#allocation2 + $0xaf] sm:$0xff] }
 0x6fd   : > { %v22416_v57 = vadd.f32 %v18858_v41, %v7673_v56  ;;  %v7671_v32 = vsel %vm7607_vm9, %v7575_v13, %v7639_v10  ;;  %vm7608_vm1 = vcmp.ge.f32.partialorder %v7576_v16, 0.0  ;;  %v7640_v31 = vmul.f32 0.2, %v7576_v16  ;;  %8372 = vmatprep.mubr.bf16.mxu1 %v7921_v38  ;;  %8846 = vmatprep.mubr.bf16.mxu0 %v7921_v38  ;;  %v7760_v28 = vld [vmem:[#allocation2 + $0xb7] sm:$0xff] }
 0x6fe   : > { %v22418_v5 = vadd.f32 %v18859_v62, %v7671_v32  ;;  %v7674_v43 = vsel %vm7610_vm4, %v7578_v42, %v7642_v15  ;;  %v13943_v13 = vpack.c.bf16 %v7756_v48, %v7755_v40  ;;  %vm24719_vm3 = vnez %v24718_v54 }
 0x6ff   : > { %7737 = vst [vmem:[#allocation2 + $0x110] sm:$0xff] %v22416_v57  ;;  %v22421_v49 = vadd.f32 %v18860_v24, %v7674_v43  ;;  %v7672_v55 = vsel %vm7608_vm1, %v7576_v16, %v7640_v31  ;;  %vm24717_vm1 = vnez %v24716_v45  ;;  %v13946_v42 = vpack.c.bf16 %v7758_v19, %v7757_v7 }
 0x700   : > { %7735 = vst [vmem:[#allocation2 + $0x100] sm:$0xff] %v22418_v5  ;;  %v22424_v27 = vadd.f32 %v18861_v17, %v7672_v55  ;;  %v7930_v10 = vpack.c.bf16 %v22328_v47, %v22322_v1  ;;  %vm24720_vm9 = vnez %v24548_v58  ;;  %v13949_v16 = vpack.c.bf16 %v7760_v28, %v7759_v14  ;;  %v7762_v1 = vld [vmem:[#allocation2 + $0xc7] sm:$0xff]  ;;  %v7761_v47 = vld [vmem:[#allocation2 + $0xbf] sm:$0xff]  ;;  %v7768_v2 = vld [vmem:[#allocation2 + $0xf7] sm:$0xff] }
 0x701   : > { %7738 = vst [vmem:[#allocation2 + $0x118] sm:$0xff] %v22421_v49  ;;  %v7933_v38 = vpack.c.bf16 %v22369_v33, %v22356_v21  ;;  %vm24721_vm4 = vnez %v24550_v44  ;;  %v13952_v56 = vpack.c.bf16 %v7762_v1, %v7761_v47  ;;  %v7936_v15 = vpack.c.bf16 %v22360_v37, %v22354_v26  ;;  %v7763_v21 = vld [vmem:[#allocation2 + $0xcf] sm:$0xff]  ;;  %v7764_v33 = vld [vmem:[#allocation2 + $0xd7] sm:$0xff]  ;;  %v7766_v31 = vld [vmem:[#allocation2 + $0xe7] sm:$0xff] }
 0x702   : > { %7736 = vst [vmem:[#allocation2 + $0x108] sm:$0xff] %v22424_v27  ;;  %v13955_v41 = vpack.c.bf16 %v7764_v33, %v7763_v21  ;;  %v7939_v32 = vpack.c.bf16 %v22396_v39, %v22388_v60  ;;  %v7765_v55 = vld [vmem:[#allocation2 + $0xdf] sm:$0xff]  ;;  %v7942_v60 = vpack.c.bf16 %v22392_v50, %v22386_v6  ;;  %v7767_v39 = vld [vmem:[#allocation2 + $0xef] sm:$0xff]  ;;  %v8097_v48 = vpack.c.bf16 %v22421_v49, %v22416_v57 }
 0x703   : > { %v13958_v17 = vpack.c.bf16 %v7766_v31, %v7765_v55  ;;  %v7840_v57 = vld [vmem:[#allocation2 + $0x39] sm:$0xff]  ;;  %v7841_v49 = vld [vmem:[#allocation2 + $0x41] sm:$0xff]  ;;  %v7847_v31 = vld [vmem:[#allocation2 + $0x71] sm:$0xff] }
 0x704   : > { %13941 = vmatmul.mubr.msk.bf16.gmra.mrb[104].mxu1 %vm24715_vm7, %v13940_v59  ;;  %14064 = vmatmul.mubr.msk.bf16.gmra.mrb[140].mxu0 %vm24717_vm1, %v13940_v59  ;;  %v13961_v59 = vpack.c.bf16 %v7768_v2, %v7767_v39  ;;  %v18660_v28 = vld [vmem:[%s23926_s1 + $0x748] sm:$0xff]   ;;  %v7844_v1 = vld [vmem:[#allocation2 + $0x59] sm:$0xff] }
 0x705   : > { %8380 = vmatprep.mubr.bf16.mxu1 %v7924_v12  ;;  %8854 = vmatprep.mubr.bf16.mxu0 %v7924_v12  ;;  %v7945_v12 = vpack.c.bf16 %v22424_v27, %v22418_v5  ;;  %v7845_v47 = vld [vmem:[#allocation2 + $0x61] sm:$0xff]  ;;  %v18662_v33 = vld [vmem:[%s23926_s1 + $0x758] sm:$0xff]  }
 0x706   : > { %v7852_v39 = vld [vmem:[#allocation2 + $0x99] sm:$0xff]  ;;  %v7853_v2 = vld [vmem:[#allocation2 + $0xa1] sm:$0xff] }
 0x707   : > { %v7769_v50 = vld [vmem:[#allocation2 + $0xff] sm:$0xff] }
 0x708   : > { %v7997_v27 = vld [vmem:[#allocation2 + $0x117] sm:$0xff] }
 0x709   : > { %v7770_v6 = vld [vmem:[#allocation2 + $0x107] sm:$0xff]  ;;  %v7996_v5 = vld [vmem:[#allocation2 + $0x10f] sm:$0xff] }
 0x70a   : > { %v13964_v40 = vpack.c.bf16 %v7770_v6, %v7769_v50  ;;  %v13967_v19 = vpack.c.bf16 %v7997_v27, %v7996_v5  ;;  %v18666_v50 = vld [vmem:[%s23926_s1 + $0x778] sm:$0xff]   ;;  %v24727_v5 = vld [vmem:[#allocation45_spill] sm:$0xff]  ;;  %v18667_v27 = vld [vmem:[%s23926_s1 + $0x880] sm:$0xff]  }
 0x70c   : > { %13944 = vmatmul.mubr.msk.bf16.gmra.mrb[108].mxu1 %vm24717_vm1, %v13943_v13  ;;  %14067 = vmatmul.mubr.msk.bf16.gmra.mrb[144].mxu0 %vm24719_vm3, %v13943_v13  ;;  %v7837_v13 = vld [vmem:[#allocation2 + $0x21] sm:$0xff] }
 0x70d   : > { %8388 = vmatprep.mubr.bf16.mxu1 %v7927_v34  ;;  %8862 = vmatprep.mubr.bf16.mxu0 %v7927_v34  ;;  %v7838_v34 = vld [vmem:[#allocation2 + $0x29] sm:$0xff] }
 0x70e   : > { %v22486_v7 = vpack.c.bf16 %v7838_v34, %v7837_v13  ;;  %v7856_v13 = vld [vmem:[#allocation2 + $0xb9] sm:$0xff]  ;;  %v7857_v34 = vld [vmem:[#allocation2 + $0xc1] sm:$0xff] }
 0x714   : > { %13947 = vmatmul.mubr.msk.bf16.gmra.mrb[112].mxu1 %vm24719_vm3, %v13946_v42  ;;  %14070 = vmatmul.mubr.msk.bf16.gmra.mrb[148].mxu0 %vm24720_vm9, %v13946_v42  ;;  %v7842_v42 = vld [vmem:[#allocation2 + $0x49] sm:$0xff] }
 0x715   : > { %8396 = vmatprep.mubr.bf16.mxu1 %v7930_v10  ;;  %8870 = vmatprep.mubr.bf16.mxu0 %v7930_v10  ;;  %v7839_v10 = vld [vmem:[#allocation2 + $0x31] sm:$0xff] }
 0x716   : > { %v22493_v14 = vpack.c.bf16 %v7840_v57, %v7839_v10  ;;  %v7855_v57 = vld [vmem:[#allocation2 + $0xb1] sm:$0xff]  ;;  %v24729_v10 = vld [vmem:[#allocation47_spill] sm:$0xff] }
 0x71c   : > { %13950 = vmatmul.mubr.msk.bf16.gmra.mrb[116].mxu1 %vm24720_vm9, %v13949_v16  ;;  %14073 = vmatmul.mubr.msk.bf16.gmra.mrb[152].mxu0 %vm24721_vm4, %v13949_v16  ;;  %vm24722_vm9 = vnez %v24607_v3  ;;  %v22498_v16 = vpack.c.bf16 %v7842_v42, %v7841_v49  ;;  %v22558_v49 = vpack.c.bf16 %v7856_v13, %v7855_v57  ;;  %v7836_v13 = vld [vmem:[#allocation2 + $0x19] sm:$0xff]  ;;  %v24741_v57 = vld [vmem:[#allocation57_spill] sm:$0xff] }
 0x71d   : > { %8404 = vmatprep.mubr.bf16.mxu1 %v7933_v38  ;;  %8878 = vmatprep.mubr.bf16.mxu0 %v7933_v38  ;;  %v18661_v38 = vld [vmem:[%s23926_s1 + $0x750] sm:$0xff]   ;;  %vm24742_vm11 = vnez %v24741_v57 }
 0x724   : > { %13953 = vmatmul.mubr.msk.bf16.gmra.mrb[120].mxu1 %vm24721_vm4, %v13952_v56  ;;  %14076 = vmatmul.mubr.msk.bf16.gmra.mrb[156].mxu0 %vm24673_vm12, %v13952_v56  ;;  %v7846_v56 = vld [vmem:[#allocation2 + $0x69] sm:$0xff] }
 0x725   : > { %8412 = vmatprep.mubr.bf16.mxu1 %v7936_v15  ;;  %8886 = vmatprep.mubr.bf16.mxu0 %v7936_v15  ;;  %v7843_v15 = vld [vmem:[#allocation2 + $0x51] sm:$0xff] }
 0x726   : > { %v16193_v26 = vpop.f32.mrb[112].mxu0  ;;  %v22510_v21 = vpack.c.bf16 %v7844_v1, %v7843_v15  ;;  %v7861_v1 = vld [vmem:[#allocation2 + $0xe1] sm:$0xff] }
 0x727   : > { %v16194_v37 = vpop.f32.mrb[113].mxu0 }
 0x728   : > { %v22464_v62 = vadd.f32 %v16194_v37, %v16193_v26  ;;  %v16196_v43 = vpop.f32.mrb[114].mxu0  ;;  %v7849_v26 = vld [vmem:[#allocation2 + $0x81] sm:$0xff]  ;;  %v7850_v37 = vld [vmem:[#allocation2 + $0x89] sm:$0xff] }
 0x729   : > { %v16197_v24 = vpop.f32.mrb[115].mxu0  ;;  %v22531_v55 = vpack.c.bf16 %v7850_v37, %v7849_v26  ;;  %v7864_v26 = vld [vmem:[#allocation2 + $0xf9] sm:$0xff]  ;;  %v7865_v37 = vld [vmem:[#allocation2 + $0x101] sm:$0xff] }
 0x72a   : > { %v22466_v23 = vadd.f32 %v16197_v24, %v16196_v43  ;;  %v18664_v24 = vld [vmem:[%s23926_s1 + $0x768] sm:$0xff]  }
 0x72c   : > { %13956 = vmatmul.mubr.msk.bf16.gmra.mrb[124].mxu1 %vm24673_vm12, %v13955_v41  ;;  %14079 = vmatmul.mubr.msk.bf16.gmra.mrb[160].mxu0 %vm24722_vm9, %v13955_v41  ;;  %vm24723_vm12 = vnez %v24608_v8  ;;  %v22515_v41 = vpack.c.bf16 %v7846_v56, %v7845_v47  ;;  %v7862_v47 = vld [vmem:[#allocation2 + $0xe9] sm:$0xff]  ;;  %v7859_v56 = vld [vmem:[#allocation2 + $0xd1] sm:$0xff] }
 0x72d   : > { %8420 = vmatprep.mubr.bf16.mxu1 %v7939_v32  ;;  %8894 = vmatprep.mubr.bf16.mxu0 %v7939_v32  ;;  %v7848_v32 = vld [vmem:[#allocation2 + $0x79] sm:$0xff] }
 0x72e   : > { %v22526_v43 = vpack.c.bf16 %v7848_v32, %v7847_v31  ;;  %v24735_v32 = vld [vmem:[#allocation51_spill] sm:$0xff]  ;;  %v7866_v31 = vld [vmem:[#allocation2 + $0x109] sm:$0xff] }
 0x72f   : > { %vm24736_vm3 = vnez %v24735_v32 }
 0x734   : > { %13959 = vmatmul.mubr.msk.bf16.gmra.mrb[128].mxu1 %vm24722_vm9, %v13958_v17  ;;  %14082 = vmatmul.mubr.msk.bf16.gmra.mrb[164].mxu0 %vm24723_vm12, %v13958_v17  ;;  %v18865_v17 = vld [vmem:[#allocation2 + $0x38] sm:$0xff] }
 0x735   : > { %8428 = vmatprep.mubr.bf16.mxu1 %v7942_v60  ;;  %8902 = vmatprep.mubr.bf16.mxu0 %v7942_v60  ;;  %v18665_v60 = vld [vmem:[%s23926_s1 + $0x770] sm:$0xff]  }
 0x73c   : > { %13962 = vmatmul.mubr.msk.bf16.gmra.mrb[132].mxu1 %vm24723_vm12, %v13961_v59  ;;  %14085 = vmatmul.mubr.msk.bf16.gmra.mrb[168].mxu0 %vm24676_vm10, %v13961_v59  ;;  %v7854_v59 = vld [vmem:[#allocation2 + $0xa9] sm:$0xff]  ;;  %vm24730_vm12 = vnez %v24729_v10 }
 0x73d   : > { %8436 = vmatprep.mubr.bf16.mxu1 %v7945_v12  ;;  %8910 = vmatprep.mubr.bf16.mxu0 %v7945_v12  ;;  %v7851_v12 = vld [vmem:[#allocation2 + $0x91] sm:$0xff] }
 0x73e   : > { %v22542_v6 = vpack.c.bf16 %v7852_v39, %v7851_v12  ;;  %v22580_v39 = vpack.c.bf16 %v7866_v31, %v7865_v37  ;;  %v8032_v12 = vld [vmem:[#allocation2 + $0x111] sm:$0xff]  ;;  %v18675_v37 = vld [vmem:[%s23926_s1 + $0x8a0] sm:$0xff]  }
 0x73f   : > { %v18676_v31 = vld [vmem:[%s23926_s1 + $0x860] sm:$0xff]  }
 0x744   : > { %13965 = vmatmul.mubr.msk.bf16.gmra.mrb[136].mxu1 %vm24676_vm10, %v13964_v40  ;;  %14088 = vmatmul.mubr.msk.bf16.gmra.mrb[172].mxu0 %vm24677_vm8, %v13964_v40  ;;  %v22547_v40 = vpack.c.bf16 %v7854_v59, %v7853_v2  ;;  %vm24728_vm10 = vnez %v24727_v5  ;;  %v24737_v2 = vld [vmem:[#allocation54_spill] sm:$0xff]  ;;  %v24739_v59 = vld [vmem:[#allocation55_spill] sm:$0xff] }
 0x745   : > { %8444 = vmatprep.mubr.bf16.mxu1 %v8097_v48  ;;  %v24725_v48 = vld [vmem:[#allocation44_spill] sm:$0xff]  ;;  %vm24738_vm1 = vnez %v24737_v2  ;;  %vm24740_vm7 = vnez %v24739_v59 }
 0x74c   : > { %13968 = vmatmul.mubr.msk.bf16.gmra.mrb[140].mxu1 %vm24677_vm8, %v13967_v19  ;;  %vm24726_vm8 = vnez %v24725_v48  ;;  %v7858_v19 = vld [vmem:[#allocation2 + $0xc9] sm:$0xff] }
 0x74d   : > { %17305 = vmatprep.mubr.msk.bf16.mxu1 %vm24613_vm2, %v22486_v7  ;;  %v22560_v42 = vpack.c.bf16 %v7858_v19, %v7857_v34 }
 0x754   : > { %17306 = vmatmul.mubr.msk.bf16.vlgmr.msra.gmra.mrb[48].mxu1 %vm24615_vm0, %v22493_v14 }
 0x755   : > { %17309 = vmatprep.mubr.msk.bf16.mxu1 %vm24617_vm13, %v22498_v16  ;;  %17338 = vmatpush3.bf16.msra.mxu1 %v22366_v52  ;;  %v18663_v52 = vld [vmem:[%s23926_s1 + $0x760] sm:$0xff]  }
 0x756   : > { %17339 = vmatprep.subr.bf16.mxu1 %v18660_v28 }
 0x759   : > { %17340 = vmatpush3.bf16.msra.mxu1 %v18660_v28  ;;  %v24731_v28 = vld [vmem:[#allocation48_spill] sm:$0xff] }
 0x75a   : > { %17341 = vmatprep.subr.bf16.mxu1 %v18661_v38  ;;  %vm24732_vm9 = vnez %v24731_v28 }
 0x75c   : > { %17310 = vmatmul.mubr.msk.bf16.gmra.mrb[52].mxu1 %vm24619_vm14, %v22510_v21 }
 0x75d   : > { %17313 = vmatprep.mubr.msk.bf16.mxu1 %vm24621_vm6, %v22515_v41  ;;  %17342 = vmatpush3.bf16.msra.mxu1 %v18661_v38  ;;  %v7860_v38 = vld [vmem:[#allocation2 + $0xd9] sm:$0xff] }
 0x75e   : > { %17343 = vmatprep.subr.bf16.mxu1 %v18662_v33  ;;  %v22568_v15 = vpack.c.bf16 %v7860_v38, %v7859_v56  ;;  %v18668_v38 = vld [vmem:[%s23926_s1 + $0x840] sm:$0xff]   ;;  %v18671_v56 = vld [vmem:[%s23926_s1 + $0x890] sm:$0xff]  }
 0x761   : > { %17344 = vmatpush3.bf16.msra.mxu1 %v18662_v33  ;;  %v22570_v33 = vpack.c.bf16 %v7862_v47, %v7861_v1  ;;  %v18669_v1 = vld [vmem:[%s23926_s1 + $0x888] sm:$0xff]  }
 0x762   : > { %17345 = vmatprep.subr.bf16.mxu1 %v18663_v52  ;;  %v18670_v47 = vld [vmem:[%s23926_s1 + $0x848] sm:$0xff]  }
 0x764   : > { %17314 = vmatmul.mubr.msk.bf16.gmra.mrb[56].mxu1 %vm24623_vm15, %v22526_v43 }
 0x765   : > { %17317 = vmatprep.mubr.msk.bf16.mxu1 %vm24625_vm5, %v22531_v55  ;;  %17346 = vmatpush3.bf16.msra.mxu1 %v18663_v52  ;;  %v24733_v52 = vld [vmem:[#allocation50_spill] sm:$0xff] }
 0x766   : > { %17347 = vmatprep.subr.bf16.mxu1 %v18664_v24  ;;  %vm24734_vm4 = vnez %v24733_v52 }
 0x769   : > { %17348 = vmatpush3.bf16.msra.mxu1 %v18664_v24  ;;  %v7863_v24 = vld [vmem:[#allocation2 + $0xf1] sm:$0xff] }
 0x76a   : > { %17349 = vmatprep.subr.bf16.mxu1 %v18665_v60 }
 0x76c   : > { %17318 = vmatmul.mubr.msk.bf16.gmra.mrb[60].mxu1 %vm24726_vm8, %v22542_v6 }
 0x76d   : > { %17321 = vmatprep.mubr.msk.bf16.mxu1 %vm24728_vm10, %v22547_v40  ;;  %17350 = vmatpush3.bf16.msra.mxu1 %v18665_v60  ;;  %v22578_v60 = vpack.c.bf16 %v7864_v26, %v7863_v24  ;;  %v18672_v26 = vld [vmem:[%s23926_s1 + $0x850] sm:$0xff]  }
 0x76e   : > { %17351 = vmatprep.subr.bf16.mxu1 %v18666_v50  ;;  %v18679_v24 = vld [vmem:[%s23926_s1 + $0x8b0] sm:$0xff]  }
 0x771   : > { %17352 = vmatpush3.bf16.msra.mxu1 %v18666_v50  ;;  %v8033_v50 = vld [vmem:[#allocation2 + $0x119] sm:$0xff] }
 0x772   : > { %16313 = vmatprep.subr.bf16.mxu1 %v18667_v27  ;;  %v7835_v27 = vld [vmem:[#allocation2 + $0x11] sm:$0xff]  ;;  %v14015_v34 = vpack.c.bf16 %v8033_v50, %v8032_v12 }
 0x773   : > { %v14090_v19 = vpack.c.bf16 %v7836_v13, %v7835_v27 }
 0x774   : > { %17322 = vmatmul.mubr.msk.bf16.gmra.mrb[64].mxu1 %vm24730_vm12, %v22558_v49 }
 0x775   : > { %17325 = vmatprep.mubr.msk.bf16.mxu1 %vm24732_vm9, %v22560_v42 }
 0x77c   : > { %17326 = vmatmul.mubr.msk.bf16.gmra.mrb[68].mxu1 %vm24734_vm4, %v22568_v15 }
 0x77d   : > { %17329 = vmatprep.mubr.msk.bf16.mxu1 %vm24736_vm3, %v22570_v33 }
 0x784   : > { %17330 = vmatmul.mubr.msk.bf16.gmra.mrb[72].mxu1 %vm24738_vm1, %v22578_v60 }
 0x785   : > { %17333 = vmatprep.mubr.msk.bf16.mxu1 %vm24740_vm7, %v22580_v39 }
 0x78c   : > { %17334 = vmatmul.mubr.msk.bf16.gmra.mrb[76].mxu1 %vm24742_vm11, %v14015_v34 }
 0x78d   : > { %17353 = vmatprep.mubr.msk.bf16.mxu1 %vm24613_vm2, %v14090_v19 }
 0x794   : > { %17354 = vmatmul.mubr.msk.bf16.vlgmr.msra.gmra.mrb[48].mxu1 %vm24615_vm0, %v22486_v7  ;;  %v18673_v7 = vld [vmem:[%s23926_s1 + $0x898] sm:$0xff]  }
 0x795   : > { %17357 = vmatprep.mubr.msk.bf16.mxu1 %vm24617_vm13, %v22493_v14  ;;  %16314 = vmatpush3.bf16.msra.mxu1 %v18668_v38  ;;  %v18674_v14 = vld [vmem:[%s23926_s1 + $0x858] sm:$0xff]  }
 0x796   : > { %16315 = vmatprep.subr.bf16.mxu1 %v18669_v1 }
 0x799   : > { %16316 = vmatpush3.bf16.msra.mxu1 %v18670_v47 }
 0x79a   : > { %16317 = vmatprep.subr.bf16.mxu1 %v18671_v56  ;;  %v18681_v56 = vld [vmem:[%s23926_s1 + $0x8b8] sm:$0xff]  }
 0x79c   : > { %17358 = vmatmul.mubr.msk.bf16.gmra.mrb[52].mxu1 %vm24619_vm14, %v22498_v16  ;;  %v18677_v16 = vld [vmem:[%s23926_s1 + $0x8a8] sm:$0xff]  }
 0x79d   : > { %17361 = vmatprep.mubr.msk.bf16.mxu1 %vm24621_vm6, %v22510_v21  ;;  %16318 = vmatpush3.bf16.msra.mxu1 %v18672_v26  ;;  %v18678_v21 = vld [vmem:[%s23926_s1 + $0x868] sm:$0xff]  }
 0x79e   : > { %16319 = vmatprep.subr.bf16.mxu1 %v18673_v7 }
 0x7a1   : > { %16320 = vmatpush3.bf16.msra.mxu1 %v18674_v14 }
 0x7a2   : > { %16321 = vmatprep.subr.bf16.mxu1 %v18675_v37 }
 0x7a4   : > { %17362 = vmatmul.mubr.msk.bf16.gmra.mrb[56].mxu1 %vm24623_vm15, %v22515_v41 }
 0x7a5   : > { %17365 = vmatprep.mubr.msk.bf16.mxu1 %vm24625_vm5, %v22526_v43  ;;  %16322 = vmatpush3.bf16.msra.mxu1 %v18676_v31  ;;  %v18680_v43 = vld [vmem:[%s23926_s1 + $0x870] sm:$0xff]   ;;  %v18682_v31 = vld [vmem:[%s23926_s1 + $0x878] sm:$0xff]  }
 0x7a6   : > { %16323 = vmatprep.subr.bf16.mxu1 %v18677_v16 }
 0x7a7   : > { %v16057_v12 = vpop.f32.mrb[80].mxu1  ;;  %v16199_v50 = vpop.f32.mrb[116].mxu0 }
 0x7a8   : > { %v16058_v27 = vpop.f32.mrb[81].mxu1  ;;  %v16200_v13 = vpop.f32.mrb[117].mxu0 }
 0x7a9   : > { %v16059_v34 = vadd.f32 %v16058_v27, %v16057_v12  ;;  %v16201_v41 = vadd.f32 %v16200_v13, %v16199_v50  ;;  %v16060_v19 = vpop.f32.mrb[82].mxu1  ;;  %v16202_v38 = vpop.f32.mrb[118].mxu0  ;;  %16324 = vmatpush3.bf16.msra.mxu1 %v18678_v21 }
 0x7aa   : > { %v16061_v1 = vpop.f32.mrb[83].mxu1  ;;  %v16203_v47 = vpop.f32.mrb[119].mxu0  ;;  %16325 = vmatprep.subr.bf16.mxu1 %v18679_v24 }
 0x7ab   : > { %v22653_v26 = vadd.f32 %v22464_v62, %v16059_v34  ;;  %v16062_v7 = vadd.f32 %v16061_v1, %v16060_v19  ;;  %v16204_v14 = vadd.f32 %v16203_v47, %v16202_v38  ;;  %v22670_v62 = vld [vmem:[%s23926_s1 + $0x8c0] sm:$0xff]  }
 0x7ac   : > { %17366 = vmatmul.mubr.msk.bf16.gmra.mrb[60].mxu1 %vm24726_vm8, %v22531_v55 }
 0x7ad   : > { %v22659_v37 = vadd.f32 %v22466_v23, %v16062_v7  ;;  %17369 = vmatprep.mubr.msk.bf16.mxu1 %vm24728_vm10, %v22542_v6  ;;  %16326 = vmatpush3.bf16.msra.mxu1 %v18680_v43 }
 0x7ae   : > { %16327 = vmatprep.subr.bf16.mxu1 %v18681_v56 }
 0x7af   : > { %v16063_v16 = vpop.f32.mrb[84].mxu1  ;;  %v16205_v55 = vpop.f32.mrb[120].mxu0 }
 0x7b0   : > { %v16064_v21 = vpop.f32.mrb[85].mxu1  ;;  %v16206_v23 = vpop.f32.mrb[121].mxu0 }
 0x7b1   : > { %v16065_v24 = vadd.f32 %v16064_v21, %v16063_v16  ;;  %v16207_v12 = vadd.f32 %v16206_v23, %v16205_v55  ;;  %v16066_v50 = vpop.f32.mrb[86].mxu1  ;;  %v16208_v27 = vpop.f32.mrb[122].mxu0  ;;  %16328 = vmatpush3.bf16.msra.mxu1 %v18682_v31 }
 0x7b2   : > { %v16067_v6 = vpop.f32.mrb[87].mxu1  ;;  %v16209_v13 = vpop.f32.mrb[123].mxu0  ;;  %17385 = vmatprep.subr.bf16.mxu1 %v22670_v62 }
 0x7b3   : > { %v22673_v34 = vadd.f32 %v16201_v41, %v16065_v24  ;;  %v16068_v19 = vadd.f32 %v16067_v6, %v16066_v50  ;;  %v16210_v38 = vadd.f32 %v16209_v13, %v16208_v27 }
 0x7b4   : > { %17370 = vmatmul.mubr.msk.bf16.gmra.mrb[64].mxu1 %vm24730_vm12, %v22547_v40 }
 0x7b5   : > { %v22678_v43 = vadd.f32 %v16204_v14, %v16068_v19  ;;  %17373 = vmatprep.mubr.msk.bf16.mxu1 %vm24732_vm9, %v22558_v49 }
 0x7b7   : > { %v16069_v1 = vpop.f32.mrb[88].mxu1  ;;  %v16211_v47 = vpop.f32.mrb[124].mxu0 }
 0x7b8   : > { %v16070_v56 = vpop.f32.mrb[89].mxu1  ;;  %v16212_v7 = vpop.f32.mrb[125].mxu0 }
 0x7b9   : > { %v16071_v31 = vadd.f32 %v16070_v56, %v16069_v1  ;;  %v16213_v16 = vadd.f32 %v16212_v7, %v16211_v47  ;;  %v16072_v41 = vpop.f32.mrb[90].mxu1  ;;  %v16214_v55 = vpop.f32.mrb[126].mxu0 }
 0x7ba   : > { %v16073_v21 = vpop.f32.mrb[91].mxu1  ;;  %v16215_v23 = vpop.f32.mrb[127].mxu0 }
 0x7bb   : > { %v22683_v24 = vadd.f32 %v16207_v12, %v16071_v31  ;;  %v16074_v50 = vadd.f32 %v16073_v21, %v16072_v41  ;;  %v16216_v40 = vadd.f32 %v16215_v23, %v16214_v55 }
 0x7bc   : > { %17374 = vmatmul.mubr.msk.bf16.gmra.mrb[68].mxu1 %vm24734_vm4, %v22560_v42 }
 0x7bd   : > { %v22688_v14 = vadd.f32 %v16210_v38, %v16074_v50  ;;  %17377 = vmatprep.mubr.msk.bf16.mxu1 %vm24736_vm3, %v22568_v15  ;;  %v9145_v50 = vld [vmem:[#allocation2 + $0x38] sm:$0xff] }
 0x7bf   : > { %v16075_v49 = vpop.f32.mrb[92].mxu1  ;;  %v16217_v27 = vpop.f32.mrb[128].mxu0 }
 0x7c0   : > { %v16076_v6 = vpop.f32.mrb[93].mxu1  ;;  %v16218_v13 = vpop.f32.mrb[129].mxu0 }
 0x7c1   : > { %v16077_v19 = vadd.f32 %v16076_v6, %v16075_v49  ;;  %v16219_v1 = vadd.f32 %v16218_v13, %v16217_v27  ;;  %v16078_v12 = vpop.f32.mrb[94].mxu1  ;;  %v16220_v47 = vpop.f32.mrb[130].mxu0 }
 0x7c2   : > { %v16079_v56 = vpop.f32.mrb[95].mxu1  ;;  %v16221_v7 = vpop.f32.mrb[131].mxu0 }
 0x7c3   : > { %v22693_v31 = vadd.f32 %v16213_v16, %v16077_v19  ;;  %v16080_v41 = vadd.f32 %v16079_v56, %v16078_v12  ;;  %v16222_v42 = vadd.f32 %v16221_v7, %v16220_v47  ;;  %v9144_v12 = vld [vmem:[#allocation2 + $0x30] sm:$0xff] }
 0x7c4   : > { %17378 = vmatmul.mubr.msk.bf16.gmra.mrb[72].mxu1 %vm24738_vm1, %v22570_v33  ;;  %v9241_v56 = vpack.c.bf16 %v9145_v50, %v9144_v12  ;;  %vm24769_vm1 = vnez %v24608_v8 }
 0x7c5   : > { %24743 = vst [vmem:[#allocation12_spill] sm:$0xff] %v22693_v31  ;;  %v22698_v38 = vadd.f32 %v16216_v40, %v16080_v41  ;;  %17381 = vmatprep.mubr.msk.bf16.mxu1 %vm24740_vm7, %v22578_v60  ;;  %vm24766_vm7 = vnez %v24550_v44 }
 0x7c7   : > { %24744 = vst [vmem:[#allocation10_spill] sm:$0xff] %v22698_v38  ;;  %v16081_v15 = vpop.f32.mrb[96].mxu1  ;;  %v16223_v55 = vpop.f32.mrb[132].mxu0  ;;  %v9147_v38 = vld [vmem:[#allocation2 + $0x48] sm:$0xff] }
 0x7c8   : > { %v16082_v21 = vpop.f32.mrb[97].mxu1  ;;  %v16224_v23 = vpop.f32.mrb[133].mxu0 }
 0x7c9   : > { %v16083_v49 = vadd.f32 %v16082_v21, %v16081_v15  ;;  %v16225_v16 = vadd.f32 %v16224_v23, %v16223_v55  ;;  %v16084_v27 = vpop.f32.mrb[98].mxu1  ;;  %v16226_v6 = vpop.f32.mrb[134].mxu0  ;;  %v9080_v15 = vld [vmem:[#allocation2 + $0x2f] sm:$0xff]  ;;  %v9081_v55 = vld [vmem:[#allocation2 + $0x37] sm:$0xff] }
 0x7ca   : > { %v16085_v13 = vpop.f32.mrb[99].mxu1  ;;  %v16227_v19 = vpop.f32.mrb[135].mxu0 }
 0x7cb   : > { %v22703_v47 = vadd.f32 %v16219_v1, %v16083_v49  ;;  %v16086_v33 = vadd.f32 %v16085_v13, %v16084_v27  ;;  %v16228_v40 = vadd.f32 %v16227_v19, %v16226_v6  ;;  %v14210_v13 = vpack.c.bf16 %v9081_v55, %v9080_v15  ;;  %v9146_v19 = vld [vmem:[#allocation2 + $0x40] sm:$0xff] }
 0x7cc   : > { %17382 = vmatmul.mubr.msk.bf16.gmra.mrb[76].mxu1 %vm24742_vm11, %v22580_v39  ;;  %v18684_v39 = vld [vmem:[%s23926_s1 + $0x8c8] sm:$0xff]   ;;  %vm24747_vm11 = vnez %v24563_v51 }
 0x7cd   : > { %v22708_v60 = vadd.f32 %v16222_v42, %v16086_v33  ;;  %9513 = vmatprep.mubr.bf16.mxu1 %v9241_v56  ;;  %v9244_v56 = vpack.c.bf16 %v9147_v38, %v9146_v19  ;;  %v9148_v19 = vld [vmem:[#allocation2 + $0x50] sm:$0xff] }
 0x7cf   : > { %24745 = vst [vmem:[#allocation16_spill] sm:$0xff] %v22708_v60  ;;  %v16087_v7 = vpop.f32.mrb[100].mxu1  ;;  %v16229_v41 = vpop.f32.mrb[136].mxu0 }
 0x7d0   : > { %v16088_v21 = vpop.f32.mrb[101].mxu1  ;;  %v16230_v23 = vpop.f32.mrb[137].mxu0 }
 0x7d1   : > { %v16089_v31 = vadd.f32 %v16088_v21, %v16087_v7  ;;  %v16231_v1 = vadd.f32 %v16230_v23, %v16229_v41  ;;  %v16090_v49 = vpop.f32.mrb[102].mxu1  ;;  %v16232_v27 = vpop.f32.mrb[138].mxu0  ;;  %v18685_v41 = vld [vmem:[%s23926_s1 + $0x8d0] sm:$0xff]   ;;  %v9149_v23 = vld [vmem:[#allocation2 + $0x58] sm:$0xff] }
 0x7d2   : > { %v16091_v6 = vpop.f32.mrb[103].mxu1  ;;  %v16233_v50 = vpop.f32.mrb[139].mxu0  ;;  %v9247_v60 = vpack.c.bf16 %v9149_v23, %v9148_v19 }
 0x7d3   : > { %v22713_v42 = vadd.f32 %v16225_v16, %v16089_v31  ;;  %v16092_v12 = vadd.f32 %v16091_v6, %v16090_v49  ;;  %v16234_v33 = vadd.f32 %v16233_v50, %v16232_v27  ;;  %v9083_v31 = vld [vmem:[#allocation2 + $0x47] sm:$0xff] }
 0x7d4   : > { %14211 = vmatmul.mubr.msk.bf16.vlgmr.msra.gmra.mrb[176].mxu1 %vm24747_vm11, %v14210_v13  ;;  %vm24749_vm11 = vnez %v24704_v46 }
 0x7d5   : > { %24746 = vst [vmem:[#allocation14_spill] sm:$0xff] %v22713_v42  ;;  %v22717_v7 = vadd.f32 %v16228_v40, %v16092_v12  ;;  %9521 = vmatprep.mubr.bf16.mxu1 %v9244_v56  ;;  %17386 = vmatpush3.bf16.msra.mxu1 %v22670_v62  ;;  %v9082_v40 = vld [vmem:[#allocation2 + $0x3f] sm:$0xff] }
 0x7d6   : > { %17387 = vmatprep.subr.bf16.mxu1 %v18684_v39  ;;  %v14213_v62 = vpack.c.bf16 %v9083_v31, %v9082_v40  ;;  %v18686_v12 = vld [vmem:[%s23926_s1 + $0x8d8] sm:$0xff]  }
 0x7d7   : > { %24748 = vst [vmem:[#allocation43_spill] sm:$0xff] %v22717_v7  ;;  %v16093_v15 = vpop.f32.mrb[104].mxu1  ;;  %v16235_v55 = vpop.f32.mrb[140].mxu0 }
 0x7d8   : > { %v16094_v16 = vpop.f32.mrb[105].mxu1  ;;  %v16236_v21 = vpop.f32.mrb[141].mxu0 }
 0x7d9   : > { %v16095_v38 = vadd.f32 %v16094_v16, %v16093_v15  ;;  %v16237_v49 = vadd.f32 %v16236_v21, %v16235_v55  ;;  %v16096_v27 = vpop.f32.mrb[106].mxu1  ;;  %v16238_v6 = vpop.f32.mrb[142].mxu0  ;;  %17388 = vmatpush3.bf16.msra.mxu1 %v18684_v39  ;;  %v18687_v39 = vld [vmem:[%s23926_s1 + $0x8e0] sm:$0xff]   ;;  %v9084_v16 = vld [vmem:[#allocation2 + $0x4f] sm:$0xff] }
 0x7da   : > { %v16097_v50 = vpop.f32.mrb[107].mxu1  ;;  %v16239_v13 = vpop.f32.mrb[143].mxu0  ;;  %17389 = vmatprep.subr.bf16.mxu1 %v18685_v41 }
 0x7db   : > { %v22726_v56 = vadd.f32 %v16231_v1, %v16095_v38  ;;  %v16098_v7 = vadd.f32 %v16097_v50, %v16096_v27  ;;  %v16240_v42 = vadd.f32 %v16239_v13, %v16238_v6  ;;  %v9085_v1 = vld [vmem:[#allocation2 + $0x57] sm:$0xff]  ;;  %v9151_v27 = vld [vmem:[#allocation2 + $0x68] sm:$0xff] }
 0x7dc   : > { %14214 = vmatmul.mubr.msk.bf16.gmra.mrb[180].mxu1 %vm24749_vm11, %v14213_v62  ;;  %v18688_v13 = vld [vmem:[%s23926_s1 + $0x8e8] sm:$0xff]   ;;  %vm24752_vm11 = vnez %v24706_v30 }
 0x7dd   : > { %v22730_v15 = vadd.f32 %v16234_v33, %v16098_v7  ;;  %9529 = vmatprep.mubr.bf16.mxu1 %v9247_v60  ;;  %17390 = vmatpush3.bf16.msra.mxu1 %v18685_v41  ;;  %v14216_v7 = vpack.c.bf16 %v9085_v1, %v9084_v16  ;;  %v9150_v41 = vld [vmem:[#allocation2 + $0x60] sm:$0xff] }
 0x7de   : > { %17391 = vmatprep.subr.bf16.mxu1 %v18686_v12  ;;  %v9087_v1 = vld [vmem:[#allocation2 + $0x67] sm:$0xff] }
 0x7df   : > { %24750 = vst [vmem:[#allocation19_spill] sm:$0xff] %v22730_v15  ;;  %v16099_v55 = vpop.f32.mrb[108].mxu1  ;;  %v16241_v31 = vpop.f32.mrb[144].mxu0  ;;  %v9250_v15 = vpack.c.bf16 %v9151_v27, %v9150_v41 }
 0x7e0   : > { %v16100_v21 = vpop.f32.mrb[109].mxu1  ;;  %v16242_v38 = vpop.f32.mrb[145].mxu0 }
 0x7e1   : > { %v16101_v23 = vadd.f32 %v16100_v21, %v16099_v55  ;;  %v16243_v6 = vadd.f32 %v16242_v38, %v16241_v31  ;;  %v16102_v40 = vpop.f32.mrb[110].mxu1  ;;  %v16244_v50 = vpop.f32.mrb[146].mxu0  ;;  %17392 = vmatpush3.bf16.msra.mxu1 %v18686_v12  ;;  %v18689_v12 = vld [vmem:[%s23926_s1 + $0x8f0] sm:$0xff]   ;;  %v9153_v38 = vld [vmem:[#allocation2 + $0x78] sm:$0xff] }
 0x7e2   : > { %v16103_v33 = vpop.f32.mrb[111].mxu1  ;;  %v16245_v60 = vpop.f32.mrb[147].mxu0  ;;  %17393 = vmatprep.subr.bf16.mxu1 %v18687_v39 }
 0x7e3   : > { %v22738_v62 = vadd.f32 %v16237_v49, %v16101_v23  ;;  %v16104_v19 = vadd.f32 %v16103_v33, %v16102_v40  ;;  %v16246_v46 = vadd.f32 %v16245_v60, %v16244_v50  ;;  %v9086_v33 = vld [vmem:[#allocation2 + $0x5f] sm:$0xff]  ;;  %v9152_v60 = vld [vmem:[#allocation2 + $0x70] sm:$0xff] }
 0x7e4   : > { %14217 = vmatmul.mubr.msk.bf16.gmra.mrb[184].mxu1 %vm24752_vm11, %v14216_v7  ;;  %v18690_v7 = vld [vmem:[%s23926_s1 + $0x8f8] sm:$0xff]   ;;  %vm24754_vm11 = vnez %v24708_v29 }
 0x7e5   : > { %24751 = vst [vmem:[#allocation20_spill] sm:$0xff] %v22738_v62  ;;  %v22742_v55 = vadd.f32 %v16240_v42, %v16104_v19  ;;  %9537 = vmatprep.mubr.bf16.mxu1 %v9250_v15  ;;  %17394 = vmatpush3.bf16.msra.mxu1 %v18687_v39  ;;  %v14219_v39 = vpack.c.bf16 %v9087_v1, %v9086_v33 }
 0x7e6   : > { %17395 = vmatprep.subr.bf16.mxu1 %v18688_v13 }
 0x7e7   : > { %24753 = vst [vmem:[#allocation22_spill] sm:$0xff] %v22742_v55  ;;  %v16105_v31 = vpop.f32.mrb[112].mxu1  ;;  %v16247_v16 = vpop.f32.mrb[148].mxu0  ;;  %v9253_v55 = vpack.c.bf16 %v9153_v38, %v9152_v60 }
 0x7e8   : > { %v16106_v49 = vpop.f32.mrb[113].mxu1  ;;  %v16248_v21 = vpop.f32.mrb[149].mxu0 }
 0x7e9   : > { %v16107_v23 = vadd.f32 %v16106_v49, %v16105_v31  ;;  %v16249_v27 = vadd.f32 %v16248_v21, %v16247_v16  ;;  %v16108_v40 = vpop.f32.mrb[114].mxu1  ;;  %v16250_v50 = vpop.f32.mrb[150].mxu0  ;;  %17396 = vmatpush3.bf16.msra.mxu1 %v18688_v13  ;;  %v9155_v21 = vld [vmem:[#allocation2 + $0x88] sm:$0xff] }
 0x7ea   : > { %v16109_v42 = vpop.f32.mrb[115].mxu1  ;;  %v16251_v15 = vpop.f32.mrb[151].mxu0  ;;  %17397 = vmatprep.subr.bf16.mxu1 %v18689_v12 }
 0x7eb   : > { %v22750_v41 = vadd.f32 %v16243_v6, %v16107_v23  ;;  %v16110_v19 = vadd.f32 %v16109_v42, %v16108_v40  ;;  %v16252_v30 = vadd.f32 %v16251_v15, %v16250_v50  ;;  %v9154_v50 = vld [vmem:[#allocation2 + $0x80] sm:$0xff] }
 0x7ec   : > { %14220 = vmatmul.mubr.msk.bf16.gmra.mrb[188].mxu1 %vm24754_vm11, %v14219_v39  ;;  %vm24755_vm11 = vnez %v24710_v11 }
 0x7ed   : > { %v22754_v31 = vadd.f32 %v16246_v46, %v16110_v19  ;;  %9545 = vmatprep.mubr.bf16.mxu1 %v9253_v55  ;;  %17398 = vmatpush3.bf16.msra.mxu1 %v18689_v12  ;;  %v9256_v55 = vpack.c.bf16 %v9155_v21, %v9154_v50  ;;  %v9091_v19 = vld [vmem:[#allocation2 + $0x87] sm:$0xff] }
 0x7ee   : > { %17399 = vmatprep.subr.bf16.mxu1 %v18690_v7 }
 0x7ef   : > { %v16111_v13 = vpop.f32.mrb[116].mxu1  ;;  %v16253_v16 = vpop.f32.mrb[152].mxu0 }
 0x7f0   : > { %v16112_v1 = vpop.f32.mrb[117].mxu1  ;;  %v16254_v49 = vpop.f32.mrb[153].mxu0 }
 0x7f1   : > { %v16113_v33 = vadd.f32 %v16112_v1, %v16111_v13  ;;  %v16255_v62 = vadd.f32 %v16254_v49, %v16253_v16  ;;  %v16114_v6 = vpop.f32.mrb[118].mxu1  ;;  %v16256_v23 = vpop.f32.mrb[154].mxu0  ;;  %17400 = vmatpush3.bf16.msra.mxu1 %v18690_v7  ;;  %v9157_v16 = vld [vmem:[#allocation2 + $0x98] sm:$0xff] }
 0x7f2   : > { %v16115_v40 = vpop.f32.mrb[119].mxu1  ;;  %v16257_v38 = vpop.f32.mrb[155].mxu0 }
 0x7f3   : > { %v22756_v42 = vadd.f32 %v16249_v27, %v16113_v33  ;;  %v16116_v46 = vadd.f32 %v16115_v40, %v16114_v6  ;;  %v16258_v15 = vadd.f32 %v16257_v38, %v16256_v23  ;;  %v9090_v6 = vld [vmem:[#allocation2 + $0x7f] sm:$0xff]  ;;  %v9156_v38 = vld [vmem:[#allocation2 + $0x90] sm:$0xff] }
 0x7f4   : > { %14223 = vmatmul.mubr.msk.bf16.gmra.mrb[192].mxu1 %vm24755_vm11, %v22405_v25  ;;  %v14225_v40 = vpack.c.bf16 %v9091_v19, %v9090_v6  ;;  %vm24757_vm11 = vnez %v24712_v63  ;;  %v9161_v63 = vld [vmem:[#allocation2 + $0xb8] sm:$0xff] }
 0x7f5   : > { %v22761_v12 = vadd.f32 %v16252_v30, %v16116_v46  ;;  %9553 = vmatprep.mubr.bf16.mxu1 %v9256_v55  ;;  %v9259_v46 = vpack.c.bf16 %v9157_v16, %v9156_v38 }
 0x7f7   : > { %24756 = vst [vmem:[#allocation17_spill] sm:$0xff] %v22761_v12  ;;  %v16117_v39 = vpop.f32.mrb[120].mxu1  ;;  %v16259_v60 = vpop.f32.mrb[156].mxu0  ;;  %v9159_v12 = vld [vmem:[#allocation2 + $0xa8] sm:$0xff] }
 0x7f8   : > { %v16118_v13 = vpop.f32.mrb[121].mxu1  ;;  %v16260_v7 = vpop.f32.mrb[157].mxu0 }
 0x7f9   : > { %v16119_v1 = vadd.f32 %v16118_v13, %v16117_v39  ;;  %v16261_v49 = vadd.f32 %v16260_v7, %v16259_v60  ;;  %v16120_v27 = vpop.f32.mrb[122].mxu1  ;;  %v16262_v33 = vpop.f32.mrb[158].mxu0  ;;  %v9092_v13 = vld [vmem:[#allocation2 + $0x8f] sm:$0xff]  ;;  %v9093_v7 = vld [vmem:[#allocation2 + $0x97] sm:$0xff] }
 0x7fa   : > { %v16121_v23 = vpop.f32.mrb[123].mxu1  ;;  %v16263_v21 = vpop.f32.mrb[159].mxu0  ;;  %v14228_v16 = vpack.c.bf16 %v9093_v7, %v9092_v13 }
 0x7fb   : > { %v22763_v50 = vadd.f32 %v16255_v62, %v16119_v1  ;;  %v16122_v30 = vadd.f32 %v16121_v23, %v16120_v27  ;;  %v16264_v25 = vadd.f32 %v16263_v21, %v16262_v33  ;;  %v9158_v23 = vld [vmem:[#allocation2 + $0xa0] sm:$0xff] }
 0x7fc   : > { %14226 = vmatmul.mubr.msk.bf16.gmra.mrb[196].mxu1 %vm24757_vm11, %v14225_v40  ;;  %v9262_v38 = vpack.c.bf16 %v9159_v12, %v9158_v23  ;;  %vm24759_vm11 = vnez %v24714_v35 }
 0x7fd   : > { %v22767_v55 = vadd.f32 %v16258_v15, %v16122_v30  ;;  %9561 = vmatprep.mubr.bf16.mxu1 %v9259_v46 }
 0x7ff   : > { %24758 = vst [vmem:[#allocation21_spill] sm:$0xff] %v22767_v55  ;;  %v16123_v39 = vpop.f32.mrb[124].mxu1  ;;  %v16265_v60 = vpop.f32.mrb[160].mxu0 }
 0x800   : > { %v16124_v11 = vpop.f32.mrb[125].mxu1  ;;  %v16266_v29 = vpop.f32.mrb[161].mxu0 }
 0x801   : > { %v16125_v19 = vadd.f32 %v16124_v11, %v16123_v39  ;;  %v16267_v6 = vadd.f32 %v16266_v29, %v16265_v60  ;;  %v16126_v62 = vpop.f32.mrb[126].mxu1  ;;  %v16268_v1 = vpop.f32.mrb[162].mxu0  ;;  %v9095_v29 = vld [vmem:[#allocation2 + $0xa7] sm:$0xff] }
 0x802   : > { %v16127_v27 = vpop.f32.mrb[127].mxu1  ;;  %v16269_v33 = vpop.f32.mrb[163].mxu0 }
 0x803   : > { %v22769_v21 = vadd.f32 %v16261_v49, %v16125_v19  ;;  %v16128_v15 = vadd.f32 %v16127_v27, %v16126_v62  ;;  %v16270_v40 = vadd.f32 %v16269_v33, %v16268_v1  ;;  %v9094_v19 = vld [vmem:[#allocation2 + $0x9f] sm:$0xff]  ;;  %v9160_v27 = vld [vmem:[#allocation2 + $0xb0] sm:$0xff] }
 0x804   : > { %14229 = vmatmul.mubr.msk.bf16.gmra.mrb[200].mxu1 %vm24759_vm11, %v14228_v16  ;;  %v14231_v12 = vpack.c.bf16 %v9095_v29, %v9094_v19  ;;  %v9265_v23 = vpack.c.bf16 %v9161_v63, %v9160_v27  ;;  %vm24761_vm11 = vnez %v24716_v45  ;;  %v9165_v45 = vld [vmem:[#allocation2 + $0xd8] sm:$0xff] }
 0x805   : > { %v22773_v30 = vadd.f32 %v16264_v25, %v16128_v15  ;;  %9569 = vmatprep.mubr.bf16.mxu1 %v9262_v38 }
 0x807   : > { %24760 = vst [vmem:[#allocation26_spill] sm:$0xff] %v22773_v30  ;;  %v16129_v46 = vpop.f32.mrb[128].mxu1  ;;  %v16271_v11 = vpop.f32.mrb[164].mxu0  ;;  %v9163_v30 = vld [vmem:[#allocation2 + $0xc8] sm:$0xff] }
 0x808   : > { %v16130_v39 = vpop.f32.mrb[129].mxu1  ;;  %v16272_v60 = vpop.f32.mrb[165].mxu0 }
 0x809   : > { %v16131_v55 = vadd.f32 %v16130_v39, %v16129_v46  ;;  %v16273_v13 = vadd.f32 %v16272_v60, %v16271_v11  ;;  %v16132_v7 = vpop.f32.mrb[130].mxu1  ;;  %v16274_v49 = vpop.f32.mrb[166].mxu0  ;;  %v9096_v11 = vld [vmem:[#allocation2 + $0xaf] sm:$0xff]  ;;  %v9097_v39 = vld [vmem:[#allocation2 + $0xb7] sm:$0xff] }
 0x80a   : > { %v16133_v62 = vpop.f32.mrb[131].mxu1  ;;  %v16275_v1 = vpop.f32.mrb[167].mxu0  ;;  %v14234_v63 = vpack.c.bf16 %v9097_v39, %v9096_v11 }
 0x80b   : > { %v22775_v33 = vadd.f32 %v16267_v6, %v16131_v55  ;;  %v16134_v25 = vadd.f32 %v16133_v62, %v16132_v7  ;;  %v16276_v16 = vadd.f32 %v16275_v1, %v16274_v49  ;;  %v9162_v62 = vld [vmem:[#allocation2 + $0xc0] sm:$0xff] }
 0x80c   : > { %14232 = vmatmul.mubr.msk.bf16.gmra.mrb[204].mxu1 %vm24761_vm11, %v14231_v12  ;;  %v9268_v27 = vpack.c.bf16 %v9163_v30, %v9162_v62  ;;  %vm24763_vm11 = vnez %v24718_v54 }
 0x80d   : > { %v22779_v15 = vadd.f32 %v16270_v40, %v16134_v25  ;;  %9577 = vmatprep.mubr.bf16.mxu1 %v9265_v23 }
 0x80f   : > { %24762 = vst [vmem:[#allocation28_spill] sm:$0xff] %v22779_v15  ;;  %v16135_v38 = vpop.f32.mrb[132].mxu1  ;;  %v16277_v46 = vpop.f32.mrb[168].mxu0 }
 0x810   : > { %v16136_v60 = vpop.f32.mrb[133].mxu1  ;;  %v16278_v35 = vpop.f32.mrb[169].mxu0 }
 0x811   : > { %v16137_v29 = vadd.f32 %v16136_v60, %v16135_v38  ;;  %v16279_v19 = vadd.f32 %v16278_v35, %v16277_v46  ;;  %v16138_v55 = vpop.f32.mrb[134].mxu1  ;;  %v16280_v6 = vpop.f32.mrb[170].mxu0  ;;  %v9099_v35 = vld [vmem:[#allocation2 + $0xc7] sm:$0xff] }
 0x812   : > { %v16139_v7 = vpop.f32.mrb[135].mxu1  ;;  %v16281_v49 = vpop.f32.mrb[171].mxu0 }
 0x813   : > { %v22781_v1 = vadd.f32 %v16273_v13, %v16137_v29  ;;  %v16140_v40 = vadd.f32 %v16139_v7, %v16138_v55  ;;  %v16282_v12 = vadd.f32 %v16281_v49, %v16280_v6  ;;  %v9098_v29 = vld [vmem:[#allocation2 + $0xbf] sm:$0xff]  ;;  %v9164_v7 = vld [vmem:[#allocation2 + $0xd0] sm:$0xff] }
 0x814   : > { %14235 = vmatmul.mubr.msk.bf16.gmra.mrb[208].mxu1 %vm24763_vm11, %v14234_v63  ;;  %v14237_v30 = vpack.c.bf16 %v9099_v35, %v9098_v29  ;;  %v9271_v62 = vpack.c.bf16 %v9165_v45, %v9164_v7  ;;  %vm24765_vm11 = vnez %v24548_v58  ;;  %v9168_v7 = vld [vmem:[#allocation2 + $0xf0] sm:$0xff] }
 0x815   : > { %v22785_v25 = vadd.f32 %v16276_v16, %v16140_v40  ;;  %9585 = vmatprep.mubr.bf16.mxu1 %v9268_v27 }
 0x817   : > { %24764 = vst [vmem:[#allocation30_spill] sm:$0xff] %v22785_v25  ;;  %v16141_v23 = vpop.f32.mrb[136].mxu1  ;;  %v16283_v38 = vpop.f32.mrb[172].mxu0 }
 0x818   : > { %v16142_v46 = vpop.f32.mrb[137].mxu1  ;;  %v16284_v60 = vpop.f32.mrb[173].mxu0 }
 0x819   : > { %v16143_v15 = vadd.f32 %v16142_v46, %v16141_v23  ;;  %v16285_v11 = vadd.f32 %v16284_v60, %v16283_v38  ;;  %v16144_v39 = vpop.f32.mrb[138].mxu1  ;;  %v16286_v13 = vpop.f32.mrb[174].mxu0  ;;  %v9100_v23 = vld [vmem:[#allocation2 + $0xcf] sm:$0xff]  ;;  %v9101_v38 = vld [vmem:[#allocation2 + $0xd7] sm:$0xff] }
 0x81a   : > { %v16145_v55 = vpop.f32.mrb[139].mxu1  ;;  %v16287_v6 = vpop.f32.mrb[175].mxu0  ;;  %v9167_v60 = vld [vmem:[#allocation2 + $0xe8] sm:$0xff]  ;;  %v14240_v29 = vpack.c.bf16 %v9101_v38, %v9100_v23  ;;  %v9173_v38 = vld [vmem:[#allocation2 + $0x118] sm:$0xff] }
 0x81b   : > { %v22787_v49 = vadd.f32 %v16279_v19, %v16143_v15  ;;  %v16146_v16 = vadd.f32 %v16145_v55, %v16144_v39  ;;  %v16288_v63 = vadd.f32 %v16287_v6, %v16286_v13  ;;  %v9166_v15 = vld [vmem:[#allocation2 + $0xe0] sm:$0xff]  ;;  %v9169_v55 = vld [vmem:[#allocation2 + $0xf8] sm:$0xff] }
 0x81c   : > { %14238 = vmatmul.mubr.msk.bf16.gmra.mrb[212].mxu1 %vm24765_vm11, %v14237_v30  ;;  %v9274_v45 = vpack.c.bf16 %v9167_v60, %v9166_v15  ;;  %v9103_v13 = vld [vmem:[#allocation2 + $0xe7] sm:$0xff]  ;;  %v9102_v6 = vld [vmem:[#allocation2 + $0xdf] sm:$0xff]  ;;  %vm24767_vm11 = vnez %v24606_v0  ;;  %v9108_v15 = vld [vmem:[#allocation2 + $0x10f] sm:$0xff] }
 0x81d   : > { %v22791_v40 = vadd.f32 %v16282_v12, %v16146_v16  ;;  %9593 = vmatprep.mubr.bf16.mxu1 %v9271_v62  ;;  %v14243_v30 = vpack.c.bf16 %v9103_v13, %v9102_v6  ;;  %v9277_v16 = vpack.c.bf16 %v9169_v55, %v9168_v7  ;;  %v18862_v13 = vld [vmem:[#allocation2] sm:$0xff] }
 0x81e   : > { %v22808_v55 = vpack.c.bf16 %v18862_v13, %v18862_v13  ;;  %v18692_v6 = vld [vmem:[%s23926_s1 + $0x9c0] sm:$0xff]  }
 0x81f   : > { %v16147_v27 = vpop.f32.mrb[140].mxu1  ;;  %v9110_v7 = vld [vmem:[#allocation2 + $0x11f] sm:$0xff] }
 0x820   : > { %v16148_v46 = vpop.f32.mrb[141].mxu1 }
 0x821   : > { %v16149_v54 = vadd.f32 %v16148_v46, %v16147_v27  ;;  %v16150_v25 = vpop.f32.mrb[142].mxu1  ;;  %v9170_v27 = vld [vmem:[#allocation2 + $0x100] sm:$0xff] }
 0x822   : > { %v16151_v35 = vpop.f32.mrb[143].mxu1  ;;  %v9106_v46 = vld [vmem:[#allocation2 + $0xff] sm:$0xff] }
 0x823   : > { %v22793_v19 = vadd.f32 %v16285_v11, %v16149_v54  ;;  %v16152_v39 = vadd.f32 %v16151_v35, %v16150_v25  ;;  %v9104_v54 = vld [vmem:[#allocation2 + $0xef] sm:$0xff]  ;;  %v9105_v11 = vld [vmem:[#allocation2 + $0xf7] sm:$0xff] }
 0x824   : > { %14241 = vmatmul.mubr.msk.bf16.gmra.mrb[216].mxu1 %vm24766_vm7, %v14240_v29  ;;  %v9171_v25 = vld [vmem:[#allocation2 + $0x108] sm:$0xff]  ;;  %v14246_v62 = vpack.c.bf16 %v9105_v11, %v9104_v54  ;;  %vm24768_vm7 = vnez %v24607_v3  ;;  %v9172_v35 = vld [vmem:[#allocation2 + $0x110] sm:$0xff]  ;;  %v9177_v54 = vld [vmem:[#allocation2 + $0x39] sm:$0xff] }
 0x825   : > { %v22797_v12 = vadd.f32 %v16288_v63, %v16152_v39  ;;  %9601 = vmatprep.mubr.bf16.mxu1 %v9274_v45  ;;  %v9280_v23 = vpack.c.bf16 %v9171_v25, %v9170_v27  ;;  %v9107_v63 = vld [vmem:[#allocation2 + $0x107] sm:$0xff]  ;;  %v9283_v29 = vpack.c.bf16 %v9173_v38, %v9172_v35  ;;  %v9109_v39 = vld [vmem:[#allocation2 + $0x117] sm:$0xff] }
 0x826   : > { %v14249_v60 = vpack.c.bf16 %v9107_v63, %v9106_v46  ;;  %v18691_v45 = vld [vmem:[%s23926_s1 + $0xa00] sm:$0xff]   ;;  %v9176_v25 = vld [vmem:[#allocation2 + $0x31] sm:$0xff]  ;;  %v18693_v63 = vld [vmem:[%s23926_s1 + $0xa08] sm:$0xff]  }
 0x827   : > { %16449 = vmatprep.subr.bf16.mxu0 %v18691_v45  ;;  %v9178_v27 = vld [vmem:[#allocation2 + $0x41] sm:$0xff]  ;;  %v9181_v38 = vld [vmem:[#allocation2 + $0x59] sm:$0xff]  ;;  %v9180_v35 = vld [vmem:[#allocation2 + $0x51] sm:$0xff] }
 0x828   : > { %16450 = vmatpush3.bf16.msra.mxu0 %v18692_v6  ;;  %v18694_v46 = vld [vmem:[%s23926_s1 + $0x9c8] sm:$0xff]   ;;  %v9185_v45 = vld [vmem:[#allocation2 + $0x79] sm:$0xff]  ;;  %v9184_v6 = vld [vmem:[#allocation2 + $0x71] sm:$0xff] }
 0x829   : > { %16451 = vmatprep.subr.bf16.mxu0 %v18693_v63  ;;  %v9190_v63 = vld [vmem:[#allocation2 + $0xa1] sm:$0xff] }
 0x82c   : > { %14244 = vmatmul.mubr.msk.bf16.gmra.mrb[220].mxu1 %vm24767_vm11, %v14243_v30  ;;  %v14252_v30 = vpack.c.bf16 %v9109_v39, %v9108_v15  ;;  %16452 = vmatpush3.bf16.msra.mxu0 %v18694_v46  ;;  %v9182_v15 = vld [vmem:[#allocation2 + $0x61] sm:$0xff]  ;;  %v9183_v39 = vld [vmem:[#allocation2 + $0x69] sm:$0xff]  ;;  %v9193_v46 = vld [vmem:[#allocation2 + $0xb9] sm:$0xff] }
 0x82d   : > { %9609 = vmatprep.mubr.bf16.mxu1 %v9277_v16  ;;  %v9111_v16 = vld [vmem:[#allocation2 + $0x127] sm:$0xff]  ;;  %v14267_v13 = vpack.c.bf16 %v9183_v39, %v9182_v15 }
 0x82e   : > { %v14255_v11 = vpack.c.bf16 %v9111_v16, %v9110_v7  ;;  %v9186_v7 = vld [vmem:[#allocation2 + $0x81] sm:$0xff]  ;;  %v9187_v16 = vld [vmem:[#allocation2 + $0x89] sm:$0xff] }
 0x82f   : > { %v9194_v15 = vld [vmem:[#allocation2 + $0xc1] sm:$0xff]  ;;  %v9195_v39 = vld [vmem:[#allocation2 + $0xc9] sm:$0xff] }
 0x834   : > { %14247 = vmatmul.mubr.msk.bf16.gmra.mrb[224].mxu1 %vm24768_vm7, %v14246_v62  ;;  %vm24770_vm7 = vnez %v24609_v36  ;;  %v14258_v62 = vpack.c.bf16 %v9177_v54, %v9176_v25  ;;  %v18695_v54 = vld [vmem:[%s23926_s1 + $0xa10] sm:$0xff]  }
 0x835   : > { %9617 = vmatprep.mubr.bf16.mxu1 %v9280_v23  ;;  %v9179_v23 = vld [vmem:[#allocation2 + $0x49] sm:$0xff]  ;;  %16453 = vmatprep.subr.bf16.mxu0 %v18695_v54  ;;  %v9198_v54 = vld [vmem:[#allocation2 + $0xe1] sm:$0xff] }
 0x836   : > { %v18696_v25 = vld [vmem:[%s23926_s1 + $0x9d0] sm:$0xff]  }
 0x837   : > { %16454 = vmatpush3.bf16.msra.mxu0 %v18696_v25  ;;  %v9201_v25 = vld [vmem:[#allocation2 + $0xf9] sm:$0xff] }
 0x83c   : > { %14250 = vmatmul.mubr.msk.bf16.gmra.mrb[228].mxu1 %vm24769_vm1, %v14249_v60  ;;  %vm24771_vm1 = vnez %v24610_v18  ;;  %v14261_v60 = vpack.c.bf16 %v9179_v23, %v9178_v27  ;;  %v9188_v27 = vld [vmem:[#allocation2 + $0x91] sm:$0xff] }
 0x83d   : > { %9625 = vmatprep.mubr.bf16.mxu1 %v9283_v29  ;;  %v14264_v29 = vpack.c.bf16 %v9181_v38, %v9180_v35  ;;  %v9191_v38 = vld [vmem:[#allocation2 + $0xa9] sm:$0xff]  ;;  %v9192_v35 = vld [vmem:[#allocation2 + $0xb1] sm:$0xff] }
 0x844   : > { %14253 = vmatmul.mubr.msk.bf16.gmra.mrb[232].mxu1 %vm24770_vm7, %v14252_v30  ;;  %v14270_v30 = vpack.c.bf16 %v9185_v45, %v9184_v6  ;;  %v18697_v45 = vld [vmem:[%s23926_s1 + $0xa18] sm:$0xff]  }
 0x845   : > { %9633 = vmatprep.mubr.bf16.mxu1 %v22808_v55  ;;  %16455 = vmatprep.subr.bf16.mxu0 %v18697_v45  ;;  %v18698_v6 = vld [vmem:[%s23926_s1 + $0x9d8] sm:$0xff]   ;;  %v9206_v45 = vld [vmem:[#allocation2 + $0x121] sm:$0xff] }
 0x846   : > { %16456 = vmatpush3.bf16.msra.mxu0 %v18698_v6 }
 0x84c   : > { %14256 = vmatmul.mubr.msk.bf16.gmra.mrb[236].mxu1 %vm24771_vm1, %v14255_v11  ;;  %v9189_v11 = vld [vmem:[#allocation2 + $0x99] sm:$0xff] }
 0x84d   : > { %17401 = vmatprep.mubr.msk.bf16.mxu1 %vm24613_vm2, %v14258_v62  ;;  %v14273_v62 = vpack.c.bf16 %v9187_v16, %v9186_v7  ;;  %v14276_v23 = vpack.c.bf16 %v9189_v11, %v9188_v27  ;;  %v9196_v7 = vld [vmem:[#allocation2 + $0xd1] sm:$0xff]  ;;  %v9199_v11 = vld [vmem:[#allocation2 + $0xe9] sm:$0xff] }
 0x84e   : > { %v9200_v27 = vld [vmem:[#allocation2 + $0xf1] sm:$0xff] }
 0x854   : > { %17402 = vmatmul.mubr.msk.bf16.vlgmr.msra.gmra.mrb[48].mxu1 %vm24615_vm0, %v14261_v60  ;;  %v14279_v60 = vpack.c.bf16 %v9191_v38, %v9190_v63  ;;  %v9202_v63 = vld [vmem:[#allocation2 + $0x101] sm:$0xff]  ;;  %v9203_v38 = vld [vmem:[#allocation2 + $0x109] sm:$0xff] }
 0x855   : > { %17405 = vmatprep.mubr.msk.bf16.mxu1 %vm24617_vm13, %v14264_v29  ;;  %v14282_v29 = vpack.c.bf16 %v9193_v46, %v9192_v35  ;;  %v18699_v46 = vld [vmem:[%s23926_s1 + $0xa20] sm:$0xff]  }
 0x856   : > { %v9205_v35 = vld [vmem:[#allocation2 + $0x119] sm:$0xff]  ;;  %16457 = vmatprep.subr.bf16.mxu0 %v18699_v46 }
 0x85c   : > { %17406 = vmatmul.mubr.msk.bf16.gmra.mrb[52].mxu1 %vm24619_vm14, %v14267_v13  ;;  %v9197_v13 = vld [vmem:[#allocation2 + $0xd9] sm:$0xff] }
 0x85d   : > { %17409 = vmatprep.mubr.msk.bf16.mxu1 %vm24621_vm6, %v14270_v30  ;;  %v14285_v30 = vpack.c.bf16 %v9195_v39, %v9194_v15  ;;  %v14288_v16 = vpack.c.bf16 %v9197_v13, %v9196_v7  ;;  %v14297_v15 = vpack.c.bf16 %v9203_v38, %v9202_v63  ;;  %v9207_v13 = vld [vmem:[#allocation2 + $0x129] sm:$0xff]  ;;  %v18711_v63 = vld [vmem:[%s23926_s1 + $0x958] sm:$0xff]  }
 0x85e   : > { %v14303_v6 = vpack.c.bf16 %v9207_v13, %v9206_v45  ;;  %v18702_v7 = vld [vmem:[%s23926_s1 + $0x9e8] sm:$0xff]   ;;  %v18712_v38 = vld [vmem:[%s23926_s1 + $0x918] sm:$0xff]  }
 0x864   : > { %17410 = vmatmul.mubr.msk.bf16.gmra.mrb[56].mxu1 %vm24623_vm15, %v14273_v62  ;;  %v14291_v62 = vpack.c.bf16 %v9199_v11, %v9198_v54  ;;  %v18704_v54 = vld [vmem:[%s23926_s1 + $0x900] sm:$0xff]   ;;  %v18706_v11 = vld [vmem:[%s23926_s1 + $0x908] sm:$0xff]  }
 0x865   : > { %17413 = vmatprep.mubr.msk.bf16.mxu1 %vm24625_vm5, %v14276_v23  ;;  %v14294_v23 = vpack.c.bf16 %v9201_v25, %v9200_v27  ;;  %v18707_v25 = vld [vmem:[%s23926_s1 + $0xa30] sm:$0xff]  }
 0x866   : > { %v18709_v27 = vld [vmem:[%s23926_s1 + $0x9f0] sm:$0xff]  }
 0x86c   : > { %17414 = vmatmul.mubr.msk.bf16.gmra.mrb[60].mxu1 %vm24726_vm8, %v14279_v60  ;;  %v9204_v60 = vld [vmem:[#allocation2 + $0x111] sm:$0xff] }
 0x86d   : > { %17417 = vmatprep.mubr.msk.bf16.mxu1 %vm24728_vm10, %v14282_v29  ;;  %v18700_v29 = vld [vmem:[%s23926_s1 + $0x9e0] sm:$0xff]   ;;  %v14300_v39 = vpack.c.bf16 %v9205_v35, %v9204_v60 }
 0x86e   : > { %16458 = vmatpush3.bf16.msra.mxu0 %v18700_v29 }
 0x874   : > { %17418 = vmatmul.mubr.msk.bf16.gmra.mrb[64].mxu1 %vm24730_vm12, %v14285_v30  ;;  %v18701_v30 = vld [vmem:[%s23926_s1 + $0xa28] sm:$0xff]  }
 0x875   : > { %17421 = vmatprep.mubr.msk.bf16.mxu1 %vm24732_vm9, %v14288_v16  ;;  %vm24774_vm9 = vnez %v24741_v57  ;;  %16459 = vmatprep.subr.bf16.mxu0 %v18701_v30  ;;  %v18703_v16 = vld [vmem:[%s23926_s1 + $0x940] sm:$0xff]  }
 0x876   : > { %16460 = vmatpush3.bf16.msra.mxu0 %v18702_v7  ;;  %16585 = vmatprep.subr.bf16.mxu1 %v18703_v16 }
 0x877   : > { %16586 = vmatpush3.bf16.msra.mxu1 %v18704_v54  ;;  %16461 = vmatprep.subr.bf16.mxu0 %v18707_v25  ;;  %v18713_v54 = vld [vmem:[%s23926_s1 + $0x960] sm:$0xff]  }
 0x87a   : > { %16462 = vmatpush3.bf16.msra.mxu0 %v18709_v27 }
 0x87c   : > { %17422 = vmatmul.mubr.msk.bf16.gmra.mrb[68].mxu1 %vm24734_vm4, %v14291_v62  ;;  %vm24772_vm4 = vnez %v24737_v2  ;;  %v18708_v62 = vld [vmem:[%s23926_s1 + $0x950] sm:$0xff]   ;;  %v24783_v2 = vld [vmem:[#allocation22_spill] sm:$0xff] }
 0x87d   : > { %17425 = vmatprep.mubr.msk.bf16.mxu1 %vm24736_vm3, %v14294_v23  ;;  %vm24773_vm3 = vnez %v24739_v59  ;;  %v18710_v23 = vld [vmem:[%s23926_s1 + $0x910] sm:$0xff]  }
 0x884   : > { %17426 = vmatmul.mubr.msk.bf16.gmra.mrb[72].mxu1 %vm24772_vm4, %v14297_v15 }
 0x885   : > { %17429 = vmatprep.mubr.msk.bf16.mxu1 %vm24773_vm3, %v14300_v39 }
 0x88c   : > { %17430 = vmatmul.mubr.msk.bf16.gmra.mrb[76].mxu1 %vm24774_vm9, %v14303_v6  ;;  %vm24776_vm9 = vnez %v24563_v51 }
 0x88d   : > { %11086 = vmatprep.mubr.bf16.mxu1 %v22808_v55  ;;  %v18705_v55 = vld [vmem:[%s23926_s1 + $0x948] sm:$0xff]  }
 0x88e   : > { %16587 = vmatprep.subr.bf16.mxu1 %v18705_v55 }
 0x88f   : > { %16588 = vmatpush3.bf16.msra.mxu1 %v18706_v11  ;;  %v18714_v11 = vld [vmem:[%s23926_s1 + $0x920] sm:$0xff]  }
 0x890   : > { %16589 = vmatprep.subr.bf16.mxu1 %v18708_v62  ;;  %v18716_v62 = vld [vmem:[%s23926_s1 + $0x928] sm:$0xff]  }
 0x893   : > { %16590 = vmatpush3.bf16.msra.mxu1 %v18710_v23 }
 0x894   : > { %16591 = vmatprep.subr.bf16.mxu1 %v18711_v63 }
 0x897   : > { %16592 = vmatpush3.bf16.msra.mxu1 %v18712_v38 }
 0x898   : > { %16593 = vmatprep.subr.bf16.mxu1 %v18713_v54 }
 0x89b   : > { %16594 = vmatpush3.bf16.msra.mxu1 %v18714_v11  ;;  %v10035_v11 = vld [vmem:[#allocation2 + $0xf] sm:$0xff] }
 0x8a7   : > { %v16329_v46 = vpop.f32.mrb[176].mxu1 }
 0x8a8   : > { %v16330_v60 = vpop.f32.mrb[177].mxu1 }
 0x8a9   : > { %v16331_v35 = vadd.f32 %v16330_v60, %v16329_v46  ;;  %v16332_v29 = vpop.f32.mrb[178].mxu1  ;;  %v18717_v46 = vld [vmem:[%s23926_s1 + $0xa38] sm:$0xff]   ;;  %v18718_v60 = vld [vmem:[%s23926_s1 + $0x970] sm:$0xff]  }
 0x8aa   : > { %v16333_v15 = vpop.f32.mrb[179].mxu1  ;;  %16463 = vmatprep.subr.bf16.mxu0 %v18717_v46 }
 0x8ab   : > { %v16334_v39 = vadd.f32 %v16333_v15, %v16332_v29  ;;  %v22912_v45 = vadd.f32 %v22653_v26, %v16331_v35  ;;  %v18720_v29 = vld [vmem:[%s23926_s1 + $0x930] sm:$0xff]  }
 0x8ad   : > { %v22915_v13 = vadd.f32 %v22659_v37, %v16334_v39  ;;  %v18715_v37 = vld [vmem:[%s23926_s1 + $0x968] sm:$0xff]  }
 0x8ae   : > { %16595 = vmatprep.subr.bf16.mxu1 %v18715_v37 }
 0x8af   : > { %v16335_v6 = vpop.f32.mrb[180].mxu1  ;;  %16596 = vmatpush3.bf16.msra.mxu1 %v18716_v62 }
 0x8b0   : > { %v16336_v30 = vpop.f32.mrb[181].mxu1  ;;  %16597 = vmatprep.subr.bf16.mxu1 %v18718_v60 }
 0x8b1   : > { %v16337_v7 = vadd.f32 %v16336_v30, %v16335_v6  ;;  %v16338_v16 = vpop.f32.mrb[182].mxu1  ;;  %v18721_v6 = vld [vmem:[%s23926_s1 + $0x978] sm:$0xff]  }
 0x8b2   : > { %v16339_v55 = vpop.f32.mrb[183].mxu1  ;;  %v18722_v30 = vld [vmem:[%s23926_s1 + $0x938] sm:$0xff]  }
 0x8b3   : > { %v16340_v25 = vadd.f32 %v16339_v55, %v16338_v16  ;;  %v22924_v26 = vadd.f32 %v22673_v34, %v16337_v7  ;;  %16598 = vmatpush3.bf16.msra.mxu1 %v18720_v29  ;;  %v22970_v29 = vld [vmem:[%s23926_s1 + $0xa40] sm:$0xff]  }
 0x8b4   : > { %16599 = vmatprep.subr.bf16.mxu1 %v18721_v6 }
 0x8b5   : > { %v22933_v27 = vadd.f32 %v22678_v43, %v16340_v25  ;;  %v18719_v43 = vld [vmem:[%s23926_s1 + $0x9f8] sm:$0xff]  }
 0x8b6   : > { %16464 = vmatpush3.bf16.msra.mxu0 %v18719_v43  ;;  %v10036_v25 = vld [vmem:[#allocation2 + $0x17] sm:$0xff] }
 0x8b7   : > { %v16341_v23 = vpop.f32.mrb[184].mxu1  ;;  %16600 = vmatpush3.bf16.msra.mxu1 %v18722_v30  ;;  %v14548_v62 = vpack.c.bf16 %v10036_v25, %v10035_v11  ;;  %17433 = vmatprep.subr.bf16.mxu0 %v22970_v29 }
 0x8b8   : > { %v16342_v63 = vpop.f32.mrb[185].mxu1 }
 0x8b9   : > { %v16343_v38 = vadd.f32 %v16342_v63, %v16341_v23  ;;  %v16344_v34 = vpop.f32.mrb[186].mxu1  ;;  %v24775_v63 = vld [vmem:[#allocation12_spill] sm:$0xff] }
 0x8ba   : > { %v16345_v35 = vpop.f32.mrb[187].mxu1  ;;  %14549 = vmatmul.mubr.msk.bf16.vlgmr.msra.gmra.mrb[144].mxu1 %vm24776_vm9, %v14548_v62 }
 0x8bb   : > { %v16346_v15 = vadd.f32 %v16345_v35, %v16344_v34  ;;  %v22948_v39 = vadd.f32 %v22683_v24, %v16343_v38  ;;  %v24777_v34 = vld [vmem:[#allocation10_spill] sm:$0xff] }
 0x8bd   : > { %v22957_v7 = vadd.f32 %v22688_v14, %v16346_v15 }
 0x8bf   : > { %v16347_v16 = vpop.f32.mrb[188].mxu1 }
 0x8c0   : > { %v16348_v54 = vpop.f32.mrb[189].mxu1 }
 0x8c1   : > { %v16349_v55 = vadd.f32 %v16348_v54, %v16347_v16  ;;  %v16350_v24 = vpop.f32.mrb[190].mxu1  ;;  %v24778_v16 = vld [vmem:[#allocation16_spill] sm:$0xff] }
 0x8c2   : > { %v16351_v37 = vpop.f32.mrb[191].mxu1 }
 0x8c3   : > { %v16352_v23 = vadd.f32 %v16351_v37, %v16350_v24  ;;  %v22960_v38 = vadd.f32 %v24775_v63, %v16349_v55 }
 0x8c5   : > { %v22965_v14 = vadd.f32 %v24777_v34, %v16352_v23  ;;  %v24779_v23 = vld [vmem:[#allocation14_spill] sm:$0xff]  ;;  %v24780_v34 = vld [vmem:[#allocation43_spill] sm:$0xff] }
 0x8c7   : > { %v16353_v46 = vpop.f32.mrb[192].mxu1 }
 0x8c8   : > { %v16354_v60 = vpop.f32.mrb[193].mxu1 }
 0x8c9   : > { %v16355_v35 = vadd.f32 %v16354_v60, %v16353_v46  ;;  %v16356_v43 = vpop.f32.mrb[194].mxu1 }
 0x8ca   : > { %v16357_v15 = vpop.f32.mrb[195].mxu1 }
 0x8cb   : > { %v16358_v6 = vadd.f32 %v16357_v15, %v16356_v43  ;;  %v22973_v30 = vadd.f32 %v22703_v47, %v16355_v35 }
 0x8cd   : > { %v22977_v54 = vadd.f32 %v24778_v16, %v16358_v6  ;;  %v24781_v16 = vld [vmem:[#allocation19_spill] sm:$0xff] }
 0x8cf   : > { %v16359_v55 = vpop.f32.mrb[196].mxu1 }
 0x8d0   : > { %v16360_v24 = vpop.f32.mrb[197].mxu1 }
 0x8d1   : > { %v16361_v11 = vadd.f32 %v16360_v24, %v16359_v55  ;;  %v16362_v25 = vpop.f32.mrb[198].mxu1 }
 0x8d2   : > { %v16363_v37 = vpop.f32.mrb[199].mxu1 }
 0x8d3   : > { %v16364_v62 = vadd.f32 %v16363_v37, %v16362_v25  ;;  %v22980_v63 = vadd.f32 %v24779_v23, %v16361_v11 }
 0x8d5   : > { %v22983_v46 = vadd.f32 %v24780_v34, %v16364_v62  ;;  %v24782_v62 = vld [vmem:[#allocation20_spill] sm:$0xff] }
 0x8d7   : > { %v16365_v60 = vpop.f32.mrb[200].mxu1 }
 0x8d8   : > { %v16366_v47 = vpop.f32.mrb[201].mxu1 }
 0x8d9   : > { %v16367_v35 = vadd.f32 %v16366_v47, %v16365_v60  ;;  %v16368_v43 = vpop.f32.mrb[202].mxu1 }
 0x8da   : > { %v16369_v15 = vpop.f32.mrb[203].mxu1 }
 0x8db   : > { %v16370_v57 = vadd.f32 %v16369_v15, %v16368_v43  ;;  %v22986_v6 = vadd.f32 %v22726_v56, %v16367_v35 }
 0x8dd   : > { %v22989_v55 = vadd.f32 %v24781_v16, %v16370_v57 }
 0x8df   : > { %v16371_v24 = vpop.f32.mrb[204].mxu1 }
 0x8e0   : > { %v16372_v25 = vpop.f32.mrb[205].mxu1 }
 0x8e1   : > { %v16373_v37 = vadd.f32 %v16372_v25, %v16371_v24  ;;  %v16374_v11 = vpop.f32.mrb[206].mxu1 }
 0x8e2   : > { %v16375_v23 = vpop.f32.mrb[207].mxu1 }
 0x8e3   : > { %v16376_v59 = vadd.f32 %v16375_v23, %v16374_v11  ;;  %v22992_v34 = vadd.f32 %v24782_v62, %v16373_v37 }
 0x8e5   : > { %v22995_v60 = vadd.f32 %v24783_v2, %v16376_v59  ;;  %v24784_v59 = vld [vmem:[#allocation17_spill] sm:$0xff] }
 0x8e7   : > { %v16377_v47 = vpop.f32.mrb[208].mxu1 }
 0x8e8   : > { %v16378_v43 = vpop.f32.mrb[209].mxu1 }
 0x8e9   : > { %v16379_v15 = vadd.f32 %v16378_v43, %v16377_v47  ;;  %v16380_v56 = vpop.f32.mrb[210].mxu1 }
 0x8ea   : > { %v16381_v35 = vpop.f32.mrb[211].mxu1 }
 0x8eb   : > { %v16382_v32 = vadd.f32 %v16381_v35, %v16380_v56  ;;  %v22998_v57 = vadd.f32 %v22750_v41, %v16379_v15 }
 0x8ed   : > { %v23001_v16 = vadd.f32 %v22754_v31, %v16382_v32  ;;  %v24785_v31 = vld [vmem:[#allocation21_spill] sm:$0xff] }
 0x8ef   : > { %v16383_v24 = vpop.f32.mrb[212].mxu1 }
 0x8f0   : > { %v16384_v25 = vpop.f32.mrb[213].mxu1 }
 0x8f1   : > { %v16385_v11 = vadd.f32 %v16384_v25, %v16383_v24  ;;  %v16386_v37 = vpop.f32.mrb[214].mxu1 }
 0x8f2   : > { %v16387_v23 = vpop.f32.mrb[215].mxu1 }
 0x8f3   : > { %v16388_v62 = vadd.f32 %v16387_v23, %v16386_v37  ;;  %v23004_v2 = vadd.f32 %v22756_v42, %v16385_v11 }
 0x8f5   : > { %v23007_v47 = vadd.f32 %v24784_v59, %v16388_v62  ;;  %v24786_v59 = vld [vmem:[#allocation26_spill] sm:$0xff] }
 0x8f7   : > { %v16389_v43 = vpop.f32.mrb[216].mxu1 }
 0x8f8   : > { %v16390_v56 = vpop.f32.mrb[217].mxu1 }
 0x8f9   : > { %v16391_v35 = vadd.f32 %v16390_v56, %v16389_v43  ;;  %v16392_v41 = vpop.f32.mrb[218].mxu1 }
 0x8fa   : > { %v16393_v15 = vpop.f32.mrb[219].mxu1 }
 0x8fb   : > { %v16394_v52 = vadd.f32 %v16393_v15, %v16392_v41  ;;  %v23010_v32 = vadd.f32 %v22763_v50, %v16391_v35 }
 0x8fd   : > { %v23013_v24 = vadd.f32 %v24785_v31, %v16394_v52  ;;  %v24787_v31 = vld [vmem:[#allocation28_spill] sm:$0xff] }
 0x8ff   : > { %v16395_v25 = vpop.f32.mrb[220].mxu1 }
 0x900   : > { %v16396_v37 = vpop.f32.mrb[221].mxu1 }
 0x901   : > { %v16397_v23 = vadd.f32 %v16396_v37, %v16395_v25  ;;  %v16398_v42 = vpop.f32.mrb[222].mxu1 }
 0x902   : > { %v16399_v11 = vpop.f32.mrb[223].mxu1 }
 0x903   : > { %v16400_v28 = vadd.f32 %v16399_v11, %v16398_v42  ;;  %v23016_v62 = vadd.f32 %v22769_v21, %v16397_v23 }
 0x905   : > { %v23019_v43 = vadd.f32 %v24786_v59, %v16400_v28  ;;  %v24788_v59 = vld [vmem:[#allocation30_spill] sm:$0xff] }
 0x907   : > { %v16401_v56 = vpop.f32.mrb[224].mxu1 }
 0x908   : > { %v16402_v41 = vpop.f32.mrb[225].mxu1 }
 0x909   : > { %v16403_v15 = vadd.f32 %v16402_v41, %v16401_v56  ;;  %v16404_v50 = vpop.f32.mrb[226].mxu1 }
 0x90a   : > { %v16405_v35 = vpop.f32.mrb[227].mxu1 }
 0x90b   : > { %v16406_v10 = vadd.f32 %v16405_v35, %v16404_v50  ;;  %v23022_v52 = vadd.f32 %v22775_v33, %v16403_v15 }
 0x90d   : > { %v23025_v25 = vadd.f32 %v24787_v31, %v16406_v10 }
 0x90f   : > { %v16407_v37 = vpop.f32.mrb[228].mxu1 }
 0x910   : > { %v16408_v42 = vpop.f32.mrb[229].mxu1 }
 0x911   : > { %v16409_v11 = vadd.f32 %v16408_v42, %v16407_v37  ;;  %v16410_v21 = vpop.f32.mrb[230].mxu1 }
 0x912   : > { %v16411_v23 = vpop.f32.mrb[231].mxu1 }
 0x913   : > { %v16412_v5 = vadd.f32 %v16411_v23, %v16410_v21  ;;  %v23028_v28 = vadd.f32 %v22781_v1, %v16409_v11 }
 0x915   : > { %v23031_v56 = vadd.f32 %v24788_v59, %v16412_v5 }
 0x917   : > { %v16413_v41 = vpop.f32.mrb[232].mxu1 }
 0x918   : > { %v16414_v50 = vpop.f32.mrb[233].mxu1 }
 0x919   : > { %v16415_v35 = vadd.f32 %v16414_v50, %v16413_v41  ;;  %v16416_v33 = vpop.f32.mrb[234].mxu1 }
 0x91a   : > { %v16417_v15 = vpop.f32.mrb[235].mxu1 }
 0x91b   : > { %v16418_v48 = vadd.f32 %v16417_v15, %v16416_v33  ;;  %v23034_v10 = vadd.f32 %v22787_v49, %v16415_v35  ;;  %v23048_v49 = vld [vmem:[%s23927_s2 + $0x3] ss:$0 sm:$0xff] }
 0x91d   : > { %v23037_v31 = vadd.f32 %v22791_v40, %v16418_v48 }
 0x91f   : > { %v16419_v37 = vpop.f32.mrb[236].mxu1 }
 0x920   : > { %v16420_v42 = vpop.f32.mrb[237].mxu1 }
 0x921   : > { %v16421_v21 = vadd.f32 %v16420_v42, %v16419_v37  ;;  %v16422_v1 = vpop.f32.mrb[238].mxu1 }
 0x922   : > { %v16423_v11 = vpop.f32.mrb[239].mxu1 }
 0x923   : > { %v16424_v23 = vadd.f32 %v16423_v11, %v16422_v1  ;;  %v23040_v5 = vadd.f32 %v22793_v19, %v16421_v21 }
 0x925   : > { %v23043_v59 = vadd.f32 %v22797_v12, %v16424_v23  ;;  %v18863_v23 = vld [vmem:[#allocation2 + $0x30] sm:$0xff] }
 0x927   : > { %v17403_v41 = vpop.f32.mrb[48].mxu1 }
 0x928   : > { %v17883_v48 = vadd.f32 %v22924_v26, %v17403_v41  ;;  %v9676_v40 = vpop.f32.mrb[49].mxu1 }
 0x929   : > { %v17886_v50 = vadd.f32 %v22912_v45, %v9676_v40  ;;  %v17404_v35 = vpop.f32.mrb[50].mxu1 }
 0x92a   : > { %v9845_v33 = vadd.f32 %v17883_v48, %v23048_v49  ;;  %v17889_v19 = vadd.f32 %v22933_v27, %v17404_v35  ;;  %v9679_v15 = vpop.f32.mrb[51].mxu1 }
 0x92b   : > { %v9843_v12 = vadd.f32 %v17886_v50, %v23048_v49  ;;  %v17892_v37 = vadd.f32 %v22915_v13, %v9679_v15  ;;  %v18864_v50 = vld [vmem:[#allocation2 + $0x20] sm:$0xff] }
 0x92c   : > { %vm9877_vm3 = vcmp.ge.f32.partialorder %v9845_v33, 0.0  ;;  %v9909_v42 = vmul.f32 0.2, %v9845_v33  ;;  %v9846_v21 = vadd.f32 %v17889_v19, %v23048_v49 }
 0x92d   : > { %vm9875_vm4 = vcmp.ge.f32.partialorder %v9843_v12, 0.0  ;;  %v9907_v1 = vmul.f32 0.2, %v9843_v12  ;;  %v9844_v26 = vadd.f32 %v17892_v37, %v23048_v49 }
 0x92e   : > { %v9941_v11 = vsel %vm9877_vm3, %v9845_v33, %v9909_v42  ;;  %vm9878_vm12 = vcmp.ge.f32.partialorder %v9846_v21, 0.0  ;;  %v9910_v45 = vmul.f32 0.2, %v9846_v21 }
 0x92f   : > { %v23058_v41 = vadd.f32 %v18863_v23, %v9941_v11  ;;  %v9939_v27 = vsel %vm9875_vm4, %v9843_v12, %v9907_v1  ;;  %vm9876_vm10 = vcmp.ge.f32.partialorder %v9844_v26, 0.0  ;;  %v9908_v48 = vmul.f32 0.2, %v9844_v26  ;;  %v17407_v40 = vpop.f32.mrb[52].mxu1  ;;  %v18866_v12 = vld [vmem:[#allocation2 + $0x28] sm:$0xff] }
 0x930   : > { %v9971_v13 = vadd.f32 %v18864_v50, %v9939_v27  ;;  %v9942_v35 = vsel %vm9878_vm12, %v9846_v21, %v9910_v45  ;;  %v17895_v15 = vadd.f32 %v22960_v38, %v17407_v40  ;;  %v9692_v19 = vpop.f32.mrb[53].mxu1 }
 0x931   : > { %10005 = vst [vmem:[#allocation2 + $0x30] sm:$0xff] %v23058_v41  ;;  %v23062_v37 = vadd.f32 %v18865_v17, %v9942_v35  ;;  %v9940_v33 = vsel %vm9876_vm10, %v9844_v26, %v9908_v48  ;;  %v17898_v42 = vadd.f32 %v22948_v39, %v9692_v19  ;;  %v17408_v11 = vpop.f32.mrb[54].mxu1  ;;  %v18867_v35 = vld [vmem:[#allocation2 + $0x50] sm:$0xff] }
 0x932   : > { %10003 = vst [vmem:[#allocation2 + $0x20] sm:$0xff] %v9971_v13  ;;  %v9972_v1 = vadd.f32 %v18866_v12, %v9940_v33  ;;  %v9849_v23 = vadd.f32 %v17895_v15, %v23048_v49  ;;  %v17901_v27 = vadd.f32 %v22965_v14, %v17408_v11  ;;  %v9695_v21 = vpop.f32.mrb[55].mxu1 }
 0x933   : > { %10006 = vst [vmem:[#allocation2 + $0x38] sm:$0xff] %v23062_v37  ;;  %v9847_v38 = vadd.f32 %v17898_v42, %v23048_v49  ;;  %v17904_v45 = vadd.f32 %v22957_v7, %v9695_v21  ;;  %v18868_v42 = vld [vmem:[#allocation2 + $0x40] sm:$0xff] }
 0x934   : > { %10004 = vst [vmem:[#allocation2 + $0x28] sm:$0xff] %v9972_v1  ;;  %vm9881_vm12 = vcmp.ge.f32.partialorder %v9849_v23, 0.0  ;;  %v9913_v17 = vmul.f32 0.2, %v9849_v23  ;;  %v9850_v39 = vadd.f32 %v17901_v27, %v23048_v49  ;;  %v10199_v26 = vpack.c.bf16 %v9972_v1, %v9971_v13 }
 0x935   : > { %vm9879_vm10 = vcmp.ge.f32.partialorder %v9847_v38, 0.0  ;;  %v9911_v48 = vmul.f32 0.2, %v9847_v38  ;;  %v9848_v40 = vadd.f32 %v17904_v45, %v23048_v49 }
 0x936   : > { %v9945_v50 = vsel %vm9881_vm12, %v9849_v23, %v9913_v17  ;;  %vm9882_vm3 = vcmp.ge.f32.partialorder %v9850_v39, 0.0  ;;  %v9914_v14 = vmul.f32 0.2, %v9850_v39  ;;  %10620 = vmatprep.mubr.bf16.mxu0 %v10199_v26  ;;  %11094 = vmatprep.mubr.bf16.mxu1 %v10199_v26  ;;  %v18869_v23 = vld [vmem:[#allocation2 + $0x58] sm:$0xff] }
 0x937   : > { %v23072_v15 = vadd.f32 %v18867_v35, %v9945_v50  ;;  %v9943_v19 = vsel %vm9879_vm10, %v9847_v38, %v9911_v48  ;;  %vm9880_vm4 = vcmp.ge.f32.partialorder %v9848_v40, 0.0  ;;  %v9912_v7 = vmul.f32 0.2, %v9848_v40  ;;  %v17411_v33 = vpop.f32.mrb[56].mxu1  ;;  %v18870_v38 = vld [vmem:[#allocation2 + $0x48] sm:$0xff] }
 0x938   : > { %v23074_v11 = vadd.f32 %v18868_v42, %v9943_v19  ;;  %v9946_v13 = vsel %vm9882_vm3, %v9850_v39, %v9914_v14  ;;  %v17907_v12 = vadd.f32 %v22980_v63, %v17411_v33  ;;  %v9708_v1 = vpop.f32.mrb[57].mxu1 }
 0x939   : > { %10009 = vst [vmem:[#allocation2 + $0x50] sm:$0xff] %v23072_v15  ;;  %v23078_v27 = vadd.f32 %v18869_v23, %v9946_v13  ;;  %v9944_v21 = vsel %vm9880_vm4, %v9848_v40, %v9912_v7  ;;  %v17910_v45 = vadd.f32 %v22973_v30, %v9708_v1  ;;  %v17412_v17 = vpop.f32.mrb[58].mxu1  ;;  %v10037_v40 = vld [vmem:[#allocation2 + $0x1f] sm:$0xff]  ;;  %v24789_v1 = vld [vmem:[#allocation13_spill] sm:$0xff] }
 0x93a   : > { %10007 = vst [vmem:[#allocation2 + $0x40] sm:$0xff] %v23074_v11  ;;  %v23082_v26 = vadd.f32 %v18870_v38, %v9944_v21  ;;  %v9853_v48 = vadd.f32 %v17907_v12, %v23048_v49  ;;  %v17913_v39 = vadd.f32 %v22983_v46, %v17412_v17  ;;  %v9711_v63 = vpop.f32.mrb[59].mxu1  ;;  %v18724_v46 = vld [vmem:[%s23926_s1 + $0xa48] sm:$0xff]   ;;  %vm24790_vm4 = vnez %v24789_v1  ;;  %v18871_v23 = vld [vmem:[#allocation2 + $0x70] sm:$0xff] }
 0x93b   : > { %10010 = vst [vmem:[#allocation2 + $0x58] sm:$0xff] %v23078_v27  ;;  %v9851_v50 = vadd.f32 %v17910_v45, %v23048_v49  ;;  %v17916_v14 = vadd.f32 %v22977_v54, %v9711_v63  ;;  %v10038_v35 = vld [vmem:[#allocation2 + $0x27] sm:$0xff]  ;;  %v10202_v54 = vpack.c.bf16 %v23062_v37, %v23058_v41 }
 0x93c   : > { %10008 = vst [vmem:[#allocation2 + $0x48] sm:$0xff] %v23082_v26  ;;  %vm9885_vm12 = vcmp.ge.f32.partialorder %v9853_v48, 0.0  ;;  %v9917_v30 = vmul.f32 0.2, %v9853_v48  ;;  %v9854_v19 = vadd.f32 %v17913_v39, %v23048_v49  ;;  %v14428_v7 = vpack.c.bf16 %v10038_v35, %v10037_v40  ;;  %v18872_v41 = vld [vmem:[#allocation2 + $0x60] sm:$0xff] }
 0x93d   : > { %vm9883_vm10 = vcmp.ge.f32.partialorder %v9851_v50, 0.0  ;;  %v9915_v33 = vmul.f32 0.2, %v9851_v50  ;;  %v9852_v42 = vadd.f32 %v17916_v14, %v23048_v49  ;;  %v18725_v14 = vld [vmem:[%s23926_s1 + $0xa50] sm:$0xff]  }
 0x93e   : > { %v9949_v13 = vsel %vm9885_vm12, %v9853_v48, %v9917_v30  ;;  %vm9886_vm3 = vcmp.ge.f32.partialorder %v9854_v19, 0.0  ;;  %v9918_v12 = vmul.f32 0.2, %v9854_v19  ;;  %14429 = vmatmul.mubr.msk.bf16.vlgmr.msra.gmra.mrb[176].mxu0 %vm24776_vm9, %v14428_v7  ;;  %14552 = vmatmul.mubr.msk.bf16.gmra.mrb[148].mxu1 %vm24790_vm4, %v14428_v7  ;;  %v10040_v7 = vld [vmem:[#allocation2 + $0x37] sm:$0xff] }
 0x93f   : > { %v23101_v21 = vadd.f32 %v18871_v23, %v9949_v13  ;;  %v9947_v45 = vsel %vm9883_vm10, %v9851_v50, %v9915_v33  ;;  %vm9884_vm8 = vcmp.ge.f32.partialorder %v9852_v42, 0.0  ;;  %v9916_v17 = vmul.f32 0.2, %v9852_v42  ;;  %v17415_v38 = vpop.f32.mrb[60].mxu1  ;;  %10628 = vmatprep.mubr.bf16.mxu0 %v10202_v54  ;;  %17434 = vmatpush3.bf16.msra.mxu0 %v22970_v29  ;;  %v18873_v50 = vld [vmem:[#allocation2 + $0x78] sm:$0xff] }
 0x940   : > { %v23104_v37 = vadd.f32 %v18872_v41, %v9947_v45  ;;  %v9950_v48 = vsel %vm9886_vm3, %v9854_v19, %v9918_v12  ;;  %v17919_v39 = vadd.f32 %v22992_v34, %v17415_v38  ;;  %v9724_v63 = vpop.f32.mrb[61].mxu1  ;;  %11102 = vmatprep.mubr.bf16.mxu1 %v10202_v54  ;;  %17435 = vmatprep.subr.bf16.mxu0 %v18724_v46  ;;  %v10039_v19 = vld [vmem:[#allocation2 + $0x2f] sm:$0xff] }
 0x941   : > { %10013 = vst [vmem:[#allocation2 + $0x70] sm:$0xff] %v23101_v21  ;;  %v23111_v40 = vadd.f32 %v18873_v50, %v9950_v48  ;;  %v9948_v29 = vsel %vm9884_vm8, %v9852_v42, %v9916_v17  ;;  %v17922_v35 = vadd.f32 %v22986_v6, %v9724_v63  ;;  %v17416_v30 = vpop.f32.mrb[62].mxu1  ;;  %v18874_v34 = vld [vmem:[#allocation2 + $0x68] sm:$0xff]  ;;  %v14431_v17 = vpack.c.bf16 %v10040_v7, %v10039_v19  ;;  %v18875_v63 = vld [vmem:[#allocation2 + $0x90] sm:$0xff] }
 0x942   : > { %10011 = vst [vmem:[#allocation2 + $0x60] sm:$0xff] %v23104_v37  ;;  %v23116_v33 = vadd.f32 %v18874_v34, %v9948_v29  ;;  %v9857_v54 = vadd.f32 %v17919_v39, %v23048_v49  ;;  %v17925_v13 = vadd.f32 %v22995_v60, %v17416_v30  ;;  %v9727_v12 = vpop.f32.mrb[63].mxu1  ;;  %v10205_v41 = vpack.c.bf16 %v23082_v26, %v23074_v11  ;;  %v24791_v39 = vld [vmem:[#allocation18_spill] sm:$0xff]  ;;  %v18876_v26 = vld [vmem:[#allocation2 + $0x80] sm:$0xff] }
 0x943   : > { %10014 = vst [vmem:[#allocation2 + $0x78] sm:$0xff] %v23111_v40  ;;  %v9855_v23 = vadd.f32 %v17922_v35, %v23048_v49  ;;  %v17928_v42 = vadd.f32 %v22989_v55, %v9727_v12  ;;  %17436 = vmatpush3.bf16.msra.mxu0 %v18724_v46  ;;  %v18726_v55 = vld [vmem:[%s23926_s1 + $0xa58] sm:$0xff]   ;;  %vm24792_vm3 = vnez %v24791_v39 }
 0x944   : > { %10012 = vst [vmem:[#allocation2 + $0x68] sm:$0xff] %v23116_v33  ;;  %vm9889_vm8 = vcmp.ge.f32.partialorder %v9857_v54, 0.0  ;;  %v9921_v6 = vmul.f32 0.2, %v9857_v54  ;;  %v9858_v45 = vadd.f32 %v17925_v13, %v23048_v49  ;;  %17437 = vmatprep.subr.bf16.mxu0 %v18725_v14 }
 0x945   : > { %vm9887_vm12 = vcmp.ge.f32.partialorder %v9855_v23, 0.0  ;;  %v9919_v38 = vmul.f32 0.2, %v9855_v23  ;;  %v9856_v60 = vadd.f32 %v17928_v42, %v23048_v49 }
 0x946   : > { %v9953_v46 = vsel %vm9889_vm8, %v9857_v54, %v9921_v6  ;;  %vm9890_vm10 = vcmp.ge.f32.partialorder %v9858_v45, 0.0  ;;  %v9922_v48 = vmul.f32 0.2, %v9858_v45  ;;  %14432 = vmatmul.mubr.msk.bf16.gmra.mrb[180].mxu0 %vm24790_vm4, %v14431_v17  ;;  %14555 = vmatmul.mubr.msk.bf16.gmra.mrb[152].mxu1 %vm24792_vm3, %v14431_v17  ;;  %v18877_v54 = vld [vmem:[#allocation2 + $0x98] sm:$0xff]  ;;  %v10042_v6 = vld [vmem:[#allocation2 + $0x47] sm:$0xff] }
 0x947   : > { %v23135_v50 = vadd.f32 %v18875_v63, %v9953_v46  ;;  %v9951_v29 = vsel %vm9887_vm12, %v9855_v23, %v9919_v38  ;;  %vm9888_vm9 = vcmp.ge.f32.partialorder %v9856_v60, 0.0  ;;  %v9920_v35 = vmul.f32 0.2, %v9856_v60  ;;  %v17419_v11 = vpop.f32.mrb[64].mxu1  ;;  %10636 = vmatprep.mubr.bf16.mxu0 %v10205_v41  ;;  %11110 = vmatprep.mubr.bf16.mxu1 %v10205_v41  ;;  %v18727_v17 = vld [vmem:[%s23926_s1 + $0xa60] sm:$0xff]  }
 0x948   : > { %v23137_v30 = vadd.f32 %v18876_v26, %v9951_v29  ;;  %v9954_v19 = vsel %vm9890_vm10, %v9858_v45, %v9922_v48  ;;  %v17931_v7 = vadd.f32 %v23004_v2, %v17419_v11  ;;  %v9740_v34 = vpop.f32.mrb[65].mxu1  ;;  %17438 = vmatpush3.bf16.msra.mxu0 %v18725_v14  ;;  %v18878_v2 = vld [vmem:[#allocation2 + $0x88] sm:$0xff]  ;;  %v10041_v46 = vld [vmem:[#allocation2 + $0x3f] sm:$0xff]  ;;  %v10208_v11 = vpack.c.bf16 %v23078_v27, %v23072_v15 }
 0x949   : > { %10017 = vst [vmem:[#allocation2 + $0x90] sm:$0xff] %v23135_v50  ;;  %v23141_v13 = vadd.f32 %v18877_v54, %v9954_v19  ;;  %v9952_v12 = vsel %vm9888_vm9, %v9856_v60, %v9920_v35  ;;  %v17934_v23 = vadd.f32 %v22998_v57, %v9740_v34  ;;  %v17420_v42 = vpop.f32.mrb[66].mxu1  ;;  %17439 = vmatprep.subr.bf16.mxu0 %v18726_v55 }
 0x94a   : > { %10015 = vst [vmem:[#allocation2 + $0x80] sm:$0xff] %v23137_v30  ;;  %v23148_v45 = vadd.f32 %v18878_v2, %v9952_v12  ;;  %v9861_v14 = vadd.f32 %v17931_v7, %v23048_v49  ;;  %v17937_v38 = vadd.f32 %v23007_v47, %v17420_v42  ;;  %v9743_v41 = vpop.f32.mrb[67].mxu1  ;;  %v14434_v29 = vpack.c.bf16 %v10042_v6, %v10041_v46  ;;  %v24793_v7 = vld [vmem:[#allocation23_spill] sm:$0xff]  ;;  %v10043_v46 = vld [vmem:[#allocation2 + $0x4f] sm:$0xff] }
 0x94b   : > { %10018 = vst [vmem:[#allocation2 + $0x98] sm:$0xff] %v23141_v13  ;;  %v9859_v57 = vadd.f32 %v17934_v23, %v23048_v49  ;;  %v17940_v60 = vadd.f32 %v23001_v16, %v9743_v41  ;;  %v18728_v16 = vld [vmem:[%s23926_s1 + $0xa68] sm:$0xff]   ;;  %vm24794_vm10 = vnez %v24793_v7  ;;  %v18880_v12 = vld [vmem:[#allocation2 + $0xa0] sm:$0xff] }
 0x94c   : > { %10016 = vst [vmem:[#allocation2 + $0x88] sm:$0xff] %v23148_v45  ;;  %vm9893_vm9 = vcmp.ge.f32.partialorder %v9861_v14, 0.0  ;;  %v9925_v48 = vmul.f32 0.2, %v9861_v14  ;;  %v9862_v63 = vadd.f32 %v17937_v38, %v23048_v49  ;;  %17440 = vmatpush3.bf16.msra.mxu0 %v18726_v55  ;;  %v18879_v55 = vld [vmem:[#allocation2 + $0xb0] sm:$0xff] }
 0x94d   : > { %vm9891_vm8 = vcmp.ge.f32.partialorder %v9859_v57, 0.0  ;;  %v9923_v35 = vmul.f32 0.2, %v9859_v57  ;;  %v9860_v47 = vadd.f32 %v17940_v60, %v23048_v49  ;;  %17441 = vmatprep.subr.bf16.mxu0 %v18727_v17 }
 0x94e   : > { %v9957_v26 = vsel %vm9893_vm9, %v9861_v14, %v9925_v48  ;;  %vm9894_vm12 = vcmp.ge.f32.partialorder %v9862_v63, 0.0  ;;  %v9926_v19 = vmul.f32 0.2, %v9862_v63  ;;  %14435 = vmatmul.mubr.msk.bf16.gmra.mrb[184].mxu0 %vm24792_vm3, %v14434_v29  ;;  %14558 = vmatmul.mubr.msk.bf16.gmra.mrb[156].mxu1 %vm24794_vm10, %v14434_v29  ;;  %v18881_v14 = vld [vmem:[#allocation2 + $0xb8] sm:$0xff] }
 0x94f   : > { %v23167_v34 = vadd.f32 %v18879_v55, %v9957_v26  ;;  %v9955_v54 = vsel %vm9891_vm8, %v9859_v57, %v9923_v35  ;;  %vm9892_vm4 = vcmp.ge.f32.partialorder %v9860_v47, 0.0  ;;  %v9924_v15 = vmul.f32 0.2, %v9860_v47  ;;  %v17423_v27 = vpop.f32.mrb[68].mxu1  ;;  %10644 = vmatprep.mubr.bf16.mxu0 %v10208_v11  ;;  %11118 = vmatprep.mubr.bf16.mxu1 %v10208_v11  ;;  %v10044_v48 = vld [vmem:[#allocation2 + $0x57] sm:$0xff] }
 0x950   : > { %v23169_v23 = vadd.f32 %v18880_v12, %v9955_v54  ;;  %v9958_v42 = vsel %vm9894_vm12, %v9862_v63, %v9926_v19  ;;  %v17943_v6 = vadd.f32 %v23016_v62, %v17423_v27  ;;  %v9756_v2 = vpop.f32.mrb[69].mxu1  ;;  %17442 = vmatpush3.bf16.msra.mxu0 %v18727_v17  ;;  %v18729_v63 = vld [vmem:[%s23926_s1 + $0xa70] sm:$0xff]   ;;  %v18882_v62 = vld [vmem:[#allocation2 + $0xa8] sm:$0xff]  ;;  %v14437_v55 = vpack.c.bf16 %v10044_v48, %v10043_v46  ;;  %v18885_v48 = vld [vmem:[#allocation2 + $0xd8] sm:$0xff] }
 0x951   : > { %10021 = vst [vmem:[#allocation2 + $0xb0] sm:$0xff] %v23167_v34  ;;  %v23173_v38 = vadd.f32 %v18881_v14, %v9958_v42  ;;  %v9956_v41 = vsel %vm9892_vm4, %v9860_v47, %v9924_v15  ;;  %v17946_v57 = vadd.f32 %v23010_v32, %v9756_v2  ;;  %v17424_v60 = vpop.f32.mrb[70].mxu1  ;;  %17443 = vmatprep.subr.bf16.mxu0 %v18728_v16  ;;  %v24795_v42 = vld [vmem:[#allocation3_spill] sm:$0xff] }
 0x952   : > { %10019 = vst [vmem:[#allocation2 + $0xa0] sm:$0xff] %v23169_v23  ;;  %v23180_v17 = vadd.f32 %v18882_v62, %v9956_v41  ;;  %v9865_v29 = vadd.f32 %v17943_v6, %v23048_v49  ;;  %v17949_v35 = vadd.f32 %v23019_v43, %v17424_v60  ;;  %v9759_v47 = vpop.f32.mrb[71].mxu1  ;;  %v10211_v43 = vpack.c.bf16 %v23116_v33, %v23104_v37  ;;  %v18884_v14 = vld [vmem:[#allocation2 + $0xc0] sm:$0xff] }
 0x953   : > { %10022 = vst [vmem:[#allocation2 + $0xb8] sm:$0xff] %v23173_v38  ;;  %v9863_v32 = vadd.f32 %v17946_v57, %v23048_v49  ;;  %v17952_v11 = vadd.f32 %v23013_v24, %v9759_v47  ;;  %v18730_v24 = vld [vmem:[%s23926_s1 + $0xa78] sm:$0xff]   ;;  %vm24796_vm12 = vnez %v24795_v42  ;;  %v11482_v61 = vld [vmem:[#allocation2 + $0x81] sm:$0xff] }
 0x954   : > { %10020 = vst [vmem:[#allocation2 + $0xa8] sm:$0xff] %v23180_v17  ;;  %vm9897_vm4 = vcmp.ge.f32.partialorder %v9865_v29, 0.0  ;;  %v9929_v26 = vmul.f32 0.2, %v9865_v29  ;;  %v9866_v19 = vadd.f32 %v17949_v35, %v23048_v49  ;;  %17444 = vmatpush3.bf16.msra.mxu0 %v18728_v16  ;;  %v18883_v16 = vld [vmem:[#allocation2 + $0xd0] sm:$0xff] }
 0x955   : > { %vm9895_vm9 = vcmp.ge.f32.partialorder %v9863_v32, 0.0  ;;  %v9927_v54 = vmul.f32 0.2, %v9863_v32  ;;  %v9864_v15 = vadd.f32 %v17952_v11, %v23048_v49  ;;  %17445 = vmatprep.subr.bf16.mxu0 %v18729_v63  ;;  %v23211_v11 = vld [vmem:[%s23926_s1 + $0x980] sm:$0xff]  }
 0x956   : > { %v9961_v27 = vsel %vm9897_vm4, %v9865_v29, %v9929_v26  ;;  %vm9898_vm8 = vcmp.ge.f32.partialorder %v9866_v19, 0.0  ;;  %v9930_v12 = vmul.f32 0.2, %v9866_v19  ;;  %14438 = vmatmul.mubr.msk.bf16.gmra.mrb[188].mxu0 %vm24794_vm10, %v14437_v55  ;;  %14561 = vmatmul.mubr.msk.bf16.gmra.mrb[160].mxu1 %vm24796_vm12, %v14437_v55 }
 0x957   : > { %v23199_v6 = vadd.f32 %v18883_v16, %v9961_v27  ;;  %v9959_v2 = vsel %vm9895_vm9, %v9863_v32, %v9927_v54  ;;  %vm9896_vm3 = vcmp.ge.f32.partialorder %v9864_v15, 0.0  ;;  %v9928_v37 = vmul.f32 0.2, %v9864_v15  ;;  %v17427_v33 = vpop.f32.mrb[72].mxu1  ;;  %10652 = vmatprep.mubr.bf16.mxu0 %v10211_v43  ;;  %11126 = vmatprep.mubr.bf16.mxu1 %v10211_v43  ;;  %v10046_v32 = vld [vmem:[#allocation2 + $0x67] sm:$0xff] }
 0x958   : > { %v23201_v41 = vadd.f32 %v18884_v14, %v9959_v2  ;;  %v9962_v57 = vsel %vm9898_vm8, %v9866_v19, %v9930_v12  ;;  %v17955_v60 = vadd.f32 %v23028_v28, %v17427_v33  ;;  %v9772_v46 = vpop.f32.mrb[73].mxu1  ;;  %17446 = vmatpush3.bf16.msra.mxu0 %v18729_v63  ;;  %v18886_v28 = vld [vmem:[#allocation2 + $0xc8] sm:$0xff]  ;;  %v10214_v2 = vpack.c.bf16 %v23111_v40, %v23101_v21  ;;  %v18887_v14 = vld [vmem:[#allocation2 + $0xf0] sm:$0xff]  ;;  %v18888_v21 = vld [vmem:[#allocation2 + $0xe0] sm:$0xff] }
 0x959   : > { %10025 = vst [vmem:[#allocation2 + $0xd0] sm:$0xff] %v23199_v6  ;;  %v23205_v62 = vadd.f32 %v18885_v48, %v9962_v57  ;;  %v9960_v29 = vsel %vm9896_vm3, %v9864_v15, %v9928_v37  ;;  %v17958_v35 = vadd.f32 %v23022_v52, %v9772_v46  ;;  %v17428_v47 = vpop.f32.mrb[74].mxu1  ;;  %17447 = vmatprep.subr.bf16.mxu0 %v18730_v24  ;;  %v10045_v15 = vld [vmem:[#allocation2 + $0x5f] sm:$0xff]  ;;  %v24797_v33 = vld [vmem:[#allocation4_spill] sm:$0xff] }
 0x95a   : > { %10023 = vst [vmem:[#allocation2 + $0xc0] sm:$0xff] %v23201_v41  ;;  %v23214_v63 = vadd.f32 %v18886_v28, %v9960_v29  ;;  %v9869_v26 = vadd.f32 %v17955_v60, %v23048_v49  ;;  %v17961_v19 = vadd.f32 %v23031_v56, %v17428_v47  ;;  %v9775_v55 = vpop.f32.mrb[75].mxu1  ;;  %v14440_v12 = vpack.c.bf16 %v10046_v32, %v10045_v15  ;;  %v18889_v47 = vld [vmem:[#allocation2 + $0xf8] sm:$0xff] }
 0x95b   : > { %10026 = vst [vmem:[#allocation2 + $0xd8] sm:$0xff] %v23205_v62  ;;  %v9867_v52 = vadd.f32 %v17958_v35, %v23048_v49  ;;  %v17964_v54 = vadd.f32 %v23025_v25, %v9775_v55  ;;  %vm24798_vm8 = vnez %v24797_v33  ;;  %v10047_v55 = vld [vmem:[#allocation2 + $0x6f] sm:$0xff]  ;;  %v11486_v22 = vld [vmem:[#allocation2 + $0xa1] sm:$0xff] }
 0x95c   : > { %10024 = vst [vmem:[#allocation2 + $0xc8] sm:$0xff] %v23214_v63  ;;  %vm9901_vm3 = vcmp.ge.f32.partialorder %v9869_v26, 0.0  ;;  %v9933_v43 = vmul.f32 0.2, %v9869_v26  ;;  %v9870_v27 = vadd.f32 %v17961_v19, %v23048_v49  ;;  %17448 = vmatpush3.bf16.msra.mxu0 %v18730_v24 }
 0x95d   : > { %vm9899_vm4 = vcmp.ge.f32.partialorder %v9867_v52, 0.0  ;;  %v9931_v16 = vmul.f32 0.2, %v9867_v52  ;;  %v9868_v56 = vadd.f32 %v17964_v54, %v23048_v49  ;;  %17481 = vmatprep.subr.bf16.mxu0 %v23211_v11  ;;  %v18890_v54 = vld [vmem:[#allocation2 + $0xe8] sm:$0xff] }
 0x95e   : > { %v9965_v37 = vsel %vm9901_vm3, %v9869_v26, %v9933_v43  ;;  %vm9902_vm9 = vcmp.ge.f32.partialorder %v9870_v27, 0.0  ;;  %v9934_v25 = vmul.f32 0.2, %v9870_v27  ;;  %14441 = vmatmul.mubr.msk.bf16.gmra.mrb[192].mxu0 %vm24796_vm12, %v14440_v12  ;;  %14564 = vmatmul.mubr.msk.bf16.gmra.mrb[164].mxu1 %vm24798_vm8, %v14440_v12 }
 0x95f   : > { %v23231_v24 = vadd.f32 %v18887_v14, %v9965_v37  ;;  %v9963_v57 = vsel %vm9899_vm4, %v9867_v52, %v9931_v16  ;;  %vm9900_vm10 = vcmp.ge.f32.partialorder %v9868_v56, 0.0  ;;  %v9932_v60 = vmul.f32 0.2, %v9868_v56  ;;  %v17431_v46 = vpop.f32.mrb[76].mxu1  ;;  %10660 = vmatprep.mubr.bf16.mxu0 %v10214_v2  ;;  %11134 = vmatprep.mubr.bf16.mxu1 %v10214_v2  ;;  %v10048_v52 = vld [vmem:[#allocation2 + $0x77] sm:$0xff] }
 0x960   : > { %v23233_v40 = vadd.f32 %v18888_v21, %v9963_v57  ;;  %v9966_v48 = vsel %vm9902_vm9, %v9870_v27, %v9934_v25  ;;  %v17967_v29 = vadd.f32 %v23040_v5, %v17431_v46  ;;  %v9788_v35 = vpop.f32.mrb[77].mxu1  ;;  %v23250_v2 = vpack.c.bf16 %v10048_v52, %v10047_v55  ;;  %v10049_v55 = vld [vmem:[#allocation2 + $0x7f] sm:$0xff] }
 0x961   : > { %10029 = vst [vmem:[#allocation2 + $0xf0] sm:$0xff] %v23231_v24  ;;  %v23237_v32 = vadd.f32 %v18889_v47, %v9966_v48  ;;  %v9964_v28 = vsel %vm9900_vm10, %v9868_v56, %v9932_v60  ;;  %v17970_v26 = vadd.f32 %v23034_v10, %v9788_v35  ;;  %v17432_v19 = vpop.f32.mrb[78].mxu1  ;;  %v18891_v60 = vld [vmem:[#allocation2 + $0x110] sm:$0xff] }
 0x962   : > { %10027 = vst [vmem:[#allocation2 + $0xe0] sm:$0xff] %v23233_v40  ;;  %v23241_v15 = vadd.f32 %v18890_v54, %v9964_v28  ;;  %v9873_v43 = vadd.f32 %v17967_v29, %v23048_v49  ;;  %v17973_v5 = vadd.f32 %v23043_v59, %v17432_v19  ;;  %v9791_v27 = vpop.f32.mrb[79].mxu1  ;;  %v10217_v59 = vpack.c.bf16 %v23148_v45, %v23137_v30  ;;  %v18892_v30 = vld [vmem:[#allocation2 + $0x100] sm:$0xff]  ;;  %v18893_v29 = vld [vmem:[#allocation2 + $0x118] sm:$0xff] }
 0x963   : > { %10030 = vst [vmem:[#allocation2 + $0xf8] sm:$0xff] %v23237_v32  ;;  %v9871_v12 = vadd.f32 %v17970_v26, %v23048_v49  ;;  %v17976_v16 = vadd.f32 %v23037_v31, %v9791_v27  ;;  %v24799_v31 = vld [vmem:[#allocation5_spill] sm:$0xff]  ;;  %v10050_v28 = vld [vmem:[#allocation2 + $0x87] sm:$0xff]  ;;  %v10220_v54 = vpack.c.bf16 %v23141_v13, %v23135_v50  ;;  %v10053_v13 = vld [vmem:[#allocation2 + $0x9f] sm:$0xff] }
 0x964   : > { %10028 = vst [vmem:[#allocation2 + $0xe8] sm:$0xff] %v23241_v15  ;;  %vm9905_vm10 = vcmp.ge.f32.partialorder %v9873_v43, 0.0  ;;  %v9937_v10 = vmul.f32 0.2, %v9873_v43  ;;  %v9874_v56 = vadd.f32 %v17973_v5, %v23048_v49  ;;  %vm24800_vm9 = vnez %v24799_v31  ;;  %v18894_v26 = vld [vmem:[#allocation2 + $0x108] sm:$0xff]  ;;  %v10052_v27 = vld [vmem:[#allocation2 + $0x97] sm:$0xff] }
 0x965   : > { %vm9903_vm3 = vcmp.ge.f32.partialorder %v9871_v12, 0.0  ;;  %v9935_v37 = vmul.f32 0.2, %v9871_v12  ;;  %v9872_v25 = vadd.f32 %v17976_v16, %v23048_v49  ;;  %v14446_v52 = vpack.c.bf16 %v10050_v28, %v10049_v55  ;;  %v10051_v5 = vld [vmem:[#allocation2 + $0x8f] sm:$0xff]  ;;  %v10054_v50 = vld [vmem:[#allocation2 + $0xa7] sm:$0xff] }
 0x966   : > { %v9969_v14 = vsel %vm9905_vm10, %v9873_v43, %v9937_v10  ;;  %vm9906_vm4 = vcmp.ge.f32.partialorder %v9874_v56, 0.0  ;;  %v9938_v57 = vmul.f32 0.2, %v9874_v56  ;;  %14444 = vmatmul.mubr.msk.bf16.gmra.mrb[196].mxu0 %vm24798_vm8, %v23250_v2  ;;  %14567 = vmatmul.mubr.msk.bf16.gmra.mrb[168].mxu1 %vm24800_vm9, %v23250_v2  ;;  %v24801_v43 = vld [vmem:[#allocation6_spill] sm:$0xff]  ;;  %v10223_v16 = vpack.c.bf16 %v23180_v17, %v23169_v23  ;;  %v24803_v10 = vld [vmem:[#allocation7_spill] sm:$0xff]  ;;  %v10055_v23 = vld [vmem:[#allocation2 + $0xaf] sm:$0xff] }
 0x967   : > { %v23261_v46 = vadd.f32 %v18891_v60, %v9969_v14  ;;  %v9967_v21 = vsel %vm9903_vm3, %v9871_v12, %v9935_v37  ;;  %vm9904_vm12 = vcmp.ge.f32.partialorder %v9872_v25, 0.0  ;;  %v9936_v49 = vmul.f32 0.2, %v9872_v25  ;;  %10668 = vmatprep.mubr.bf16.mxu0 %v10217_v59  ;;  %11142 = vmatprep.mubr.bf16.mxu1 %v10217_v59  ;;  %v10056_v17 = vld [vmem:[#allocation2 + $0xb7] sm:$0xff]  ;;  %v11490_v4 = vld [vmem:[#allocation2 + $0xc1] sm:$0xff] }
 0x968   : > { %v23263_v45 = vadd.f32 %v18892_v30, %v9967_v21  ;;  %v9970_v48 = vsel %vm9906_vm4, %v9874_v56, %v9938_v57  ;;  %v14449_v12 = vpack.c.bf16 %v10052_v27, %v10051_v5  ;;  %vm24804_vm10 = vnez %v24803_v10 }
 0x969   : > { %10033 = vst [vmem:[#allocation2 + $0x110] sm:$0xff] %v23261_v46  ;;  %v23266_v35 = vadd.f32 %v18893_v29, %v9970_v48  ;;  %v9968_v47 = vsel %vm9904_vm12, %v9872_v25, %v9936_v49  ;;  %vm24802_vm12 = vnez %v24801_v43  ;;  %v14452_v56 = vpack.c.bf16 %v10054_v50, %v10053_v13 }
 0x96a   : > { %10031 = vst [vmem:[#allocation2 + $0x100] sm:$0xff] %v23263_v45  ;;  %v23269_v19 = vadd.f32 %v18894_v26, %v9968_v47  ;;  %v10226_v37 = vpack.c.bf16 %v23173_v38, %v23167_v34  ;;  %vm24805_vm3 = vnez %v24548_v58  ;;  %v14455_v25 = vpack.c.bf16 %v10056_v17, %v10055_v23  ;;  %v10058_v34 = vld [vmem:[#allocation2 + $0xc7] sm:$0xff]  ;;  %v10057_v38 = vld [vmem:[#allocation2 + $0xbf] sm:$0xff]  ;;  %v10064_v55 = vld [vmem:[#allocation2 + $0xf7] sm:$0xff] }
 0x96b   : > { %10034 = vst [vmem:[#allocation2 + $0x118] sm:$0xff] %v23266_v35  ;;  %v10229_v59 = vpack.c.bf16 %v23214_v63, %v23201_v41  ;;  %vm24806_vm4 = vnez %v24550_v44  ;;  %v14458_v14 = vpack.c.bf16 %v10058_v34, %v10057_v38  ;;  %v10232_v57 = vpack.c.bf16 %v23205_v62, %v23199_v6  ;;  %v10059_v41 = vld [vmem:[#allocation2 + $0xcf] sm:$0xff]  ;;  %v10060_v63 = vld [vmem:[#allocation2 + $0xd7] sm:$0xff]  ;;  %v10062_v49 = vld [vmem:[#allocation2 + $0xe7] sm:$0xff] }
 0x96c   : > { %10032 = vst [vmem:[#allocation2 + $0x108] sm:$0xff] %v23269_v19  ;;  %v14461_v60 = vpack.c.bf16 %v10060_v63, %v10059_v41  ;;  %v10235_v21 = vpack.c.bf16 %v23241_v15, %v23233_v40  ;;  %v10061_v47 = vld [vmem:[#allocation2 + $0xdf] sm:$0xff]  ;;  %v10238_v40 = vpack.c.bf16 %v23237_v32, %v23231_v24  ;;  %v10063_v15 = vld [vmem:[#allocation2 + $0xef] sm:$0xff]  ;;  %v10393_v27 = vpack.c.bf16 %v23266_v35, %v23261_v46 }
 0x96d   : > { %v14464_v26 = vpack.c.bf16 %v10062_v49, %v10061_v47  ;;  %v10136_v46 = vld [vmem:[#allocation2 + $0x39] sm:$0xff]  ;;  %v10137_v35 = vld [vmem:[#allocation2 + $0x41] sm:$0xff]  ;;  %v10143_v49 = vld [vmem:[#allocation2 + $0x71] sm:$0xff] }
 0x96e   : > { %14447 = vmatmul.mubr.msk.bf16.gmra.mrb[200].mxu0 %vm24800_vm9, %v14446_v52  ;;  %14570 = vmatmul.mubr.msk.bf16.gmra.mrb[172].mxu1 %vm24802_vm12, %v14446_v52  ;;  %v14467_v52 = vpack.c.bf16 %v10064_v55, %v10063_v15  ;;  %v18732_v17 = vld [vmem:[%s23926_s1 + $0x988] sm:$0xff]   ;;  %v10140_v34 = vld [vmem:[#allocation2 + $0x59] sm:$0xff] }
 0x96f   : > { %10676 = vmatprep.mubr.bf16.mxu0 %v10220_v54  ;;  %11150 = vmatprep.mubr.bf16.mxu1 %v10220_v54  ;;  %v10241_v54 = vpack.c.bf16 %v23269_v19, %v23263_v45  ;;  %v10141_v38 = vld [vmem:[#allocation2 + $0x61] sm:$0xff]  ;;  %v18734_v63 = vld [vmem:[%s23926_s1 + $0x998] sm:$0xff]  }
 0x970   : > { %v10148_v15 = vld [vmem:[#allocation2 + $0x99] sm:$0xff]  ;;  %v10149_v55 = vld [vmem:[#allocation2 + $0xa1] sm:$0xff] }
 0x971   : > { %v10065_v32 = vld [vmem:[#allocation2 + $0xff] sm:$0xff] }
 0x972   : > { %v10293_v19 = vld [vmem:[#allocation2 + $0x117] sm:$0xff] }
 0x973   : > { %v10066_v24 = vld [vmem:[#allocation2 + $0x107] sm:$0xff]  ;;  %v10292_v45 = vld [vmem:[#allocation2 + $0x10f] sm:$0xff] }
 0x974   : > { %v14470_v5 = vpack.c.bf16 %v10066_v24, %v10065_v32  ;;  %v14473_v50 = vpack.c.bf16 %v10293_v19, %v10292_v45  ;;  %v18738_v32 = vld [vmem:[%s23926_s1 + $0x9b8] sm:$0xff]   ;;  %v24812_v45 = vld [vmem:[#allocation45_spill] sm:$0xff]  ;;  %v18739_v19 = vld [vmem:[%s23926_s1 + $0xac0] sm:$0xff]  }
 0x976   : > { %14450 = vmatmul.mubr.msk.bf16.gmra.mrb[204].mxu0 %vm24802_vm12, %v14449_v12  ;;  %14573 = vmatmul.mubr.msk.bf16.gmra.mrb[240].mxu1 %vm24804_vm10, %v14449_v12  ;;  %v10133_v12 = vld [vmem:[#allocation2 + $0x21] sm:$0xff] }
 0x977   : > { %10684 = vmatprep.mubr.bf16.mxu0 %v10223_v16  ;;  %11158 = vmatprep.mubr.bf16.mxu1 %v10223_v16  ;;  %v10134_v16 = vld [vmem:[#allocation2 + $0x29] sm:$0xff] }
 0x978   : > { %v23331_v13 = vpack.c.bf16 %v10134_v16, %v10133_v12  ;;  %v10152_v12 = vld [vmem:[#allocation2 + $0xb9] sm:$0xff]  ;;  %v10153_v16 = vld [vmem:[#allocation2 + $0xc1] sm:$0xff] }
 0x97e   : > { %14453 = vmatmul.mubr.msk.bf16.gmra.mrb[208].mxu0 %vm24804_vm10, %v14452_v56  ;;  %14576 = vmatmul.mubr.msk.bf16.gmra.mrb[244].mxu1 %vm24805_vm3, %v14452_v56  ;;  %v10138_v56 = vld [vmem:[#allocation2 + $0x49] sm:$0xff] }
 0x97f   : > { %10692 = vmatprep.mubr.bf16.mxu0 %v10226_v37  ;;  %11166 = vmatprep.mubr.bf16.mxu1 %v10226_v37  ;;  %v10135_v37 = vld [vmem:[#allocation2 + $0x31] sm:$0xff] }
 0x980   : > { %v23338_v23 = vpack.c.bf16 %v10136_v46, %v10135_v37  ;;  %v10151_v46 = vld [vmem:[#allocation2 + $0xb1] sm:$0xff]  ;;  %v24814_v37 = vld [vmem:[#allocation47_spill] sm:$0xff] }
 0x986   : > { %14456 = vmatmul.mubr.msk.bf16.gmra.mrb[212].mxu0 %vm24805_vm3, %v14455_v25  ;;  %14579 = vmatmul.mubr.msk.bf16.gmra.mrb[248].mxu1 %vm24806_vm4, %v14455_v25  ;;  %vm24807_vm3 = vnez %v24607_v3  ;;  %v23343_v25 = vpack.c.bf16 %v10138_v56, %v10137_v35  ;;  %v23403_v35 = vpack.c.bf16 %v10152_v12, %v10151_v46  ;;  %v10132_v12 = vld [vmem:[#allocation2 + $0x19] sm:$0xff]  ;;  %v24826_v46 = vld [vmem:[#allocation57_spill] sm:$0xff] }
 0x987   : > { %10700 = vmatprep.mubr.bf16.mxu0 %v10229_v59  ;;  %11174 = vmatprep.mubr.bf16.mxu1 %v10229_v59  ;;  %v18733_v59 = vld [vmem:[%s23926_s1 + $0x990] sm:$0xff]   ;;  %vm24827_vm8 = vnez %v24826_v46 }
 0x98d   : > { %v16601_v6 = vpop.f32.mrb[144].mxu1 }
 0x98e   : > { %14459 = vmatmul.mubr.msk.bf16.gmra.mrb[216].mxu0 %vm24806_vm4, %v14458_v14  ;;  %14582 = vmatmul.mubr.msk.bf16.gmra.mrb[252].mxu1 %vm24767_vm11, %v14458_v14  ;;  %v16602_v62 = vpop.f32.mrb[145].mxu1  ;;  %v10142_v14 = vld [vmem:[#allocation2 + $0x69] sm:$0xff] }
 0x98f   : > { %10708 = vmatprep.mubr.bf16.mxu0 %v10232_v57  ;;  %11182 = vmatprep.mubr.bf16.mxu1 %v10232_v57  ;;  %v23309_v30 = vadd.f32 %v16602_v62, %v16601_v6  ;;  %v16604_v48 = vpop.f32.mrb[146].mxu1  ;;  %v10139_v57 = vld [vmem:[#allocation2 + $0x51] sm:$0xff]  ;;  %v10145_v6 = vld [vmem:[#allocation2 + $0x81] sm:$0xff]  ;;  %v10146_v62 = vld [vmem:[#allocation2 + $0x89] sm:$0xff] }
 0x990   : > { %v16605_v29 = vpop.f32.mrb[147].mxu1  ;;  %v23355_v41 = vpack.c.bf16 %v10140_v34, %v10139_v57  ;;  %v23376_v47 = vpack.c.bf16 %v10146_v62, %v10145_v6  ;;  %v10157_v34 = vld [vmem:[#allocation2 + $0xe1] sm:$0xff]  ;;  %v10160_v6 = vld [vmem:[#allocation2 + $0xf9] sm:$0xff] }
 0x991   : > { %v23311_v28 = vadd.f32 %v16605_v29, %v16604_v48  ;;  %v18736_v29 = vld [vmem:[%s23926_s1 + $0x9a8] sm:$0xff]  }
 0x992   : > { %v10161_v62 = vld [vmem:[#allocation2 + $0x101] sm:$0xff] }
 0x996   : > { %14462 = vmatmul.mubr.msk.bf16.gmra.mrb[220].mxu0 %vm24767_vm11, %v14461_v60  ;;  %14585 = vmatmul.mubr.msk.bf16.gmra.mrb[0].mxu1 %vm24807_vm3, %v14461_v60  ;;  %vm24808_vm11 = vnez %v24608_v8  ;;  %v23360_v60 = vpack.c.bf16 %v10142_v14, %v10141_v38  ;;  %v10158_v38 = vld [vmem:[#allocation2 + $0xe9] sm:$0xff]  ;;  %v10155_v14 = vld [vmem:[#allocation2 + $0xd1] sm:$0xff] }
 0x997   : > { %10716 = vmatprep.mubr.bf16.mxu0 %v10235_v21  ;;  %11190 = vmatprep.mubr.bf16.mxu1 %v10235_v21  ;;  %v10144_v21 = vld [vmem:[#allocation2 + $0x79] sm:$0xff] }
 0x998   : > { %v23371_v48 = vpack.c.bf16 %v10144_v21, %v10143_v49  ;;  %v24820_v21 = vld [vmem:[#allocation51_spill] sm:$0xff]  ;;  %v10162_v49 = vld [vmem:[#allocation2 + $0x109] sm:$0xff] }
 0x999   : > { %vm24821_vm10 = vnez %v24820_v21 }
 0x99e   : > { %14465 = vmatmul.mubr.msk.bf16.gmra.mrb[224].mxu0 %vm24807_vm3, %v14464_v26  ;;  %14588 = vmatmul.mubr.msk.bf16.gmra.mrb[4].mxu1 %vm24808_vm11, %v14464_v26  ;;  %v11494_v26 = vld [vmem:[#allocation2 + $0xe1] sm:$0xff] }
 0x99f   : > { %10724 = vmatprep.mubr.bf16.mxu0 %v10238_v40  ;;  %11198 = vmatprep.mubr.bf16.mxu1 %v10238_v40  ;;  %v18737_v40 = vld [vmem:[%s23926_s1 + $0x9b0] sm:$0xff]  }
 0x9a6   : > { %14468 = vmatmul.mubr.msk.bf16.gmra.mrb[228].mxu0 %vm24808_vm11, %v14467_v52  ;;  %14591 = vmatmul.mubr.msk.bf16.gmra.mrb[8].mxu1 %vm24770_vm7, %v14467_v52  ;;  %v10150_v52 = vld [vmem:[#allocation2 + $0xa9] sm:$0xff]  ;;  %vm24815_vm11 = vnez %v24814_v37  ;;  %v11501_v37 = vld [vmem:[#allocation2 + $0x119] sm:$0xff] }
 0x9a7   : > { %10732 = vmatprep.mubr.bf16.mxu0 %v10241_v54  ;;  %11206 = vmatprep.mubr.bf16.mxu1 %v10241_v54  ;;  %v10147_v54 = vld [vmem:[#allocation2 + $0x91] sm:$0xff] }
 0x9a8   : > { %v23387_v24 = vpack.c.bf16 %v10148_v15, %v10147_v54  ;;  %v23425_v15 = vpack.c.bf16 %v10162_v49, %v10161_v62  ;;  %v10328_v54 = vld [vmem:[#allocation2 + $0x111] sm:$0xff]  ;;  %v18747_v62 = vld [vmem:[%s23926_s1 + $0xae0] sm:$0xff]  }
 0x9a9   : > { %v18748_v49 = vld [vmem:[%s23926_s1 + $0xaa0] sm:$0xff]  }
 0x9ae   : > { %14471 = vmatmul.mubr.msk.bf16.gmra.mrb[232].mxu0 %vm24770_vm7, %v14470_v5  ;;  %14594 = vmatmul.mubr.msk.bf16.gmra.mrb[12].mxu1 %vm24771_vm1, %v14470_v5  ;;  %v23392_v5 = vpack.c.bf16 %v10150_v52, %v10149_v55  ;;  %vm24813_vm7 = vnez %v24812_v45  ;;  %v24822_v55 = vld [vmem:[#allocation54_spill] sm:$0xff]  ;;  %v24824_v52 = vld [vmem:[#allocation55_spill] sm:$0xff] }
 0x9af   : > { %10740 = vmatprep.mubr.bf16.mxu0 %v10393_v27  ;;  %v24810_v27 = vld [vmem:[#allocation44_spill] sm:$0xff]  ;;  %vm24823_vm12 = vnez %v24822_v55  ;;  %vm24825_vm9 = vnez %v24824_v52 }
 0x9b0   : > { %v11498_v45 = vld [vmem:[#allocation2 + $0x101] sm:$0xff] }
 0x9b6   : > { %14474 = vmatmul.mubr.msk.bf16.gmra.mrb[236].mxu0 %vm24771_vm1, %v14473_v50  ;;  %vm24811_vm1 = vnez %v24810_v27  ;;  %v10154_v50 = vld [vmem:[#allocation2 + $0xc9] sm:$0xff] }
 0x9b7   : > { %17449 = vmatprep.mubr.msk.bf16.mxu0 %vm24613_vm2, %v23331_v13  ;;  %v23405_v56 = vpack.c.bf16 %v10154_v50, %v10153_v16 }
 0x9be   : > { %17450 = vmatmul.mubr.msk.bf16.vlgmr.msra.gmra.mrb[240].mxu0 %vm24615_vm0, %v23338_v23 }
 0x9bf   : > { %17453 = vmatprep.mubr.msk.bf16.mxu0 %vm24617_vm13, %v23343_v25  ;;  %17482 = vmatpush3.bf16.msra.mxu0 %v23211_v11  ;;  %v18735_v11 = vld [vmem:[%s23926_s1 + $0x9a0] sm:$0xff]  }
 0x9c0   : > { %17483 = vmatprep.subr.bf16.mxu0 %v18732_v17 }
 0x9c3   : > { %17484 = vmatpush3.bf16.msra.mxu0 %v18732_v17  ;;  %v24816_v17 = vld [vmem:[#allocation48_spill] sm:$0xff] }
 0x9c4   : > { %17485 = vmatprep.subr.bf16.mxu0 %v18733_v59  ;;  %vm24817_vm3 = vnez %v24816_v17  ;;  %v11502_v17 = vld [vmem:[#allocation2 + $0x121] sm:$0xff] }
 0x9c6   : > { %17454 = vmatmul.mubr.msk.bf16.gmra.mrb[244].mxu0 %vm24619_vm14, %v23355_v41 }
 0x9c7   : > { %17457 = vmatprep.mubr.msk.bf16.mxu0 %vm24621_vm6, %v23360_v60  ;;  %17486 = vmatpush3.bf16.msra.mxu0 %v18733_v59  ;;  %v10156_v59 = vld [vmem:[#allocation2 + $0xd9] sm:$0xff] }
 0x9c8   : > { %17487 = vmatprep.subr.bf16.mxu0 %v18734_v63  ;;  %v23413_v57 = vpack.c.bf16 %v10156_v59, %v10155_v14  ;;  %v18740_v59 = vld [vmem:[%s23926_s1 + $0xa80] sm:$0xff]   ;;  %v18743_v14 = vld [vmem:[%s23926_s1 + $0xad0] sm:$0xff]  }
 0x9cb   : > { %17488 = vmatpush3.bf16.msra.mxu0 %v18734_v63  ;;  %v23415_v63 = vpack.c.bf16 %v10158_v38, %v10157_v34  ;;  %v18741_v34 = vld [vmem:[%s23926_s1 + $0xac8] sm:$0xff]  }
 0x9cc   : > { %17489 = vmatprep.subr.bf16.mxu0 %v18735_v11  ;;  %v18742_v38 = vld [vmem:[%s23926_s1 + $0xa88] sm:$0xff]  }
 0x9ce   : > { %17458 = vmatmul.mubr.msk.bf16.gmra.mrb[248].mxu0 %vm24623_vm15, %v23371_v48 }
 0x9cf   : > { %17461 = vmatprep.mubr.msk.bf16.mxu0 %vm24625_vm5, %v23376_v47  ;;  %17490 = vmatpush3.bf16.msra.mxu0 %v18735_v11  ;;  %v24818_v11 = vld [vmem:[#allocation50_spill] sm:$0xff] }
 0x9d0   : > { %17491 = vmatprep.subr.bf16.mxu0 %v18736_v29  ;;  %vm24819_vm4 = vnez %v24818_v11 }
 0x9d3   : > { %17492 = vmatpush3.bf16.msra.mxu0 %v18736_v29  ;;  %v10159_v29 = vld [vmem:[#allocation2 + $0xf1] sm:$0xff] }
 0x9d4   : > { %17493 = vmatprep.subr.bf16.mxu0 %v18737_v40 }
 0x9d6   : > { %17462 = vmatmul.mubr.msk.bf16.gmra.mrb[252].mxu0 %vm24811_vm1, %v23387_v24 }
 0x9d7   : > { %17465 = vmatprep.mubr.msk.bf16.mxu0 %vm24813_vm7, %v23392_v5  ;;  %17494 = vmatpush3.bf16.msra.mxu0 %v18737_v40  ;;  %v23423_v40 = vpack.c.bf16 %v10160_v6, %v10159_v29  ;;  %v18744_v6 = vld [vmem:[%s23926_s1 + $0xa90] sm:$0xff]  }
 0x9d8   : > { %17495 = vmatprep.subr.bf16.mxu0 %v18738_v32  ;;  %v18751_v29 = vld [vmem:[%s23926_s1 + $0xaf0] sm:$0xff]  }
 0x9db   : > { %17496 = vmatpush3.bf16.msra.mxu0 %v18738_v32  ;;  %v10329_v32 = vld [vmem:[#allocation2 + $0x119] sm:$0xff] }
 0x9dc   : > { %16721 = vmatprep.subr.bf16.mxu0 %v18739_v19  ;;  %v10131_v19 = vld [vmem:[#allocation2 + $0x11] sm:$0xff]  ;;  %v14521_v16 = vpack.c.bf16 %v10329_v32, %v10328_v54 }
 0x9dd   : > { %v14596_v50 = vpack.c.bf16 %v10132_v12, %v10131_v19 }
 0x9de   : > { %17466 = vmatmul.mubr.msk.bf16.gmra.mrb[0].mxu0 %vm24815_vm11, %v23403_v35 }
 0x9df   : > { %17469 = vmatprep.mubr.msk.bf16.mxu0 %vm24817_vm3, %v23405_v56 }
 0x9e6   : > { %17470 = vmatmul.mubr.msk.bf16.gmra.mrb[4].mxu0 %vm24819_vm4, %v23413_v57 }
 0x9e7   : > { %17473 = vmatprep.mubr.msk.bf16.mxu0 %vm24821_vm10, %v23415_v63 }
 0x9ee   : > { %17474 = vmatmul.mubr.msk.bf16.gmra.mrb[8].mxu0 %vm24823_vm12, %v23423_v40 }
 0x9ef   : > { %17477 = vmatprep.mubr.msk.bf16.mxu0 %vm24825_vm9, %v23425_v15 }
 0x9f6   : > { %17478 = vmatmul.mubr.msk.bf16.gmra.mrb[12].mxu0 %vm24827_vm8, %v14521_v16 }
 0x9f7   : > { %17497 = vmatprep.mubr.msk.bf16.mxu0 %vm24613_vm2, %v14596_v50 }
 0x9fe   : > { %17498 = vmatmul.mubr.msk.bf16.vlgmr.msra.gmra.mrb[240].mxu0 %vm24615_vm0, %v23331_v13  ;;  %v18745_v13 = vld [vmem:[%s23926_s1 + $0xad8] sm:$0xff]  }
 0x9ff   : > { %17501 = vmatprep.mubr.msk.bf16.mxu0 %vm24617_vm13, %v23338_v23  ;;  %16722 = vmatpush3.bf16.msra.mxu0 %v18740_v59  ;;  %v18746_v23 = vld [vmem:[%s23926_s1 + $0xa98] sm:$0xff]  }
 0xa00   : > { %16723 = vmatprep.subr.bf16.mxu0 %v18741_v34 }
 0xa03   : > { %16724 = vmatpush3.bf16.msra.mxu0 %v18742_v38 }
 0xa04   : > { %16725 = vmatprep.subr.bf16.mxu0 %v18743_v14  ;;  %v18753_v14 = vld [vmem:[%s23926_s1 + $0xaf8] sm:$0xff]  }
 0xa06   : > { %17502 = vmatmul.mubr.msk.bf16.gmra.mrb[244].mxu0 %vm24619_vm14, %v23343_v25  ;;  %v18749_v25 = vld [vmem:[%s23926_s1 + $0xae8] sm:$0xff]  }
 0xa07   : > { %17505 = vmatprep.mubr.msk.bf16.mxu0 %vm24621_vm6, %v23355_v41  ;;  %16726 = vmatpush3.bf16.msra.mxu0 %v18744_v6  ;;  %v18750_v41 = vld [vmem:[%s23926_s1 + $0xaa8] sm:$0xff]  }
 0xa08   : > { %16727 = vmatprep.subr.bf16.mxu0 %v18745_v13 }
 0xa0b   : > { %16728 = vmatpush3.bf16.msra.mxu0 %v18746_v23 }
 0xa0c   : > { %16729 = vmatprep.subr.bf16.mxu0 %v18747_v62 }
 0xa0e   : > { %17506 = vmatmul.mubr.msk.bf16.gmra.mrb[248].mxu0 %vm24623_vm15, %v23360_v60 }
 0xa0f   : > { %17509 = vmatprep.mubr.msk.bf16.mxu0 %vm24625_vm5, %v23371_v48  ;;  %16730 = vmatpush3.bf16.msra.mxu0 %v18748_v49  ;;  %v18752_v48 = vld [vmem:[%s23926_s1 + $0xab0] sm:$0xff]   ;;  %v18754_v49 = vld [vmem:[%s23926_s1 + $0xab8] sm:$0xff]  }
 0xa10   : > { %16731 = vmatprep.subr.bf16.mxu0 %v18749_v25 }
 0xa11   : > { %v16465_v54 = vpop.f32.mrb[176].mxu0  ;;  %v16607_v32 = vpop.f32.mrb[148].mxu1 }
 0xa12   : > { %v16466_v19 = vpop.f32.mrb[177].mxu0  ;;  %v16608_v12 = vpop.f32.mrb[149].mxu1 }
 0xa13   : > { %v16467_v16 = vadd.f32 %v16466_v19, %v16465_v54  ;;  %v16609_v60 = vadd.f32 %v16608_v12, %v16607_v32  ;;  %v16468_v50 = vpop.f32.mrb[178].mxu0  ;;  %v16610_v59 = vpop.f32.mrb[150].mxu1  ;;  %16732 = vmatpush3.bf16.msra.mxu0 %v18750_v41 }
 0xa14   : > { %v16469_v34 = vpop.f32.mrb[179].mxu0  ;;  %v16611_v38 = vpop.f32.mrb[151].mxu1  ;;  %16733 = vmatprep.subr.bf16.mxu0 %v18751_v29 }
 0xa15   : > { %v23498_v6 = vadd.f32 %v23309_v30, %v16467_v16  ;;  %v16470_v13 = vadd.f32 %v16469_v34, %v16468_v50  ;;  %v16612_v23 = vadd.f32 %v16611_v38, %v16610_v59  ;;  %v23515_v30 = vld [vmem:[%s23926_s1 + $0xb00] sm:$0xff]  }
 0xa16   : > { %17510 = vmatmul.mubr.msk.bf16.gmra.mrb[252].mxu0 %vm24811_vm1, %v23376_v47 }
 0xa17   : > { %v23504_v62 = vadd.f32 %v23311_v28, %v16470_v13  ;;  %17513 = vmatprep.mubr.msk.bf16.mxu0 %vm24813_vm7, %v23387_v24  ;;  %16734 = vmatpush3.bf16.msra.mxu0 %v18752_v48 }
 0xa18   : > { %16735 = vmatprep.subr.bf16.mxu0 %v18753_v14 }
 0xa19   : > { %v16471_v25 = vpop.f32.mrb[180].mxu0  ;;  %v16613_v47 = vpop.f32.mrb[152].mxu1 }
 0xa1a   : > { %v16472_v41 = vpop.f32.mrb[181].mxu0  ;;  %v16614_v28 = vpop.f32.mrb[153].mxu1 }
 0xa1b   : > { %v16473_v29 = vadd.f32 %v16472_v41, %v16471_v25  ;;  %v16615_v54 = vadd.f32 %v16614_v28, %v16613_v47  ;;  %v16474_v32 = vpop.f32.mrb[182].mxu0  ;;  %v16616_v19 = vpop.f32.mrb[154].mxu1  ;;  %16736 = vmatpush3.bf16.msra.mxu0 %v18754_v49 }
 0xa1c   : > { %v16475_v24 = vpop.f32.mrb[183].mxu0  ;;  %v16617_v12 = vpop.f32.mrb[155].mxu1  ;;  %17529 = vmatprep.subr.bf16.mxu0 %v23515_v30 }
 0xa1d   : > { %v23518_v16 = vadd.f32 %v16609_v60, %v16473_v29  ;;  %v16476_v50 = vadd.f32 %v16475_v24, %v16474_v32  ;;  %v16618_v59 = vadd.f32 %v16617_v12, %v16616_v19 }
 0xa1e   : > { %17514 = vmatmul.mubr.msk.bf16.gmra.mrb[0].mxu0 %vm24815_vm11, %v23392_v5 }
 0xa1f   : > { %v23523_v48 = vadd.f32 %v16612_v23, %v16476_v50  ;;  %17517 = vmatprep.mubr.msk.bf16.mxu0 %vm24817_vm3, %v23403_v35 }
 0xa21   : > { %v16477_v34 = vpop.f32.mrb[184].mxu0  ;;  %v16619_v38 = vpop.f32.mrb[156].mxu1 }
 0xa22   : > { %v16478_v14 = vpop.f32.mrb[185].mxu0  ;;  %v16620_v13 = vpop.f32.mrb[157].mxu1 }
 0xa23   : > { %v16479_v49 = vadd.f32 %v16478_v14, %v16477_v34  ;;  %v16621_v25 = vadd.f32 %v16620_v13, %v16619_v38  ;;  %v16480_v60 = vpop.f32.mrb[186].mxu0  ;;  %v16622_v47 = vpop.f32.mrb[158].mxu1 }
 0xa24   : > { %v16481_v41 = vpop.f32.mrb[187].mxu0  ;;  %v16623_v28 = vpop.f32.mrb[159].mxu1 }
 0xa25   : > { %v23528_v29 = vadd.f32 %v16615_v54, %v16479_v49  ;;  %v16482_v32 = vadd.f32 %v16481_v41, %v16480_v60  ;;  %v16624_v5 = vadd.f32 %v16623_v28, %v16622_v47 }
 0xa26   : > { %17518 = vmatmul.mubr.msk.bf16.gmra.mrb[4].mxu0 %vm24819_vm4, %v23405_v56 }
 0xa27   : > { %v23533_v23 = vadd.f32 %v16618_v59, %v16482_v32  ;;  %17521 = vmatprep.mubr.msk.bf16.mxu0 %vm24821_vm10, %v23413_v57  ;;  %v11441_v32 = vld [vmem:[#allocation2 + $0x38] sm:$0xff] }
 0xa29   : > { %v16483_v35 = vpop.f32.mrb[188].mxu0  ;;  %v16625_v19 = vpop.f32.mrb[160].mxu1 }
 0xa2a   : > { %v16484_v24 = vpop.f32.mrb[189].mxu0  ;;  %v16626_v12 = vpop.f32.mrb[161].mxu1 }
 0xa2b   : > { %v16485_v50 = vadd.f32 %v16484_v24, %v16483_v35  ;;  %v16627_v34 = vadd.f32 %v16626_v12, %v16625_v19  ;;  %v16486_v54 = vpop.f32.mrb[190].mxu0  ;;  %v16628_v38 = vpop.f32.mrb[162].mxu1 }
 0xa2c   : > { %v16487_v14 = vpop.f32.mrb[191].mxu0  ;;  %v16629_v13 = vpop.f32.mrb[163].mxu1 }
 0xa2d   : > { %v23538_v49 = vadd.f32 %v16621_v25, %v16485_v50  ;;  %v16488_v60 = vadd.f32 %v16487_v14, %v16486_v54  ;;  %v16630_v56 = vadd.f32 %v16629_v13, %v16628_v38  ;;  %v11440_v54 = vld [vmem:[#allocation2 + $0x30] sm:$0xff] }
 0xa2e   : > { %17522 = vmatmul.mubr.msk.bf16.gmra.mrb[8].mxu0 %vm24823_vm12, %v23415_v63  ;;  %v11537_v14 = vpack.c.bf16 %v11441_v32, %v11440_v54  ;;  %vm24853_vm12 = vnez %v24608_v8  ;;  %v11474_v8 = vld [vmem:[#allocation2 + $0x41] sm:$0xff] }
 0xa2f   : > { %24828 = vst [vmem:[#allocation31_spill] sm:$0xff] %v23538_v49  ;;  %v23543_v59 = vadd.f32 %v16624_v5, %v16488_v60  ;;  %17525 = vmatprep.mubr.msk.bf16.mxu0 %vm24825_vm9, %v23423_v40  ;;  %vm24850_vm9 = vnez %v24550_v44 }
 0xa31   : > { %24829 = vst [vmem:[#allocation33_spill] sm:$0xff] %v23543_v59  ;;  %v16489_v57 = vpop.f32.mrb[192].mxu0  ;;  %v16631_v47 = vpop.f32.mrb[164].mxu1  ;;  %v11443_v59 = vld [vmem:[#allocation2 + $0x48] sm:$0xff] }
 0xa32   : > { %v16490_v41 = vpop.f32.mrb[193].mxu0  ;;  %v16632_v28 = vpop.f32.mrb[165].mxu1 }
 0xa33   : > { %v16491_v35 = vadd.f32 %v16490_v41, %v16489_v57  ;;  %v16633_v25 = vadd.f32 %v16632_v28, %v16631_v47  ;;  %v16492_v19 = vpop.f32.mrb[194].mxu0  ;;  %v16634_v24 = vpop.f32.mrb[166].mxu1  ;;  %v11376_v57 = vld [vmem:[#allocation2 + $0x2f] sm:$0xff]  ;;  %v11377_v47 = vld [vmem:[#allocation2 + $0x37] sm:$0xff] }
 0xa34   : > { %v16493_v12 = vpop.f32.mrb[195].mxu0  ;;  %v16635_v50 = vpop.f32.mrb[167].mxu1 }
 0xa35   : > { %v23548_v38 = vadd.f32 %v16627_v34, %v16491_v35  ;;  %v16494_v63 = vadd.f32 %v16493_v12, %v16492_v19  ;;  %v16636_v5 = vadd.f32 %v16635_v50, %v16634_v24  ;;  %v14716_v12 = vpack.c.bf16 %v11377_v47, %v11376_v57  ;;  %v11442_v50 = vld [vmem:[#allocation2 + $0x40] sm:$0xff] }
 0xa36   : > { %17526 = vmatmul.mubr.msk.bf16.gmra.mrb[12].mxu0 %vm24827_vm8, %v23425_v15  ;;  %v18756_v15 = vld [vmem:[%s23926_s1 + $0xb08] sm:$0xff]   ;;  %vm24831_vm8 = vnez %v24563_v51 }
 0xa37   : > { %v23553_v40 = vadd.f32 %v16630_v56, %v16494_v63  ;;  %11809 = vmatprep.mubr.bf16.mxu0 %v11537_v14  ;;  %v11540_v14 = vpack.c.bf16 %v11443_v59, %v11442_v50  ;;  %v18758_v50 = vld [vmem:[%s23926_s1 + $0xb18] sm:$0xff]  }
 0xa39   : > { %v16495_v13 = vpop.f32.mrb[196].mxu0  ;;  %v16637_v60 = vpop.f32.mrb[168].mxu1 }
 0xa3a   : > { %v16496_v41 = vpop.f32.mrb[197].mxu0  ;;  %v16638_v28 = vpop.f32.mrb[169].mxu1 }
 0xa3b   : > { %v16497_v49 = vadd.f32 %v16496_v41, %v16495_v13  ;;  %v16639_v34 = vadd.f32 %v16638_v28, %v16637_v60  ;;  %v16498_v35 = vpop.f32.mrb[198].mxu0  ;;  %v16640_v19 = vpop.f32.mrb[170].mxu1  ;;  %v18757_v60 = vld [vmem:[%s23926_s1 + $0xb10] sm:$0xff]   ;;  %v11445_v28 = vld [vmem:[#allocation2 + $0x58] sm:$0xff] }
 0xa3c   : > { %v16499_v24 = vpop.f32.mrb[199].mxu0  ;;  %v16641_v32 = vpop.f32.mrb[171].mxu1 }
 0xa3d   : > { %v23558_v56 = vadd.f32 %v16633_v25, %v16497_v49  ;;  %v16500_v54 = vadd.f32 %v16499_v24, %v16498_v35  ;;  %v16642_v63 = vadd.f32 %v16641_v32, %v16640_v19  ;;  %v11379_v49 = vld [vmem:[#allocation2 + $0x47] sm:$0xff] }
 0xa3e   : > { %14717 = vmatmul.mubr.msk.bf16.vlgmr.msra.gmra.mrb[48].mxu0 %vm24831_vm8, %v14716_v12  ;;  %v11444_v12 = vld [vmem:[#allocation2 + $0x50] sm:$0xff]  ;;  %vm24833_vm8 = vnez %v24789_v1 }
 0xa3f   : > { %24830 = vst [vmem:[#allocation34_spill] sm:$0xff] %v23558_v56  ;;  %v23562_v13 = vadd.f32 %v16636_v5, %v16500_v54  ;;  %11817 = vmatprep.mubr.bf16.mxu0 %v11540_v14  ;;  %17530 = vmatpush3.bf16.msra.mxu0 %v23515_v30  ;;  %v11378_v5 = vld [vmem:[#allocation2 + $0x3f] sm:$0xff]  ;;  %v11543_v56 = vpack.c.bf16 %v11445_v28, %v11444_v12 }
 0xa40   : > { %17531 = vmatprep.subr.bf16.mxu0 %v18756_v15  ;;  %v14719_v30 = vpack.c.bf16 %v11379_v49, %v11378_v5 }
 0xa41   : > { %24832 = vst [vmem:[#allocation37_spill] sm:$0xff] %v23562_v13  ;;  %v16501_v57 = vpop.f32.mrb[200].mxu0  ;;  %v16643_v47 = vpop.f32.mrb[172].mxu1 }
 0xa42   : > { %v16502_v25 = vpop.f32.mrb[201].mxu0  ;;  %v16644_v41 = vpop.f32.mrb[173].mxu1 }
 0xa43   : > { %v16503_v59 = vadd.f32 %v16502_v25, %v16501_v57  ;;  %v16645_v35 = vadd.f32 %v16644_v41, %v16643_v47  ;;  %v16504_v51 = vpop.f32.mrb[202].mxu0  ;;  %v16646_v19 = vpop.f32.mrb[174].mxu1  ;;  %17532 = vmatpush3.bf16.msra.mxu0 %v18756_v15  ;;  %v18759_v15 = vld [vmem:[%s23926_s1 + $0xb20] sm:$0xff]   ;;  %v11380_v25 = vld [vmem:[#allocation2 + $0x4f] sm:$0xff] }
 0xa44   : > { %v16505_v24 = vpop.f32.mrb[203].mxu0  ;;  %v16647_v32 = vpop.f32.mrb[175].mxu1  ;;  %17533 = vmatprep.subr.bf16.mxu0 %v18757_v60 }
 0xa45   : > { %v23571_v54 = vadd.f32 %v16639_v34, %v16503_v59  ;;  %v16506_v14 = vadd.f32 %v16505_v24, %v16504_v51  ;;  %v16648_v13 = vadd.f32 %v16647_v32, %v16646_v19  ;;  %v11381_v34 = vld [vmem:[#allocation2 + $0x57] sm:$0xff]  ;;  %v11447_v51 = vld [vmem:[#allocation2 + $0x68] sm:$0xff]  ;;  %v11446_v24 = vld [vmem:[#allocation2 + $0x60] sm:$0xff] }
 0xa46   : > { %14720 = vmatmul.mubr.msk.bf16.gmra.mrb[52].mxu0 %vm24833_vm8, %v14719_v30  ;;  %v18760_v32 = vld [vmem:[%s23926_s1 + $0xb28] sm:$0xff]   ;;  %vm24836_vm8 = vnez %v24791_v39 }
 0xa47   : > { %v23575_v57 = vadd.f32 %v16642_v63, %v16506_v14  ;;  %11825 = vmatprep.mubr.bf16.mxu0 %v11543_v56  ;;  %17534 = vmatpush3.bf16.msra.mxu0 %v18757_v60  ;;  %v14722_v60 = vpack.c.bf16 %v11381_v34, %v11380_v25  ;;  %v11383_v34 = vld [vmem:[#allocation2 + $0x67] sm:$0xff] }
 0xa48   : > { %17535 = vmatprep.subr.bf16.mxu0 %v18758_v50 }
 0xa49   : > { %24834 = vst [vmem:[#allocation38_spill] sm:$0xff] %v23575_v57  ;;  %v16507_v47 = vpop.f32.mrb[204].mxu0  ;;  %v16649_v49 = vpop.f32.mrb[240].mxu1  ;;  %v11546_v57 = vpack.c.bf16 %v11447_v51, %v11446_v24 }
 0xa4a   : > { %v16508_v41 = vpop.f32.mrb[205].mxu0  ;;  %v16650_v59 = vpop.f32.mrb[241].mxu1 }
 0xa4b   : > { %v16509_v28 = vadd.f32 %v16508_v41, %v16507_v47  ;;  %v16651_v19 = vadd.f32 %v16650_v59, %v16649_v49  ;;  %v16510_v1 = vpop.f32.mrb[206].mxu0  ;;  %v16652_v5 = vpop.f32.mrb[242].mxu1  ;;  %17536 = vmatpush3.bf16.msra.mxu0 %v18758_v50  ;;  %v18761_v50 = vld [vmem:[%s23926_s1 + $0xb30] sm:$0xff]   ;;  %v11449_v59 = vld [vmem:[#allocation2 + $0x78] sm:$0xff] }
 0xa4c   : > { %v16511_v63 = vpop.f32.mrb[207].mxu0  ;;  %v16653_v56 = vpop.f32.mrb[243].mxu1  ;;  %17537 = vmatprep.subr.bf16.mxu0 %v18759_v15 }
 0xa4d   : > { %v23583_v30 = vadd.f32 %v16645_v35, %v16509_v28  ;;  %v16512_v12 = vadd.f32 %v16511_v63, %v16510_v1  ;;  %v16654_v14 = vadd.f32 %v16653_v56, %v16652_v5  ;;  %v11382_v5 = vld [vmem:[#allocation2 + $0x5f] sm:$0xff]  ;;  %v11448_v63 = vld [vmem:[#allocation2 + $0x70] sm:$0xff] }
 0xa4e   : > { %14723 = vmatmul.mubr.msk.bf16.gmra.mrb[56].mxu0 %vm24836_vm8, %v14722_v60  ;;  %v18762_v56 = vld [vmem:[%s23926_s1 + $0xb38] sm:$0xff]   ;;  %vm24838_vm8 = vnez %v24793_v7 }
 0xa4f   : > { %24835 = vst [vmem:[#allocation41_spill] sm:$0xff] %v23583_v30  ;;  %v23587_v47 = vadd.f32 %v16648_v13, %v16512_v12  ;;  %11833 = vmatprep.mubr.bf16.mxu0 %v11546_v57  ;;  %17538 = vmatpush3.bf16.msra.mxu0 %v18759_v15  ;;  %v14725_v15 = vpack.c.bf16 %v11383_v34, %v11382_v5 }
 0xa50   : > { %17539 = vmatprep.subr.bf16.mxu0 %v18760_v32 }
 0xa51   : > { %24837 = vst [vmem:[#allocation46_spill] sm:$0xff] %v23587_v47  ;;  %v16513_v49 = vpop.f32.mrb[208].mxu0  ;;  %v16655_v25 = vpop.f32.mrb[244].mxu1  ;;  %v11549_v47 = vpack.c.bf16 %v11449_v59, %v11448_v63  ;;  %v11387_v63 = vld [vmem:[#allocation2 + $0x87] sm:$0xff] }
 0xa52   : > { %v16514_v35 = vpop.f32.mrb[209].mxu0  ;;  %v16656_v41 = vpop.f32.mrb[245].mxu1 }
 0xa53   : > { %v16515_v28 = vadd.f32 %v16514_v35, %v16513_v49  ;;  %v16657_v51 = vadd.f32 %v16656_v41, %v16655_v25  ;;  %v16516_v1 = vpop.f32.mrb[210].mxu0  ;;  %v16658_v39 = vpop.f32.mrb[246].mxu1  ;;  %17540 = vmatpush3.bf16.msra.mxu0 %v18760_v32  ;;  %v11451_v41 = vld [vmem:[#allocation2 + $0x88] sm:$0xff] }
 0xa54   : > { %v16517_v13 = vpop.f32.mrb[211].mxu0  ;;  %v16659_v57 = vpop.f32.mrb[247].mxu1  ;;  %17541 = vmatprep.subr.bf16.mxu0 %v18761_v50 }
 0xa55   : > { %v23595_v60 = vadd.f32 %v16651_v19, %v16515_v28  ;;  %v16518_v24 = vadd.f32 %v16517_v13, %v16516_v1  ;;  %v16660_v12 = vadd.f32 %v16659_v57, %v16658_v39  ;;  %v11450_v39 = vld [vmem:[#allocation2 + $0x80] sm:$0xff] }
 0xa56   : > { %14726 = vmatmul.mubr.msk.bf16.gmra.mrb[60].mxu0 %vm24838_vm8, %v14725_v15  ;;  %vm24839_vm8 = vnez %v24795_v42 }
 0xa57   : > { %v23599_v49 = vadd.f32 %v16654_v14, %v16518_v24  ;;  %11841 = vmatprep.mubr.bf16.mxu0 %v11549_v47  ;;  %17542 = vmatpush3.bf16.msra.mxu0 %v18761_v50  ;;  %v11552_v47 = vpack.c.bf16 %v11451_v41, %v11450_v39 }
 0xa58   : > { %17543 = vmatprep.subr.bf16.mxu0 %v18762_v56 }
 0xa59   : > { %v16519_v32 = vpop.f32.mrb[212].mxu0  ;;  %v16661_v25 = vpop.f32.mrb[248].mxu1 }
 0xa5a   : > { %v16520_v34 = vpop.f32.mrb[213].mxu0  ;;  %v16662_v35 = vpop.f32.mrb[249].mxu1 }
 0xa5b   : > { %v16521_v5 = vadd.f32 %v16520_v34, %v16519_v32  ;;  %v16663_v30 = vadd.f32 %v16662_v35, %v16661_v25  ;;  %v16522_v19 = vpop.f32.mrb[214].mxu0  ;;  %v16664_v28 = vpop.f32.mrb[250].mxu1  ;;  %17544 = vmatpush3.bf16.msra.mxu0 %v18762_v56  ;;  %v11453_v32 = vld [vmem:[#allocation2 + $0x98] sm:$0xff] }
 0xa5c   : > { %v16523_v1 = vpop.f32.mrb[215].mxu0  ;;  %v16665_v59 = vpop.f32.mrb[251].mxu1 }
 0xa5d   : > { %v23601_v7 = vadd.f32 %v16657_v51, %v16521_v5  ;;  %v16524_v14 = vadd.f32 %v16523_v1, %v16522_v19  ;;  %v16666_v13 = vadd.f32 %v16665_v59, %v16664_v28  ;;  %v11386_v5 = vld [vmem:[#allocation2 + $0x7f] sm:$0xff]  ;;  %v11452_v1 = vld [vmem:[#allocation2 + $0x90] sm:$0xff] }
 0xa5e   : > { %14729 = vmatmul.mubr.msk.bf16.gmra.mrb[64].mxu0 %vm24839_vm8, %v23250_v2  ;;  %v14731_v28 = vpack.c.bf16 %v11387_v63, %v11386_v5  ;;  %v11555_v59 = vpack.c.bf16 %v11453_v32, %v11452_v1  ;;  %vm24841_vm8 = vnez %v24797_v33 }
 0xa5f   : > { %v23606_v50 = vadd.f32 %v16660_v12, %v16524_v14  ;;  %11849 = vmatprep.mubr.bf16.mxu0 %v11552_v47 }
 0xa61   : > { %24840 = vst [vmem:[#allocation49_spill] sm:$0xff] %v23606_v50  ;;  %v16525_v57 = vpop.f32.mrb[216].mxu0  ;;  %v16667_v15 = vpop.f32.mrb[252].mxu1  ;;  %v11455_v50 = vld [vmem:[#allocation2 + $0xa8] sm:$0xff] }
 0xa62   : > { %v16526_v24 = vpop.f32.mrb[217].mxu0  ;;  %v16668_v56 = vpop.f32.mrb[253].mxu1 }
 0xa63   : > { %v16527_v25 = vadd.f32 %v16526_v24, %v16525_v57  ;;  %v16669_v34 = vadd.f32 %v16668_v56, %v16667_v15  ;;  %v16528_v51 = vpop.f32.mrb[218].mxu0  ;;  %v16670_v35 = vpop.f32.mrb[254].mxu1  ;;  %v11388_v57 = vld [vmem:[#allocation2 + $0x8f] sm:$0xff]  ;;  %v11389_v15 = vld [vmem:[#allocation2 + $0x97] sm:$0xff] }
 0xa64   : > { %v16529_v19 = vpop.f32.mrb[219].mxu0  ;;  %v16671_v41 = vpop.f32.mrb[255].mxu1  ;;  %v14734_v32 = vpack.c.bf16 %v11389_v15, %v11388_v57 }
 0xa65   : > { %v23608_v42 = vadd.f32 %v16663_v30, %v16527_v25  ;;  %v16530_v2 = vadd.f32 %v16529_v19, %v16528_v51  ;;  %v16672_v12 = vadd.f32 %v16671_v41, %v16670_v35  ;;  %v11454_v19 = vld [vmem:[#allocation2 + $0xa0] sm:$0xff] }
 0xa66   : > { %14732 = vmatmul.mubr.msk.bf16.gmra.mrb[68].mxu0 %vm24841_vm8, %v14731_v28  ;;  %v11558_v28 = vpack.c.bf16 %v11455_v50, %v11454_v19  ;;  %vm24843_vm8 = vnez %v24799_v31 }
 0xa67   : > { %v23612_v39 = vadd.f32 %v16666_v13, %v16530_v2  ;;  %11857 = vmatprep.mubr.bf16.mxu0 %v11555_v59 }
 0xa69   : > { %24842 = vst [vmem:[#allocation24_spill] sm:$0xff] %v23612_v39  ;;  %v16531_v14 = vpop.f32.mrb[220].mxu0  ;;  %v16673_v47 = vpop.f32.mrb[0].mxu1 }
 0xa6a   : > { %v16532_v24 = vpop.f32.mrb[221].mxu0  ;;  %v16674_v56 = vpop.f32.mrb[1].mxu1 }
 0xa6b   : > { %v16533_v63 = vadd.f32 %v16532_v24, %v16531_v14  ;;  %v16675_v5 = vadd.f32 %v16674_v56, %v16673_v47  ;;  %v16534_v30 = vpop.f32.mrb[222].mxu0  ;;  %v16676_v25 = vpop.f32.mrb[2].mxu1  ;;  %v11391_v14 = vld [vmem:[#allocation2 + $0xa7] sm:$0xff]  ;;  %v11457_v56 = vld [vmem:[#allocation2 + $0xb8] sm:$0xff] }
 0xa6c   : > { %v16535_v51 = vpop.f32.mrb[223].mxu0  ;;  %v16677_v35 = vpop.f32.mrb[3].mxu1 }
 0xa6d   : > { %v23614_v33 = vadd.f32 %v16669_v34, %v16533_v63  ;;  %v16536_v13 = vadd.f32 %v16535_v51, %v16534_v30  ;;  %v16678_v41 = vadd.f32 %v16677_v35, %v16676_v25  ;;  %v11390_v63 = vld [vmem:[#allocation2 + $0x9f] sm:$0xff]  ;;  %v11456_v51 = vld [vmem:[#allocation2 + $0xb0] sm:$0xff] }
 0xa6e   : > { %14735 = vmatmul.mubr.msk.bf16.gmra.mrb[72].mxu0 %vm24843_vm8, %v14734_v32  ;;  %v14737_v50 = vpack.c.bf16 %v11391_v14, %v11390_v63  ;;  %v11561_v32 = vpack.c.bf16 %v11457_v56, %v11456_v51  ;;  %vm24845_vm8 = vnez %v24801_v43 }
 0xa6f   : > { %v23618_v1 = vadd.f32 %v16672_v12, %v16536_v13  ;;  %11865 = vmatprep.mubr.bf16.mxu0 %v11558_v28 }
 0xa71   : > { %24844 = vst [vmem:[#allocation25_spill] sm:$0xff] %v23618_v1  ;;  %v16537_v2 = vpop.f32.mrb[224].mxu0  ;;  %v16679_v59 = vpop.f32.mrb[4].mxu1  ;;  %v11459_v1 = vld [vmem:[#allocation2 + $0xc8] sm:$0xff] }
 0xa72   : > { %v16538_v47 = vpop.f32.mrb[225].mxu0  ;;  %v16680_v24 = vpop.f32.mrb[5].mxu1 }
 0xa73   : > { %v16539_v39 = vadd.f32 %v16538_v47, %v16537_v2  ;;  %v16681_v57 = vadd.f32 %v16680_v24, %v16679_v59  ;;  %v16540_v15 = vpop.f32.mrb[226].mxu0  ;;  %v16682_v34 = vpop.f32.mrb[6].mxu1  ;;  %v11392_v2 = vld [vmem:[#allocation2 + $0xaf] sm:$0xff]  ;;  %v11393_v59 = vld [vmem:[#allocation2 + $0xb7] sm:$0xff] }
 0xa74   : > { %v16541_v30 = vpop.f32.mrb[227].mxu0  ;;  %v16683_v25 = vpop.f32.mrb[7].mxu1  ;;  %v14740_v56 = vpack.c.bf16 %v11393_v59, %v11392_v2 }
 0xa75   : > { %v23620_v31 = vadd.f32 %v16675_v5, %v16539_v39  ;;  %v16542_v12 = vadd.f32 %v16541_v30, %v16540_v15  ;;  %v16684_v35 = vadd.f32 %v16683_v25, %v16682_v34  ;;  %v11458_v30 = vld [vmem:[#allocation2 + $0xc0] sm:$0xff] }
 0xa76   : > { %14738 = vmatmul.mubr.msk.bf16.gmra.mrb[76].mxu0 %vm24845_vm8, %v14737_v50  ;;  %v11564_v50 = vpack.c.bf16 %v11459_v1, %v11458_v30  ;;  %vm24847_vm8 = vnez %v24803_v10 }
 0xa77   : > { %v23624_v19 = vadd.f32 %v16678_v41, %v16542_v12  ;;  %11873 = vmatprep.mubr.bf16.mxu0 %v11561_v32 }
 0xa79   : > { %24846 = vst [vmem:[#allocation27_spill] sm:$0xff] %v23624_v19  ;;  %v16543_v13 = vpop.f32.mrb[228].mxu0  ;;  %v16685_v28 = vpop.f32.mrb[8].mxu1 }
 0xa7a   : > { %v16544_v47 = vpop.f32.mrb[229].mxu0  ;;  %v16686_v24 = vpop.f32.mrb[9].mxu1 }
 0xa7b   : > { %v16545_v14 = vadd.f32 %v16544_v47, %v16543_v13  ;;  %v16687_v63 = vadd.f32 %v16686_v24, %v16685_v28  ;;  %v16546_v39 = vpop.f32.mrb[230].mxu0  ;;  %v16688_v5 = vpop.f32.mrb[10].mxu1  ;;  %v11395_v13 = vld [vmem:[#allocation2 + $0xc7] sm:$0xff]  ;;  %v11461_v24 = vld [vmem:[#allocation2 + $0xd8] sm:$0xff] }
 0xa7c   : > { %v16547_v15 = vpop.f32.mrb[231].mxu0  ;;  %v16689_v34 = vpop.f32.mrb[11].mxu1 }
 0xa7d   : > { %v23626_v43 = vadd.f32 %v16681_v57, %v16545_v14  ;;  %v16548_v41 = vadd.f32 %v16547_v15, %v16546_v39  ;;  %v16690_v25 = vadd.f32 %v16689_v34, %v16688_v5  ;;  %v11394_v14 = vld [vmem:[#allocation2 + $0xbf] sm:$0xff]  ;;  %v11460_v15 = vld [vmem:[#allocation2 + $0xd0] sm:$0xff] }
 0xa7e   : > { %14741 = vmatmul.mubr.msk.bf16.gmra.mrb[80].mxu0 %vm24847_vm8, %v14740_v56  ;;  %v14743_v1 = vpack.c.bf16 %v11395_v13, %v11394_v14  ;;  %v11567_v56 = vpack.c.bf16 %v11461_v24, %v11460_v15  ;;  %vm24849_vm8 = vnez %v24548_v58 }
 0xa7f   : > { %v23630_v51 = vadd.f32 %v16684_v35, %v16548_v41  ;;  %11881 = vmatprep.mubr.bf16.mxu0 %v11564_v50  ;;  %v11396_v50 = vld [vmem:[#allocation2 + $0xcf] sm:$0xff] }
 0xa81   : > { %24848 = vst [vmem:[#allocation29_spill] sm:$0xff] %v23630_v51  ;;  %v16549_v12 = vpop.f32.mrb[232].mxu0  ;;  %v16691_v32 = vpop.f32.mrb[12].mxu1 }
 0xa82   : > { %v16550_v28 = vpop.f32.mrb[233].mxu0  ;;  %v16692_v47 = vpop.f32.mrb[13].mxu1 }
 0xa83   : > { %v16551_v19 = vadd.f32 %v16550_v28, %v16549_v12  ;;  %v16693_v2 = vadd.f32 %v16692_v47, %v16691_v32  ;;  %v16552_v59 = vpop.f32.mrb[234].mxu0  ;;  %v16694_v57 = vpop.f32.mrb[14].mxu1  ;;  %v11397_v12 = vld [vmem:[#allocation2 + $0xd7] sm:$0xff]  ;;  %v11463_v28 = vld [vmem:[#allocation2 + $0xe8] sm:$0xff] }
 0xa84   : > { %v16553_v39 = vpop.f32.mrb[235].mxu0  ;;  %v16695_v5 = vpop.f32.mrb[15].mxu1  ;;  %v14746_v14 = vpack.c.bf16 %v11397_v12, %v11396_v50  ;;  %v11469_v50 = vld [vmem:[#allocation2 + $0x118] sm:$0xff] }
 0xa85   : > { %v23632_v10 = vadd.f32 %v16687_v63, %v16551_v19  ;;  %v16554_v35 = vadd.f32 %v16553_v39, %v16552_v59  ;;  %v16696_v34 = vadd.f32 %v16695_v5, %v16694_v57  ;;  %v11462_v19 = vld [vmem:[#allocation2 + $0xe0] sm:$0xff]  ;;  %v11465_v57 = vld [vmem:[#allocation2 + $0xf8] sm:$0xff] }
 0xa86   : > { %14744 = vmatmul.mubr.msk.bf16.gmra.mrb[84].mxu0 %vm24849_vm8, %v14743_v1  ;;  %v11570_v24 = vpack.c.bf16 %v11463_v28, %v11462_v19  ;;  %v11398_v39 = vld [vmem:[#allocation2 + $0xdf] sm:$0xff]  ;;  %v11464_v1 = vld [vmem:[#allocation2 + $0xf0] sm:$0xff]  ;;  %vm24851_vm8 = vnez %v24606_v0 }
 0xa87   : > { %v23636_v30 = vadd.f32 %v16690_v25, %v16554_v35  ;;  %11889 = vmatprep.mubr.bf16.mxu0 %v11567_v56  ;;  %v11399_v25 = vld [vmem:[#allocation2 + $0xe7] sm:$0xff]  ;;  %v11573_v15 = vpack.c.bf16 %v11465_v57, %v11464_v1  ;;  %v11401_v35 = vld [vmem:[#allocation2 + $0xf7] sm:$0xff]  ;;  %v11402_v12 = vld [vmem:[#allocation2 + $0xff] sm:$0xff] }
 0xa88   : > { %v14749_v5 = vpack.c.bf16 %v11399_v25, %v11398_v39  ;;  %v11468_v28 = vld [vmem:[#allocation2 + $0x110] sm:$0xff]  ;;  %v11473_v25 = vld [vmem:[#allocation2 + $0x39] sm:$0xff] }
 0xa89   : > { %v16555_v41 = vpop.f32.mrb[236].mxu0  ;;  %v11404_v0 = vld [vmem:[#allocation2 + $0x10f] sm:$0xff] }
 0xa8a   : > { %v16556_v32 = vpop.f32.mrb[237].mxu0  ;;  %v11472_v39 = vld [vmem:[#allocation2 + $0x31] sm:$0xff]  ;;  %v11475_v1 = vld [vmem:[#allocation2 + $0x49] sm:$0xff] }
 0xa8b   : > { %v16557_v47 = vadd.f32 %v16556_v32, %v16555_v41  ;;  %v16558_v51 = vpop.f32.mrb[238].mxu0  ;;  %v11466_v41 = vld [vmem:[#allocation2 + $0x100] sm:$0xff] }
 0xa8c   : > { %v16559_v13 = vpop.f32.mrb[239].mxu0 }
 0xa8d   : > { %v23638_v63 = vadd.f32 %v16693_v2, %v16557_v47  ;;  %v16560_v59 = vadd.f32 %v16559_v13, %v16558_v51  ;;  %v11400_v2 = vld [vmem:[#allocation2 + $0xef] sm:$0xff]  ;;  %v11579_v47 = vpack.c.bf16 %v11469_v50, %v11468_v28  ;;  %v11405_v13 = vld [vmem:[#allocation2 + $0x117] sm:$0xff] }
 0xa8e   : > { %14747 = vmatmul.mubr.msk.bf16.gmra.mrb[88].mxu0 %vm24850_vm9, %v14746_v14  ;;  %v11467_v51 = vld [vmem:[#allocation2 + $0x108] sm:$0xff]  ;;  %v14752_v56 = vpack.c.bf16 %v11401_v35, %v11400_v2  ;;  %vm24852_vm9 = vnez %v24607_v3  ;;  %v18895_v14 = vld [vmem:[#allocation2] sm:$0xff]  ;;  %v14767_v2 = vpack.c.bf16 %v11475_v1, %v11474_v8  ;;  %v11476_v35 = vld [vmem:[#allocation2 + $0x51] sm:$0xff] }
 0xa8f   : > { %v23642_v58 = vadd.f32 %v16696_v34, %v16560_v59  ;;  %11897 = vmatprep.mubr.bf16.mxu0 %v11570_v24  ;;  %v11576_v44 = vpack.c.bf16 %v11467_v51, %v11466_v41  ;;  %v11403_v34 = vld [vmem:[#allocation2 + $0x107] sm:$0xff]  ;;  %v11582_v19 = vpack.c.bf16 %v18895_v14, %v18895_v14  ;;  %v14758_v59 = vpack.c.bf16 %v11405_v13, %v11404_v0  ;;  %v11406_v3 = vld [vmem:[#allocation2 + $0x11f] sm:$0xff]  ;;  %v11488_v13 = vld [vmem:[#allocation2 + $0xb1] sm:$0xff] }
 0xa90   : > { %v14755_v32 = vpack.c.bf16 %v11403_v34, %v11402_v12  ;;  %v11407_v24 = vld [vmem:[#allocation2 + $0x127] sm:$0xff]  ;;  %v11481_v41 = vld [vmem:[#allocation2 + $0x79] sm:$0xff]  ;;  %v11500_v1 = vld [vmem:[#allocation2 + $0x111] sm:$0xff] }
 0xa91   : > { %v14761_v57 = vpack.c.bf16 %v11407_v24, %v11406_v3  ;;  %v11478_v51 = vld [vmem:[#allocation2 + $0x61] sm:$0xff]  ;;  %v11483_v50 = vld [vmem:[#allocation2 + $0x89] sm:$0xff]  ;;  %v11485_v12 = vld [vmem:[#allocation2 + $0x99] sm:$0xff] }
 0xa92   : > { %v14779_v9 = vpack.c.bf16 %v11483_v50, %v11482_v61  ;;  %v11489_v0 = vld [vmem:[#allocation2 + $0xb9] sm:$0xff]  ;;  %v11492_v3 = vld [vmem:[#allocation2 + $0xd1] sm:$0xff]  ;;  %v11499_v8 = vld [vmem:[#allocation2 + $0x109] sm:$0xff] }
 0xa93   : > { %v14788_v14 = vpack.c.bf16 %v11489_v0, %v11488_v13 }
 0xa96   : > { %14750 = vmatmul.mubr.msk.bf16.gmra.mrb[92].mxu0 %vm24851_vm8, %v14749_v5  ;;  %vm24854_vm8 = vnez %v24609_v36  ;;  %v14764_v5 = vpack.c.bf16 %v11473_v25, %v11472_v39  ;;  %v11495_v25 = vld [vmem:[#allocation2 + $0xe9] sm:$0xff]  ;;  %v11496_v39 = vld [vmem:[#allocation2 + $0xf1] sm:$0xff] }
 0xa97   : > { %11905 = vmatprep.mubr.bf16.mxu0 %v11573_v15  ;;  %v11477_v15 = vld [vmem:[#allocation2 + $0x59] sm:$0xff]  ;;  %v14797_v27 = vpack.c.bf16 %v11495_v25, %v11494_v26 }
 0xa98   : > { %v14770_v36 = vpack.c.bf16 %v11477_v15, %v11476_v35  ;;  %v14803_v15 = vpack.c.bf16 %v11499_v8, %v11498_v45  ;;  %v11503_v35 = vld [vmem:[#allocation2 + $0x129] sm:$0xff] }
 0xa9e   : > { %14753 = vmatmul.mubr.msk.bf16.gmra.mrb[96].mxu0 %vm24852_vm9, %v14752_v56  ;;  %vm24855_vm9 = vnez %v24610_v18  ;;  %v11479_v56 = vld [vmem:[#allocation2 + $0x69] sm:$0xff] }
 0xa9f   : > { %11913 = vmatprep.mubr.bf16.mxu0 %v11576_v44  ;;  %v14773_v18 = vpack.c.bf16 %v11479_v56, %v11478_v51  ;;  %v11480_v44 = vld [vmem:[#allocation2 + $0x71] sm:$0xff] }
 0xaa0   : > { %v14776_v34 = vpack.c.bf16 %v11481_v41, %v11480_v44 }
 0xaa6   : > { %14756 = vmatmul.mubr.msk.bf16.gmra.mrb[100].mxu0 %vm24853_vm12, %v14755_v32  ;;  %v11484_v32 = vld [vmem:[#allocation2 + $0x91] sm:$0xff] }
 0xaa7   : > { %11921 = vmatprep.mubr.bf16.mxu0 %v11579_v47  ;;  %v14782_v28 = vpack.c.bf16 %v11485_v12, %v11484_v32  ;;  %v11487_v47 = vld [vmem:[#allocation2 + $0xa9] sm:$0xff] }
 0xaa8   : > { %v14785_v20 = vpack.c.bf16 %v11487_v47, %v11486_v22 }
 0xaae   : > { %14759 = vmatmul.mubr.msk.bf16.gmra.mrb[104].mxu0 %vm24854_vm8, %v14758_v59  ;;  %v11493_v59 = vld [vmem:[#allocation2 + $0xd9] sm:$0xff] }
 0xaaf   : > { %11929 = vmatprep.mubr.bf16.mxu0 %v11582_v19  ;;  %v11491_v19 = vld [vmem:[#allocation2 + $0xc9] sm:$0xff]  ;;  %v14794_v24 = vpack.c.bf16 %v11493_v59, %v11492_v3 }
 0xab0   : > { %v14791_v53 = vpack.c.bf16 %v11491_v19, %v11490_v4 }
 0xab6   : > { %14762 = vmatmul.mubr.msk.bf16.gmra.mrb[108].mxu0 %vm24855_vm9, %v14761_v57  ;;  %v11497_v57 = vld [vmem:[#allocation2 + $0xf9] sm:$0xff] }
 0xab7   : > { %17545 = vmatprep.mubr.msk.bf16.mxu0 %vm24613_vm2, %v14764_v5  ;;  %v14800_v5 = vpack.c.bf16 %v11497_v57, %v11496_v39 }
 0xabe   : > { %17546 = vmatmul.mubr.msk.bf16.vlgmr.msra.gmra.mrb[240].mxu0 %vm24615_vm0, %v14767_v2  ;;  %v14806_v2 = vpack.c.bf16 %v11501_v37, %v11500_v1 }
 0xabf   : > { %17549 = vmatprep.mubr.msk.bf16.mxu0 %vm24617_vm13, %v14770_v36  ;;  %v14809_v36 = vpack.c.bf16 %v11503_v35, %v11502_v17  ;;  %v24861_v35 = vld [vmem:[#allocation34_spill] sm:$0xff] }
 0xac6   : > { %17550 = vmatmul.mubr.msk.bf16.gmra.mrb[244].mxu0 %vm24619_vm14, %v14773_v18  ;;  %vm12235_vm14 = vcmask 64512  }
 0xac7   : > { %17553 = vmatprep.mubr.msk.bf16.mxu0 %vm24621_vm6, %v14776_v34  ;;  %vm24856_vm6 = vnez %v24822_v55 }
 0xace   : > { %17554 = vmatmul.mubr.msk.bf16.gmra.mrb[248].mxu0 %vm24623_vm15, %v14779_v9  ;;  %vm24858_vm15 = vnez %v24826_v46 }
 0xacf   : > { %17557 = vmatprep.mubr.msk.bf16.mxu0 %vm24625_vm5, %v14782_v28  ;;  %vm24857_vm5 = vnez %v24824_v52 }
 0xad6   : > { %17558 = vmatmul.mubr.msk.bf16.gmra.mrb[252].mxu0 %vm24811_vm1, %v14785_v20 }
 0xad7   : > { %17561 = vmatprep.mubr.msk.bf16.mxu0 %vm24813_vm7, %v14788_v14 }
 0xade   : > { %17562 = vmatmul.mubr.msk.bf16.gmra.mrb[0].mxu0 %vm24815_vm11, %v14791_v53 }
 0xadf   : > { %17565 = vmatprep.mubr.msk.bf16.mxu0 %vm24817_vm3, %v14794_v24  ;;  %v24860_v24 = vld [vmem:[#allocation33_spill] sm:$0xff] }
 0xae6   : > { %17566 = vmatmul.mubr.msk.bf16.gmra.mrb[4].mxu0 %vm24819_vm4, %v14797_v27 }
 0xae7   : > { %17569 = vmatprep.mubr.msk.bf16.mxu0 %vm24821_vm10, %v14800_v5 }
 0xaee   : > { %17570 = vmatmul.mubr.msk.bf16.gmra.mrb[8].mxu0 %vm24856_vm6, %v14803_v15 }
 0xaef   : > { %17573 = vmatprep.mubr.msk.bf16.mxu0 %vm24857_vm5, %v14806_v2 }
 0xaf6   : > { %17574 = vmatmul.mubr.msk.bf16.gmra.mrb[12].mxu0 %vm24858_vm15, %v14809_v36 }
 0xb11   : > { %v16737_v11 = vpop.f32.mrb[48].mxu0 }
 0xb12   : > { %v16738_v21 = vpop.f32.mrb[49].mxu0 }
 0xb13   : > { %v16739_v51 = vadd.f32 %v16738_v21, %v16737_v11  ;;  %v16740_v56 = vpop.f32.mrb[50].mxu0  ;;  %v24862_v11 = vld [vmem:[#allocation37_spill] sm:$0xff] }
 0xb14   : > { %v16741_v41 = vpop.f32.mrb[51].mxu0 }
 0xb15   : > { %v16742_v18 = vadd.f32 %v16741_v41, %v16740_v56  ;;  %v23687_v44 = vadd.f32 %v23498_v6, %v16739_v51 }
 0xb17   : > { %v23690_v55 = vadd.f32 %v23504_v62, %v16742_v18 }
 0xb19   : > { %v16743_v52 = vpop.f32.mrb[52].mxu0 }
 0xb1a   : > { %v16744_v34 = vpop.f32.mrb[53].mxu0 }
 0xb1b   : > { %v16745_v61 = vadd.f32 %v16744_v34, %v16743_v52  ;;  %v16746_v50 = vpop.f32.mrb[54].mxu0  ;;  %v24863_v34 = vld [vmem:[#allocation38_spill] sm:$0xff] }
 0xb1c   : > { %v16747_v12 = vpop.f32.mrb[55].mxu0 }
 0xb1d   : > { %v16748_v9 = vadd.f32 %v16747_v12, %v16746_v50  ;;  %v23693_v46 = vadd.f32 %v23518_v16, %v16745_v61 }
 0xb1f   : > { %v23696_v32 = vadd.f32 %v23523_v48, %v16748_v9  ;;  %v24859_v48 = vld [vmem:[#allocation31_spill] sm:$0xff] }
 0xb21   : > { %v16749_v28 = vpop.f32.mrb[56].mxu0 }
 0xb22   : > { %v16750_v22 = vpop.f32.mrb[57].mxu0 }
 0xb23   : > { %v16751_v47 = vadd.f32 %v16750_v22, %v16749_v28  ;;  %v16752_v6 = vpop.f32.mrb[58].mxu0 }
 0xb24   : > { %v16753_v0 = vpop.f32.mrb[59].mxu0 }
 0xb25   : > { %v16754_v20 = vadd.f32 %v16753_v0, %v16752_v6  ;;  %v23699_v62 = vadd.f32 %v23528_v29, %v16751_v47  ;;  %v24864_v6 = vld [vmem:[#allocation41_spill] sm:$0xff] }
 0xb27   : > { %v23702_v13 = vadd.f32 %v23533_v23, %v16754_v20  ;;  %v24865_v20 = vld [vmem:[#allocation46_spill] sm:$0xff] }
 0xb29   : > { %v16755_v14 = vpop.f32.mrb[60].mxu0 }
 0xb2a   : > { %v16756_v4 = vpop.f32.mrb[61].mxu0 }
 0xb2b   : > { %v16757_v19 = vadd.f32 %v16756_v4, %v16755_v14  ;;  %v16758_v16 = vpop.f32.mrb[62].mxu0 }
 0xb2c   : > { %v16759_v59 = vpop.f32.mrb[63].mxu0 }
 0xb2d   : > { %v16760_v53 = vadd.f32 %v16759_v59, %v16758_v16  ;;  %v23705_v3 = vadd.f32 %v24859_v48, %v16757_v19 }
 0xb2f   : > { %v23708_v26 = vadd.f32 %v24860_v24, %v16760_v53 }
 0xb31   : > { %v16761_v25 = vpop.f32.mrb[64].mxu0 }
 0xb32   : > { %v16762_v57 = vpop.f32.mrb[65].mxu0 }
 0xb33   : > { %v16763_v27 = vadd.f32 %v16762_v57, %v16761_v25  ;;  %v16764_v29 = vpop.f32.mrb[66].mxu0 }
 0xb34   : > { %v16765_v39 = vpop.f32.mrb[67].mxu0 }
 0xb35   : > { %v16766_v5 = vadd.f32 %v16765_v39, %v16764_v29  ;;  %v23711_v23 = vadd.f32 %v23548_v38, %v16763_v27 }
 0xb37   : > { %v23714_v45 = vadd.f32 %v23553_v40, %v16766_v5 }
 0xb39   : > { %v16767_v8 = vpop.f32.mrb[68].mxu0 }
 0xb3a   : > { %v16768_v1 = vpop.f32.mrb[69].mxu0 }
 0xb3b   : > { %v16769_v37 = vadd.f32 %v16768_v1, %v16767_v8  ;;  %v16770_v15 = vpop.f32.mrb[70].mxu0  ;;  %v24866_v1 = vld [vmem:[#allocation49_spill] sm:$0xff] }
 0xb3c   : > { %v16771_v2 = vpop.f32.mrb[71].mxu0 }
 0xb3d   : > { %v16772_v17 = vadd.f32 %v16771_v2, %v16770_v15  ;;  %v23717_v36 = vadd.f32 %v24861_v35, %v16769_v37 }
 0xb3f   : > { %v23720_v21 = vadd.f32 %v24862_v11, %v16772_v17 }
 0xb41   : > { %v16773_v51 = vpop.f32.mrb[72].mxu0 }
 0xb42   : > { %v16774_v56 = vpop.f32.mrb[73].mxu0 }
 0xb43   : > { %v16775_v41 = vadd.f32 %v16774_v56, %v16773_v51  ;;  %v16776_v38 = vpop.f32.mrb[74].mxu0  ;;  %v24867_v51 = vld [vmem:[#allocation24_spill] sm:$0xff] }
 0xb44   : > { %v16777_v18 = vpop.f32.mrb[75].mxu0 }
 0xb45   : > { %v16778_v52 = vadd.f32 %v16777_v18, %v16776_v38  ;;  %v23723_v40 = vadd.f32 %v23571_v54, %v16775_v41 }
 0xb47   : > { %v23726_v61 = vadd.f32 %v24863_v34, %v16778_v52 }
 0xb49   : > { %v16779_v50 = vpop.f32.mrb[76].mxu0 }
 0xb4a   : > { %v16780_v12 = vpop.f32.mrb[77].mxu0 }
 0xb4b   : > { %v16781_v9 = vadd.f32 %v16780_v12, %v16779_v50  ;;  %v16782_v28 = vpop.f32.mrb[78].mxu0  ;;  %v24868_v12 = vld [vmem:[#allocation25_spill] sm:$0xff] }
 0xb4c   : > { %v16783_v22 = vpop.f32.mrb[79].mxu0 }
 0xb4d   : > { %v16784_v47 = vadd.f32 %v16783_v22, %v16782_v28  ;;  %v23729_v0 = vadd.f32 %v24864_v6, %v16781_v9 }
 0xb4f   : > { %v23732_v14 = vadd.f32 %v24865_v20, %v16784_v47 }
 0xb51   : > { %v16785_v4 = vpop.f32.mrb[80].mxu0 }
 0xb52   : > { %v16786_v19 = vpop.f32.mrb[81].mxu0 }
 0xb53   : > { %v16787_v16 = vadd.f32 %v16786_v19, %v16785_v4  ;;  %v16788_v54 = vpop.f32.mrb[82].mxu0  ;;  %v24869_v19 = vld [vmem:[#allocation27_spill] sm:$0xff] }
 0xb54   : > { %v16789_v59 = vpop.f32.mrb[83].mxu0 }
 0xb55   : > { %v16790_v53 = vadd.f32 %v16789_v59, %v16788_v54  ;;  %v23735_v48 = vadd.f32 %v23595_v60, %v16787_v16 }
 0xb57   : > { %v23738_v24 = vadd.f32 %v23599_v49, %v16790_v53 }
 0xb59   : > { %v16791_v25 = vpop.f32.mrb[84].mxu0 }
 0xb5a   : > { %v16792_v57 = vpop.f32.mrb[85].mxu0 }
 0xb5b   : > { %v16793_v27 = vadd.f32 %v16792_v57, %v16791_v25  ;;  %v16794_v29 = vpop.f32.mrb[86].mxu0 }
 0xb5c   : > { %v16795_v39 = vpop.f32.mrb[87].mxu0 }
 0xb5d   : > { %v16796_v5 = vadd.f32 %v16795_v39, %v16794_v29  ;;  %v23741_v8 = vadd.f32 %v23601_v7, %v16793_v27  ;;  %v24870_v29 = vld [vmem:[#allocation29_spill] sm:$0xff] }
 0xb5f   : > { %v23744_v37 = vadd.f32 %v24866_v1, %v16796_v5 }
 0xb61   : > { %v16797_v15 = vpop.f32.mrb[88].mxu0 }
 0xb62   : > { %v16798_v2 = vpop.f32.mrb[89].mxu0 }
 0xb63   : > { %v16799_v17 = vadd.f32 %v16798_v2, %v16797_v15  ;;  %v16800_v60 = vpop.f32.mrb[90].mxu0 }
 0xb64   : > { %v16801_v35 = vpop.f32.mrb[91].mxu0 }
 0xb65   : > { %v16802_v11 = vadd.f32 %v16801_v35, %v16800_v60  ;;  %v23747_v49 = vadd.f32 %v23608_v42, %v16799_v17 }
 0xb67   : > { %v23750_v56 = vadd.f32 %v24867_v51, %v16802_v11 }
 0xb69   : > { %v16803_v41 = vpop.f32.mrb[92].mxu0 }
 0xb6a   : > { %v16804_v38 = vpop.f32.mrb[93].mxu0 }
 0xb6b   : > { %v16805_v18 = vadd.f32 %v16804_v38, %v16803_v41  ;;  %v16806_v7 = vpop.f32.mrb[94].mxu0 }
 0xb6c   : > { %v16807_v52 = vpop.f32.mrb[95].mxu0 }
 0xb6d   : > { %v16808_v34 = vadd.f32 %v16807_v52, %v16806_v7  ;;  %v23753_v50 = vadd.f32 %v23614_v33, %v16805_v18 }
 0xb6f   : > { %v23756_v9 = vadd.f32 %v24868_v12, %v16808_v34 }
 0xb71   : > { %v16809_v28 = vpop.f32.mrb[96].mxu0 }
 0xb72   : > { %v16810_v22 = vpop.f32.mrb[97].mxu0 }
 0xb73   : > { %v16811_v47 = vadd.f32 %v16810_v22, %v16809_v28  ;;  %v16812_v42 = vpop.f32.mrb[98].mxu0 }
 0xb74   : > { %v16813_v6 = vpop.f32.mrb[99].mxu0 }
 0xb75   : > { %v16814_v20 = vadd.f32 %v16813_v6, %v16812_v42  ;;  %v23759_v4 = vadd.f32 %v23620_v31, %v16811_v47 }
 0xb77   : > { %v23762_v16 = vadd.f32 %v24869_v19, %v16814_v20 }
 0xb79   : > { %v16815_v54 = vpop.f32.mrb[100].mxu0 }
 0xb7a   : > { %v16816_v59 = vpop.f32.mrb[101].mxu0 }
 0xb7b   : > { %v16817_v53 = vadd.f32 %v16816_v59, %v16815_v54  ;;  %v16818_v33 = vpop.f32.mrb[102].mxu0 }
 0xb7c   : > { %v16819_v25 = vpop.f32.mrb[103].mxu0 }
 0xb7d   : > { %v16820_v57 = vadd.f32 %v16819_v25, %v16818_v33  ;;  %v23765_v27 = vadd.f32 %v23626_v43, %v16817_v53 }
 0xb7f   : > { %v23768_v39 = vadd.f32 %v24870_v29, %v16820_v57  ;;  %v18898_v57 = vld [vmem:[#allocation2 + $0x38] sm:$0xff] }
 0xb81   : > { %v16821_v5 = vpop.f32.mrb[104].mxu0 }
 0xb82   : > { %v16822_v1 = vpop.f32.mrb[105].mxu0 }
 0xb83   : > { %v16823_v15 = vadd.f32 %v16822_v1, %v16821_v5  ;;  %v16824_v31 = vpop.f32.mrb[106].mxu0 }
 0xb84   : > { %v16825_v2 = vpop.f32.mrb[107].mxu0 }
 0xb85   : > { %v16826_v17 = vadd.f32 %v16825_v2, %v16824_v31  ;;  %v23771_v60 = vadd.f32 %v23632_v10, %v16823_v15  ;;  %v23785_v10 = vld [vmem:[%s23927_s2 + $0x4] ss:$0 sm:$0xff]  ;;  %v18899_v15 = vld [vmem:[#allocation2 + $0x28] sm:$0xff] }
 0xb87   : > { %v23774_v35 = vadd.f32 %v23636_v30, %v16826_v17 }
 0xb89   : > { %v16827_v11 = vpop.f32.mrb[108].mxu0 }
 0xb8a   : > { %v16828_v51 = vpop.f32.mrb[109].mxu0 }
 0xb8b   : > { %v16829_v41 = vadd.f32 %v16828_v51, %v16827_v11  ;;  %v16830_v43 = vpop.f32.mrb[110].mxu0 }
 0xb8c   : > { %v16831_v38 = vpop.f32.mrb[111].mxu0 }
 0xb8d   : > { %v16832_v18 = vadd.f32 %v16831_v38, %v16830_v43  ;;  %v23777_v7 = vadd.f32 %v23638_v63, %v16829_v41 }
 0xb8f   : > { %v23780_v52 = vadd.f32 %v23642_v58, %v16832_v18 }
 0xb91   : > { %v17547_v34 = vpop.f32.mrb[240].mxu0 }
 0xb92   : > { %v17979_v30 = vadd.f32 %v23693_v46, %v17547_v34  ;;  %v11972_v12 = vpop.f32.mrb[241].mxu0 }
 0xb93   : > { %v17982_v28 = vadd.f32 %v23687_v44, %v11972_v12  ;;  %v17548_v22 = vpop.f32.mrb[242].mxu0 }
 0xb94   : > { %v12141_v47 = vadd.f32 %v17979_v30, %v23785_v10  ;;  %v17985_v63 = vadd.f32 %v23696_v32, %v17548_v22  ;;  %v11975_v42 = vpop.f32.mrb[243].mxu0  ;;  %v18896_v32 = vld [vmem:[#allocation2 + $0x30] sm:$0xff] }
 0xb95   : > { %v12139_v58 = vadd.f32 %v17982_v28, %v23785_v10  ;;  %v17988_v6 = vadd.f32 %v23690_v55, %v11975_v42  ;;  %v18897_v55 = vld [vmem:[#allocation2 + $0x20] sm:$0xff]  ;;  %v18900_v30 = vld [vmem:[#allocation2 + $0x50] sm:$0xff]  ;;  %v18902_v42 = vld [vmem:[#allocation2 + $0x58] sm:$0xff] }
 0xb96   : > { %v12173_v20 = vmul.f32 0.2, %v12141_v47  ;;  %v12142_v19 = vadd.f32 %v17985_v63, %v23785_v10 }
 0xb97   : > { %v12171_v44 = vmul.f32 0.2, %v12139_v58  ;;  %v12140_v46 = vadd.f32 %v17988_v6, %v23785_v10 }
 0xb98   : > { %v12205_v54 = vadd.f32 %v18896_v32, %v12173_v20  ;;  %v12174_v59 = vmul.f32 0.2, %v12142_v19  ;;  %v18903_v20 = vld [vmem:[#allocation2 + $0x48] sm:$0xff] }
 0xb99   : > { %v12203_v53 = vadd.f32 %v18897_v55, %v12171_v44  ;;  %v12172_v33 = vmul.f32 0.2, %v12140_v46  ;;  %v17551_v25 = vpop.f32.mrb[244].mxu0 }
 0xb9a   : > { %12238 = vst.msk [vmem:[%s23799_s30 + $0x10] sm:$0xff] %vm12235_vm14, %v12205_v54  ;;  %v12206_v29 = vadd.f32 %v18898_v57, %v12174_v59  ;;  %v17991_v5 = vadd.f32 %v23705_v3, %v17551_v25  ;;  %v11988_v1 = vpop.f32.mrb[245].mxu0  ;;  %v18904_v57 = vld [vmem:[#allocation2 + $0x70] sm:$0xff] }
 0xb9b   : > { %12236 = vst.msk [vmem:[%s23799_s30] sm:$0xff] %vm12235_vm14, %v12203_v53  ;;  %v12204_v31 = vadd.f32 %v18899_v15, %v12172_v33  ;;  %v17994_v2 = vadd.f32 %v23699_v62, %v11988_v1  ;;  %v17552_v17 = vpop.f32.mrb[246].mxu0 }
 0xb9c   : > { %12239 = vst.msk [vmem:[%s23799_s30 + $0x18] sm:$0xff] %vm12235_vm14, %v12206_v29  ;;  %v12145_v11 = vadd.f32 %v17991_v5, %v23785_v10  ;;  %v17997_v51 = vadd.f32 %v23708_v26, %v17552_v17  ;;  %v11991_v41 = vpop.f32.mrb[247].mxu0  ;;  %v18901_v26 = vld [vmem:[#allocation2 + $0x40] sm:$0xff] }
 0xb9d   : > { %12237 = vst.msk [vmem:[%s23799_s30 + $0x8] sm:$0xff] %vm12235_vm14, %v12204_v31  ;;  %v12143_v3 = vadd.f32 %v17994_v2, %v23785_v10  ;;  %v18000_v43 = vadd.f32 %v23702_v13, %v11991_v41  ;;  %v18906_v2 = vld [vmem:[#allocation2 + $0x78] sm:$0xff] }
 0xb9e   : > { %v12177_v38 = vmul.f32 0.2, %v12145_v11  ;;  %v12146_v18 = vadd.f32 %v17997_v51, %v23785_v10  ;;  %v18907_v51 = vld [vmem:[#allocation2 + $0x68] sm:$0xff] }
 0xb9f   : > { %v12175_v62 = vmul.f32 0.2, %v12143_v3  ;;  %v12144_v34 = vadd.f32 %v18000_v43, %v23785_v10 }
 0xba0   : > { %v12209_v12 = vadd.f32 %v18900_v30, %v12177_v38  ;;  %v12178_v28 = vmul.f32 0.2, %v12146_v18 }
 0xba1   : > { %v12207_v22 = vadd.f32 %v18901_v26, %v12175_v62  ;;  %v12176_v47 = vmul.f32 0.2, %v12144_v34  ;;  %v17555_v63 = vpop.f32.mrb[248].mxu0  ;;  %v18908_v26 = vld [vmem:[#allocation2 + $0x90] sm:$0xff] }
 0xba2   : > { %12242 = vst.msk [vmem:[%s23799_s30 + $0x30] sm:$0xff] %vm12235_vm14, %v12209_v12  ;;  %v12210_v13 = vadd.f32 %v18902_v42, %v12178_v28  ;;  %v18003_v58 = vadd.f32 %v23717_v36, %v17555_v63  ;;  %v12004_v6 = vpop.f32.mrb[249].mxu0 }
 0xba3   : > { %12240 = vst.msk [vmem:[%s23799_s30 + $0x20] sm:$0xff] %vm12235_vm14, %v12207_v22  ;;  %v12208_v19 = vadd.f32 %v18903_v20, %v12176_v47  ;;  %v18006_v44 = vadd.f32 %v23711_v23, %v12004_v6  ;;  %v17556_v46 = vpop.f32.mrb[250].mxu0 }
 0xba4   : > { %12243 = vst.msk [vmem:[%s23799_s30 + $0x38] sm:$0xff] %vm12235_vm14, %v12210_v13  ;;  %v12149_v32 = vadd.f32 %v18003_v58, %v23785_v10  ;;  %v18009_v54 = vadd.f32 %v23720_v21, %v17556_v46  ;;  %v12007_v59 = vpop.f32.mrb[251].mxu0  ;;  %v18905_v21 = vld [vmem:[#allocation2 + $0x60] sm:$0xff]  ;;  %v18910_v58 = vld [vmem:[#allocation2 + $0x98] sm:$0xff] }
 0xba5   : > { %12241 = vst.msk [vmem:[%s23799_s30 + $0x28] sm:$0xff] %vm12235_vm14, %v12208_v19  ;;  %v12147_v36 = vadd.f32 %v18006_v44, %v23785_v10  ;;  %v18012_v55 = vadd.f32 %v23714_v45, %v12007_v59  ;;  %v18911_v19 = vld [vmem:[#allocation2 + $0x88] sm:$0xff] }
 0xba6   : > { %v12181_v53 = vmul.f32 0.2, %v12149_v32  ;;  %v12150_v33 = vadd.f32 %v18009_v54, %v23785_v10 }
 0xba7   : > { %v12179_v23 = vmul.f32 0.2, %v12147_v36  ;;  %v12148_v25 = vadd.f32 %v18012_v55, %v23785_v10 }
 0xba8   : > { %v12213_v29 = vadd.f32 %v18904_v57, %v12181_v53  ;;  %v12182_v5 = vmul.f32 0.2, %v12150_v33 }
 0xba9   : > { %v12211_v1 = vadd.f32 %v18905_v21, %v12179_v23  ;;  %v12180_v15 = vmul.f32 0.2, %v12148_v25  ;;  %v17559_v31 = vpop.f32.mrb[252].mxu0  ;;  %v18912_v25 = vld [vmem:[#allocation2 + $0xb0] sm:$0xff] }
 0xbaa   : > { %12246 = vst.msk [vmem:[%s23799_s30 + $0x50] sm:$0xff] %vm12235_vm14, %v12213_v29  ;;  %v12214_v45 = vadd.f32 %v18906_v2, %v12182_v5  ;;  %v18015_v17 = vadd.f32 %v23729_v0, %v17559_v31  ;;  %v12020_v11 = vpop.f32.mrb[253].mxu0 }
 0xbab   : > { %12244 = vst.msk [vmem:[%s23799_s30 + $0x40] sm:$0xff] %vm12235_vm14, %v12211_v1  ;;  %v12212_v41 = vadd.f32 %v18907_v51, %v12180_v15  ;;  %v18018_v3 = vadd.f32 %v23723_v40, %v12020_v11  ;;  %v17560_v43 = vpop.f32.mrb[254].mxu0  ;;  %v18914_v15 = vld [vmem:[#allocation2 + $0xb8] sm:$0xff] }
 0xbac   : > { %12247 = vst.msk [vmem:[%s23799_s30 + $0x58] sm:$0xff] %vm12235_vm14, %v12214_v45  ;;  %v12153_v38 = vadd.f32 %v18015_v17, %v23785_v10  ;;  %v18021_v18 = vadd.f32 %v23732_v14, %v17560_v43  ;;  %v12023_v62 = vpop.f32.mrb[255].mxu0  ;;  %v18909_v14 = vld [vmem:[#allocation2 + $0x80] sm:$0xff]  ;;  %v18915_v45 = vld [vmem:[#allocation2 + $0xa8] sm:$0xff] }
 0xbad   : > { %12245 = vst.msk [vmem:[%s23799_s30 + $0x48] sm:$0xff] %vm12235_vm14, %v12212_v41  ;;  %v12151_v0 = vadd.f32 %v18018_v3, %v23785_v10  ;;  %v18024_v34 = vadd.f32 %v23726_v61, %v12023_v62 }
 0xbae   : > { %v12185_v30 = vmul.f32 0.2, %v12153_v38  ;;  %v12154_v12 = vadd.f32 %v18021_v18, %v23785_v10 }
 0xbaf   : > { %v12183_v40 = vmul.f32 0.2, %v12151_v0  ;;  %v12152_v28 = vadd.f32 %v18024_v34, %v23785_v10  ;;  %v18916_v34 = vld [vmem:[#allocation2 + $0xd0] sm:$0xff] }
 0xbb0   : > { %v12217_v22 = vadd.f32 %v18908_v26, %v12185_v30  ;;  %v12186_v47 = vmul.f32 0.2, %v12154_v12 }
 0xbb1   : > { %v12215_v63 = vadd.f32 %v18909_v14, %v12183_v40  ;;  %v12184_v42 = vmul.f32 0.2, %v12152_v28  ;;  %v17563_v13 = vpop.f32.mrb[0].mxu0 }
 0xbb2   : > { %12250 = vst.msk [vmem:[%s23799_s30 + $0x70] sm:$0xff] %vm12235_vm14, %v12217_v22  ;;  %v12218_v61 = vadd.f32 %v18910_v58, %v12186_v47  ;;  %v18027_v6 = vadd.f32 %v23741_v8, %v17563_v13  ;;  %v12036_v20 = vpop.f32.mrb[1].mxu0  ;;  %v18918_v22 = vld [vmem:[#allocation2 + $0xd8] sm:$0xff] }
 0xbb3   : > { %12248 = vst.msk [vmem:[%s23799_s30 + $0x60] sm:$0xff] %vm12235_vm14, %v12215_v63  ;;  %v12216_v44 = vadd.f32 %v18911_v19, %v12184_v42  ;;  %v18030_v46 = vadd.f32 %v23735_v48, %v12036_v20  ;;  %v17564_v32 = vpop.f32.mrb[2].mxu0  ;;  %v18919_v63 = vld [vmem:[#allocation2 + $0xc8] sm:$0xff] }
 0xbb4   : > { %12251 = vst.msk [vmem:[%s23799_s30 + $0x78] sm:$0xff] %vm12235_vm14, %v12218_v61  ;;  %v12157_v54 = vadd.f32 %v18027_v6, %v23785_v10  ;;  %v18033_v59 = vadd.f32 %v23744_v37, %v17564_v32  ;;  %v12039_v36 = vpop.f32.mrb[3].mxu0  ;;  %v18913_v37 = vld [vmem:[#allocation2 + $0xa0] sm:$0xff] }
 0xbb5   : > { %12249 = vst.msk [vmem:[%s23799_s30 + $0x68] sm:$0xff] %vm12235_vm14, %v12216_v44  ;;  %v12155_v8 = vadd.f32 %v18030_v46, %v23785_v10  ;;  %v18036_v55 = vadd.f32 %v23738_v24, %v12039_v36 }
 0xbb6   : > { %v12189_v53 = vmul.f32 0.2, %v12157_v54  ;;  %v12158_v33 = vadd.f32 %v18033_v59, %v23785_v10  ;;  %v18920_v54 = vld [vmem:[#allocation2 + $0xf0] sm:$0xff] }
 0xbb7   : > { %v12187_v48 = vmul.f32 0.2, %v12155_v8  ;;  %v12156_v23 = vadd.f32 %v18036_v55, %v23785_v10 }
 0xbb8   : > { %v12221_v57 = vadd.f32 %v18912_v25, %v12189_v53  ;;  %v12190_v29 = vmul.f32 0.2, %v12158_v33  ;;  %v18922_v33 = vld [vmem:[#allocation2 + $0xf8] sm:$0xff]  ;;  %v18923_v25 = vld [vmem:[#allocation2 + $0xe8] sm:$0xff] }
 0xbb9   : > { %v12219_v5 = vadd.f32 %v18913_v37, %v12187_v48  ;;  %v12188_v21 = vmul.f32 0.2, %v12156_v23  ;;  %v17567_v1 = vpop.f32.mrb[4].mxu0 }
 0xbba   : > { %12254 = vst.msk [vmem:[%s23799_s30 + $0x90] sm:$0xff] %vm12235_vm14, %v12221_v57  ;;  %v12222_v24 = vadd.f32 %v18914_v15, %v12190_v29  ;;  %v18039_v31 = vadd.f32 %v23753_v50, %v17567_v1  ;;  %v12052_v2 = vpop.f32.mrb[5].mxu0 }
 0xbbb   : > { %12252 = vst.msk [vmem:[%s23799_s30 + $0x80] sm:$0xff] %vm12235_vm14, %v12219_v5  ;;  %v12220_v17 = vadd.f32 %v18915_v45, %v12188_v21  ;;  %v18042_v11 = vadd.f32 %v23747_v49, %v12052_v2  ;;  %v17568_v51 = vpop.f32.mrb[6].mxu0  ;;  %v18924_v45 = vld [vmem:[#allocation2 + $0x110] sm:$0xff] }
 0xbbc   : > { %12255 = vst.msk [vmem:[%s23799_s30 + $0x98] sm:$0xff] %vm12235_vm14, %v12222_v24  ;;  %v12161_v41 = vadd.f32 %v18039_v31, %v23785_v10  ;;  %v18045_v3 = vadd.f32 %v23756_v9, %v17568_v51  ;;  %v12055_v43 = vpop.f32.mrb[7].mxu0  ;;  %v18917_v9 = vld [vmem:[#allocation2 + $0xc0] sm:$0xff] }
 0xbbd   : > { %12253 = vst.msk [vmem:[%s23799_s30 + $0x88] sm:$0xff] %vm12235_vm14, %v12220_v17  ;;  %v12159_v50 = vadd.f32 %v18042_v11, %v23785_v10  ;;  %v18048_v38 = vadd.f32 %v23750_v56, %v12055_v43 }
 0xbbe   : > { %v12193_v18 = vmul.f32 0.2, %v12161_v41  ;;  %v12162_v62 = vadd.f32 %v18045_v3, %v23785_v10  ;;  %v18926_v3 = vld [vmem:[#allocation2 + $0x118] sm:$0xff] }
 0xbbf   : > { %v12191_v49 = vmul.f32 0.2, %v12159_v50  ;;  %v12160_v0 = vadd.f32 %v18048_v38, %v23785_v10 }
 0xbc0   : > { %v12225_v30 = vadd.f32 %v18916_v34, %v12193_v18  ;;  %v12194_v12 = vmul.f32 0.2, %v12162_v62 }
 0xbc1   : > { %v12223_v40 = vadd.f32 %v18917_v9, %v12191_v49  ;;  %v12192_v28 = vmul.f32 0.2, %v12160_v0  ;;  %v17571_v26 = vpop.f32.mrb[8].mxu0 }
 0xbc2   : > { %12258 = vst.msk [vmem:[%s23799_s30 + $0xb0] sm:$0xff] %vm12235_vm14, %v12225_v30  ;;  %v12226_v56 = vadd.f32 %v18918_v22, %v12194_v12  ;;  %v18051_v47 = vadd.f32 %v23765_v27, %v17571_v26  ;;  %v12068_v14 = vpop.f32.mrb[9].mxu0 }
 0xbc3   : > { %12256 = vst.msk [vmem:[%s23799_s30 + $0xa0] sm:$0xff] %vm12235_vm14, %v12223_v40  ;;  %v12224_v42 = vadd.f32 %v18919_v63, %v12192_v28  ;;  %v18054_v13 = vadd.f32 %v23759_v4, %v12068_v14  ;;  %v17572_v58 = vpop.f32.mrb[10].mxu0 }
 0xbc4   : > { %12259 = vst.msk [vmem:[%s23799_s30 + $0xb8] sm:$0xff] %vm12235_vm14, %v12226_v56  ;;  %v12165_v61 = vadd.f32 %v18051_v47, %v23785_v10  ;;  %v18057_v6 = vadd.f32 %v23768_v39, %v17572_v58  ;;  %v12071_v20 = vpop.f32.mrb[11].mxu0  ;;  %v18921_v39 = vld [vmem:[#allocation2 + $0xe0] sm:$0xff] }
 0xbc5   : > { %12257 = vst.msk [vmem:[%s23799_s30 + $0xa8] sm:$0xff] %vm12235_vm14, %v12224_v42  ;;  %v12163_v27 = vadd.f32 %v18054_v13, %v23785_v10  ;;  %v18060_v19 = vadd.f32 %v23762_v16, %v12071_v20 }
 0xbc6   : > { %v12197_v44 = vmul.f32 0.2, %v12165_v61  ;;  %v12166_v46 = vadd.f32 %v18057_v6, %v23785_v10 }
 0xbc7   : > { %v12195_v4 = vmul.f32 0.2, %v12163_v27  ;;  %v12164_v32 = vadd.f32 %v18060_v19, %v23785_v10 }
 0xbc8   : > { %v12229_v59 = vadd.f32 %v18920_v54, %v12197_v44  ;;  %v12198_v36 = vmul.f32 0.2, %v12166_v46 }
 0xbc9   : > { %v12227_v8 = vadd.f32 %v18921_v39, %v12195_v4  ;;  %v12196_v55 = vmul.f32 0.2, %v12164_v32  ;;  %v17575_v53 = vpop.f32.mrb[12].mxu0 }
 0xbca   : > { %12262 = vst.msk [vmem:[%s23799_s30 + $0xd0] sm:$0xff] %vm12235_vm14, %v12229_v59  ;;  %v12230_v16 = vadd.f32 %v18922_v33, %v12198_v36  ;;  %v18063_v48 = vadd.f32 %v23777_v7, %v17575_v53  ;;  %v12084_v23 = vpop.f32.mrb[13].mxu0 }
 0xbcb   : > { %12260 = vst.msk [vmem:[%s23799_s30 + $0xc0] sm:$0xff] %vm12235_vm14, %v12227_v8  ;;  %v12228_v57 = vadd.f32 %v18923_v25, %v12196_v55  ;;  %v18066_v29 = vadd.f32 %v23771_v60, %v12084_v23  ;;  %v17576_v37 = vpop.f32.mrb[14].mxu0 }
 0xbcc   : > { %12263 = vst.msk [vmem:[%s23799_s30 + $0xd8] sm:$0xff] %vm12235_vm14, %v12230_v16  ;;  %v12169_v5 = vadd.f32 %v18063_v48, %v23785_v10  ;;  %v18069_v21 = vadd.f32 %v23780_v52, %v17576_v37  ;;  %v12087_v1 = vpop.f32.mrb[15].mxu0  ;;  %v18925_v52 = vld [vmem:[#allocation2 + $0x100] sm:$0xff] }
 0xbcd   : > { %12261 = vst.msk [vmem:[%s23799_s30 + $0xc8] sm:$0xff] %vm12235_vm14, %v12228_v57  ;;  %v12167_v7 = vadd.f32 %v18066_v29, %v23785_v10  ;;  %v18072_v15 = vadd.f32 %v23774_v35, %v12087_v1  ;;  %v18927_v35 = vld [vmem:[#allocation2 + $0x108] sm:$0xff] }
 0xbce   : > { %v12201_v24 = vmul.f32 0.2, %v12169_v5  ;;  %v12170_v60 = vadd.f32 %v18069_v21, %v23785_v10 }
 0xbcf   : > { %v12199_v31 = vmul.f32 0.2, %v12167_v7  ;;  %v12168_v2 = vadd.f32 %v18072_v15, %v23785_v10 }
 0xbd0   : > { %v12233_v17 = vadd.f32 %v18924_v45, %v12201_v24  ;;  %v12202_v11 = vmul.f32 0.2, %v12170_v60 }
 0xbd1   : > { %v12231_v51 = vadd.f32 %v18925_v52, %v12199_v31  ;;  %v12200_v41 = vmul.f32 0.2, %v12168_v2 }
 0xbd2   : > { %12266 = vst.msk [vmem:[%s23799_s30 + $0xf0] sm:$0xff] %vm12235_vm14, %v12233_v17  ;;  %v12234_v43 = vadd.f32 %v18926_v3, %v12202_v11 }
 0xbd3   : > { %12264 = vst.msk [vmem:[%s23799_s30 + $0xe0] sm:$0xff] %vm12235_vm14, %v12231_v51  ;;  %v12232_v50 = vadd.f32 %v18927_v35, %v12200_v41 }
 0xbd4   : > { %12267 = vst.msk [vmem:[%s23799_s30 + $0xf8] sm:$0xff] %vm12235_vm14, %v12234_v43 }
 0xbd5   : > { %12265 = vst.msk [vmem:[%s23799_s30 + $0xe8] sm:$0xff] %vm12235_vm14, %v12232_v50 }
 0xbd6 PF: > { %s13_s12 = sadd.s32 1, %s18934_s12  }
 0xbd7   : > { %p10_p4 = scmp.ge.s32.totalorder %s13_s12, 4  }
 0xbd9   :  { %12 = sbr.rel (!%p10_p4) target bundleno = 1 (0x1), region = 80 }

</bundles_post_ra>
